<compile_context>
chip_gen: v6e
topology: v6e:2x2x1
jax: 0.10.0
libtpu: 0.0.40
codegen_flags: <defaults>
</compile_context>

<pallas_src>
import functools

import jax
import jax.numpy as jnp
from jax.experimental import pallas as pl
from jax.experimental.pallas import tpu as pltpu


K5 = 5                      # conv kernel size
COUT_PAD = 128              # conv matmul output lanes (Cout padded -> lane dense)
CIN1_PAD = 8                # conv1's single input channel padded so MXU K != 1
VMEM_LIMIT = 48 * 1024 * 1024   # headroom under v7x's 64 MiB physical VMEM


def _round_up(x, m):
    return (x + m - 1) // m * m


# ----------------------------------------------------------------------------
# Pallas kernels
# ----------------------------------------------------------------------------
def conv_pool_kernel(x_ref, w_ref, b_ref, o_ref, row_ref, *, H, W, Cout):
    """Fused 5x5 conv (stride 1, pad 2) + bias + ReLU + 2x2/2 maxpool.

    x_ref:  (1, Lp, Cin)  f32, flat padded image, row = i*Wp + j
    w_ref:  (25, Cin, 128) bf16, tap-major weights (Cout zero-padded to 128)
    b_ref:  (1, 128)      f32
    o_ref:  (1, H//2, W//2, Cout) f32 pooled output
    row_ref: VMEM scratch (2*Wp, 128) f32 -- one 2-row conv band
    """
    Wp = W + 4
    Hpool, Wpool = H // 2, W // 2
    chunk = 2 * Wp                       # two conv-output image rows per step

    @pl.loop(0, Hpool)
    def _(ip):
        base = 2 * ip * Wp               # flat row of this band's first output
        # conv band: 25 shifted-window matmuls accumulated in f32 registers
        acc = jnp.zeros((chunk, COUT_PAD), jnp.float32)
        for kh in range(K5):
            for kw in range(K5):
                xs = x_ref[0, pl.ds(base + kh * Wp + kw, chunk), :]
                acc = acc + jnp.dot(xs.astype(jnp.bfloat16),
                                    w_ref[kh * K5 + kw],
                                    preferred_element_type=jnp.float32)
        row_ref[...] = acc
        # fused pool: strided reads pick the four members of each 2x2 quad.
        # max commutes with +bias and with ReLU, so the epilogue runs on the
        # small pooled tile only.
        q = jnp.maximum(
            jnp.maximum(row_ref[pl.ds(0, Wpool, 2), :],
                        row_ref[pl.ds(1, Wpool, 2), :]),
            jnp.maximum(row_ref[pl.ds(Wp, Wpool, 2), :],
                        row_ref[pl.ds(Wp + 1, Wpool, 2), :]))
        q = jnp.maximum(q + b_ref[...], 0.0)
        o_ref[0, ip] = q[:, :Cout].astype(o_ref.dtype)


def matmul_bias_act_kernel(a_ref, w_ref, b_ref, o_ref, *, relu):
    acc = jnp.dot(a_ref[...], w_ref[...], preferred_element_type=jnp.float32)
    acc = acc + b_ref[...]
    if relu:
        acc = jnp.maximum(acc, 0.0)
    o_ref[...] = acc.astype(o_ref.dtype)


# ----------------------------------------------------------------------------
# Wrappers
# ----------------------------------------------------------------------------
def conv_relu_pool(x_flat, w_shift, bias, *, H, W, Cin, Cout):
    """x_flat: (N, Lp, Cin) f32 flat padded image.  Returns (N, H/2, W/2, Cout)."""
    N, Lp, cin = x_flat.shape
    assert cin == Cin
    Wp = W + 4
    Hpool, Wpool = H // 2, W // 2
    kernel = functools.partial(conv_pool_kernel, H=H, W=W, Cout=Cout)
    return pl.pallas_call(
        kernel,
        out_shape=jax.ShapeDtypeStruct((N, Hpool, Wpool, Cout), jnp.float32),
        grid=(N,),
        in_specs=[
            pl.BlockSpec((1, Lp, Cin), lambda n: (n, 0, 0)),
            pl.BlockSpec((K5 * K5, Cin, COUT_PAD), lambda n: (0, 0, 0)),
            pl.BlockSpec((1, COUT_PAD), lambda n: (0, 0)),
        ],
        out_specs=pl.BlockSpec((1, Hpool, Wpool, Cout), lambda n: (n, 0, 0, 0)),
        scratch_shapes=[pltpu.VMEM((2 * Wp, COUT_PAD), jnp.float32)],
        compiler_params=pltpu.CompilerParams(
            dimension_semantics=("parallel",),
            vmem_limit_bytes=VMEM_LIMIT),
    )(x_flat, w_shift, bias)


def fused_matmul(a, w, b, *, relu, tm=512):
    """relu?(a @ w + b): M-tiled, weight resident, bf16 MXU inputs, f32 epilogue."""
    M, K = a.shape
    Kw, N = w.shape
    assert K == Kw
    a = a.astype(jnp.bfloat16)
    Mp = _round_up(M, 8)
    if Mp > tm:
        Mp = _round_up(M, tm)
        TM = tm
    else:
        TM = Mp
    if Mp != M:
        a = jnp.pad(a, ((0, Mp - M), (0, 0)))
    out = pl.pallas_call(
        functools.partial(matmul_bias_act_kernel, relu=relu),
        out_shape=jax.ShapeDtypeStruct((Mp, N), jnp.float32),
        grid=(Mp // TM,),
        in_specs=[
            pl.BlockSpec((TM, K), lambda i: (i, 0)),
            pl.BlockSpec((K, N), lambda i: (0, 0)),   # resident across the grid
            pl.BlockSpec((1, N), lambda i: (0, 0)),
        ],
        out_specs=pl.BlockSpec((TM, N), lambda i: (i, 0)),
        compiler_params=pltpu.CompilerParams(
            dimension_semantics=("parallel",),
            vmem_limit_bytes=VMEM_LIMIT),
    )(a, w.astype(jnp.bfloat16), b.astype(jnp.float32))
    return out[:M]


def _flat_pad_image(x_nhwc):
    """Pad spatially by 2, flatten (H,W) row-major, append zero rows so every
    in-kernel 5x5 tap window stays in bounds."""
    N, H, W, C = x_nhwc.shape
    Hp, Wp = H + 4, W + 4
    Lp = _round_up(Hp * Wp + 4, 8)
    x = jnp.pad(x_nhwc, ((0, 0), (2, 2), (2, 2), (0, 0)))
    x = x.reshape(N, Hp * Wp, C)
    return jnp.pad(x, ((0, 0), (0, Lp - Hp * Wp), (0, 0)))


# ----------------------------------------------------------------------------
# Parameters (PyTorch-native layouts -> one-time TPU layouts)
# ----------------------------------------------------------------------------
def init_params(key):
    """Random params in the same layouts PyTorch uses (Conv2d: (out,in,kh,kw),
    Linear: (out,in)); fc1 columns are NCHW-flatten ordered like torch."""
    ks = jax.random.split(key, 8)
    s = 0.05
    return {
        "conv1_w": s * jax.random.normal(ks[0], (32, 1, 5, 5), jnp.float32),
        "conv1_b": s * jax.random.normal(ks[1], (32,), jnp.float32),
        "conv2_w": s * jax.random.normal(ks[2], (64, 32, 5, 5), jnp.float32),
        "conv2_b": s * jax.random.normal(ks[3], (64,), jnp.float32),
        "fc1_w": s * jax.random.normal(ks[4], (512, 7 * 7 * 64), jnp.float32),
        "fc1_b": s * jax.random.normal(ks[5], (512,), jnp.float32),
        "fc2_w": s * jax.random.normal(ks[6], (10, 512), jnp.float32),
        "fc2_b": s * jax.random.normal(ks[7], (10,), jnp.float32),
    }


def prepare_params(p):
    """One-time (init-time) layout prep: tap-major conv weights with padded
    Cin/Cout, bf16 MXU weights, f32 biases, and fc1 rows permuted
    (c,h,w)->(h,w,c) so the runtime NCHW transpose disappears."""
    w1 = jnp.transpose(p["conv1_w"], (2, 3, 1, 0)).reshape(25, 1, 32)
    w1 = jnp.pad(w1, ((0, 0), (0, CIN1_PAD - 1), (0, COUT_PAD - 32)))
    b1 = jnp.pad(p["conv1_b"], (0, COUT_PAD - 32)).reshape(1, COUT_PAD)

    w2 = jnp.transpose(p["conv2_w"], (2, 3, 1, 0)).reshape(25, 32, 64)
    w2 = jnp.pad(w2, ((0, 0), (0, 0), (0, COUT_PAD - 64)))
    b2 = jnp.pad(p["conv2_b"], (0, COUT_PAD - 64)).reshape(1, COUT_PAD)

    wf1 = (p["fc1_w"].T.reshape(64, 7, 7, 512)
           .transpose(1, 2, 0, 3).reshape(7 * 7 * 64, 512))
    bf1 = p["fc1_b"].reshape(1, 512)

    wf2 = jnp.pad(p["fc2_w"].T, ((0, 0), (0, 128 - 10)))
    bf2 = jnp.pad(p["fc2_b"], (0, 128 - 10)).reshape(1, 128)

    return {
        "w1": w1.astype(jnp.bfloat16), "b1": b1.astype(jnp.float32),
        "w2": w2.astype(jnp.bfloat16), "b2": b2.astype(jnp.float32),
        "wf1": wf1.astype(jnp.bfloat16), "bf1": bf1.astype(jnp.float32),
        "wf2": wf2.astype(jnp.bfloat16), "bf2": bf2.astype(jnp.float32),
    }


# ----------------------------------------------------------------------------
# Model: Mnist_CNN forward
# ----------------------------------------------------------------------------
@jax.jit
def mnist_cnn_forward(inputs, params):
    # inputs.view(-1, 1, 28, 28); single channel -> NHWC with C=1
    x = inputs.reshape(-1, 28, 28, 1).astype(jnp.float32)
    N = x.shape[0]

    # conv1 + relu + pool1  (input channel zero-padded 1 -> 8 for the MXU K dim)
    x = jnp.pad(x, ((0, 0), (0, 0), (0, 0), (0, CIN1_PAD - 1)))
    x = _flat_pad_image(x)                                        # (N, 1032, 8)
    h = conv_relu_pool(x, params["w1"], params["b1"],
                       H=28, W=28, Cin=CIN1_PAD, Cout=32)         # (N,14,14,32)

    # conv2 + relu + pool2
    h = _flat_pad_image(h)                                        # (N, 328, 32)
    h = conv_relu_pool(h, params["w2"], params["b2"],
                       H=14, W=14, Cin=32, Cout=64)               # (N, 7, 7,64)

    # NHWC flatten; wf1 rows were permuted at init to match torch's NCHW view
    h = h.reshape(N, 7 * 7 * 64)
    h = fused_matmul(h, params["wf1"], params["bf1"], relu=True)     # (N, 512)
    logits = fused_matmul(h, params["wf2"], params["bf2"], relu=False)  # (N,128)
    return logits[:, :10]


if __name__ == "__main__":
    key = jax.random.PRNGKey(0)
    pkey, xkey = jax.random.split(key)
    params = prepare_params(init_params(pkey))

    # MNIST-style flattened input; forward hard-codes view(-1, 1, 28, 28)
    x = jax.random.normal(xkey, (2, 784), jnp.float32)

    out = mnist_cnn_forward(x, params)
    jax.block_until_ready(out)
    assert out.shape == (2, 10), out.shape
    print("KERNEL_OK")
</pallas_src>

<mosaic_0001>
module attributes {stable_mosaic.version = 11 : i64} {
  func.func @conv_pool_kernel(%arg0: i32, %arg1: memref<1x1032x8xf32, #tpu.memory_space<vmem>>, %arg2: memref<25x8x128xbf16, #tpu.memory_space<vmem>>, %arg3: memref<1x128xf32, #tpu.memory_space<vmem>>, %arg4: memref<1x14x14x32xf32, #tpu.memory_space<vmem>>, %arg5: memref<64x128xf32, #tpu.memory_space<vmem>>) attributes {dimension_semantics = [#tpu.dimension_semantics<parallel>], iteration_bounds = array<i64: 2>, scalar_prefetch = 0 : i64, scratch_operands = 1 : i64, tpu.core_type = #tpu.core_type<tc>, window_params = [{transform_indices = @transform_0, window_bounds = array<i64: 1, 1032, 8>}, {pipeline_mode = #tpu.pipeline_mode<synchronous>, transform_indices = @transform_1, window_bounds = array<i64: 25, 8, 128>}, {pipeline_mode = #tpu.pipeline_mode<synchronous>, transform_indices = @transform_2, window_bounds = array<i64: 1, 128>}, {transform_indices = @transform_3, window_bounds = array<i64: 1, 14, 14, 32>}]} {
    %c0_i32 = arith.constant 0 : i32
    %c14_i32 = arith.constant 14 : i32
    %0 = arith.addi %c0_i32, %c14_i32 : i32
    %c1_i32 = arith.constant 1 : i32
    scf.for %arg6 = %c0_i32 to %0 step %c1_i32  : i32 {
      %c1_i32_1 = arith.constant 1 : i32
      %1 = arith.muli %arg6, %c1_i32_1 : i32
      %c0_i32_2 = arith.constant 0 : i32
      %2 = arith.addi %c0_i32_2, %1 : i32
      %c2_i32 = arith.constant 2 : i32
      %3 = arith.muli %c2_i32, %2 : i32
      %c32_i32 = arith.constant 32 : i32
      %4 = arith.muli %3, %c32_i32 : i32
      %cst = arith.constant 0.000000e+00 : f32
      %5 = vector.broadcast %cst : f32 to vector<64x128xf32>
      %c0_i32_3 = arith.constant 0 : i32
      %6 = arith.addi %4, %c0_i32_3 : i32
      %c0_i32_4 = arith.constant 0 : i32
      %7 = arith.addi %6, %c0_i32_4 : i32
      %c0 = arith.constant 0 : index
      %8 = arith.index_cast %7 : i32 to index
      %c0_5 = arith.constant 0 : index
      %9 = vector.load %arg1[%c0, %8, %c0_5] : memref<1x1032x8xf32, #tpu.memory_space<vmem>>, vector<1x64x8xf32>
      %10 = vector.shape_cast %9 : vector<1x64x8xf32> to vector<64x8xf32>
      %11 = arith.truncf %10 : vector<64x8xf32> to vector<64x8xbf16>
      %c0_6 = arith.constant 0 : index
      %c0_7 = arith.constant 0 : index
      %c0_8 = arith.constant 0 : index
      %12 = vector.load %arg2[%c0_6, %c0_7, %c0_8] : memref<25x8x128xbf16, #tpu.memory_space<vmem>>, vector<1x8x128xbf16>
      %13 = vector.shape_cast %12 : vector<1x8x128xbf16> to vector<8x128xbf16>
      %cst_9 = arith.constant dense<0.000000e+00> : vector<64x128xf32>
      %14 = tpu.matmul %11, %13, %cst_9 {dimension_numbers = #tpu.dot_dimension_numbers<[1], [0], [0], [1], [0, 0, 1, 1], [], []>} : vector<64x8xbf16>, vector<8x128xbf16>, vector<64x128xf32> -> vector<64x128xf32>
      %15 = arith.addf %5, %14 : vector<64x128xf32>
      %c0_i32_10 = arith.constant 0 : i32
      %16 = arith.addi %4, %c0_i32_10 : i32
      %c1_i32_11 = arith.constant 1 : i32
      %17 = arith.addi %16, %c1_i32_11 : i32
      %c0_12 = arith.constant 0 : index
      %18 = arith.index_cast %17 : i32 to index
      %c0_13 = arith.constant 0 : index
      %19 = vector.load %arg1[%c0_12, %18, %c0_13] : memref<1x1032x8xf32, #tpu.memory_space<vmem>>, vector<1x64x8xf32>
      %20 = vector.shape_cast %19 : vector<1x64x8xf32> to vector<64x8xf32>
      %21 = arith.truncf %20 : vector<64x8xf32> to vector<64x8xbf16>
      %c1 = arith.constant 1 : index
      %c0_14 = arith.constant 0 : index
      %c0_15 = arith.constant 0 : index
      %22 = vector.load %arg2[%c1, %c0_14, %c0_15] : memref<25x8x128xbf16, #tpu.memory_space<vmem>>, vector<1x8x128xbf16>
      %23 = vector.shape_cast %22 : vector<1x8x128xbf16> to vector<8x128xbf16>
      %cst_16 = arith.constant dense<0.000000e+00> : vector<64x128xf32>
      %24 = tpu.matmul %21, %23, %cst_16 {dimension_numbers = #tpu.dot_dimension_numbers<[1], [0], [0], [1], [0, 0, 1, 1], [], []>} : vector<64x8xbf16>, vector<8x128xbf16>, vector<64x128xf32> -> vector<64x128xf32>
      %25 = arith.addf %15, %24 : vector<64x128xf32>
      %c0_i32_17 = arith.constant 0 : i32
      %26 = arith.addi %4, %c0_i32_17 : i32
      %c2_i32_18 = arith.constant 2 : i32
      %27 = arith.addi %26, %c2_i32_18 : i32
      %c0_19 = arith.constant 0 : index
      %28 = arith.index_cast %27 : i32 to index
      %c0_20 = arith.constant 0 : index
      %29 = vector.load %arg1[%c0_19, %28, %c0_20] : memref<1x1032x8xf32, #tpu.memory_space<vmem>>, vector<1x64x8xf32>
      %30 = vector.shape_cast %29 : vector<1x64x8xf32> to vector<64x8xf32>
      %31 = arith.truncf %30 : vector<64x8xf32> to vector<64x8xbf16>
      %c2 = arith.constant 2 : index
      %c0_21 = arith.constant 0 : index
      %c0_22 = arith.constant 0 : index
      %32 = vector.load %arg2[%c2, %c0_21, %c0_22] : memref<25x8x128xbf16, #tpu.memory_space<vmem>>, vector<1x8x128xbf16>
      %33 = vector.shape_cast %32 : vector<1x8x128xbf16> to vector<8x128xbf16>
      %cst_23 = arith.constant dense<0.000000e+00> : vector<64x128xf32>
      %34 = tpu.matmul %31, %33, %cst_23 {dimension_numbers = #tpu.dot_dimension_numbers<[1], [0], [0], [1], [0, 0, 1, 1], [], []>} : vector<64x8xbf16>, vector<8x128xbf16>, vector<64x128xf32> -> vector<64x128xf32>
      %35 = arith.addf %25, %34 : vector<64x128xf32>
      %c0_i32_24 = arith.constant 0 : i32
      %36 = arith.addi %4, %c0_i32_24 : i32
      %c3_i32 = arith.constant 3 : i32
      %37 = arith.addi %36, %c3_i32 : i32
      %c0_25 = arith.constant 0 : index
      %38 = arith.index_cast %37 : i32 to index
      %c0_26 = arith.constant 0 : index
      %39 = vector.load %arg1[%c0_25, %38, %c0_26] : memref<1x1032x8xf32, #tpu.memory_space<vmem>>, vector<1x64x8xf32>
      %40 = vector.shape_cast %39 : vector<1x64x8xf32> to vector<64x8xf32>
      %41 = arith.truncf %40 : vector<64x8xf32> to vector<64x8xbf16>
      %c3 = arith.constant 3 : index
      %c0_27 = arith.constant 0 : index
      %c0_28 = arith.constant 0 : index
      %42 = vector.load %arg2[%c3, %c0_27, %c0_28] : memref<25x8x128xbf16, #tpu.memory_space<vmem>>, vector<1x8x128xbf16>
      %43 = vector.shape_cast %42 : vector<1x8x128xbf16> to vector<8x128xbf16>
      %cst_29 = arith.constant dense<0.000000e+00> : vector<64x128xf32>
      %44 = tpu.matmul %41, %43, %cst_29 {dimension_numbers = #tpu.dot_dimension_numbers<[1], [0], [0], [1], [0, 0, 1, 1], [], []>} : vector<64x8xbf16>, vector<8x128xbf16>, vector<64x128xf32> -> vector<64x128xf32>
      %45 = arith.addf %35, %44 : vector<64x128xf32>
      %c0_i32_30 = arith.constant 0 : i32
      %46 = arith.addi %4, %c0_i32_30 : i32
      %c4_i32 = arith.constant 4 : i32
      %47 = arith.addi %46, %c4_i32 : i32
      %c0_31 = arith.constant 0 : index
      %48 = arith.index_cast %47 : i32 to index
      %c0_32 = arith.constant 0 : index
      %49 = vector.load %arg1[%c0_31, %48, %c0_32] : memref<1x1032x8xf32, #tpu.memory_space<vmem>>, vector<1x64x8xf32>
      %50 = vector.shape_cast %49 : vector<1x64x8xf32> to vector<64x8xf32>
      %51 = arith.truncf %50 : vector<64x8xf32> to vector<64x8xbf16>
      %c4 = arith.constant 4 : index
      %c0_33 = arith.constant 0 : index
      %c0_34 = arith.constant 0 : index
      %52 = vector.load %arg2[%c4, %c0_33, %c0_34] : memref<25x8x128xbf16, #tpu.memory_space<vmem>>, vector<1x8x128xbf16>
      %53 = vector.shape_cast %52 : vector<1x8x128xbf16> to vector<8x128xbf16>
      %cst_35 = arith.constant dense<0.000000e+00> : vector<64x128xf32>
      %54 = tpu.matmul %51, %53, %cst_35 {dimension_numbers = #tpu.dot_dimension_numbers<[1], [0], [0], [1], [0, 0, 1, 1], [], []>} : vector<64x8xbf16>, vector<8x128xbf16>, vector<64x128xf32> -> vector<64x128xf32>
      %55 = arith.addf %45, %54 : vector<64x128xf32>
      %c32_i32_36 = arith.constant 32 : i32
      %56 = arith.addi %4, %c32_i32_36 : i32
      %c0_i32_37 = arith.constant 0 : i32
      %57 = arith.addi %56, %c0_i32_37 : i32
      %c0_38 = arith.constant 0 : index
      %58 = arith.index_cast %57 : i32 to index
      %c0_39 = arith.constant 0 : index
      %59 = vector.load %arg1[%c0_38, %58, %c0_39] : memref<1x1032x8xf32, #tpu.memory_space<vmem>>, vector<1x64x8xf32>
      %60 = vector.shape_cast %59 : vector<1x64x8xf32> to vector<64x8xf32>
      %61 = arith.truncf %60 : vector<64x8xf32> to vector<64x8xbf16>
      %c5 = arith.constant 5 : index
      %c0_40 = arith.constant 0 : index
      %c0_41 = arith.constant 0 : index
      %62 = vector.load %arg2[%c5, %c0_40, %c0_41] : memref<25x8x128xbf16, #tpu.memory_space<vmem>>, vector<1x8x128xbf16>
      %63 = vector.shape_cast %62 : vector<1x8x128xbf16> to vector<8x128xbf16>
      %cst_42 = arith.constant dense<0.000000e+00> : vector<64x128xf32>
      %64 = tpu.matmul %61, %63, %cst_42 {dimension_numbers = #tpu.dot_dimension_numbers<[1], [0], [0], [1], [0, 0, 1, 1], [], []>} : vector<64x8xbf16>, vector<8x128xbf16>, vector<64x128xf32> -> vector<64x128xf32>
      %65 = arith.addf %55, %64 : vector<64x128xf32>
      %c32_i32_43 = arith.constant 32 : i32
      %66 = arith.addi %4, %c32_i32_43 : i32
      %c1_i32_44 = arith.constant 1 : i32
      %67 = arith.addi %66, %c1_i32_44 : i32
      %c0_45 = arith.constant 0 : index
      %68 = arith.index_cast %67 : i32 to index
      %c0_46 = arith.constant 0 : index
      %69 = vector.load %arg1[%c0_45, %68, %c0_46] : memref<1x1032x8xf32, #tpu.memory_space<vmem>>, vector<1x64x8xf32>
      %70 = vector.shape_cast %69 : vector<1x64x8xf32> to vector<64x8xf32>
      %71 = arith.truncf %70 : vector<64x8xf32> to vector<64x8xbf16>
      %c6 = arith.constant 6 : index
      %c0_47 = arith.constant 0 : index
      %c0_48 = arith.constant 0 : index
      %72 = vector.load %arg2[%c6, %c0_47, %c0_48] : memref<25x8x128xbf16, #tpu.memory_space<vmem>>, vector<1x8x128xbf16>
      %73 = vector.shape_cast %72 : vector<1x8x128xbf16> to vector<8x128xbf16>
      %cst_49 = arith.constant dense<0.000000e+00> : vector<64x128xf32>
      %74 = tpu.matmul %71, %73, %cst_49 {dimension_numbers = #tpu.dot_dimension_numbers<[1], [0], [0], [1], [0, 0, 1, 1], [], []>} : vector<64x8xbf16>, vector<8x128xbf16>, vector<64x128xf32> -> vector<64x128xf32>
      %75 = arith.addf %65, %74 : vector<64x128xf32>
      %c32_i32_50 = arith.constant 32 : i32
      %76 = arith.addi %4, %c32_i32_50 : i32
      %c2_i32_51 = arith.constant 2 : i32
      %77 = arith.addi %76, %c2_i32_51 : i32
      %c0_52 = arith.constant 0 : index
      %78 = arith.index_cast %77 : i32 to index
      %c0_53 = arith.constant 0 : index
      %79 = vector.load %arg1[%c0_52, %78, %c0_53] : memref<1x1032x8xf32, #tpu.memory_space<vmem>>, vector<1x64x8xf32>
      %80 = vector.shape_cast %79 : vector<1x64x8xf32> to vector<64x8xf32>
      %81 = arith.truncf %80 : vector<64x8xf32> to vector<64x8xbf16>
      %c7 = arith.constant 7 : index
      %c0_54 = arith.constant 0 : index
      %c0_55 = arith.constant 0 : index
      %82 = vector.load %arg2[%c7, %c0_54, %c0_55] : memref<25x8x128xbf16, #tpu.memory_space<vmem>>, vector<1x8x128xbf16>
      %83 = vector.shape_cast %82 : vector<1x8x128xbf16> to vector<8x128xbf16>
      %cst_56 = arith.constant dense<0.000000e+00> : vector<64x128xf32>
      %84 = tpu.matmul %81, %83, %cst_56 {dimension_numbers = #tpu.dot_dimension_numbers<[1], [0], [0], [1], [0, 0, 1, 1], [], []>} : vector<64x8xbf16>, vector<8x128xbf16>, vector<64x128xf32> -> vector<64x128xf32>
      %85 = arith.addf %75, %84 : vector<64x128xf32>
      %c32_i32_57 = arith.constant 32 : i32
      %86 = arith.addi %4, %c32_i32_57 : i32
      %c3_i32_58 = arith.constant 3 : i32
      %87 = arith.addi %86, %c3_i32_58 : i32
      %c0_59 = arith.constant 0 : index
      %88 = arith.index_cast %87 : i32 to index
      %c0_60 = arith.constant 0 : index
      %89 = vector.load %arg1[%c0_59, %88, %c0_60] : memref<1x1032x8xf32, #tpu.memory_space<vmem>>, vector<1x64x8xf32>
      %90 = vector.shape_cast %89 : vector<1x64x8xf32> to vector<64x8xf32>
      %91 = arith.truncf %90 : vector<64x8xf32> to vector<64x8xbf16>
      %c8 = arith.constant 8 : index
      %c0_61 = arith.constant 0 : index
      %c0_62 = arith.constant 0 : index
      %92 = vector.load %arg2[%c8, %c0_61, %c0_62] : memref<25x8x128xbf16, #tpu.memory_space<vmem>>, vector<1x8x128xbf16>
      %93 = vector.shape_cast %92 : vector<1x8x128xbf16> to vector<8x128xbf16>
      %cst_63 = arith.constant dense<0.000000e+00> : vector<64x128xf32>
      %94 = tpu.matmul %91, %93, %cst_63 {dimension_numbers = #tpu.dot_dimension_numbers<[1], [0], [0], [1], [0, 0, 1, 1], [], []>} : vector<64x8xbf16>, vector<8x128xbf16>, vector<64x128xf32> -> vector<64x128xf32>
      %95 = arith.addf %85, %94 : vector<64x128xf32>
      %c32_i32_64 = arith.constant 32 : i32
      %96 = arith.addi %4, %c32_i32_64 : i32
      %c4_i32_65 = arith.constant 4 : i32
      %97 = arith.addi %96, %c4_i32_65 : i32
      %c0_66 = arith.constant 0 : index
      %98 = arith.index_cast %97 : i32 to index
      %c0_67 = arith.constant 0 : index
      %99 = vector.load %arg1[%c0_66, %98, %c0_67] : memref<1x1032x8xf32, #tpu.memory_space<vmem>>, vector<1x64x8xf32>
      %100 = vector.shape_cast %99 : vector<1x64x8xf32> to vector<64x8xf32>
      %101 = arith.truncf %100 : vector<64x8xf32> to vector<64x8xbf16>
      %c9 = arith.constant 9 : index
      %c0_68 = arith.constant 0 : index
      %c0_69 = arith.constant 0 : index
      %102 = vector.load %arg2[%c9, %c0_68, %c0_69] : memref<25x8x128xbf16, #tpu.memory_space<vmem>>, vector<1x8x128xbf16>
      %103 = vector.shape_cast %102 : vector<1x8x128xbf16> to vector<8x128xbf16>
      %cst_70 = arith.constant dense<0.000000e+00> : vector<64x128xf32>
      %104 = tpu.matmul %101, %103, %cst_70 {dimension_numbers = #tpu.dot_dimension_numbers<[1], [0], [0], [1], [0, 0, 1, 1], [], []>} : vector<64x8xbf16>, vector<8x128xbf16>, vector<64x128xf32> -> vector<64x128xf32>
      %105 = arith.addf %95, %104 : vector<64x128xf32>
      %c64_i32 = arith.constant 64 : i32
      %106 = arith.addi %4, %c64_i32 : i32
      %c0_i32_71 = arith.constant 0 : i32
      %107 = arith.addi %106, %c0_i32_71 : i32
      %c0_72 = arith.constant 0 : index
      %108 = arith.index_cast %107 : i32 to index
      %c0_73 = arith.constant 0 : index
      %109 = vector.load %arg1[%c0_72, %108, %c0_73] : memref<1x1032x8xf32, #tpu.memory_space<vmem>>, vector<1x64x8xf32>
      %110 = vector.shape_cast %109 : vector<1x64x8xf32> to vector<64x8xf32>
      %111 = arith.truncf %110 : vector<64x8xf32> to vector<64x8xbf16>
      %c10 = arith.constant 10 : index
      %c0_74 = arith.constant 0 : index
      %c0_75 = arith.constant 0 : index
      %112 = vector.load %arg2[%c10, %c0_74, %c0_75] : memref<25x8x128xbf16, #tpu.memory_space<vmem>>, vector<1x8x128xbf16>
      %113 = vector.shape_cast %112 : vector<1x8x128xbf16> to vector<8x128xbf16>
      %cst_76 = arith.constant dense<0.000000e+00> : vector<64x128xf32>
      %114 = tpu.matmul %111, %113, %cst_76 {dimension_numbers = #tpu.dot_dimension_numbers<[1], [0], [0], [1], [0, 0, 1, 1], [], []>} : vector<64x8xbf16>, vector<8x128xbf16>, vector<64x128xf32> -> vector<64x128xf32>
      %115 = arith.addf %105, %114 : vector<64x128xf32>
      %c64_i32_77 = arith.constant 64 : i32
      %116 = arith.addi %4, %c64_i32_77 : i32
      %c1_i32_78 = arith.constant 1 : i32
      %117 = arith.addi %116, %c1_i32_78 : i32
      %c0_79 = arith.constant 0 : index
      %118 = arith.index_cast %117 : i32 to index
      %c0_80 = arith.constant 0 : index
      %119 = vector.load %arg1[%c0_79, %118, %c0_80] : memref<1x1032x8xf32, #tpu.memory_space<vmem>>, vector<1x64x8xf32>
      %120 = vector.shape_cast %119 : vector<1x64x8xf32> to vector<64x8xf32>
      %121 = arith.truncf %120 : vector<64x8xf32> to vector<64x8xbf16>
      %c11 = arith.constant 11 : index
      %c0_81 = arith.constant 0 : index
      %c0_82 = arith.constant 0 : index
      %122 = vector.load %arg2[%c11, %c0_81, %c0_82] : memref<25x8x128xbf16, #tpu.memory_space<vmem>>, vector<1x8x128xbf16>
      %123 = vector.shape_cast %122 : vector<1x8x128xbf16> to vector<8x128xbf16>
      %cst_83 = arith.constant dense<0.000000e+00> : vector<64x128xf32>
      %124 = tpu.matmul %121, %123, %cst_83 {dimension_numbers = #tpu.dot_dimension_numbers<[1], [0], [0], [1], [0, 0, 1, 1], [], []>} : vector<64x8xbf16>, vector<8x128xbf16>, vector<64x128xf32> -> vector<64x128xf32>
      %125 = arith.addf %115, %124 : vector<64x128xf32>
      %c64_i32_84 = arith.constant 64 : i32
      %126 = arith.addi %4, %c64_i32_84 : i32
      %c2_i32_85 = arith.constant 2 : i32
      %127 = arith.addi %126, %c2_i32_85 : i32
      %c0_86 = arith.constant 0 : index
      %128 = arith.index_cast %127 : i32 to index
      %c0_87 = arith.constant 0 : index
      %129 = vector.load %arg1[%c0_86, %128, %c0_87] : memref<1x1032x8xf32, #tpu.memory_space<vmem>>, vector<1x64x8xf32>
      %130 = vector.shape_cast %129 : vector<1x64x8xf32> to vector<64x8xf32>
      %131 = arith.truncf %130 : vector<64x8xf32> to vector<64x8xbf16>
      %c12 = arith.constant 12 : index
      %c0_88 = arith.constant 0 : index
      %c0_89 = arith.constant 0 : index
      %132 = vector.load %arg2[%c12, %c0_88, %c0_89] : memref<25x8x128xbf16, #tpu.memory_space<vmem>>, vector<1x8x128xbf16>
      %133 = vector.shape_cast %132 : vector<1x8x128xbf16> to vector<8x128xbf16>
      %cst_90 = arith.constant dense<0.000000e+00> : vector<64x128xf32>
      %134 = tpu.matmul %131, %133, %cst_90 {dimension_numbers = #tpu.dot_dimension_numbers<[1], [0], [0], [1], [0, 0, 1, 1], [], []>} : vector<64x8xbf16>, vector<8x128xbf16>, vector<64x128xf32> -> vector<64x128xf32>
      %135 = arith.addf %125, %134 : vector<64x128xf32>
      %c64_i32_91 = arith.constant 64 : i32
      %136 = arith.addi %4, %c64_i32_91 : i32
      %c3_i32_92 = arith.constant 3 : i32
      %137 = arith.addi %136, %c3_i32_92 : i32
      %c0_93 = arith.constant 0 : index
      %138 = arith.index_cast %137 : i32 to index
      %c0_94 = arith.constant 0 : index
      %139 = vector.load %arg1[%c0_93, %138, %c0_94] : memref<1x1032x8xf32, #tpu.memory_space<vmem>>, vector<1x64x8xf32>
      %140 = vector.shape_cast %139 : vector<1x64x8xf32> to vector<64x8xf32>
      %141 = arith.truncf %140 : vector<64x8xf32> to vector<64x8xbf16>
      %c13 = arith.constant 13 : index
      %c0_95 = arith.constant 0 : index
      %c0_96 = arith.constant 0 : index
      %142 = vector.load %arg2[%c13, %c0_95, %c0_96] : memref<25x8x128xbf16, #tpu.memory_space<vmem>>, vector<1x8x128xbf16>
      %143 = vector.shape_cast %142 : vector<1x8x128xbf16> to vector<8x128xbf16>
      %cst_97 = arith.constant dense<0.000000e+00> : vector<64x128xf32>
      %144 = tpu.matmul %141, %143, %cst_97 {dimension_numbers = #tpu.dot_dimension_numbers<[1], [0], [0], [1], [0, 0, 1, 1], [], []>} : vector<64x8xbf16>, vector<8x128xbf16>, vector<64x128xf32> -> vector<64x128xf32>
      %145 = arith.addf %135, %144 : vector<64x128xf32>
      %c64_i32_98 = arith.constant 64 : i32
      %146 = arith.addi %4, %c64_i32_98 : i32
      %c4_i32_99 = arith.constant 4 : i32
      %147 = arith.addi %146, %c4_i32_99 : i32
      %c0_100 = arith.constant 0 : index
      %148 = arith.index_cast %147 : i32 to index
      %c0_101 = arith.constant 0 : index
      %149 = vector.load %arg1[%c0_100, %148, %c0_101] : memref<1x1032x8xf32, #tpu.memory_space<vmem>>, vector<1x64x8xf32>
      %150 = vector.shape_cast %149 : vector<1x64x8xf32> to vector<64x8xf32>
      %151 = arith.truncf %150 : vector<64x8xf32> to vector<64x8xbf16>
      %c14 = arith.constant 14 : index
      %c0_102 = arith.constant 0 : index
      %c0_103 = arith.constant 0 : index
      %152 = vector.load %arg2[%c14, %c0_102, %c0_103] : memref<25x8x128xbf16, #tpu.memory_space<vmem>>, vector<1x8x128xbf16>
      %153 = vector.shape_cast %152 : vector<1x8x128xbf16> to vector<8x128xbf16>
      %cst_104 = arith.constant dense<0.000000e+00> : vector<64x128xf32>
      %154 = tpu.matmul %151, %153, %cst_104 {dimension_numbers = #tpu.dot_dimension_numbers<[1], [0], [0], [1], [0, 0, 1, 1], [], []>} : vector<64x8xbf16>, vector<8x128xbf16>, vector<64x128xf32> -> vector<64x128xf32>
      %155 = arith.addf %145, %154 : vector<64x128xf32>
      %c96_i32 = arith.constant 96 : i32
      %156 = arith.addi %4, %c96_i32 : i32
      %c0_i32_105 = arith.constant 0 : i32
      %157 = arith.addi %156, %c0_i32_105 : i32
      %c0_106 = arith.constant 0 : index
      %158 = arith.index_cast %157 : i32 to index
      %c0_107 = arith.constant 0 : index
      %159 = vector.load %arg1[%c0_106, %158, %c0_107] : memref<1x1032x8xf32, #tpu.memory_space<vmem>>, vector<1x64x8xf32>
      %160 = vector.shape_cast %159 : vector<1x64x8xf32> to vector<64x8xf32>
      %161 = arith.truncf %160 : vector<64x8xf32> to vector<64x8xbf16>
      %c15 = arith.constant 15 : index
      %c0_108 = arith.constant 0 : index
      %c0_109 = arith.constant 0 : index
      %162 = vector.load %arg2[%c15, %c0_108, %c0_109] : memref<25x8x128xbf16, #tpu.memory_space<vmem>>, vector<1x8x128xbf16>
      %163 = vector.shape_cast %162 : vector<1x8x128xbf16> to vector<8x128xbf16>
      %cst_110 = arith.constant dense<0.000000e+00> : vector<64x128xf32>
      %164 = tpu.matmul %161, %163, %cst_110 {dimension_numbers = #tpu.dot_dimension_numbers<[1], [0], [0], [1], [0, 0, 1, 1], [], []>} : vector<64x8xbf16>, vector<8x128xbf16>, vector<64x128xf32> -> vector<64x128xf32>
      %165 = arith.addf %155, %164 : vector<64x128xf32>
      %c96_i32_111 = arith.constant 96 : i32
      %166 = arith.addi %4, %c96_i32_111 : i32
      %c1_i32_112 = arith.constant 1 : i32
      %167 = arith.addi %166, %c1_i32_112 : i32
      %c0_113 = arith.constant 0 : index
      %168 = arith.index_cast %167 : i32 to index
      %c0_114 = arith.constant 0 : index
      %169 = vector.load %arg1[%c0_113, %168, %c0_114] : memref<1x1032x8xf32, #tpu.memory_space<vmem>>, vector<1x64x8xf32>
      %170 = vector.shape_cast %169 : vector<1x64x8xf32> to vector<64x8xf32>
      %171 = arith.truncf %170 : vector<64x8xf32> to vector<64x8xbf16>
      %c16 = arith.constant 16 : index
      %c0_115 = arith.constant 0 : index
      %c0_116 = arith.constant 0 : index
      %172 = vector.load %arg2[%c16, %c0_115, %c0_116] : memref<25x8x128xbf16, #tpu.memory_space<vmem>>, vector<1x8x128xbf16>
      %173 = vector.shape_cast %172 : vector<1x8x128xbf16> to vector<8x128xbf16>
      %cst_117 = arith.constant dense<0.000000e+00> : vector<64x128xf32>
      %174 = tpu.matmul %171, %173, %cst_117 {dimension_numbers = #tpu.dot_dimension_numbers<[1], [0], [0], [1], [0, 0, 1, 1], [], []>} : vector<64x8xbf16>, vector<8x128xbf16>, vector<64x128xf32> -> vector<64x128xf32>
      %175 = arith.addf %165, %174 : vector<64x128xf32>
      %c96_i32_118 = arith.constant 96 : i32
      %176 = arith.addi %4, %c96_i32_118 : i32
      %c2_i32_119 = arith.constant 2 : i32
      %177 = arith.addi %176, %c2_i32_119 : i32
      %c0_120 = arith.constant 0 : index
      %178 = arith.index_cast %177 : i32 to index
      %c0_121 = arith.constant 0 : index
      %179 = vector.load %arg1[%c0_120, %178, %c0_121] : memref<1x1032x8xf32, #tpu.memory_space<vmem>>, vector<1x64x8xf32>
      %180 = vector.shape_cast %179 : vector<1x64x8xf32> to vector<64x8xf32>
      %181 = arith.truncf %180 : vector<64x8xf32> to vector<64x8xbf16>
      %c17 = arith.constant 17 : index
      %c0_122 = arith.constant 0 : index
      %c0_123 = arith.constant 0 : index
      %182 = vector.load %arg2[%c17, %c0_122, %c0_123] : memref<25x8x128xbf16, #tpu.memory_space<vmem>>, vector<1x8x128xbf16>
      %183 = vector.shape_cast %182 : vector<1x8x128xbf16> to vector<8x128xbf16>
      %cst_124 = arith.constant dense<0.000000e+00> : vector<64x128xf32>
      %184 = tpu.matmul %181, %183, %cst_124 {dimension_numbers = #tpu.dot_dimension_numbers<[1], [0], [0], [1], [0, 0, 1, 1], [], []>} : vector<64x8xbf16>, vector<8x128xbf16>, vector<64x128xf32> -> vector<64x128xf32>
      %185 = arith.addf %175, %184 : vector<64x128xf32>
      %c96_i32_125 = arith.constant 96 : i32
      %186 = arith.addi %4, %c96_i32_125 : i32
      %c3_i32_126 = arith.constant 3 : i32
      %187 = arith.addi %186, %c3_i32_126 : i32
      %c0_127 = arith.constant 0 : index
      %188 = arith.index_cast %187 : i32 to index
      %c0_128 = arith.constant 0 : index
      %189 = vector.load %arg1[%c0_127, %188, %c0_128] : memref<1x1032x8xf32, #tpu.memory_space<vmem>>, vector<1x64x8xf32>
      %190 = vector.shape_cast %189 : vector<1x64x8xf32> to vector<64x8xf32>
      %191 = arith.truncf %190 : vector<64x8xf32> to vector<64x8xbf16>
      %c18 = arith.constant 18 : index
      %c0_129 = arith.constant 0 : index
      %c0_130 = arith.constant 0 : index
      %192 = vector.load %arg2[%c18, %c0_129, %c0_130] : memref<25x8x128xbf16, #tpu.memory_space<vmem>>, vector<1x8x128xbf16>
      %193 = vector.shape_cast %192 : vector<1x8x128xbf16> to vector<8x128xbf16>
      %cst_131 = arith.constant dense<0.000000e+00> : vector<64x128xf32>
      %194 = tpu.matmul %191, %193, %cst_131 {dimension_numbers = #tpu.dot_dimension_numbers<[1], [0], [0], [1], [0, 0, 1, 1], [], []>} : vector<64x8xbf16>, vector<8x128xbf16>, vector<64x128xf32> -> vector<64x128xf32>
      %195 = arith.addf %185, %194 : vector<64x128xf32>
      %c96_i32_132 = arith.constant 96 : i32
      %196 = arith.addi %4, %c96_i32_132 : i32
      %c4_i32_133 = arith.constant 4 : i32
      %197 = arith.addi %196, %c4_i32_133 : i32
      %c0_134 = arith.constant 0 : index
      %198 = arith.index_cast %197 : i32 to index
      %c0_135 = arith.constant 0 : index
      %199 = vector.load %arg1[%c0_134, %198, %c0_135] : memref<1x1032x8xf32, #tpu.memory_space<vmem>>, vector<1x64x8xf32>
      %200 = vector.shape_cast %199 : vector<1x64x8xf32> to vector<64x8xf32>
      %201 = arith.truncf %200 : vector<64x8xf32> to vector<64x8xbf16>
      %c19 = arith.constant 19 : index
      %c0_136 = arith.constant 0 : index
      %c0_137 = arith.constant 0 : index
      %202 = vector.load %arg2[%c19, %c0_136, %c0_137] : memref<25x8x128xbf16, #tpu.memory_space<vmem>>, vector<1x8x128xbf16>
      %203 = vector.shape_cast %202 : vector<1x8x128xbf16> to vector<8x128xbf16>
      %cst_138 = arith.constant dense<0.000000e+00> : vector<64x128xf32>
      %204 = tpu.matmul %201, %203, %cst_138 {dimension_numbers = #tpu.dot_dimension_numbers<[1], [0], [0], [1], [0, 0, 1, 1], [], []>} : vector<64x8xbf16>, vector<8x128xbf16>, vector<64x128xf32> -> vector<64x128xf32>
      %205 = arith.addf %195, %204 : vector<64x128xf32>
      %c128_i32 = arith.constant 128 : i32
      %206 = arith.addi %4, %c128_i32 : i32
      %c0_i32_139 = arith.constant 0 : i32
      %207 = arith.addi %206, %c0_i32_139 : i32
      %c0_140 = arith.constant 0 : index
      %208 = arith.index_cast %207 : i32 to index
      %c0_141 = arith.constant 0 : index
      %209 = vector.load %arg1[%c0_140, %208, %c0_141] : memref<1x1032x8xf32, #tpu.memory_space<vmem>>, vector<1x64x8xf32>
      %210 = vector.shape_cast %209 : vector<1x64x8xf32> to vector<64x8xf32>
      %211 = arith.truncf %210 : vector<64x8xf32> to vector<64x8xbf16>
      %c20 = arith.constant 20 : index
      %c0_142 = arith.constant 0 : index
      %c0_143 = arith.constant 0 : index
      %212 = vector.load %arg2[%c20, %c0_142, %c0_143] : memref<25x8x128xbf16, #tpu.memory_space<vmem>>, vector<1x8x128xbf16>
      %213 = vector.shape_cast %212 : vector<1x8x128xbf16> to vector<8x128xbf16>
      %cst_144 = arith.constant dense<0.000000e+00> : vector<64x128xf32>
      %214 = tpu.matmul %211, %213, %cst_144 {dimension_numbers = #tpu.dot_dimension_numbers<[1], [0], [0], [1], [0, 0, 1, 1], [], []>} : vector<64x8xbf16>, vector<8x128xbf16>, vector<64x128xf32> -> vector<64x128xf32>
      %215 = arith.addf %205, %214 : vector<64x128xf32>
      %c128_i32_145 = arith.constant 128 : i32
      %216 = arith.addi %4, %c128_i32_145 : i32
      %c1_i32_146 = arith.constant 1 : i32
      %217 = arith.addi %216, %c1_i32_146 : i32
      %c0_147 = arith.constant 0 : index
      %218 = arith.index_cast %217 : i32 to index
      %c0_148 = arith.constant 0 : index
      %219 = vector.load %arg1[%c0_147, %218, %c0_148] : memref<1x1032x8xf32, #tpu.memory_space<vmem>>, vector<1x64x8xf32>
      %220 = vector.shape_cast %219 : vector<1x64x8xf32> to vector<64x8xf32>
      %221 = arith.truncf %220 : vector<64x8xf32> to vector<64x8xbf16>
      %c21 = arith.constant 21 : index
      %c0_149 = arith.constant 0 : index
      %c0_150 = arith.constant 0 : index
      %222 = vector.load %arg2[%c21, %c0_149, %c0_150] : memref<25x8x128xbf16, #tpu.memory_space<vmem>>, vector<1x8x128xbf16>
      %223 = vector.shape_cast %222 : vector<1x8x128xbf16> to vector<8x128xbf16>
      %cst_151 = arith.constant dense<0.000000e+00> : vector<64x128xf32>
      %224 = tpu.matmul %221, %223, %cst_151 {dimension_numbers = #tpu.dot_dimension_numbers<[1], [0], [0], [1], [0, 0, 1, 1], [], []>} : vector<64x8xbf16>, vector<8x128xbf16>, vector<64x128xf32> -> vector<64x128xf32>
      %225 = arith.addf %215, %224 : vector<64x128xf32>
      %c128_i32_152 = arith.constant 128 : i32
      %226 = arith.addi %4, %c128_i32_152 : i32
      %c2_i32_153 = arith.constant 2 : i32
      %227 = arith.addi %226, %c2_i32_153 : i32
      %c0_154 = arith.constant 0 : index
      %228 = arith.index_cast %227 : i32 to index
      %c0_155 = arith.constant 0 : index
      %229 = vector.load %arg1[%c0_154, %228, %c0_155] : memref<1x1032x8xf32, #tpu.memory_space<vmem>>, vector<1x64x8xf32>
      %230 = vector.shape_cast %229 : vector<1x64x8xf32> to vector<64x8xf32>
      %231 = arith.truncf %230 : vector<64x8xf32> to vector<64x8xbf16>
      %c22 = arith.constant 22 : index
      %c0_156 = arith.constant 0 : index
      %c0_157 = arith.constant 0 : index
      %232 = vector.load %arg2[%c22, %c0_156, %c0_157] : memref<25x8x128xbf16, #tpu.memory_space<vmem>>, vector<1x8x128xbf16>
      %233 = vector.shape_cast %232 : vector<1x8x128xbf16> to vector<8x128xbf16>
      %cst_158 = arith.constant dense<0.000000e+00> : vector<64x128xf32>
      %234 = tpu.matmul %231, %233, %cst_158 {dimension_numbers = #tpu.dot_dimension_numbers<[1], [0], [0], [1], [0, 0, 1, 1], [], []>} : vector<64x8xbf16>, vector<8x128xbf16>, vector<64x128xf32> -> vector<64x128xf32>
      %235 = arith.addf %225, %234 : vector<64x128xf32>
      %c128_i32_159 = arith.constant 128 : i32
      %236 = arith.addi %4, %c128_i32_159 : i32
      %c3_i32_160 = arith.constant 3 : i32
      %237 = arith.addi %236, %c3_i32_160 : i32
      %c0_161 = arith.constant 0 : index
      %238 = arith.index_cast %237 : i32 to index
      %c0_162 = arith.constant 0 : index
      %239 = vector.load %arg1[%c0_161, %238, %c0_162] : memref<1x1032x8xf32, #tpu.memory_space<vmem>>, vector<1x64x8xf32>
      %240 = vector.shape_cast %239 : vector<1x64x8xf32> to vector<64x8xf32>
      %241 = arith.truncf %240 : vector<64x8xf32> to vector<64x8xbf16>
      %c23 = arith.constant 23 : index
      %c0_163 = arith.constant 0 : index
      %c0_164 = arith.constant 0 : index
      %242 = vector.load %arg2[%c23, %c0_163, %c0_164] : memref<25x8x128xbf16, #tpu.memory_space<vmem>>, vector<1x8x128xbf16>
      %243 = vector.shape_cast %242 : vector<1x8x128xbf16> to vector<8x128xbf16>
      %cst_165 = arith.constant dense<0.000000e+00> : vector<64x128xf32>
      %244 = tpu.matmul %241, %243, %cst_165 {dimension_numbers = #tpu.dot_dimension_numbers<[1], [0], [0], [1], [0, 0, 1, 1], [], []>} : vector<64x8xbf16>, vector<8x128xbf16>, vector<64x128xf32> -> vector<64x128xf32>
      %245 = arith.addf %235, %244 : vector<64x128xf32>
      %c128_i32_166 = arith.constant 128 : i32
      %246 = arith.addi %4, %c128_i32_166 : i32
      %c4_i32_167 = arith.constant 4 : i32
      %247 = arith.addi %246, %c4_i32_167 : i32
      %c0_168 = arith.constant 0 : index
      %248 = arith.index_cast %247 : i32 to index
      %c0_169 = arith.constant 0 : index
      %249 = vector.load %arg1[%c0_168, %248, %c0_169] : memref<1x1032x8xf32, #tpu.memory_space<vmem>>, vector<1x64x8xf32>
      %250 = vector.shape_cast %249 : vector<1x64x8xf32> to vector<64x8xf32>
      %251 = arith.truncf %250 : vector<64x8xf32> to vector<64x8xbf16>
      %c24 = arith.constant 24 : index
      %c0_170 = arith.constant 0 : index
      %c0_171 = arith.constant 0 : index
      %252 = vector.load %arg2[%c24, %c0_170, %c0_171] : memref<25x8x128xbf16, #tpu.memory_space<vmem>>, vector<1x8x128xbf16>
      %253 = vector.shape_cast %252 : vector<1x8x128xbf16> to vector<8x128xbf16>
      %cst_172 = arith.constant dense<0.000000e+00> : vector<64x128xf32>
      %254 = tpu.matmul %251, %253, %cst_172 {dimension_numbers = #tpu.dot_dimension_numbers<[1], [0], [0], [1], [0, 0, 1, 1], [], []>} : vector<64x8xbf16>, vector<8x128xbf16>, vector<64x128xf32> -> vector<64x128xf32>
      %255 = arith.addf %245, %254 : vector<64x128xf32>
      %c0_173 = arith.constant 0 : index
      %c0_174 = arith.constant 0 : index
      %256 = vector.load %arg5[%c0_173, %c0_174] : memref<64x128xf32, #tpu.memory_space<vmem>>, vector<64x128xf32>
      tpu.vector_store %arg5[%c0_173, %c0_174], %255 {strides = array<i32>} : memref<64x128xf32, #tpu.memory_space<vmem>>, vector<64x128xf32>,
      %c0_175 = arith.constant 0 : index
      %c0_176 = arith.constant 0 : index
      %257 = tpu.strided_load %arg5[%c0_175, %c0_176] {strides = array<i32: 2, 1>} : memref<64x128xf32, #tpu.memory_space<vmem>>, vector<14x128xf32>
      %c1_177 = arith.constant 1 : index
      %c0_178 = arith.constant 0 : index
      %258 = tpu.strided_load %arg5[%c1_177, %c0_178] {strides = array<i32: 2, 1>} : memref<64x128xf32, #tpu.memory_space<vmem>>, vector<14x128xf32>
      %259 = arith.maximumf %257, %258 : vector<14x128xf32>
      %c32 = arith.constant 32 : index
      %c0_179 = arith.constant 0 : index
      %260 = tpu.strided_load %arg5[%c32, %c0_179] {strides = array<i32: 2, 1>} : memref<64x128xf32, #tpu.memory_space<vmem>>, vector<14x128xf32>
      %c33 = arith.constant 33 : index
      %c0_180 = arith.constant 0 : index
      %261 = tpu.strided_load %arg5[%c33, %c0_180] {strides = array<i32: 2, 1>} : memref<64x128xf32, #tpu.memory_space<vmem>>, vector<14x128xf32>
      %262 = arith.maximumf %260, %261 : vector<14x128xf32>
      %263 = arith.maximumf %259, %262 : vector<14x128xf32>
      %c0_181 = arith.constant 0 : index
      %c0_182 = arith.constant 0 : index
      %264 = vector.load %arg3[%c0_181, %c0_182] : memref<1x128xf32, #tpu.memory_space<vmem>>, vector<1x128xf32>
      %265 = vector.broadcast %264 : vector<1x128xf32> to vector<14x128xf32>
      %266 = arith.addf %263, %265 : vector<14x128xf32>
      %cst_183 = arith.constant 0.000000e+00 : f32
      %267 = vector.broadcast %cst_183 : f32 to vector<14x128xf32>
      %268 = arith.maximumf %266, %267 : vector<14x128xf32>
      %269 = vector.extract_strided_slice %268 {offsets = [0, 0], sizes = [14, 32], strides = [1, 1]} : vector<14x128xf32> to vector<14x32xf32>
      %c0_184 = arith.constant 0 : index
      %270 = arith.index_cast %2 : i32 to index
      %c0_185 = arith.constant 0 : index
      %c0_186 = arith.constant 0 : index
      %271 = vector.load %arg4[%c0_184, %270, %c0_185, %c0_186] : memref<1x14x14x32xf32, #tpu.memory_space<vmem>>, vector<1x1x14x32xf32>
      %272 = vector.shape_cast %271 : vector<1x1x14x32xf32> to vector<14x32xf32>
      %273 = vector.shape_cast %269 : vector<14x32xf32> to vector<1x1x14x32xf32>
      tpu.vector_store %arg4[%c0_184, %270, %c0_185, %c0_186], %273 {strides = array<i32>} : memref<1x14x14x32xf32, #tpu.memory_space<vmem>>, vector<1x1x14x32xf32>,
    }
    %c14_i32_0 = arith.constant 14 : i32
    return
  }
  func.func @transform_0(%arg0: i32) -> (i32, i32, i32) {
    %c0_i32 = arith.constant 0 : i32
    %c0_i32_0 = arith.constant 0 : i32
    %c0_i32_1 = arith.constant 0 : i32
    return %arg0, %c0_i32, %c0_i32_0 : i32, i32, i32
  }
  func.func @transform_1(%arg0: i32) -> (i32, i32, i32) {
    %c0_i32 = arith.constant 0 : i32
    %c0_i32_0 = arith.constant 0 : i32
    %c0_i32_1 = arith.constant 0 : i32
    %c0_i32_2 = arith.constant 0 : i32
    return %c0_i32, %c0_i32_0, %c0_i32_1 : i32, i32, i32
  }
  func.func @transform_2(%arg0: i32) -> (i32, i32) {
    %c0_i32 = arith.constant 0 : i32
    %c0_i32_0 = arith.constant 0 : i32
    %c0_i32_1 = arith.constant 0 : i32
    return %c0_i32, %c0_i32_0 : i32, i32
  }
  func.func @transform_3(%arg0: i32) -> (i32, i32, i32, i32) {
    %c0_i32 = arith.constant 0 : i32
    %c0_i32_0 = arith.constant 0 : i32
    %c0_i32_1 = arith.constant 0 : i32
    %c0_i32_2 = arith.constant 0 : i32
    return %arg0, %c0_i32, %c0_i32_0, %c0_i32_1 : i32, i32, i32, i32
  }
}

module attributes {stable_mosaic.version = 11 : i64} {
  func.func @matmul_bias_act_kernel(%arg0: i32, %arg1: memref<8x3136xbf16, #tpu.memory_space<vmem>>, %arg2: memref<3136x512xbf16, #tpu.memory_space<vmem>>, %arg3: memref<1x512xf32, #tpu.memory_space<vmem>>, %arg4: memref<8x512xf32, #tpu.memory_space<vmem>>) attributes {dimension_semantics = [#tpu.dimension_semantics<parallel>], iteration_bounds = array<i64: 1>, scalar_prefetch = 0 : i64, scratch_operands = 0 : i64, tpu.core_type = #tpu.core_type<tc>, window_params = [{transform_indices = @transform_0, window_bounds = array<i64: 8, 3136>}, {pipeline_mode = #tpu.pipeline_mode<synchronous>, transform_indices = @transform_1, window_bounds = array<i64: 3136, 512>}, {pipeline_mode = #tpu.pipeline_mode<synchronous>, transform_indices = @transform_2, window_bounds = array<i64: 1, 512>}, {transform_indices = @transform_3, window_bounds = array<i64: 8, 512>}]} {
    %c0 = arith.constant 0 : index
    %c0_0 = arith.constant 0 : index
    %0 = vector.load %arg1[%c0, %c0_0] : memref<8x3136xbf16, #tpu.memory_space<vmem>>, vector<8x3136xbf16>
    %c0_1 = arith.constant 0 : index
    %c0_2 = arith.constant 0 : index
    %1 = vector.load %arg2[%c0_1, %c0_2] : memref<3136x512xbf16, #tpu.memory_space<vmem>>, vector<3136x512xbf16>
    %cst = arith.constant dense<0.000000e+00> : vector<8x512xf32>
    %2 = tpu.matmul %0, %1, %cst {dimension_numbers = #tpu.dot_dimension_numbers<[1], [0], [0], [1], [0, 0, 1, 1], [], []>} : vector<8x3136xbf16>, vector<3136x512xbf16>, vector<8x512xf32> -> vector<8x512xf32>
    %c0_3 = arith.constant 0 : index
    %c0_4 = arith.constant 0 : index
    %3 = vector.load %arg3[%c0_3, %c0_4] : memref<1x512xf32, #tpu.memory_space<vmem>>, vector<1x512xf32>
    %4 = vector.broadcast %3 : vector<1x512xf32> to vector<8x512xf32>
    %5 = arith.addf %2, %4 : vector<8x512xf32>
    %cst_5 = arith.constant 0.000000e+00 : f32
    %6 = vector.broadcast %cst_5 : f32 to vector<8x512xf32>
    %7 = arith.maximumf %5, %6 : vector<8x512xf32>
    %c0_6 = arith.constant 0 : index
    %c0_7 = arith.constant 0 : index
    %8 = vector.load %arg4[%c0_6, %c0_7] : memref<8x512xf32, #tpu.memory_space<vmem>>, vector<8x512xf32>
    tpu.vector_store %arg4[%c0_6, %c0_7], %7 {strides = array<i32>} : memref<8x512xf32, #tpu.memory_space<vmem>>, vector<8x512xf32>,
    return
  }
  func.func @transform_0(%arg0: i32) -> (i32, i32) {
    %c0_i32 = arith.constant 0 : i32
    %c0_i32_0 = arith.constant 0 : i32
    return %arg0, %c0_i32 : i32, i32
  }
  func.func @transform_1(%arg0: i32) -> (i32, i32) {
    %c0_i32 = arith.constant 0 : i32
    %c0_i32_0 = arith.constant 0 : i32
    %c0_i32_1 = arith.constant 0 : i32
    return %c0_i32, %c0_i32_0 : i32, i32
  }
  func.func @transform_2(%arg0: i32) -> (i32, i32) {
    %c0_i32 = arith.constant 0 : i32
    %c0_i32_0 = arith.constant 0 : i32
    %c0_i32_1 = arith.constant 0 : i32
    return %c0_i32, %c0_i32_0 : i32, i32
  }
  func.func @transform_3(%arg0: i32) -> (i32, i32) {
    %c0_i32 = arith.constant 0 : i32
    %c0_i32_0 = arith.constant 0 : i32
    return %arg0, %c0_i32 : i32, i32
  }
}

module attributes {stable_mosaic.version = 11 : i64} {
  func.func @conv_pool_kernel(%arg0: i32, %arg1: memref<1x328x32xf32, #tpu.memory_space<vmem>>, %arg2: memref<25x32x128xbf16, #tpu.memory_space<vmem>>, %arg3: memref<1x128xf32, #tpu.memory_space<vmem>>, %arg4: memref<1x7x7x64xf32, #tpu.memory_space<vmem>>, %arg5: memref<36x128xf32, #tpu.memory_space<vmem>>) attributes {dimension_semantics = [#tpu.dimension_semantics<parallel>], iteration_bounds = array<i64: 2>, scalar_prefetch = 0 : i64, scratch_operands = 1 : i64, tpu.core_type = #tpu.core_type<tc>, window_params = [{transform_indices = @transform_0, window_bounds = array<i64: 1, 328, 32>}, {pipeline_mode = #tpu.pipeline_mode<synchronous>, transform_indices = @transform_1, window_bounds = array<i64: 25, 32, 128>}, {pipeline_mode = #tpu.pipeline_mode<synchronous>, transform_indices = @transform_2, window_bounds = array<i64: 1, 128>}, {transform_indices = @transform_3, window_bounds = array<i64: 1, 7, 7, 64>}]} {
    %c0_i32 = arith.constant 0 : i32
    %c7_i32 = arith.constant 7 : i32
    %0 = arith.addi %c0_i32, %c7_i32 : i32
    %c1_i32 = arith.constant 1 : i32
    scf.for %arg6 = %c0_i32 to %0 step %c1_i32  : i32 {
      %c1_i32_1 = arith.constant 1 : i32
      %1 = arith.muli %arg6, %c1_i32_1 : i32
      %c0_i32_2 = arith.constant 0 : i32
      %2 = arith.addi %c0_i32_2, %1 : i32
      %c2_i32 = arith.constant 2 : i32
      %3 = arith.muli %c2_i32, %2 : i32
      %c18_i32 = arith.constant 18 : i32
      %4 = arith.muli %3, %c18_i32 : i32
      %cst = arith.constant 0.000000e+00 : f32
      %5 = vector.broadcast %cst : f32 to vector<36x128xf32>
      %c0_i32_3 = arith.constant 0 : i32
      %6 = arith.addi %4, %c0_i32_3 : i32
      %c0_i32_4 = arith.constant 0 : i32
      %7 = arith.addi %6, %c0_i32_4 : i32
      %c0 = arith.constant 0 : index
      %8 = arith.index_cast %7 : i32 to index
      %c0_5 = arith.constant 0 : index
      %9 = vector.load %arg1[%c0, %8, %c0_5] : memref<1x328x32xf32, #tpu.memory_space<vmem>>, vector<1x36x32xf32>
      %10 = vector.shape_cast %9 : vector<1x36x32xf32> to vector<36x32xf32>
      %11 = arith.truncf %10 : vector<36x32xf32> to vector<36x32xbf16>
      %c0_6 = arith.constant 0 : index
      %c0_7 = arith.constant 0 : index
      %c0_8 = arith.constant 0 : index
      %12 = vector.load %arg2[%c0_6, %c0_7, %c0_8] : memref<25x32x128xbf16, #tpu.memory_space<vmem>>, vector<1x32x128xbf16>
      %13 = vector.shape_cast %12 : vector<1x32x128xbf16> to vector<32x128xbf16>
      %cst_9 = arith.constant dense<0.000000e+00> : vector<36x128xf32>
      %14 = tpu.matmul %11, %13, %cst_9 {dimension_numbers = #tpu.dot_dimension_numbers<[1], [0], [0], [1], [0, 0, 1, 1], [], []>} : vector<36x32xbf16>, vector<32x128xbf16>, vector<36x128xf32> -> vector<36x128xf32>
      %15 = arith.addf %5, %14 : vector<36x128xf32>
      %c0_i32_10 = arith.constant 0 : i32
      %16 = arith.addi %4, %c0_i32_10 : i32
      %c1_i32_11 = arith.constant 1 : i32
      %17 = arith.addi %16, %c1_i32_11 : i32
      %c0_12 = arith.constant 0 : index
      %18 = arith.index_cast %17 : i32 to index
      %c0_13 = arith.constant 0 : index
      %19 = vector.load %arg1[%c0_12, %18, %c0_13] : memref<1x328x32xf32, #tpu.memory_space<vmem>>, vector<1x36x32xf32>
      %20 = vector.shape_cast %19 : vector<1x36x32xf32> to vector<36x32xf32>
      %21 = arith.truncf %20 : vector<36x32xf32> to vector<36x32xbf16>
      %c1 = arith.constant 1 : index
      %c0_14 = arith.constant 0 : index
      %c0_15 = arith.constant 0 : index
      %22 = vector.load %arg2[%c1, %c0_14, %c0_15] : memref<25x32x128xbf16, #tpu.memory_space<vmem>>, vector<1x32x128xbf16>
      %23 = vector.shape_cast %22 : vector<1x32x128xbf16> to vector<32x128xbf16>
      %cst_16 = arith.constant dense<0.000000e+00> : vector<36x128xf32>
      %24 = tpu.matmul %21, %23, %cst_16 {dimension_numbers = #tpu.dot_dimension_numbers<[1], [0], [0], [1], [0, 0, 1, 1], [], []>} : vector<36x32xbf16>, vector<32x128xbf16>, vector<36x128xf32> -> vector<36x128xf32>
      %25 = arith.addf %15, %24 : vector<36x128xf32>
      %c0_i32_17 = arith.constant 0 : i32
      %26 = arith.addi %4, %c0_i32_17 : i32
      %c2_i32_18 = arith.constant 2 : i32
      %27 = arith.addi %26, %c2_i32_18 : i32
      %c0_19 = arith.constant 0 : index
      %28 = arith.index_cast %27 : i32 to index
      %c0_20 = arith.constant 0 : index
      %29 = vector.load %arg1[%c0_19, %28, %c0_20] : memref<1x328x32xf32, #tpu.memory_space<vmem>>, vector<1x36x32xf32>
      %30 = vector.shape_cast %29 : vector<1x36x32xf32> to vector<36x32xf32>
      %31 = arith.truncf %30 : vector<36x32xf32> to vector<36x32xbf16>
      %c2 = arith.constant 2 : index
      %c0_21 = arith.constant 0 : index
      %c0_22 = arith.constant 0 : index
      %32 = vector.load %arg2[%c2, %c0_21, %c0_22] : memref<25x32x128xbf16, #tpu.memory_space<vmem>>, vector<1x32x128xbf16>
      %33 = vector.shape_cast %32 : vector<1x32x128xbf16> to vector<32x128xbf16>
      %cst_23 = arith.constant dense<0.000000e+00> : vector<36x128xf32>
      %34 = tpu.matmul %31, %33, %cst_23 {dimension_numbers = #tpu.dot_dimension_numbers<[1], [0], [0], [1], [0, 0, 1, 1], [], []>} : vector<36x32xbf16>, vector<32x128xbf16>, vector<36x128xf32> -> vector<36x128xf32>
      %35 = arith.addf %25, %34 : vector<36x128xf32>
      %c0_i32_24 = arith.constant 0 : i32
      %36 = arith.addi %4, %c0_i32_24 : i32
      %c3_i32 = arith.constant 3 : i32
      %37 = arith.addi %36, %c3_i32 : i32
      %c0_25 = arith.constant 0 : index
      %38 = arith.index_cast %37 : i32 to index
      %c0_26 = arith.constant 0 : index
      %39 = vector.load %arg1[%c0_25, %38, %c0_26] : memref<1x328x32xf32, #tpu.memory_space<vmem>>, vector<1x36x32xf32>
      %40 = vector.shape_cast %39 : vector<1x36x32xf32> to vector<36x32xf32>
      %41 = arith.truncf %40 : vector<36x32xf32> to vector<36x32xbf16>
      %c3 = arith.constant 3 : index
      %c0_27 = arith.constant 0 : index
      %c0_28 = arith.constant 0 : index
      %42 = vector.load %arg2[%c3, %c0_27, %c0_28] : memref<25x32x128xbf16, #tpu.memory_space<vmem>>, vector<1x32x128xbf16>
      %43 = vector.shape_cast %42 : vector<1x32x128xbf16> to vector<32x128xbf16>
      %cst_29 = arith.constant dense<0.000000e+00> : vector<36x128xf32>
      %44 = tpu.matmul %41, %43, %cst_29 {dimension_numbers = #tpu.dot_dimension_numbers<[1], [0], [0], [1], [0, 0, 1, 1], [], []>} : vector<36x32xbf16>, vector<32x128xbf16>, vector<36x128xf32> -> vector<36x128xf32>
      %45 = arith.addf %35, %44 : vector<36x128xf32>
      %c0_i32_30 = arith.constant 0 : i32
      %46 = arith.addi %4, %c0_i32_30 : i32
      %c4_i32 = arith.constant 4 : i32
      %47 = arith.addi %46, %c4_i32 : i32
      %c0_31 = arith.constant 0 : index
      %48 = arith.index_cast %47 : i32 to index
      %c0_32 = arith.constant 0 : index
      %49 = vector.load %arg1[%c0_31, %48, %c0_32] : memref<1x328x32xf32, #tpu.memory_space<vmem>>, vector<1x36x32xf32>
      %50 = vector.shape_cast %49 : vector<1x36x32xf32> to vector<36x32xf32>
      %51 = arith.truncf %50 : vector<36x32xf32> to vector<36x32xbf16>
      %c4 = arith.constant 4 : index
      %c0_33 = arith.constant 0 : index
      %c0_34 = arith.constant 0 : index
      %52 = vector.load %arg2[%c4, %c0_33, %c0_34] : memref<25x32x128xbf16, #tpu.memory_space<vmem>>, vector<1x32x128xbf16>
      %53 = vector.shape_cast %52 : vector<1x32x128xbf16> to vector<32x128xbf16>
      %cst_35 = arith.constant dense<0.000000e+00> : vector<36x128xf32>
      %54 = tpu.matmul %51, %53, %cst_35 {dimension_numbers = #tpu.dot_dimension_numbers<[1], [0], [0], [1], [0, 0, 1, 1], [], []>} : vector<36x32xbf16>, vector<32x128xbf16>, vector<36x128xf32> -> vector<36x128xf32>
      %55 = arith.addf %45, %54 : vector<36x128xf32>
      %c18_i32_36 = arith.constant 18 : i32
      %56 = arith.addi %4, %c18_i32_36 : i32
      %c0_i32_37 = arith.constant 0 : i32
      %57 = arith.addi %56, %c0_i32_37 : i32
      %c0_38 = arith.constant 0 : index
      %58 = arith.index_cast %57 : i32 to index
      %c0_39 = arith.constant 0 : index
      %59 = vector.load %arg1[%c0_38, %58, %c0_39] : memref<1x328x32xf32, #tpu.memory_space<vmem>>, vector<1x36x32xf32>
      %60 = vector.shape_cast %59 : vector<1x36x32xf32> to vector<36x32xf32>
      %61 = arith.truncf %60 : vector<36x32xf32> to vector<36x32xbf16>
      %c5 = arith.constant 5 : index
      %c0_40 = arith.constant 0 : index
      %c0_41 = arith.constant 0 : index
      %62 = vector.load %arg2[%c5, %c0_40, %c0_41] : memref<25x32x128xbf16, #tpu.memory_space<vmem>>, vector<1x32x128xbf16>
      %63 = vector.shape_cast %62 : vector<1x32x128xbf16> to vector<32x128xbf16>
      %cst_42 = arith.constant dense<0.000000e+00> : vector<36x128xf32>
      %64 = tpu.matmul %61, %63, %cst_42 {dimension_numbers = #tpu.dot_dimension_numbers<[1], [0], [0], [1], [0, 0, 1, 1], [], []>} : vector<36x32xbf16>, vector<32x128xbf16>, vector<36x128xf32> -> vector<36x128xf32>
      %65 = arith.addf %55, %64 : vector<36x128xf32>
      %c18_i32_43 = arith.constant 18 : i32
      %66 = arith.addi %4, %c18_i32_43 : i32
      %c1_i32_44 = arith.constant 1 : i32
      %67 = arith.addi %66, %c1_i32_44 : i32
      %c0_45 = arith.constant 0 : index
      %68 = arith.index_cast %67 : i32 to index
      %c0_46 = arith.constant 0 : index
      %69 = vector.load %arg1[%c0_45, %68, %c0_46] : memref<1x328x32xf32, #tpu.memory_space<vmem>>, vector<1x36x32xf32>
      %70 = vector.shape_cast %69 : vector<1x36x32xf32> to vector<36x32xf32>
      %71 = arith.truncf %70 : vector<36x32xf32> to vector<36x32xbf16>
      %c6 = arith.constant 6 : index
      %c0_47 = arith.constant 0 : index
      %c0_48 = arith.constant 0 : index
      %72 = vector.load %arg2[%c6, %c0_47, %c0_48] : memref<25x32x128xbf16, #tpu.memory_space<vmem>>, vector<1x32x128xbf16>
      %73 = vector.shape_cast %72 : vector<1x32x128xbf16> to vector<32x128xbf16>
      %cst_49 = arith.constant dense<0.000000e+00> : vector<36x128xf32>
      %74 = tpu.matmul %71, %73, %cst_49 {dimension_numbers = #tpu.dot_dimension_numbers<[1], [0], [0], [1], [0, 0, 1, 1], [], []>} : vector<36x32xbf16>, vector<32x128xbf16>, vector<36x128xf32> -> vector<36x128xf32>
      %75 = arith.addf %65, %74 : vector<36x128xf32>
      %c18_i32_50 = arith.constant 18 : i32
      %76 = arith.addi %4, %c18_i32_50 : i32
      %c2_i32_51 = arith.constant 2 : i32
      %77 = arith.addi %76, %c2_i32_51 : i32
      %c0_52 = arith.constant 0 : index
      %78 = arith.index_cast %77 : i32 to index
      %c0_53 = arith.constant 0 : index
      %79 = vector.load %arg1[%c0_52, %78, %c0_53] : memref<1x328x32xf32, #tpu.memory_space<vmem>>, vector<1x36x32xf32>
      %80 = vector.shape_cast %79 : vector<1x36x32xf32> to vector<36x32xf32>
      %81 = arith.truncf %80 : vector<36x32xf32> to vector<36x32xbf16>
      %c7 = arith.constant 7 : index
      %c0_54 = arith.constant 0 : index
      %c0_55 = arith.constant 0 : index
      %82 = vector.load %arg2[%c7, %c0_54, %c0_55] : memref<25x32x128xbf16, #tpu.memory_space<vmem>>, vector<1x32x128xbf16>
      %83 = vector.shape_cast %82 : vector<1x32x128xbf16> to vector<32x128xbf16>
      %cst_56 = arith.constant dense<0.000000e+00> : vector<36x128xf32>
      %84 = tpu.matmul %81, %83, %cst_56 {dimension_numbers = #tpu.dot_dimension_numbers<[1], [0], [0], [1], [0, 0, 1, 1], [], []>} : vector<36x32xbf16>, vector<32x128xbf16>, vector<36x128xf32> -> vector<36x128xf32>
      %85 = arith.addf %75, %84 : vector<36x128xf32>
      %c18_i32_57 = arith.constant 18 : i32
      %86 = arith.addi %4, %c18_i32_57 : i32
      %c3_i32_58 = arith.constant 3 : i32
      %87 = arith.addi %86, %c3_i32_58 : i32
      %c0_59 = arith.constant 0 : index
      %88 = arith.index_cast %87 : i32 to index
      %c0_60 = arith.constant 0 : index
      %89 = vector.load %arg1[%c0_59, %88, %c0_60] : memref<1x328x32xf32, #tpu.memory_space<vmem>>, vector<1x36x32xf32>
      %90 = vector.shape_cast %89 : vector<1x36x32xf32> to vector<36x32xf32>
      %91 = arith.truncf %90 : vector<36x32xf32> to vector<36x32xbf16>
      %c8 = arith.constant 8 : index
      %c0_61 = arith.constant 0 : index
      %c0_62 = arith.constant 0 : index
      %92 = vector.load %arg2[%c8, %c0_61, %c0_62] : memref<25x32x128xbf16, #tpu.memory_space<vmem>>, vector<1x32x128xbf16>
      %93 = vector.shape_cast %92 : vector<1x32x128xbf16> to vector<32x128xbf16>
      %cst_63 = arith.constant dense<0.000000e+00> : vector<36x128xf32>
      %94 = tpu.matmul %91, %93, %cst_63 {dimension_numbers = #tpu.dot_dimension_numbers<[1], [0], [0], [1], [0, 0, 1, 1], [], []>} : vector<36x32xbf16>, vector<32x128xbf16>, vector<36x128xf32> -> vector<36x128xf32>
      %95 = arith.addf %85, %94 : vector<36x128xf32>
      %c18_i32_64 = arith.constant 18 : i32
      %96 = arith.addi %4, %c18_i32_64 : i32
      %c4_i32_65 = arith.constant 4 : i32
      %97 = arith.addi %96, %c4_i32_65 : i32
      %c0_66 = arith.constant 0 : index
      %98 = arith.index_cast %97 : i32 to index
      %c0_67 = arith.constant 0 : index
      %99 = vector.load %arg1[%c0_66, %98, %c0_67] : memref<1x328x32xf32, #tpu.memory_space<vmem>>, vector<1x36x32xf32>
      %100 = vector.shape_cast %99 : vector<1x36x32xf32> to vector<36x32xf32>
      %101 = arith.truncf %100 : vector<36x32xf32> to vector<36x32xbf16>
      %c9 = arith.constant 9 : index
      %c0_68 = arith.constant 0 : index
      %c0_69 = arith.constant 0 : index
      %102 = vector.load %arg2[%c9, %c0_68, %c0_69] : memref<25x32x128xbf16, #tpu.memory_space<vmem>>, vector<1x32x128xbf16>
      %103 = vector.shape_cast %102 : vector<1x32x128xbf16> to vector<32x128xbf16>
      %cst_70 = arith.constant dense<0.000000e+00> : vector<36x128xf32>
      %104 = tpu.matmul %101, %103, %cst_70 {dimension_numbers = #tpu.dot_dimension_numbers<[1], [0], [0], [1], [0, 0, 1, 1], [], []>} : vector<36x32xbf16>, vector<32x128xbf16>, vector<36x128xf32> -> vector<36x128xf32>
      %105 = arith.addf %95, %104 : vector<36x128xf32>
      %c36_i32 = arith.constant 36 : i32
      %106 = arith.addi %4, %c36_i32 : i32
      %c0_i32_71 = arith.constant 0 : i32
      %107 = arith.addi %106, %c0_i32_71 : i32
      %c0_72 = arith.constant 0 : index
      %108 = arith.index_cast %107 : i32 to index
      %c0_73 = arith.constant 0 : index
      %109 = vector.load %arg1[%c0_72, %108, %c0_73] : memref<1x328x32xf32, #tpu.memory_space<vmem>>, vector<1x36x32xf32>
      %110 = vector.shape_cast %109 : vector<1x36x32xf32> to vector<36x32xf32>
      %111 = arith.truncf %110 : vector<36x32xf32> to vector<36x32xbf16>
      %c10 = arith.constant 10 : index
      %c0_74 = arith.constant 0 : index
      %c0_75 = arith.constant 0 : index
      %112 = vector.load %arg2[%c10, %c0_74, %c0_75] : memref<25x32x128xbf16, #tpu.memory_space<vmem>>, vector<1x32x128xbf16>
      %113 = vector.shape_cast %112 : vector<1x32x128xbf16> to vector<32x128xbf16>
      %cst_76 = arith.constant dense<0.000000e+00> : vector<36x128xf32>
      %114 = tpu.matmul %111, %113, %cst_76 {dimension_numbers = #tpu.dot_dimension_numbers<[1], [0], [0], [1], [0, 0, 1, 1], [], []>} : vector<36x32xbf16>, vector<32x128xbf16>, vector<36x128xf32> -> vector<36x128xf32>
      %115 = arith.addf %105, %114 : vector<36x128xf32>
      %c36_i32_77 = arith.constant 36 : i32
      %116 = arith.addi %4, %c36_i32_77 : i32
      %c1_i32_78 = arith.constant 1 : i32
      %117 = arith.addi %116, %c1_i32_78 : i32
      %c0_79 = arith.constant 0 : index
      %118 = arith.index_cast %117 : i32 to index
      %c0_80 = arith.constant 0 : index
      %119 = vector.load %arg1[%c0_79, %118, %c0_80] : memref<1x328x32xf32, #tpu.memory_space<vmem>>, vector<1x36x32xf32>
      %120 = vector.shape_cast %119 : vector<1x36x32xf32> to vector<36x32xf32>
      %121 = arith.truncf %120 : vector<36x32xf32> to vector<36x32xbf16>
      %c11 = arith.constant 11 : index
      %c0_81 = arith.constant 0 : index
      %c0_82 = arith.constant 0 : index
      %122 = vector.load %arg2[%c11, %c0_81, %c0_82] : memref<25x32x128xbf16, #tpu.memory_space<vmem>>, vector<1x32x128xbf16>
      %123 = vector.shape_cast %122 : vector<1x32x128xbf16> to vector<32x128xbf16>
      %cst_83 = arith.constant dense<0.000000e+00> : vector<36x128xf32>
      %124 = tpu.matmul %121, %123, %cst_83 {dimension_numbers = #tpu.dot_dimension_numbers<[1], [0], [0], [1], [0, 0, 1, 1], [], []>} : vector<36x32xbf16>, vector<32x128xbf16>, vector<36x128xf32> -> vector<36x128xf32>
      %125 = arith.addf %115, %124 : vector<36x128xf32>
      %c36_i32_84 = arith.constant 36 : i32
      %126 = arith.addi %4, %c36_i32_84 : i32
      %c2_i32_85 = arith.constant 2 : i32
      %127 = arith.addi %126, %c2_i32_85 : i32
      %c0_86 = arith.constant 0 : index
      %128 = arith.index_cast %127 : i32 to index
      %c0_87 = arith.constant 0 : index
      %129 = vector.load %arg1[%c0_86, %128, %c0_87] : memref<1x328x32xf32, #tpu.memory_space<vmem>>, vector<1x36x32xf32>
      %130 = vector.shape_cast %129 : vector<1x36x32xf32> to vector<36x32xf32>
      %131 = arith.truncf %130 : vector<36x32xf32> to vector<36x32xbf16>
      %c12 = arith.constant 12 : index
      %c0_88 = arith.constant 0 : index
      %c0_89 = arith.constant 0 : index
      %132 = vector.load %arg2[%c12, %c0_88, %c0_89] : memref<25x32x128xbf16, #tpu.memory_space<vmem>>, vector<1x32x128xbf16>
      %133 = vector.shape_cast %132 : vector<1x32x128xbf16> to vector<32x128xbf16>
      %cst_90 = arith.constant dense<0.000000e+00> : vector<36x128xf32>
      %134 = tpu.matmul %131, %133, %cst_90 {dimension_numbers = #tpu.dot_dimension_numbers<[1], [0], [0], [1], [0, 0, 1, 1], [], []>} : vector<36x32xbf16>, vector<32x128xbf16>, vector<36x128xf32> -> vector<36x128xf32>
      %135 = arith.addf %125, %134 : vector<36x128xf32>
      %c36_i32_91 = arith.constant 36 : i32
      %136 = arith.addi %4, %c36_i32_91 : i32
      %c3_i32_92 = arith.constant 3 : i32
      %137 = arith.addi %136, %c3_i32_92 : i32
      %c0_93 = arith.constant 0 : index
      %138 = arith.index_cast %137 : i32 to index
      %c0_94 = arith.constant 0 : index
      %139 = vector.load %arg1[%c0_93, %138, %c0_94] : memref<1x328x32xf32, #tpu.memory_space<vmem>>, vector<1x36x32xf32>
      %140 = vector.shape_cast %139 : vector<1x36x32xf32> to vector<36x32xf32>
      %141 = arith.truncf %140 : vector<36x32xf32> to vector<36x32xbf16>
      %c13 = arith.constant 13 : index
      %c0_95 = arith.constant 0 : index
      %c0_96 = arith.constant 0 : index
      %142 = vector.load %arg2[%c13, %c0_95, %c0_96] : memref<25x32x128xbf16, #tpu.memory_space<vmem>>, vector<1x32x128xbf16>
      %143 = vector.shape_cast %142 : vector<1x32x128xbf16> to vector<32x128xbf16>
      %cst_97 = arith.constant dense<0.000000e+00> : vector<36x128xf32>
      %144 = tpu.matmul %141, %143, %cst_97 {dimension_numbers = #tpu.dot_dimension_numbers<[1], [0], [0], [1], [0, 0, 1, 1], [], []>} : vector<36x32xbf16>, vector<32x128xbf16>, vector<36x128xf32> -> vector<36x128xf32>
      %145 = arith.addf %135, %144 : vector<36x128xf32>
      %c36_i32_98 = arith.constant 36 : i32
      %146 = arith.addi %4, %c36_i32_98 : i32
      %c4_i32_99 = arith.constant 4 : i32
      %147 = arith.addi %146, %c4_i32_99 : i32
      %c0_100 = arith.constant 0 : index
      %148 = arith.index_cast %147 : i32 to index
      %c0_101 = arith.constant 0 : index
      %149 = vector.load %arg1[%c0_100, %148, %c0_101] : memref<1x328x32xf32, #tpu.memory_space<vmem>>, vector<1x36x32xf32>
      %150 = vector.shape_cast %149 : vector<1x36x32xf32> to vector<36x32xf32>
      %151 = arith.truncf %150 : vector<36x32xf32> to vector<36x32xbf16>
      %c14 = arith.constant 14 : index
      %c0_102 = arith.constant 0 : index
      %c0_103 = arith.constant 0 : index
      %152 = vector.load %arg2[%c14, %c0_102, %c0_103] : memref<25x32x128xbf16, #tpu.memory_space<vmem>>, vector<1x32x128xbf16>
      %153 = vector.shape_cast %152 : vector<1x32x128xbf16> to vector<32x128xbf16>
      %cst_104 = arith.constant dense<0.000000e+00> : vector<36x128xf32>
      %154 = tpu.matmul %151, %153, %cst_104 {dimension_numbers = #tpu.dot_dimension_numbers<[1], [0], [0], [1], [0, 0, 1, 1], [], []>} : vector<36x32xbf16>, vector<32x128xbf16>, vector<36x128xf32> -> vector<36x128xf32>
      %155 = arith.addf %145, %154 : vector<36x128xf32>
      %c54_i32 = arith.constant 54 : i32
      %156 = arith.addi %4, %c54_i32 : i32
      %c0_i32_105 = arith.constant 0 : i32
      %157 = arith.addi %156, %c0_i32_105 : i32
      %c0_106 = arith.constant 0 : index
      %158 = arith.index_cast %157 : i32 to index
      %c0_107 = arith.constant 0 : index
      %159 = vector.load %arg1[%c0_106, %158, %c0_107] : memref<1x328x32xf32, #tpu.memory_space<vmem>>, vector<1x36x32xf32>
      %160 = vector.shape_cast %159 : vector<1x36x32xf32> to vector<36x32xf32>
      %161 = arith.truncf %160 : vector<36x32xf32> to vector<36x32xbf16>
      %c15 = arith.constant 15 : index
      %c0_108 = arith.constant 0 : index
      %c0_109 = arith.constant 0 : index
      %162 = vector.load %arg2[%c15, %c0_108, %c0_109] : memref<25x32x128xbf16, #tpu.memory_space<vmem>>, vector<1x32x128xbf16>
      %163 = vector.shape_cast %162 : vector<1x32x128xbf16> to vector<32x128xbf16>
      %cst_110 = arith.constant dense<0.000000e+00> : vector<36x128xf32>
      %164 = tpu.matmul %161, %163, %cst_110 {dimension_numbers = #tpu.dot_dimension_numbers<[1], [0], [0], [1], [0, 0, 1, 1], [], []>} : vector<36x32xbf16>, vector<32x128xbf16>, vector<36x128xf32> -> vector<36x128xf32>
      %165 = arith.addf %155, %164 : vector<36x128xf32>
      %c54_i32_111 = arith.constant 54 : i32
      %166 = arith.addi %4, %c54_i32_111 : i32
      %c1_i32_112 = arith.constant 1 : i32
      %167 = arith.addi %166, %c1_i32_112 : i32
      %c0_113 = arith.constant 0 : index
      %168 = arith.index_cast %167 : i32 to index
      %c0_114 = arith.constant 0 : index
      %169 = vector.load %arg1[%c0_113, %168, %c0_114] : memref<1x328x32xf32, #tpu.memory_space<vmem>>, vector<1x36x32xf32>
      %170 = vector.shape_cast %169 : vector<1x36x32xf32> to vector<36x32xf32>
      %171 = arith.truncf %170 : vector<36x32xf32> to vector<36x32xbf16>
      %c16 = arith.constant 16 : index
      %c0_115 = arith.constant 0 : index
      %c0_116 = arith.constant 0 : index
      %172 = vector.load %arg2[%c16, %c0_115, %c0_116] : memref<25x32x128xbf16, #tpu.memory_space<vmem>>, vector<1x32x128xbf16>
      %173 = vector.shape_cast %172 : vector<1x32x128xbf16> to vector<32x128xbf16>
      %cst_117 = arith.constant dense<0.000000e+00> : vector<36x128xf32>
      %174 = tpu.matmul %171, %173, %cst_117 {dimension_numbers = #tpu.dot_dimension_numbers<[1], [0], [0], [1], [0, 0, 1, 1], [], []>} : vector<36x32xbf16>, vector<32x128xbf16>, vector<36x128xf32> -> vector<36x128xf32>
      %175 = arith.addf %165, %174 : vector<36x128xf32>
      %c54_i32_118 = arith.constant 54 : i32
      %176 = arith.addi %4, %c54_i32_118 : i32
      %c2_i32_119 = arith.constant 2 : i32
      %177 = arith.addi %176, %c2_i32_119 : i32
      %c0_120 = arith.constant 0 : index
      %178 = arith.index_cast %177 : i32 to index
      %c0_121 = arith.constant 0 : index
      %179 = vector.load %arg1[%c0_120, %178, %c0_121] : memref<1x328x32xf32, #tpu.memory_space<vmem>>, vector<1x36x32xf32>
      %180 = vector.shape_cast %179 : vector<1x36x32xf32> to vector<36x32xf32>
      %181 = arith.truncf %180 : vector<36x32xf32> to vector<36x32xbf16>
      %c17 = arith.constant 17 : index
      %c0_122 = arith.constant 0 : index
      %c0_123 = arith.constant 0 : index
      %182 = vector.load %arg2[%c17, %c0_122, %c0_123] : memref<25x32x128xbf16, #tpu.memory_space<vmem>>, vector<1x32x128xbf16>
      %183 = vector.shape_cast %182 : vector<1x32x128xbf16> to vector<32x128xbf16>
      %cst_124 = arith.constant dense<0.000000e+00> : vector<36x128xf32>
      %184 = tpu.matmul %181, %183, %cst_124 {dimension_numbers = #tpu.dot_dimension_numbers<[1], [0], [0], [1], [0, 0, 1, 1], [], []>} : vector<36x32xbf16>, vector<32x128xbf16>, vector<36x128xf32> -> vector<36x128xf32>
      %185 = arith.addf %175, %184 : vector<36x128xf32>
      %c54_i32_125 = arith.constant 54 : i32
      %186 = arith.addi %4, %c54_i32_125 : i32
      %c3_i32_126 = arith.constant 3 : i32
      %187 = arith.addi %186, %c3_i32_126 : i32
      %c0_127 = arith.constant 0 : index
      %188 = arith.index_cast %187 : i32 to index
      %c0_128 = arith.constant 0 : index
      %189 = vector.load %arg1[%c0_127, %188, %c0_128] : memref<1x328x32xf32, #tpu.memory_space<vmem>>, vector<1x36x32xf32>
      %190 = vector.shape_cast %189 : vector<1x36x32xf32> to vector<36x32xf32>
      %191 = arith.truncf %190 : vector<36x32xf32> to vector<36x32xbf16>
      %c18 = arith.constant 18 : index
      %c0_129 = arith.constant 0 : index
      %c0_130 = arith.constant 0 : index
      %192 = vector.load %arg2[%c18, %c0_129, %c0_130] : memref<25x32x128xbf16, #tpu.memory_space<vmem>>, vector<1x32x128xbf16>
      %193 = vector.shape_cast %192 : vector<1x32x128xbf16> to vector<32x128xbf16>
      %cst_131 = arith.constant dense<0.000000e+00> : vector<36x128xf32>
      %194 = tpu.matmul %191, %193, %cst_131 {dimension_numbers = #tpu.dot_dimension_numbers<[1], [0], [0], [1], [0, 0, 1, 1], [], []>} : vector<36x32xbf16>, vector<32x128xbf16>, vector<36x128xf32> -> vector<36x128xf32>
      %195 = arith.addf %185, %194 : vector<36x128xf32>
      %c54_i32_132 = arith.constant 54 : i32
      %196 = arith.addi %4, %c54_i32_132 : i32
      %c4_i32_133 = arith.constant 4 : i32
      %197 = arith.addi %196, %c4_i32_133 : i32
      %c0_134 = arith.constant 0 : index
      %198 = arith.index_cast %197 : i32 to index
      %c0_135 = arith.constant 0 : index
      %199 = vector.load %arg1[%c0_134, %198, %c0_135] : memref<1x328x32xf32, #tpu.memory_space<vmem>>, vector<1x36x32xf32>
      %200 = vector.shape_cast %199 : vector<1x36x32xf32> to vector<36x32xf32>
      %201 = arith.truncf %200 : vector<36x32xf32> to vector<36x32xbf16>
      %c19 = arith.constant 19 : index
      %c0_136 = arith.constant 0 : index
      %c0_137 = arith.constant 0 : index
      %202 = vector.load %arg2[%c19, %c0_136, %c0_137] : memref<25x32x128xbf16, #tpu.memory_space<vmem>>, vector<1x32x128xbf16>
      %203 = vector.shape_cast %202 : vector<1x32x128xbf16> to vector<32x128xbf16>
      %cst_138 = arith.constant dense<0.000000e+00> : vector<36x128xf32>
      %204 = tpu.matmul %201, %203, %cst_138 {dimension_numbers = #tpu.dot_dimension_numbers<[1], [0], [0], [1], [0, 0, 1, 1], [], []>} : vector<36x32xbf16>, vector<32x128xbf16>, vector<36x128xf32> -> vector<36x128xf32>
      %205 = arith.addf %195, %204 : vector<36x128xf32>
      %c72_i32 = arith.constant 72 : i32
      %206 = arith.addi %4, %c72_i32 : i32
      %c0_i32_139 = arith.constant 0 : i32
      %207 = arith.addi %206, %c0_i32_139 : i32
      %c0_140 = arith.constant 0 : index
      %208 = arith.index_cast %207 : i32 to index
      %c0_141 = arith.constant 0 : index
      %209 = vector.load %arg1[%c0_140, %208, %c0_141] : memref<1x328x32xf32, #tpu.memory_space<vmem>>, vector<1x36x32xf32>
      %210 = vector.shape_cast %209 : vector<1x36x32xf32> to vector<36x32xf32>
      %211 = arith.truncf %210 : vector<36x32xf32> to vector<36x32xbf16>
      %c20 = arith.constant 20 : index
      %c0_142 = arith.constant 0 : index
      %c0_143 = arith.constant 0 : index
      %212 = vector.load %arg2[%c20, %c0_142, %c0_143] : memref<25x32x128xbf16, #tpu.memory_space<vmem>>, vector<1x32x128xbf16>
      %213 = vector.shape_cast %212 : vector<1x32x128xbf16> to vector<32x128xbf16>
      %cst_144 = arith.constant dense<0.000000e+00> : vector<36x128xf32>
      %214 = tpu.matmul %211, %213, %cst_144 {dimension_numbers = #tpu.dot_dimension_numbers<[1], [0], [0], [1], [0, 0, 1, 1], [], []>} : vector<36x32xbf16>, vector<32x128xbf16>, vector<36x128xf32> -> vector<36x128xf32>
      %215 = arith.addf %205, %214 : vector<36x128xf32>
      %c72_i32_145 = arith.constant 72 : i32
      %216 = arith.addi %4, %c72_i32_145 : i32
      %c1_i32_146 = arith.constant 1 : i32
      %217 = arith.addi %216, %c1_i32_146 : i32
      %c0_147 = arith.constant 0 : index
      %218 = arith.index_cast %217 : i32 to index
      %c0_148 = arith.constant 0 : index
      %219 = vector.load %arg1[%c0_147, %218, %c0_148] : memref<1x328x32xf32, #tpu.memory_space<vmem>>, vector<1x36x32xf32>
      %220 = vector.shape_cast %219 : vector<1x36x32xf32> to vector<36x32xf32>
      %221 = arith.truncf %220 : vector<36x32xf32> to vector<36x32xbf16>
      %c21 = arith.constant 21 : index
      %c0_149 = arith.constant 0 : index
      %c0_150 = arith.constant 0 : index
      %222 = vector.load %arg2[%c21, %c0_149, %c0_150] : memref<25x32x128xbf16, #tpu.memory_space<vmem>>, vector<1x32x128xbf16>
      %223 = vector.shape_cast %222 : vector<1x32x128xbf16> to vector<32x128xbf16>
      %cst_151 = arith.constant dense<0.000000e+00> : vector<36x128xf32>
      %224 = tpu.matmul %221, %223, %cst_151 {dimension_numbers = #tpu.dot_dimension_numbers<[1], [0], [0], [1], [0, 0, 1, 1], [], []>} : vector<36x32xbf16>, vector<32x128xbf16>, vector<36x128xf32> -> vector<36x128xf32>
      %225 = arith.addf %215, %224 : vector<36x128xf32>
      %c72_i32_152 = arith.constant 72 : i32
      %226 = arith.addi %4, %c72_i32_152 : i32
      %c2_i32_153 = arith.constant 2 : i32
      %227 = arith.addi %226, %c2_i32_153 : i32
      %c0_154 = arith.constant 0 : index
      %228 = arith.index_cast %227 : i32 to index
      %c0_155 = arith.constant 0 : index
      %229 = vector.load %arg1[%c0_154, %228, %c0_155] : memref<1x328x32xf32, #tpu.memory_space<vmem>>, vector<1x36x32xf32>
      %230 = vector.shape_cast %229 : vector<1x36x32xf32> to vector<36x32xf32>
      %231 = arith.truncf %230 : vector<36x32xf32> to vector<36x32xbf16>
      %c22 = arith.constant 22 : index
      %c0_156 = arith.constant 0 : index
      %c0_157 = arith.constant 0 : index
      %232 = vector.load %arg2[%c22, %c0_156, %c0_157] : memref<25x32x128xbf16, #tpu.memory_space<vmem>>, vector<1x32x128xbf16>
      %233 = vector.shape_cast %232 : vector<1x32x128xbf16> to vector<32x128xbf16>
      %cst_158 = arith.constant dense<0.000000e+00> : vector<36x128xf32>
      %234 = tpu.matmul %231, %233, %cst_158 {dimension_numbers = #tpu.dot_dimension_numbers<[1], [0], [0], [1], [0, 0, 1, 1], [], []>} : vector<36x32xbf16>, vector<32x128xbf16>, vector<36x128xf32> -> vector<36x128xf32>
      %235 = arith.addf %225, %234 : vector<36x128xf32>
      %c72_i32_159 = arith.constant 72 : i32
      %236 = arith.addi %4, %c72_i32_159 : i32
      %c3_i32_160 = arith.constant 3 : i32
      %237 = arith.addi %236, %c3_i32_160 : i32
      %c0_161 = arith.constant 0 : index
      %238 = arith.index_cast %237 : i32 to index
      %c0_162 = arith.constant 0 : index
      %239 = vector.load %arg1[%c0_161, %238, %c0_162] : memref<1x328x32xf32, #tpu.memory_space<vmem>>, vector<1x36x32xf32>
      %240 = vector.shape_cast %239 : vector<1x36x32xf32> to vector<36x32xf32>
      %241 = arith.truncf %240 : vector<36x32xf32> to vector<36x32xbf16>
      %c23 = arith.constant 23 : index
      %c0_163 = arith.constant 0 : index
      %c0_164 = arith.constant 0 : index
      %242 = vector.load %arg2[%c23, %c0_163, %c0_164] : memref<25x32x128xbf16, #tpu.memory_space<vmem>>, vector<1x32x128xbf16>
      %243 = vector.shape_cast %242 : vector<1x32x128xbf16> to vector<32x128xbf16>
      %cst_165 = arith.constant dense<0.000000e+00> : vector<36x128xf32>
      %244 = tpu.matmul %241, %243, %cst_165 {dimension_numbers = #tpu.dot_dimension_numbers<[1], [0], [0], [1], [0, 0, 1, 1], [], []>} : vector<36x32xbf16>, vector<32x128xbf16>, vector<36x128xf32> -> vector<36x128xf32>
      %245 = arith.addf %235, %244 : vector<36x128xf32>
      %c72_i32_166 = arith.constant 72 : i32
      %246 = arith.addi %4, %c72_i32_166 : i32
      %c4_i32_167 = arith.constant 4 : i32
      %247 = arith.addi %246, %c4_i32_167 : i32
      %c0_168 = arith.constant 0 : index
      %248 = arith.index_cast %247 : i32 to index
      %c0_169 = arith.constant 0 : index
      %249 = vector.load %arg1[%c0_168, %248, %c0_169] : memref<1x328x32xf32, #tpu.memory_space<vmem>>, vector<1x36x32xf32>
      %250 = vector.shape_cast %249 : vector<1x36x32xf32> to vector<36x32xf32>
      %251 = arith.truncf %250 : vector<36x32xf32> to vector<36x32xbf16>
      %c24 = arith.constant 24 : index
      %c0_170 = arith.constant 0 : index
      %c0_171 = arith.constant 0 : index
      %252 = vector.load %arg2[%c24, %c0_170, %c0_171] : memref<25x32x128xbf16, #tpu.memory_space<vmem>>, vector<1x32x128xbf16>
      %253 = vector.shape_cast %252 : vector<1x32x128xbf16> to vector<32x128xbf16>
      %cst_172 = arith.constant dense<0.000000e+00> : vector<36x128xf32>
      %254 = tpu.matmul %251, %253, %cst_172 {dimension_numbers = #tpu.dot_dimension_numbers<[1], [0], [0], [1], [0, 0, 1, 1], [], []>} : vector<36x32xbf16>, vector<32x128xbf16>, vector<36x128xf32> -> vector<36x128xf32>
      %255 = arith.addf %245, %254 : vector<36x128xf32>
      %c0_173 = arith.constant 0 : index
      %c0_174 = arith.constant 0 : index
      %256 = vector.load %arg5[%c0_173, %c0_174] : memref<36x128xf32, #tpu.memory_space<vmem>>, vector<36x128xf32>
      tpu.vector_store %arg5[%c0_173, %c0_174], %255 {strides = array<i32>} : memref<36x128xf32, #tpu.memory_space<vmem>>, vector<36x128xf32>,
      %c0_175 = arith.constant 0 : index
      %c0_176 = arith.constant 0 : index
      %257 = tpu.strided_load %arg5[%c0_175, %c0_176] {strides = array<i32: 2, 1>} : memref<36x128xf32, #tpu.memory_space<vmem>>, vector<7x128xf32>
      %c1_177 = arith.constant 1 : index
      %c0_178 = arith.constant 0 : index
      %258 = tpu.strided_load %arg5[%c1_177, %c0_178] {strides = array<i32: 2, 1>} : memref<36x128xf32, #tpu.memory_space<vmem>>, vector<7x128xf32>
      %259 = arith.maximumf %257, %258 : vector<7x128xf32>
      %c18_179 = arith.constant 18 : index
      %c0_180 = arith.constant 0 : index
      %260 = tpu.strided_load %arg5[%c18_179, %c0_180] {strides = array<i32: 2, 1>} : memref<36x128xf32, #tpu.memory_space<vmem>>, vector<7x128xf32>
      %c19_181 = arith.constant 19 : index
      %c0_182 = arith.constant 0 : index
      %261 = tpu.strided_load %arg5[%c19_181, %c0_182] {strides = array<i32: 2, 1>} : memref<36x128xf32, #tpu.memory_space<vmem>>, vector<7x128xf32>
      %262 = arith.maximumf %260, %261 : vector<7x128xf32>
      %263 = arith.maximumf %259, %262 : vector<7x128xf32>
      %c0_183 = arith.constant 0 : index
      %c0_184 = arith.constant 0 : index
      %264 = vector.load %arg3[%c0_183, %c0_184] : memref<1x128xf32, #tpu.memory_space<vmem>>, vector<1x128xf32>
      %265 = vector.broadcast %264 : vector<1x128xf32> to vector<7x128xf32>
      %266 = arith.addf %263, %265 : vector<7x128xf32>
      %cst_185 = arith.constant 0.000000e+00 : f32
      %267 = vector.broadcast %cst_185 : f32 to vector<7x128xf32>
      %268 = arith.maximumf %266, %267 : vector<7x128xf32>
      %269 = vector.extract_strided_slice %268 {offsets = [0, 0], sizes = [7, 64], strides = [1, 1]} : vector<7x128xf32> to vector<7x64xf32>
      %c0_186 = arith.constant 0 : index
      %270 = arith.index_cast %2 : i32 to index
      %c0_187 = arith.constant 0 : index
      %c0_188 = arith.constant 0 : index
      %271 = vector.load %arg4[%c0_186, %270, %c0_187, %c0_188] : memref<1x7x7x64xf32, #tpu.memory_space<vmem>>, vector<1x1x7x64xf32>
      %272 = vector.shape_cast %271 : vector<1x1x7x64xf32> to vector<7x64xf32>
      %273 = vector.shape_cast %269 : vector<7x64xf32> to vector<1x1x7x64xf32>
      tpu.vector_store %arg4[%c0_186, %270, %c0_187, %c0_188], %273 {strides = array<i32>} : memref<1x7x7x64xf32, #tpu.memory_space<vmem>>, vector<1x1x7x64xf32>,
    }
    %c7_i32_0 = arith.constant 7 : i32
    return
  }
  func.func @transform_0(%arg0: i32) -> (i32, i32, i32) {
    %c0_i32 = arith.constant 0 : i32
    %c0_i32_0 = arith.constant 0 : i32
    %c0_i32_1 = arith.constant 0 : i32
    return %arg0, %c0_i32, %c0_i32_0 : i32, i32, i32
  }
  func.func @transform_1(%arg0: i32) -> (i32, i32, i32) {
    %c0_i32 = arith.constant 0 : i32
    %c0_i32_0 = arith.constant 0 : i32
    %c0_i32_1 = arith.constant 0 : i32
    %c0_i32_2 = arith.constant 0 : i32
    return %c0_i32, %c0_i32_0, %c0_i32_1 : i32, i32, i32
  }
  func.func @transform_2(%arg0: i32) -> (i32, i32) {
    %c0_i32 = arith.constant 0 : i32
    %c0_i32_0 = arith.constant 0 : i32
    %c0_i32_1 = arith.constant 0 : i32
    return %c0_i32, %c0_i32_0 : i32, i32
  }
  func.func @transform_3(%arg0: i32) -> (i32, i32, i32, i32) {
    %c0_i32 = arith.constant 0 : i32
    %c0_i32_0 = arith.constant 0 : i32
    %c0_i32_1 = arith.constant 0 : i32
    %c0_i32_2 = arith.constant 0 : i32
    return %arg0, %c0_i32, %c0_i32_0, %c0_i32_1 : i32, i32, i32, i32
  }
}

module attributes {stable_mosaic.version = 11 : i64} {
  func.func @matmul_bias_act_kernel(%arg0: i32, %arg1: memref<8x512xbf16, #tpu.memory_space<vmem>>, %arg2: memref<512x128xbf16, #tpu.memory_space<vmem>>, %arg3: memref<1x128xf32, #tpu.memory_space<vmem>>, %arg4: memref<8x128xf32, #tpu.memory_space<vmem>>) attributes {dimension_semantics = [#tpu.dimension_semantics<parallel>], iteration_bounds = array<i64: 1>, scalar_prefetch = 0 : i64, scratch_operands = 0 : i64, tpu.core_type = #tpu.core_type<tc>, window_params = [{transform_indices = @transform_0, window_bounds = array<i64: 8, 512>}, {pipeline_mode = #tpu.pipeline_mode<synchronous>, transform_indices = @transform_1, window_bounds = array<i64: 512, 128>}, {pipeline_mode = #tpu.pipeline_mode<synchronous>, transform_indices = @transform_2, window_bounds = array<i64: 1, 128>}, {transform_indices = @transform_3, window_bounds = array<i64: 8, 128>}]} {
    %c0 = arith.constant 0 : index
    %c0_0 = arith.constant 0 : index
    %0 = vector.load %arg1[%c0, %c0_0] : memref<8x512xbf16, #tpu.memory_space<vmem>>, vector<8x512xbf16>
    %c0_1 = arith.constant 0 : index
    %c0_2 = arith.constant 0 : index
    %1 = vector.load %arg2[%c0_1, %c0_2] : memref<512x128xbf16, #tpu.memory_space<vmem>>, vector<512x128xbf16>
    %cst = arith.constant dense<0.000000e+00> : vector<8x128xf32>
    %2 = tpu.matmul %0, %1, %cst {dimension_numbers = #tpu.dot_dimension_numbers<[1], [0], [0], [1], [0, 0, 1, 1], [], []>} : vector<8x512xbf16>, vector<512x128xbf16>, vector<8x128xf32> -> vector<8x128xf32>
    %c0_3 = arith.constant 0 : index
    %c0_4 = arith.constant 0 : index
    %3 = vector.load %arg3[%c0_3, %c0_4] : memref<1x128xf32, #tpu.memory_space<vmem>>, vector<1x128xf32>
    %4 = vector.broadcast %3 : vector<1x128xf32> to vector<8x128xf32>
    %5 = arith.addf %2, %4 : vector<8x128xf32>
    %c0_5 = arith.constant 0 : index
    %c0_6 = arith.constant 0 : index
    %6 = vector.load %arg4[%c0_5, %c0_6] : memref<8x128xf32, #tpu.memory_space<vmem>>, vector<8x128xf32>
    tpu.vector_store %arg4[%c0_5, %c0_6], %5 {strides = array<i32>} : memref<8x128xf32, #tpu.memory_space<vmem>>, vector<8x128xf32>,
    return
  }
  func.func @transform_0(%arg0: i32) -> (i32, i32) {
    %c0_i32 = arith.constant 0 : i32
    %c0_i32_0 = arith.constant 0 : i32
    return %arg0, %c0_i32 : i32, i32
  }
  func.func @transform_1(%arg0: i32) -> (i32, i32) {
    %c0_i32 = arith.constant 0 : i32
    %c0_i32_0 = arith.constant 0 : i32
    %c0_i32_1 = arith.constant 0 : i32
    return %c0_i32, %c0_i32_0 : i32, i32
  }
  func.func @transform_2(%arg0: i32) -> (i32, i32) {
    %c0_i32 = arith.constant 0 : i32
    %c0_i32_0 = arith.constant 0 : i32
    %c0_i32_1 = arith.constant 0 : i32
    return %c0_i32, %c0_i32_0 : i32, i32
  }
  func.func @transform_3(%arg0: i32) -> (i32, i32) {
    %c0_i32 = arith.constant 0 : i32
    %c0_i32_0 = arith.constant 0 : i32
    return %arg0, %c0_i32 : i32, i32
  }
}

</mosaic_0001>

<bundles_post_ra>
// kernel: mnist_cnn_forward.4
= control target key start
LH: loop header
LB: loop body
LE: loop exit
PB: predicated region body
PF: predicated region fallthrough
CT: control target
= control target key end

     0   :  { %s3754_s12 = smov 0   ;;  %s4377_s0 = inlined_call_operand.vmem [shape: f32[2,1032,8], index: 0, kind: input, shape index: {}]   ;;  %s4378_s1 = inlined_call_operand.vmem [shape: bf16[25,8,128], index: 1, kind: input, shape index: {}]   ;;  %s4379_s2 = inlined_call_operand.vmem [shape: f32[1,128], index: 2, kind: input, shape index: {}]   ;;  %s4380_s3 = inlined_call_operand.vmem [shape: f32[2,14,14,32], index: 3, kind: output, shape index: {}]  }
   0x1 LB: > { %s2945_s13 = sadd.s32 4294967295, %s3728_s12   ;;  %p2949_p0 = scmp.ge.s32.totalorder %s3728_s12, 1  ;;  %s3728_s12 = sphi %s3754_s12, %s13_s12  }
   0x2   : > { %p137_p1 = scmp.lt.s32.totalorder %s3728_s12, 3 }
   0x4   : > { %p138_p2 = pnand %p2949_p0, %p137_p1 }
   0x5   : > { %p161_p3 = scmp.lt.s32.totalorder (!%p138_p2), %s2945_s13, 1  ;;  %s3772_s22 = smov (!%p138_p2), 0  }
   0x6   : > { %141 = sbr.rel (%p138_p2) target bundleno = 435 (0x1b3), region = 32 }
   0xb   : > { %s4402_s13 = smov (!%p161_p3, %s2945_s13), 1 }
   0xc   : > { %s3700_s14 = smul.u32 1032, %s4402_s13 }
   0xd   : > { %s3701_s15 = smul.u32 224, %s4402_s13 }
   0xe   : > { %s3765_s18 = scalar_lea.vmem %s4377_s0, %s3700_s14 }
   0xf   : > { %s3770_s21 = scalar_lea.vmem %s4380_s3, %s3701_s15 }
  0x10 LB: >> { %v2962_v0 = vld [vmem:[%s4378_s1 + $0x4] sm:$0xf]  ;;  %vm222_vm0 = vcmask 1043456   ;;  %v192_v1 = vld [vmem:[%s4378_s1] sm:$0xf]  ;;  %s2952_s29 = sshll.u32 %s3732_s22, 6  ;;  %s3732_s22 = sphi %s3772_s22, %s177_s22  }
  0x11   : >> { %3675 = vmatprep.subr.msk.bf16.mxu1 %vm222_vm0, %v2962_v0  ;;  %3674 = vmatprep.subr.msk.bf16.mxu0 %vm222_vm0, %v2962_v0  ;;  %v224_v2 = vsel %vm222_vm0, %v2962_v0, 0  ;;  %v2980_v3 = vld [vmem:[%s4378_s1 + $0x8] sm:$0xf]  ;;  %s3791_s30 = scalar_lea.vmem %s3765_s18, %s2952_s29  ;;  %vm209_vm1 = vcmask 64512   ;;  %v304_v18 = vsel %vm222_vm0, %v192_v1, 0  ;;  %s3294_s5 = sshll.u32 %s3732_s22, 4 }
  0x12   : >> { %3673 = vmatpush3.bf16.msra.mxu1 %v224_v2  ;;  %3423 = vmatpush3.bf16.msra.mxu0 %v224_v2  ;;  %v2954_v4 = vld [vmem:[%s3791_s30 + $0x1] sm:$0xff]  ;;  %v2955_v5 = vld [vmem:[%s3791_s30 + $0x9] sm:$0xff]  ;;  %v2956_v9 = vld [vmem:[%s3791_s30 + $0x11] sm:$0xff]  ;;  %v400_v15 = vsel %vm222_vm0, %v2980_v3, 0  ;;  %s2804_s6 = scalar_lea.vmem %s3770_s21, %s3294_s5  ;;  %vm2807_vm2 = vcmask 259072   ;;  %vm2805_vm3 = vcmask 261120  }
  0x13   : >> { %3676 = vmatprep.subr.msk.bf16.mxu1 %vm222_vm0, %v192_v1  ;;  %3677 = vmatprep.subr.msk.bf16.mxu0 %vm222_vm0, %v2980_v3  ;;  %v2958_v6 = vld [vmem:[%s3791_s30 + $0x21] sm:$0xff]  ;;  %v203_v7 = vpack.c.bf16 %v2955_v5, %v2954_v4  ;;  %v2959_v8 = vld [vmem:[%s3791_s30 + $0x29] sm:$0xff]  ;;  %v2957_v10 = vld [vmem:[%s3791_s30 + $0x19] sm:$0xff]  ;;  %s177_s22 = sadd.s32 1, %s3732_s22  }
  0x14   : >> { %v3801_v11 = vpack.c.bf16 %v2959_v8, %v2958_v6  ;;  %v204_v12 = vpack.c.bf16 %v2957_v10, %v2956_v9  ;;  %v2960_v13 = vld [vmem:[%s3791_s30 + $0x31] sm:$0xff]  ;;  %v2961_v14 = vld [vmem:[%s3791_s30 + $0x39] sm:$0xff]  ;;  %v181_v19 = vld [vmem:[%s3791_s30 + $0x8] sm:$0xff]  ;;  %p174_p4 = scmp.ge.s32.totalorder %s177_s22, 14  }
  0x15   : >> { %v180_v16 = vld [vmem:[%s3791_s30] sm:$0xff]  ;;  %3424 = vmatprep.mubr.msk.bf16.mxu0 %vm209_vm1, %v203_v7  ;;  %v3808_v17 = vpack.c.bf16 %v2961_v14, %v2960_v13  ;;  %v2973_v21 = vld [vmem:[%s3791_s30 + $0xa] sm:$0xff]  ;;  %v2974_v25 = vld [vmem:[%s3791_s30 + $0x12] sm:$0xff] }
  0x16   : >> { %v2972_v20 = vld [vmem:[%s3791_s30 + $0x2] sm:$0xff]  ;;  %3428 = vmatprep.mubr.msk.bf16.mxu1 %vm209_vm1, %v3801_v11  ;;  %3425 = vmatmul.mubr.msk.bf16.vlgmr.msra.gmra.mxu0 %vm209_vm1, %v204_v12  ;;  %v188_v22 = vpack.c.bf16 %v181_v19, %v180_v16  ;;  %v2994_v24 = vld [vmem:[%s4378_s1 + $0xc] sm:$0xf]  ;;  %v2975_v26 = vld [vmem:[%s3791_s30 + $0x1a] sm:$0xff] }
  0x17   : >> { %v381_v23 = vpack.c.bf16 %v2973_v21, %v2972_v20  ;;  %3429 = vmatmul.mubr.msk.bf16.vlgmr.msra.gmra.mxu1 %vm209_vm1, %v3808_v17  ;;  %3443 = vmatpush3.bf16.msra.mxu0 %v400_v15  ;;  %v3008_v27 = vld [vmem:[%s4378_s1 + $0x10] sm:$0xf]  ;;  %v183_v29 = vld [vmem:[%s3791_s30 + $0x18] sm:$0xff]  ;;  %v184_v30 = vld [vmem:[%s3791_s30 + $0x20] sm:$0xff]  ;;  %v382_v32 = vpack.c.bf16 %v2975_v26, %v2974_v25  ;;  %v504_v38 = vsel %vm222_vm0, %v2994_v24, 0 }
  0x18   : >> { %3433 = vmatpush3.bf16.msra.mxu1 %v304_v18  ;;  %3434 = vmatprep.mubr.msk.bf16.mxu1 %vm209_vm1, %v188_v22  ;;  %v182_v28 = vld [vmem:[%s3791_s30 + $0x10] sm:$0xff]  ;;  %v185_v31 = vld [vmem:[%s3791_s30 + $0x28] sm:$0xff]  ;;  %v608_v36 = vsel %vm222_vm0, %v3008_v27, 0  ;;  %v3036_v41 = vld [vmem:[%s4378_s1 + $0x18] sm:$0xf] }
  0x19   : >> { %3444 = vmatprep.mubr.msk.bf16.mxu0 %vm209_vm1, %v381_v23  ;;  %3678 = vmatprep.subr.msk.bf16.mxu1 %vm222_vm0, %v2994_v24  ;;  %v2976_v33 = vld [vmem:[%s3791_s30 + $0x22] sm:$0xff]  ;;  %v2977_v34 = vld [vmem:[%s3791_s30 + $0x2a] sm:$0xff]  ;;  %v189_v35 = vpack.c.bf16 %v183_v29, %v182_v28  ;;  %v190_v37 = vpack.c.bf16 %v185_v31, %v184_v30  ;;  %v3022_v40 = vld [vmem:[%s4378_s1 + $0x14] sm:$0xf]  ;;  %v816_v0 = vsel %vm222_vm0, %v3036_v41, 0 }
  0x1a   : >> { %3679 = vmatprep.subr.msk.bf16.mxu0 %vm222_vm0, %v3008_v27  ;;  %v3839_v39 = vpack.c.bf16 %v2977_v34, %v2976_v33  ;;  %v186_v42 = vld [vmem:[%s3791_s30 + $0x30] sm:$0xff]  ;;  %v2979_v44 = vld [vmem:[%s3791_s30 + $0x3a] sm:$0xff]  ;;  %v3000_v46 = vld [vmem:[%s3791_s30 + $0x4] sm:$0xff]  ;;  %v712_v2 = vsel %vm222_vm0, %v3022_v40, 0 }
  0x1b   : >> { %v2978_v43 = vld [vmem:[%s3791_s30 + $0x32] sm:$0xff]  ;;  %v2986_v48 = vld [vmem:[%s3791_s30 + $0x3] sm:$0xff]  ;;  %v2989_v57 = vld [vmem:[%s3791_s30 + $0x1b] sm:$0xff] }
  0x1c   : >> { %v187_v45 = vld [vmem:[%s3791_s30 + $0x38] sm:$0xff]  ;;  %v3001_v47 = vld [vmem:[%s3791_s30 + $0xc] sm:$0xff]  ;;  %v3861_v50 = vpack.c.bf16 %v2979_v44, %v2978_v43  ;;  %v2990_v58 = vld [vmem:[%s3791_s30 + $0x23] sm:$0xff] }
  0x1d   : >> { %v2987_v49 = vld [vmem:[%s3791_s30 + $0xb] sm:$0xff]  ;;  %v191_v51 = vpack.c.bf16 %v187_v45, %v186_v42  ;;  %v589_v52 = vpack.c.bf16 %v3001_v47, %v3000_v46  ;;  %v3002_v54 = vld [vmem:[%s3791_s30 + $0x14] sm:$0xff]  ;;  %v3003_v55 = vld [vmem:[%s3791_s30 + $0x1c] sm:$0xff] }
  0x1e   : >> { %3445 = vmatmul.mubr.msk.bf16.vlgmr.msra.gmra.mxu0 %vm209_vm1, %v382_v32  ;;  %v485_v53 = vpack.c.bf16 %v2987_v49, %v2986_v48  ;;  %v2988_v56 = vld [vmem:[%s3791_s30 + $0x13] sm:$0xff]  ;;  %v2991_v59 = vld [vmem:[%s3791_s30 + $0x2b] sm:$0xff]  ;;  %v590_v60 = vpack.c.bf16 %v3003_v55, %v3002_v54  ;;  %v3050_v4 = vld [vmem:[%s4378_s1 + $0x1c] sm:$0xf] }
  0x1f   : >> { %3435 = vmatmul.mubr.msk.bf16.vlgmr.msra.gmra.mxu1 %vm209_vm1, %v189_v35  ;;  %3463 = vmatpush3.bf16.msra.mxu0 %v608_v36  ;;  %v3004_v61 = vld [vmem:[%s3791_s30 + $0x24] sm:$0xff]  ;;  %v3005_v62 = vld [vmem:[%s3791_s30 + $0x2c] sm:$0xff]  ;;  %v486_v63 = vpack.c.bf16 %v2989_v57, %v2988_v56  ;;  %v487_v1 = vpack.c.bf16 %v2991_v59, %v2990_v58  ;;  %v3006_v5 = vld [vmem:[%s3791_s30 + $0x34] sm:$0xff]  ;;  %v920_v20 = vsel %vm222_vm0, %v3050_v4, 0 }
  0x20   : >> { %3453 = vmatpush3.bf16.msra.mxu1 %v504_v38  ;;  %3438 = vmatprep.mubr.msk.bf16.mxu1 %vm209_vm1, %v190_v37  ;;  %v3879_v3 = vpack.c.bf16 %v3005_v62, %v3004_v61  ;;  %v3007_v6 = vld [vmem:[%s3791_s30 + $0x3c] sm:$0xff]  ;;  %v2992_v8 = vld [vmem:[%s3791_s30 + $0x33] sm:$0xff]  ;;  %v3019_v14 = vld [vmem:[%s3791_s30 + $0x48] sm:$0xff] }
  0x21   : >> { %3448 = vmatprep.mubr.msk.bf16.mxu0 %vm209_vm1, %v3839_v39  ;;  %3680 = vmatprep.subr.msk.bf16.mxu1 %vm222_vm0, %v3022_v40  ;;  %v3064_v7 = vld [vmem:[%s4378_s1 + $0x20] sm:$0xf]  ;;  %v3897_v10 = vpack.c.bf16 %v3007_v6, %v3006_v5  ;;  %v3033_v16 = vld [vmem:[%s3791_s30 + $0x49] sm:$0xff]  ;;  %v3034_v22 = vld [vmem:[%s3791_s30 + $0x51] sm:$0xff] }
  0x22   : >> { %3681 = vmatprep.subr.msk.bf16.mxu0 %vm222_vm0, %v3036_v41  ;;  %v2993_v9 = vld [vmem:[%s3791_s30 + $0x3b] sm:$0xff]  ;;  %v1024_v18 = vsel %vm222_vm0, %v3064_v7, 0  ;;  %v3092_v24 = vld [vmem:[%s4378_s1 + $0x28] sm:$0xf]  ;;  %v3106_v36 = vld [vmem:[%s4378_s1 + $0x2c] sm:$0xf] }
  0x23   : >> { %v488_v12 = vpack.c.bf16 %v2993_v9, %v2992_v8  ;;  %v3018_v13 = vld [vmem:[%s3791_s30 + $0x40] sm:$0xff]  ;;  %v3021_v25 = vld [vmem:[%s3791_s30 + $0x58] sm:$0xff]  ;;  %v3047_v29 = vld [vmem:[%s3791_s30 + $0x4a] sm:$0xff]  ;;  %v1232_v32 = vsel %vm222_vm0, %v3092_v24, 0 }
  0x24   : >> { %v3032_v15 = vld [vmem:[%s3791_s30 + $0x41] sm:$0xff]  ;;  %v695_v19 = vpack.c.bf16 %v3019_v14, %v3018_v13  ;;  %v3035_v23 = vld [vmem:[%s3791_s30 + $0x59] sm:$0xff]  ;;  %v3061_v31 = vld [vmem:[%s3791_s30 + $0x4b] sm:$0xff] }
  0x25   : >> { %v3912_v21 = vpack.c.bf16 %v3033_v16, %v3032_v15  ;;  %v3931_v26 = vpack.c.bf16 %v3035_v23, %v3034_v22  ;;  %v3046_v28 = vld [vmem:[%s3791_s30 + $0x42] sm:$0xff]  ;;  %v3048_v40 = vld [vmem:[%s3791_s30 + $0x52] sm:$0xff]  ;;  %v3049_v41 = vld [vmem:[%s3791_s30 + $0x5a] sm:$0xff] }
  0x26   : >> { %3449 = vmatmul.mubr.msk.bf16.gmra.mxu0 %vm209_vm1, %v3861_v50  ;;  %v3060_v30 = vld [vmem:[%s3791_s30 + $0x43] sm:$0xff]  ;;  %v903_v33 = vpack.c.bf16 %v3047_v29, %v3046_v28  ;;  %v3063_v38 = vld [vmem:[%s3791_s30 + $0x5b] sm:$0xff]  ;;  %v904_v43 = vpack.c.bf16 %v3049_v41, %v3048_v40  ;;  %v3075_v45 = vld [vmem:[%s3791_s30 + $0x4c] sm:$0xff] }
  0x27   : >> { %3439 = vmatmul.mubr.msk.bf16.gmra.mxu1 %vm209_vm1, %v191_v51  ;;  %3464 = vmatprep.mubr.msk.bf16.mxu0 %vm209_vm1, %v589_v52  ;;  %v3946_v35 = vpack.c.bf16 %v3061_v31, %v3060_v30  ;;  %v3074_v44 = vld [vmem:[%s3791_s30 + $0x44] sm:$0xff]  ;;  %v3134_v52 = vld [vmem:[%s4378_s1 + $0x34] sm:$0xf]  ;;  %v3091_v54 = vld [vmem:[%s3791_s30 + $0x78] sm:$0xff] }
  0x28   : >> { %3454 = vmatprep.mubr.msk.bf16.mxu1 %vm209_vm1, %v485_v53  ;;  %v3088_v46 = vld [vmem:[%s3791_s30 + $0x60] sm:$0xff]  ;;  %v3089_v47 = vld [vmem:[%s3791_s30 + $0x68] sm:$0xff]  ;;  %v1111_v49 = vpack.c.bf16 %v3075_v45, %v3074_v44  ;;  %v3090_v53 = vld [vmem:[%s3791_s30 + $0x70] sm:$0xff] }
  0x29   : >> { %v3148_v55 = vld [vmem:[%s4378_s1 + $0x38] sm:$0xf]  ;;  %v3077_v57 = vld [vmem:[%s3791_s30 + $0x5c] sm:$0xff]  ;;  %v3999_v58 = vpack.c.bf16 %v3091_v54, %v3090_v53  ;;  %v3103_v61 = vld [vmem:[%s3791_s30 + $0x69] sm:$0xff] }
  0x2a   : >> { %v3076_v56 = vld [vmem:[%s3791_s30 + $0x54] sm:$0xff]  ;;  %v3116_v62 = vld [vmem:[%s3791_s30 + $0x62] sm:$0xff]  ;;  %v3131_v14 = vld [vmem:[%s3791_s30 + $0x6b] sm:$0xff] }
  0x2b   : >> { %v1112_v59 = vpack.c.bf16 %v3077_v57, %v3076_v56  ;;  %v3118_v5 = vld [vmem:[%s3791_s30 + $0x72] sm:$0xff]  ;;  %v3119_v6 = vld [vmem:[%s3791_s30 + $0x7a] sm:$0xff]  ;;  %v3130_v13 = vld [vmem:[%s3791_s30 + $0x63] sm:$0xff] }
  0x2c   : >> { %v3104_v8 = vld [vmem:[%s3791_s30 + $0x71] sm:$0xff]  ;;  %v3105_v9 = vld [vmem:[%s3791_s30 + $0x79] sm:$0xff]  ;;  %v3144_v15 = vld [vmem:[%s3791_s30 + $0x64] sm:$0xff] }
  0x2d   : >> { %v3145_v16 = vld [vmem:[%s3791_s30 + $0x6c] sm:$0xff]  ;;  %v3146_v22 = vld [vmem:[%s3791_s30 + $0x74] sm:$0xff]  ;;  %v3147_v23 = vld [vmem:[%s3791_s30 + $0x7c] sm:$0xff] }
  0x2e   : >> { %3465 = vmatmul.mubr.msk.bf16.vlgmr.msra.gmra.mxu0 %vm209_vm1, %v590_v60  ;;  %v3102_v60 = vld [vmem:[%s3791_s30 + $0x61] sm:$0xff]  ;;  %v3173_v31 = vld [vmem:[%s3791_s30 + $0x89] sm:$0xff]  ;;  %v3161_v41 = vld [vmem:[%s3791_s30 + $0x98] sm:$0xff] }
  0x2f   : >> { %3455 = vmatmul.mubr.msk.bf16.vlgmr.msra.gmra.mxu1 %vm209_vm1, %v486_v63  ;;  %3483 = vmatpush3.bf16.msra.mxu0 %v816_v0  ;;  %v3117_v63 = vld [vmem:[%s3791_s30 + $0x6a] sm:$0xff]  ;;  %v1648_v0 = vsel %vm222_vm0, %v3148_v55, 0  ;;  %v3158_v28 = vld [vmem:[%s3791_s30 + $0x80] sm:$0xff]  ;;  %v3202_v53 = vld [vmem:[%s3791_s30 + $0x93] sm:$0xff] }
  0x30   : >> { %3473 = vmatpush3.bf16.msra.mxu1 %v712_v2  ;;  %3458 = vmatprep.mubr.msk.bf16.mxu1 %vm209_vm1, %v487_v1  ;;  %v1544_v2 = vsel %vm222_vm0, %v3134_v52, 0  ;;  %v3159_v29 = vld [vmem:[%s3791_s30 + $0x88] sm:$0xff]  ;;  %v3160_v40 = vld [vmem:[%s3791_s30 + $0x90] sm:$0xff]  ;;  %v3203_v54 = vld [vmem:[%s3791_s30 + $0x9b] sm:$0xff] }
  0x31   : >> { %3468 = vmatprep.mubr.msk.bf16.mxu0 %vm209_vm1, %v3879_v3  ;;  %3682 = vmatprep.subr.msk.bf16.mxu1 %vm222_vm0, %v3050_v4  ;;  %v3162_v4 = vld [vmem:[%s4378_s1 + $0x3c] sm:$0xf]  ;;  %v3172_v30 = vld [vmem:[%s3791_s30 + $0x81] sm:$0xff]  ;;  %v3187_v45 = vld [vmem:[%s3791_s30 + $0x8a] sm:$0xff] }
  0x32   : >> { %3683 = vmatprep.subr.msk.bf16.mxu0 %vm222_vm0, %v3064_v7  ;;  %v3176_v7 = vld [vmem:[%s4378_s1 + $0x40] sm:$0xf]  ;;  %v3188_v56 = vld [vmem:[%s3791_s30 + $0x92] sm:$0xff] }
  0x33   : >> { %v3186_v44 = vld [vmem:[%s3791_s30 + $0x82] sm:$0xff]  ;;  %v3189_v57 = vld [vmem:[%s3791_s30 + $0x9a] sm:$0xff] }
  0x36   : >> { %3469 = vmatmul.mubr.msk.bf16.gmra.mxu0 %vm209_vm1, %v3897_v10 }
  0x37   : >> { %3459 = vmatmul.mubr.msk.bf16.gmra.mxu1 %vm209_vm1, %v488_v12  ;;  %3484 = vmatprep.mubr.msk.bf16.mxu0 %vm209_vm1, %v3801_v11  ;;  %v3078_v11 = vld [vmem:[%s4378_s1 + $0x24] sm:$0xf] }
  0x38   : >> { %3474 = vmatprep.mubr.msk.bf16.mxu1 %vm209_vm1, %v190_v37  ;;  %v1128_v34 = vsel %vm222_vm0, %v3078_v11, 0  ;;  %v3062_v37 = vld [vmem:[%s3791_s30 + $0x53] sm:$0xff] }
  0x39   : >> { %v3965_v42 = vpack.c.bf16 %v3063_v38, %v3062_v37  ;;  %v3174_v37 = vld [vmem:[%s3791_s30 + $0x91] sm:$0xff]  ;;  %v3175_v38 = vld [vmem:[%s3791_s30 + $0x99] sm:$0xff] }
  0x3e   : >> { %3485 = vmatmul.mubr.msk.bf16.vlgmr.msra.gmra.mxu0 %vm209_vm1, %v3808_v17  ;;  %v3020_v17 = vld [vmem:[%s3791_s30 + $0x50] sm:$0xff] }
  0x3f   : >> { %3475 = vmatmul.mubr.msk.bf16.vlgmr.msra.gmra.mxu1 %vm209_vm1, %v191_v51  ;;  %3503 = vmatpush3.bf16.msra.mxu0 %v1024_v18  ;;  %v696_v27 = vpack.c.bf16 %v3021_v25, %v3020_v17  ;;  %v3980_v51 = vpack.c.bf16 %v3089_v47, %v3088_v46  ;;  %v1856_v18 = vsel %vm222_vm0, %v3176_v7, 0  ;;  %v3132_v17 = vld [vmem:[%s3791_s30 + $0x73] sm:$0xff]  ;;  %v3133_v25 = vld [vmem:[%s3791_s30 + $0x7b] sm:$0xff]  ;;  %v3200_v46 = vld [vmem:[%s3791_s30 + $0x83] sm:$0xff] }
  0x40   : >> { %3493 = vmatpush3.bf16.msra.mxu1 %v920_v20  ;;  %3478 = vmatprep.mubr.msk.bf16.mxu1 %vm209_vm1, %v695_v19  ;;  %v1752_v20 = vsel %vm222_vm0, %v3162_v4, 0  ;;  %v3201_v47 = vld [vmem:[%s3791_s30 + $0x8b] sm:$0xff] }
  0x41   : >> { %3488 = vmatprep.mubr.msk.bf16.mxu0 %vm209_vm1, %v3912_v21  ;;  %3684 = vmatprep.subr.msk.bf16.mxu1 %vm222_vm0, %v3078_v11  ;;  %v3190_v11 = vld [vmem:[%s4378_s1 + $0x44] sm:$0xf] }
  0x42   : >> { %3685 = vmatprep.subr.msk.bf16.mxu0 %vm222_vm0, %v3092_v24  ;;  %v3204_v24 = vld [vmem:[%s4378_s1 + $0x48] sm:$0xf] }
  0x46   : >> { %3489 = vmatmul.mubr.msk.bf16.gmra.mxu0 %vm209_vm1, %v3931_v26 }
  0x47   : >> { %3479 = vmatmul.mubr.msk.bf16.gmra.mxu1 %vm209_vm1, %v696_v27  ;;  %3504 = vmatprep.mubr.msk.bf16.mxu0 %vm209_vm1, %v487_v1  ;;  %v1319_v1 = vpack.c.bf16 %v3103_v61, %v3102_v60  ;;  %v3214_v60 = vld [vmem:[%s3791_s30 + $0x84] sm:$0xff]  ;;  %v3215_v61 = vld [vmem:[%s3791_s30 + $0x8c] sm:$0xff] }
  0x48   : >> { %3494 = vmatprep.mubr.msk.bf16.mxu1 %vm209_vm1, %v3839_v39  ;;  %v3120_v39 = vld [vmem:[%s4378_s1 + $0x30] sm:$0xf] }
  0x49   : >> { %v1440_v48 = vsel %vm222_vm0, %v3120_v39, 0 }
  0x4e   : >> { %3505 = vmatmul.mubr.msk.bf16.vlgmr.msra.gmra.mxu0 %vm209_vm1, %v488_v12  ;;  %v1320_v12 = vpack.c.bf16 %v3105_v9, %v3104_v8  ;;  %v3216_v8 = vld [vmem:[%s3791_s30 + $0x94] sm:$0xff]  ;;  %v3217_v9 = vld [vmem:[%s3791_s30 + $0x9c] sm:$0xff] }
  0x4f   : >> { %3495 = vmatmul.mubr.msk.bf16.vlgmr.msra.gmra.mxu1 %vm209_vm1, %v3861_v50  ;;  %3523 = vmatpush3.bf16.msra.mxu0 %v1232_v32  ;;  %v1336_v50 = vsel %vm222_vm0, %v3106_v36, 0  ;;  %v2064_v32 = vsel %vm222_vm0, %v3204_v24, 0 }
  0x50   : >> { %3513 = vmatpush3.bf16.msra.mxu1 %v1128_v34  ;;  %3498 = vmatprep.mubr.msk.bf16.mxu1 %vm209_vm1, %v903_v33  ;;  %v1960_v34 = vsel %vm222_vm0, %v3190_v11, 0 }
  0x51   : >> { %3508 = vmatprep.mubr.msk.bf16.mxu0 %vm209_vm1, %v3946_v35  ;;  %3686 = vmatprep.subr.msk.bf16.mxu1 %vm222_vm0, %v3106_v36  ;;  %v3218_v36 = vld [vmem:[%s4378_s1 + $0x4c] sm:$0xf] }
  0x52   : >> { %3687 = vmatprep.subr.msk.bf16.mxu0 %vm222_vm0, %v3120_v39  ;;  %v3232_v39 = vld [vmem:[%s4378_s1 + $0x50] sm:$0xf] }
  0x56   : >> { %3509 = vmatmul.mubr.msk.bf16.gmra.mxu0 %vm209_vm1, %v3965_v42 }
  0x57   : >> { %3499 = vmatmul.mubr.msk.bf16.gmra.mxu1 %vm209_vm1, %v904_v43  ;;  %3524 = vmatprep.mubr.msk.bf16.mxu0 %vm209_vm1, %v695_v19  ;;  %v1527_v19 = vpack.c.bf16 %v3131_v14, %v3130_v13  ;;  %v3242_v13 = vld [vmem:[%s3791_s30 + $0xa1] sm:$0xff]  ;;  %v3243_v14 = vld [vmem:[%s3791_s30 + $0xa9] sm:$0xff] }
  0x58   : >> { %3514 = vmatprep.mubr.msk.bf16.mxu1 %vm209_vm1, %v3879_v3  ;;  %v4014_v3 = vpack.c.bf16 %v3117_v63, %v3116_v62  ;;  %v3228_v62 = vld [vmem:[%s3791_s30 + $0xa0] sm:$0xff]  ;;  %v3229_v63 = vld [vmem:[%s3791_s30 + $0xa8] sm:$0xff] }
  0x5e   : >> { %3525 = vmatmul.mubr.msk.bf16.vlgmr.msra.gmra.mxu0 %vm209_vm1, %v696_v27  ;;  %v1528_v27 = vpack.c.bf16 %v3133_v25, %v3132_v17 }
  0x5f   : >> { %3515 = vmatmul.mubr.msk.bf16.vlgmr.msra.gmra.mxu1 %vm209_vm1, %v3897_v10  ;;  %3543 = vmatpush3.bf16.msra.mxu0 %v1440_v48  ;;  %v4033_v10 = vpack.c.bf16 %v3119_v6, %v3118_v5  ;;  %v2272_v48 = vsel %vm222_vm0, %v3232_v39, 0  ;;  %v3230_v5 = vld [vmem:[%s3791_s30 + $0xb0] sm:$0xff]  ;;  %v3231_v6 = vld [vmem:[%s3791_s30 + $0xb8] sm:$0xff] }
  0x60   : >> { %3533 = vmatpush3.bf16.msra.mxu1 %v1336_v50  ;;  %3518 = vmatprep.mubr.msk.bf16.mxu1 %vm209_vm1, %v1111_v49  ;;  %v2168_v50 = vsel %vm222_vm0, %v3218_v36, 0 }
  0x61   : >> { %3528 = vmatprep.mubr.msk.bf16.mxu0 %vm209_vm1, %v3980_v51  ;;  %3688 = vmatprep.subr.msk.bf16.mxu1 %vm222_vm0, %v3134_v52  ;;  %v3246_v52 = vld [vmem:[%s4378_s1 + $0x54] sm:$0xf] }
  0x62   : >> { %3689 = vmatprep.subr.msk.bf16.mxu0 %vm222_vm0, %v3148_v55  ;;  %v3260_v55 = vld [vmem:[%s4378_s1 + $0x58] sm:$0xf] }
  0x66   : >> { %3529 = vmatmul.mubr.msk.bf16.gmra.mxu0 %vm209_vm1, %v3999_v58 }
  0x67   : >> { %3519 = vmatmul.mubr.msk.bf16.gmra.mxu1 %vm209_vm1, %v1112_v59  ;;  %3544 = vmatprep.mubr.msk.bf16.mxu0 %vm209_vm1, %v903_v33  ;;  %v1735_v33 = vpack.c.bf16 %v3159_v29, %v3158_v28  ;;  %v3270_v28 = vld [vmem:[%s3791_s30 + $0xa3] sm:$0xff]  ;;  %v3271_v29 = vld [vmem:[%s3791_s30 + $0xab] sm:$0xff] }
  0x68   : >> { %3534 = vmatprep.mubr.msk.bf16.mxu1 %vm209_vm1, %v3912_v21  ;;  %v4048_v21 = vpack.c.bf16 %v3145_v16, %v3144_v15  ;;  %v3256_v15 = vld [vmem:[%s3791_s30 + $0xa2] sm:$0xff]  ;;  %v3257_v16 = vld [vmem:[%s3791_s30 + $0xaa] sm:$0xff] }
  0x6e   : >> { %3545 = vmatmul.mubr.msk.bf16.vlgmr.msra.gmra.mxu0 %vm209_vm1, %v904_v43  ;;  %v1736_v43 = vpack.c.bf16 %v3161_v41, %v3160_v40 }
  0x6f   : >> { %3535 = vmatmul.mubr.msk.bf16.vlgmr.msra.gmra.mxu1 %vm209_vm1, %v3931_v26  ;;  %3563 = vmatpush3.bf16.msra.mxu0 %v1648_v0  ;;  %v4067_v26 = vpack.c.bf16 %v3147_v23, %v3146_v22  ;;  %v2480_v0 = vsel %vm222_vm0, %v3260_v55, 0  ;;  %v3259_v22 = vld [vmem:[%s3791_s30 + $0xba] sm:$0xff]  ;;  %v3244_v23 = vld [vmem:[%s3791_s30 + $0xb1] sm:$0xff] }
  0x70   : >> { %3553 = vmatpush3.bf16.msra.mxu1 %v1544_v2  ;;  %3538 = vmatprep.mubr.msk.bf16.mxu1 %vm209_vm1, %v1319_v1  ;;  %v2376_v2 = vsel %vm222_vm0, %v3246_v52, 0 }
  0x71   : >> { %3548 = vmatprep.mubr.msk.bf16.mxu0 %vm209_vm1, %v4014_v3  ;;  %3690 = vmatprep.subr.msk.bf16.mxu1 %vm222_vm0, %v3162_v4  ;;  %v3274_v4 = vld [vmem:[%s4378_s1 + $0x5c] sm:$0xf] }
  0x72   : >> { %3691 = vmatprep.subr.msk.bf16.mxu0 %vm222_vm0, %v3176_v7  ;;  %v3288_v7 = vld [vmem:[%s4378_s1 + $0x60] sm:$0xf] }
  0x76   : >> { %3549 = vmatmul.mubr.msk.bf16.gmra.mxu0 %vm209_vm1, %v4033_v10 }
  0x77   : >> { %3539 = vmatmul.mubr.msk.bf16.gmra.mxu1 %vm209_vm1, %v1320_v12  ;;  %3564 = vmatprep.mubr.msk.bf16.mxu0 %vm209_vm1, %v1111_v49  ;;  %v1943_v49 = vpack.c.bf16 %v3187_v45, %v3186_v44 }
  0x78   : >> { %3554 = vmatprep.mubr.msk.bf16.mxu1 %vm209_vm1, %v3946_v35  ;;  %v4082_v35 = vpack.c.bf16 %v3173_v31, %v3172_v30  ;;  %v2567_v31 = vpack.c.bf16 %v3271_v29, %v3270_v28 }
  0x7e   : >> { %3565 = vmatmul.mubr.msk.bf16.vlgmr.msra.gmra.mxu0 %vm209_vm1, %v1112_v59  ;;  %v1944_v59 = vpack.c.bf16 %v3189_v57, %v3188_v56 }
  0x7f   : >> { %3555 = vmatmul.mubr.msk.bf16.vlgmr.msra.gmra.mxu1 %vm209_vm1, %v3965_v42  ;;  %3583 = vmatpush3.bf16.msra.mxu0 %v1856_v18  ;;  %v4101_v42 = vpack.c.bf16 %v3175_v38, %v3174_v37  ;;  %v2688_v18 = vsel %vm222_vm0, %v3288_v7, 0 }
  0x80   : >> { %3573 = vmatpush3.bf16.msra.mxu1 %v1752_v20  ;;  %3558 = vmatprep.mubr.msk.bf16.mxu1 %vm209_vm1, %v1527_v19  ;;  %v2584_v20 = vsel %vm222_vm0, %v3274_v4, 0 }
  0x81   : >> { %3568 = vmatprep.mubr.msk.bf16.mxu0 %vm209_vm1, %v4048_v21  ;;  %3692 = vmatprep.subr.msk.bf16.mxu1 %vm222_vm0, %v3190_v11  ;;  %v3258_v11 = vld [vmem:[%s3791_s30 + $0xb2] sm:$0xff] }
  0x82   : >> { %3693 = vmatprep.subr.msk.bf16.mxu0 %vm222_vm0, %v3204_v24  ;;  %v3245_v24 = vld [vmem:[%s3791_s30 + $0xb9] sm:$0xff]  ;;  %v2464_v17 = vpack.c.bf16 %v3259_v22, %v3258_v11 }
  0x83   : >> { %v2360_v25 = vpack.c.bf16 %v3245_v24, %v3244_v23 }
  0x86   : >> { %3569 = vmatmul.mubr.msk.bf16.gmra.mxu0 %vm209_vm1, %v4067_v26 }
  0x87   : >> { %3559 = vmatmul.mubr.msk.bf16.gmra.mxu1 %vm209_vm1, %v1528_v27  ;;  %3584 = vmatprep.mubr.msk.bf16.mxu0 %vm209_vm1, %v1319_v1  ;;  %v2151_v1 = vpack.c.bf16 %v3215_v61, %v3214_v60 }
  0x88   : >> { %3574 = vmatprep.mubr.msk.bf16.mxu1 %vm209_vm1, %v3980_v51  ;;  %v4116_v51 = vpack.c.bf16 %v3201_v47, %v3200_v46 }
  0x8e   : >> { %3585 = vmatmul.mubr.msk.bf16.vlgmr.msra.gmra.mxu0 %vm209_vm1, %v1320_v12  ;;  %v2152_v12 = vpack.c.bf16 %v3217_v9, %v3216_v8 }
  0x8f   : >> { %3575 = vmatmul.mubr.msk.bf16.vlgmr.msra.gmra.mxu1 %vm209_vm1, %v3999_v58  ;;  %3603 = vmatpush3.bf16.msra.mxu0 %v2064_v32  ;;  %v4135_v58 = vpack.c.bf16 %v3203_v54, %v3202_v53  ;;  %v3286_v32 = vld [vmem:[%s3791_s30 + $0xb4] sm:$0xff] }
  0x90   : >> { %3593 = vmatpush3.bf16.msra.mxu1 %v1960_v34  ;;  %3578 = vmatprep.mubr.msk.bf16.mxu1 %vm209_vm1, %v1735_v33  ;;  %v3272_v34 = vld [vmem:[%s3791_s30 + $0xb3] sm:$0xff] }
  0x91   : >> { %3588 = vmatprep.mubr.msk.bf16.mxu0 %vm209_vm1, %v4082_v35  ;;  %3694 = vmatprep.subr.msk.bf16.mxu1 %vm222_vm0, %v3218_v36 }
  0x92   : >> { %3695 = vmatprep.subr.msk.bf16.mxu0 %vm222_vm0, %v3232_v39 }
  0x96   : >> { %3589 = vmatmul.mubr.msk.bf16.gmra.mxu0 %vm209_vm1, %v4101_v42 }
  0x97   : >> { %3579 = vmatmul.mubr.msk.bf16.gmra.mxu1 %vm209_vm1, %v1736_v43  ;;  %3604 = vmatprep.mubr.msk.bf16.mxu0 %vm209_vm1, %v1527_v19  ;;  %v2359_v19 = vpack.c.bf16 %v3243_v14, %v3242_v13 }
  0x98   : >> { %3594 = vmatprep.mubr.msk.bf16.mxu1 %vm209_vm1, %v4014_v3  ;;  %v2255_v3 = vpack.c.bf16 %v3229_v63, %v3228_v62 }
  0x9e   : >> { %3605 = vmatmul.mubr.msk.bf16.vlgmr.msra.gmra.mxu0 %vm209_vm1, %v1528_v27  ;;  %v3285_v27 = vld [vmem:[%s3791_s30 + $0xac] sm:$0xff] }
  0x9f   : >> { %3595 = vmatmul.mubr.msk.bf16.vlgmr.msra.gmra.mxu1 %vm209_vm1, %v4033_v10  ;;  %3623 = vmatpush3.bf16.msra.mxu0 %v2272_v48  ;;  %v2256_v10 = vpack.c.bf16 %v3231_v6, %v3230_v5 }
  0xa0   : >> { %3613 = vmatpush3.bf16.msra.mxu1 %v2168_v50  ;;  %3598 = vmatprep.mubr.msk.bf16.mxu1 %vm209_vm1, %v1943_v49 }
  0xa1   : >> { %3608 = vmatprep.mubr.msk.bf16.mxu0 %vm209_vm1, %v4116_v51  ;;  %3696 = vmatprep.subr.msk.bf16.mxu1 %vm222_vm0, %v3246_v52 }
  0xa2   : >> { %3697 = vmatprep.subr.msk.bf16.mxu0 %vm222_vm0, %v3260_v55 }
  0xa6   : >> { %3609 = vmatmul.mubr.msk.bf16.gmra.mxu0 %vm209_vm1, %v4135_v58 }
  0xa7   : >> { %3599 = vmatmul.mubr.msk.bf16.gmra.mxu1 %vm209_vm1, %v1944_v59  ;;  %3624 = vmatprep.mubr.msk.bf16.mxu0 %vm209_vm1, %v1735_v33  ;;  %v3287_v33 = vld [vmem:[%s3791_s30 + $0xbc] sm:$0xff] }
  0xa8   : >> { %3614 = vmatprep.mubr.msk.bf16.mxu1 %vm209_vm1, %v4048_v21  ;;  %v2463_v21 = vpack.c.bf16 %v3257_v16, %v3256_v15  ;;  %v2672_v36 = vpack.c.bf16 %v3287_v33, %v3286_v32 }
  0xae   : >> { %3625 = vmatmul.mubr.msk.bf16.vlgmr.msra.gmra.mxu0 %vm209_vm1, %v1736_v43 }
  0xaf   : >> { %3615 = vmatmul.mubr.msk.bf16.vlgmr.msra.gmra.mxu1 %vm209_vm1, %v4067_v26  ;;  %3643 = vmatpush3.bf16.msra.mxu0 %v2480_v0  ;;  %v3284_v26 = vld [vmem:[%s3791_s30 + $0xa4] sm:$0xff] }
  0xb0   : >> { %3633 = vmatpush3.bf16.msra.mxu1 %v2376_v2  ;;  %3618 = vmatprep.mubr.msk.bf16.mxu1 %vm209_vm1, %v2151_v1  ;;  %v2671_v30 = vpack.c.bf16 %v3285_v27, %v3284_v26 }
  0xb1   : >> { %3628 = vmatprep.mubr.msk.bf16.mxu0 %vm209_vm1, %v2255_v3  ;;  %3698 = vmatprep.subr.msk.bf16.mxu1 %vm222_vm0, %v3274_v4 }
  0xb2   : >> { %3699 = vmatprep.subr.msk.bf16.mxu0 %vm222_vm0, %v3288_v7 }
  0xb6   : >> { %3629 = vmatmul.mubr.msk.bf16.gmra.mxu0 %vm209_vm1, %v2256_v10 }
  0xb7   : >> { %3619 = vmatmul.mubr.msk.bf16.gmra.mxu1 %vm209_vm1, %v2152_v12  ;;  %3644 = vmatprep.mubr.msk.bf16.mxu0 %vm209_vm1, %v1943_v49 }
  0xb8   : >> { %3634 = vmatprep.mubr.msk.bf16.mxu1 %vm209_vm1, %v4082_v35  ;;  %v3273_v35 = vld [vmem:[%s3791_s30 + $0xbb] sm:$0xff] }
  0xb9   : >> { %v2568_v37 = vpack.c.bf16 %v3273_v35, %v3272_v34 }
  0xbe   : >> { %3645 = vmatmul.mubr.msk.bf16.vlgmr.msra.gmra.mxu0 %vm209_vm1, %v1944_v59 }
  0xbf   : >> { %3635 = vmatmul.mubr.msk.bf16.vlgmr.msra.gmra.mxu1 %vm209_vm1, %v4101_v42  ;;  %3663 = vmatpush3.bf16.msra.mxu0 %v2688_v18 }
  0xc0   : >> { %3653 = vmatpush3.bf16.msra.mxu1 %v2584_v20  ;;  %3638 = vmatprep.mubr.msk.bf16.mxu1 %vm209_vm1, %v2359_v19 }
  0xc1   : >> { %3648 = vmatprep.mubr.msk.bf16.mxu0 %vm209_vm1, %v2463_v21 }
  0xc6   : >> { %3649 = vmatmul.mubr.msk.bf16.gmra.mxu0 %vm209_vm1, %v2464_v17 }
  0xc7   : >> { %3639 = vmatmul.mubr.msk.bf16.gmra.mxu1 %vm209_vm1, %v2360_v25  ;;  %3664 = vmatprep.mubr.msk.bf16.mxu0 %vm209_vm1, %v2151_v1 }
  0xc8   : >> { %3654 = vmatprep.mubr.msk.bf16.mxu1 %vm209_vm1, %v4116_v51 }
  0xce   : >> { %3665 = vmatmul.mubr.msk.bf16.vlgmr.msra.gmra.mxu0 %vm209_vm1, %v2152_v12 }
  0xcf   : >> { %3655 = vmatmul.mubr.msk.bf16.vlgmr.msra.gmra.mxu1 %vm209_vm1, %v4135_v58  ;;  %3668 = vmatprep.mubr.msk.bf16.mxu0 %vm209_vm1, %v2671_v30 }
  0xd0   : >> { %3658 = vmatprep.mubr.msk.bf16.mxu1 %vm209_vm1, %v2567_v31 }
  0xd6   : >> { %v3426_v38 = vpop.f32.mrf.mxu0  ;;  %3669 = vmatmul.mubr.msk.bf16.gmra.mxu0 %vm209_vm1, %v2672_v36 }
  0xd7   : >> { %v3430_v39 = vpop.f32.mrf.mxu1  ;;  %3659 = vmatmul.mubr.msk.bf16.gmra.mxu1 %vm209_vm1, %v2568_v37 }
  0xd8   : >> { %v260_v40 = vpop.f32.mrf.mxu0 }
  0xd9   : >> { %v276_v41 = vpop.f32.mrf.mxu1 }
  0xda   : >> { %v3427_v42 = vpop.f32.mrf.mxu0 }
  0xdb   : >> { %v3431_v43 = vpop.f32.mrf.mxu1 }
  0xdc   : >> { %v263_v44 = vpop.f32.mrf.mxu0 }
  0xdd   : >> { %v279_v45 = vpop.f32.mrf.mxu1 }
  0xde   : >> { %v3446_v46 = vpop.f32.mrf.mxu0 }
  0xdf   : >> { %v3436_v47 = vpop.f32.mrf.mxu1 }
  0xe0   : >> { %v349_v48 = vadd.f32 %v3436_v47, %v3426_v38  ;;  %v436_v49 = vpop.f32.mrf.mxu0 }
  0xe1   : >> { %v340_v50 = vpop.f32.mrf.mxu1 }
  0xe2   : >> { %v469_v51 = vadd.f32 %v3446_v46, %v349_v48  ;;  %v341_v52 = vadd.f32 %v340_v50, %v260_v40  ;;  %v3447_v53 = vpop.f32.mrf.mxu0 }
  0xe3   : >> { %v3437_v54 = vpop.f32.mrf.mxu1 }
  0xe4   : >> { %v467_v55 = vadd.f32 %v436_v49, %v341_v52  ;;  %v352_v56 = vadd.f32 %v3437_v54, %v3427_v42  ;;  %v439_v57 = vpop.f32.mrf.mxu0 }
  0xe5   : >> { %v343_v58 = vpop.f32.mrf.mxu1 }
  0xe6   : >> { %v470_v59 = vadd.f32 %v3447_v53, %v352_v56  ;;  %v344_v60 = vadd.f32 %v343_v58, %v263_v44  ;;  %v3450_v61 = vpop.f32.mrf.mxu0 }
  0xe7   : >> { %v3440_v62 = vpop.f32.mrf.mxu1 }
  0xe8   : >> { %v468_v63 = vadd.f32 %v439_v57, %v344_v60  ;;  %v365_v0 = vadd.f32 %v3440_v62, %v3430_v39  ;;  %v452_v1 = vpop.f32.mrf.mxu0 }
  0xe9   : >> { %v356_v2 = vpop.f32.mrf.mxu1 }
  0xea   : >> { %v473_v3 = vadd.f32 %v3450_v61, %v365_v0  ;;  %v357_v4 = vadd.f32 %v356_v2, %v276_v41  ;;  %v3451_v5 = vpop.f32.mrf.mxu0 }
  0xeb   : >> { %v3441_v6 = vpop.f32.mrf.mxu1 }
  0xec   : >> { %v471_v7 = vadd.f32 %v452_v1, %v357_v4  ;;  %v368_v8 = vadd.f32 %v3441_v6, %v3431_v43  ;;  %v455_v9 = vpop.f32.mrf.mxu0 }
  0xed   : >> { %v359_v10 = vpop.f32.mrf.mxu1 }
  0xee   : >> { %v474_v12 = vadd.f32 %v3451_v5, %v368_v8  ;;  %v360_v13 = vadd.f32 %v359_v10, %v279_v45  ;;  %v3466_v14 = vpop.f32.mrf.mxu0 }
  0xef   : >> { %v3456_v15 = vpop.f32.mrf.mxu1 }
  0xf0   : >> { %v472_v16 = vadd.f32 %v455_v9, %v360_v13  ;;  %v573_v18 = vadd.f32 %v3456_v15, %v469_v51  ;;  %v644_v19 = vpop.f32.mrf.mxu0 }
  0xf1   : >> { %v540_v20 = vpop.f32.mrf.mxu1 }
  0xf2   : >> { %v677_v21 = vadd.f32 %v3466_v14, %v573_v18  ;;  %v571_v11 = vadd.f32 %v540_v20, %v467_v55  ;;  %v3467_v22 = vpop.f32.mrf.mxu0 }
  0xf3   : >> { %v3457_v23 = vpop.f32.mrf.mxu1 }
  0xf4   : >> { %v675_v24 = vadd.f32 %v644_v19, %v571_v11  ;;  %v574_v17 = vadd.f32 %v3457_v23, %v470_v59  ;;  %v647_v25 = vpop.f32.mrf.mxu0 }
  0xf5   : >> { %v543_v26 = vpop.f32.mrf.mxu1 }
  0xf6   : >> { %v678_v27 = vadd.f32 %v3467_v22, %v574_v17  ;;  %v572_v28 = vadd.f32 %v543_v26, %v468_v63  ;;  %v3470_v29 = vpop.f32.mrf.mxu0 }
  0xf7   : >> { %v3460_v30 = vpop.f32.mrf.mxu1 }
  0xf8   : >> { %v676_v31 = vadd.f32 %v647_v25, %v572_v28  ;;  %v577_v32 = vadd.f32 %v3460_v30, %v473_v3  ;;  %v660_v33 = vpop.f32.mrf.mxu0 }
  0xf9   : >> { %v556_v34 = vpop.f32.mrf.mxu1 }
  0xfa   : >> { %v681_v35 = vadd.f32 %v3470_v29, %v577_v32  ;;  %v575_v36 = vadd.f32 %v556_v34, %v471_v7  ;;  %v3471_v37 = vpop.f32.mrf.mxu0 }
  0xfb   : >> { %v3461_v38 = vpop.f32.mrf.mxu1 }
  0xfc   : >> { %v679_v39 = vadd.f32 %v660_v33, %v575_v36  ;;  %v578_v40 = vadd.f32 %v3461_v38, %v474_v12  ;;  %v663_v41 = vpop.f32.mrf.mxu0 }
  0xfd   : >> { %v559_v42 = vpop.f32.mrf.mxu1 }
  0xfe   : >> { %v682_v43 = vadd.f32 %v3471_v37, %v578_v40  ;;  %v576_v44 = vadd.f32 %v559_v42, %v472_v16  ;;  %v3486_v45 = vpop.f32.mrf.mxu0 }
  0xff   : >> { %v3476_v46 = vpop.f32.mrf.mxu1 }
 0x100   : >> { %v680_v47 = vadd.f32 %v663_v41, %v576_v44  ;;  %v781_v48 = vadd.f32 %v3476_v46, %v677_v21  ;;  %v852_v49 = vpop.f32.mrf.mxu0 }
 0x101   : >> { %v748_v50 = vpop.f32.mrf.mxu1 }
 0x102   : >> { %v885_v51 = vadd.f32 %v3486_v45, %v781_v48  ;;  %v779_v52 = vadd.f32 %v748_v50, %v675_v24  ;;  %v3487_v53 = vpop.f32.mrf.mxu0 }
 0x103   : >> { %v3477_v54 = vpop.f32.mrf.mxu1 }
 0x104   : >> { %v883_v55 = vadd.f32 %v852_v49, %v779_v52  ;;  %v782_v56 = vadd.f32 %v3477_v54, %v678_v27  ;;  %v855_v57 = vpop.f32.mrf.mxu0 }
 0x105   : >> { %v751_v58 = vpop.f32.mrf.mxu1 }
 0x106   : >> { %v886_v59 = vadd.f32 %v3487_v53, %v782_v56  ;;  %v780_v60 = vadd.f32 %v751_v58, %v676_v31  ;;  %v3490_v61 = vpop.f32.mrf.mxu0 }
 0x107   : >> { %v3480_v62 = vpop.f32.mrf.mxu1 }
 0x108   : >> { %v884_v63 = vadd.f32 %v855_v57, %v780_v60  ;;  %v785_v0 = vadd.f32 %v3480_v62, %v681_v35  ;;  %v868_v1 = vpop.f32.mrf.mxu0 }
 0x109   : >> { %v764_v2 = vpop.f32.mrf.mxu1 }
 0x10a   : >> { %v889_v3 = vadd.f32 %v3490_v61, %v785_v0  ;;  %v783_v4 = vadd.f32 %v764_v2, %v679_v39  ;;  %v3491_v5 = vpop.f32.mrf.mxu0 }
 0x10b   : >> { %v3481_v6 = vpop.f32.mrf.mxu1 }
 0x10c   : >> { %v887_v7 = vadd.f32 %v868_v1, %v783_v4  ;;  %v786_v8 = vadd.f32 %v3481_v6, %v682_v43  ;;  %v871_v9 = vpop.f32.mrf.mxu0 }
 0x10d   : >> { %v767_v10 = vpop.f32.mrf.mxu1 }
 0x10e   : >> { %v890_v12 = vadd.f32 %v3491_v5, %v786_v8  ;;  %v784_v13 = vadd.f32 %v767_v10, %v680_v47  ;;  %v3506_v14 = vpop.f32.mrf.mxu0 }
 0x10f   : >> { %v3496_v15 = vpop.f32.mrf.mxu1 }
 0x110   : >> { %v888_v16 = vadd.f32 %v871_v9, %v784_v13  ;;  %v989_v18 = vadd.f32 %v3496_v15, %v885_v51  ;;  %v1060_v19 = vpop.f32.mrf.mxu0 }
 0x111   : >> { %v956_v20 = vpop.f32.mrf.mxu1 }
 0x112   : >> { %v1093_v21 = vadd.f32 %v3506_v14, %v989_v18  ;;  %v987_v11 = vadd.f32 %v956_v20, %v883_v55  ;;  %v3507_v22 = vpop.f32.mrf.mxu0 }
 0x113   : >> { %v3497_v23 = vpop.f32.mrf.mxu1 }
 0x114   : >> { %v1091_v24 = vadd.f32 %v1060_v19, %v987_v11  ;;  %v990_v17 = vadd.f32 %v3497_v23, %v886_v59  ;;  %v1063_v25 = vpop.f32.mrf.mxu0 }
 0x115   : >> { %v959_v26 = vpop.f32.mrf.mxu1 }
 0x116   : >> { %v1094_v27 = vadd.f32 %v3507_v22, %v990_v17  ;;  %v988_v28 = vadd.f32 %v959_v26, %v884_v63  ;;  %v3510_v29 = vpop.f32.mrf.mxu0 }
 0x117   : >> { %v3500_v30 = vpop.f32.mrf.mxu1 }
 0x118   : >> { %v1092_v31 = vadd.f32 %v1063_v25, %v988_v28  ;;  %v993_v32 = vadd.f32 %v3500_v30, %v889_v3  ;;  %v1076_v33 = vpop.f32.mrf.mxu0 }
 0x119   : >> { %v972_v34 = vpop.f32.mrf.mxu1 }
 0x11a   : >> { %v1097_v35 = vadd.f32 %v3510_v29, %v993_v32  ;;  %v991_v36 = vadd.f32 %v972_v34, %v887_v7  ;;  %v3511_v37 = vpop.f32.mrf.mxu0 }
 0x11b   : >> { %v3501_v38 = vpop.f32.mrf.mxu1 }
 0x11c   : >> { %v1095_v39 = vadd.f32 %v1076_v33, %v991_v36  ;;  %v994_v40 = vadd.f32 %v3501_v38, %v890_v12  ;;  %v1079_v41 = vpop.f32.mrf.mxu0 }
 0x11d   : >> { %v975_v42 = vpop.f32.mrf.mxu1 }
 0x11e   : >> { %v1098_v43 = vadd.f32 %v3511_v37, %v994_v40  ;;  %v992_v44 = vadd.f32 %v975_v42, %v888_v16  ;;  %v3526_v45 = vpop.f32.mrf.mxu0 }
 0x11f   : >> { %v3516_v46 = vpop.f32.mrf.mxu1 }
 0x120   : >> { %v1096_v47 = vadd.f32 %v1079_v41, %v992_v44  ;;  %v1197_v48 = vadd.f32 %v3516_v46, %v1093_v21  ;;  %v1268_v49 = vpop.f32.mrf.mxu0 }
 0x121   : >> { %v1164_v50 = vpop.f32.mrf.mxu1 }
 0x122   : >> { %v1301_v51 = vadd.f32 %v3526_v45, %v1197_v48  ;;  %v1195_v52 = vadd.f32 %v1164_v50, %v1091_v24  ;;  %v3527_v53 = vpop.f32.mrf.mxu0 }
 0x123   : >> { %v3517_v54 = vpop.f32.mrf.mxu1 }
 0x124   : >> { %v1299_v55 = vadd.f32 %v1268_v49, %v1195_v52  ;;  %v1198_v56 = vadd.f32 %v3517_v54, %v1094_v27  ;;  %v1271_v57 = vpop.f32.mrf.mxu0 }
 0x125   : >> { %v1167_v58 = vpop.f32.mrf.mxu1 }
 0x126   : >> { %v1302_v59 = vadd.f32 %v3527_v53, %v1198_v56  ;;  %v1196_v60 = vadd.f32 %v1167_v58, %v1092_v31  ;;  %v3530_v61 = vpop.f32.mrf.mxu0 }
 0x127   : >> { %v3520_v62 = vpop.f32.mrf.mxu1 }
 0x128   : >> { %v1300_v63 = vadd.f32 %v1271_v57, %v1196_v60  ;;  %v1201_v0 = vadd.f32 %v3520_v62, %v1097_v35  ;;  %v1284_v1 = vpop.f32.mrf.mxu0 }
 0x129   : >> { %v1180_v2 = vpop.f32.mrf.mxu1 }
 0x12a   : >> { %v1305_v3 = vadd.f32 %v3530_v61, %v1201_v0  ;;  %v1199_v4 = vadd.f32 %v1180_v2, %v1095_v39  ;;  %v3531_v5 = vpop.f32.mrf.mxu0 }
 0x12b   : >> { %v3521_v6 = vpop.f32.mrf.mxu1 }
 0x12c   : >> { %v1303_v7 = vadd.f32 %v1284_v1, %v1199_v4  ;;  %v1202_v8 = vadd.f32 %v3521_v6, %v1098_v43  ;;  %v1287_v9 = vpop.f32.mrf.mxu0 }
 0x12d   : >> { %v1183_v10 = vpop.f32.mrf.mxu1 }
 0x12e   : >> { %v1306_v12 = vadd.f32 %v3531_v5, %v1202_v8  ;;  %v1200_v13 = vadd.f32 %v1183_v10, %v1096_v47  ;;  %v3546_v14 = vpop.f32.mrf.mxu0 }
 0x12f   : >> { %v3536_v15 = vpop.f32.mrf.mxu1 }
 0x130   : >> { %v1304_v16 = vadd.f32 %v1287_v9, %v1200_v13  ;;  %v1405_v18 = vadd.f32 %v3536_v15, %v1301_v51  ;;  %v1476_v19 = vpop.f32.mrf.mxu0 }
 0x131   : >> { %v1372_v20 = vpop.f32.mrf.mxu1 }
 0x132   : >> { %v4207_v21 = vadd.f32 %v3546_v14, %v1405_v18  ;;  %v1403_v11 = vadd.f32 %v1372_v20, %v1299_v55  ;;  %v3547_v22 = vpop.f32.mrf.mxu0 }
 0x133   : >> { %v3537_v23 = vpop.f32.mrf.mxu1 }
 0x134   : >> { %v4209_v24 = vadd.f32 %v1476_v19, %v1403_v11  ;;  %v1406_v17 = vadd.f32 %v3537_v23, %v1302_v59  ;;  %v1479_v25 = vpop.f32.mrf.mxu0 }
 0x135   : >> { %v1375_v26 = vpop.f32.mrf.mxu1 }
 0x136   : >> { %v4211_v27 = vadd.f32 %v3547_v22, %v1406_v17  ;;  %v1404_v28 = vadd.f32 %v1375_v26, %v1300_v63  ;;  %v3550_v29 = vpop.f32.mrf.mxu0 }
 0x137   : >> { %v3540_v30 = vpop.f32.mrf.mxu1 }
 0x138   : >> { %v4213_v31 = vadd.f32 %v1479_v25, %v1404_v28  ;;  %v1409_v32 = vadd.f32 %v3540_v30, %v1305_v3  ;;  %v1492_v33 = vpop.f32.mrf.mxu0 }
 0x139   : >> { %v1388_v34 = vpop.f32.mrf.mxu1 }
 0x13a   : >> { %v4215_v35 = vadd.f32 %v3550_v29, %v1409_v32  ;;  %v1407_v36 = vadd.f32 %v1388_v34, %v1303_v7  ;;  %v3551_v37 = vpop.f32.mrf.mxu0 }
 0x13b   : >> { %v3541_v38 = vpop.f32.mrf.mxu1 }
 0x13c   : >> { %v4217_v39 = vadd.f32 %v1492_v33, %v1407_v36  ;;  %v1410_v40 = vadd.f32 %v3541_v38, %v1306_v12  ;;  %v1495_v41 = vpop.f32.mrf.mxu0 }
 0x13d   : >> { %v1391_v42 = vpop.f32.mrf.mxu1 }
 0x13e   : >> { %v4219_v43 = vadd.f32 %v3551_v37, %v1410_v40  ;;  %v1408_v44 = vadd.f32 %v1391_v42, %v1304_v16  ;;  %v3566_v45 = vpop.f32.mrf.mxu0 }
 0x13f   : >> { %v3556_v46 = vpop.f32.mrf.mxu1 }
 0x140   : >> { %v4221_v47 = vadd.f32 %v1495_v41, %v1408_v44  ;;  %v1684_v48 = vpop.f32.mrf.mxu0  ;;  %v1613_v40 = vadd.f32 %v3556_v46, %v4207_v21 }
 0x141   : >> { %v1580_v49 = vpop.f32.mrf.mxu1 }
 0x142   : >> { %v4223_v50 = vpop.f32.mrf.mxu0  ;;  %v1611_v44 = vadd.f32 %v1580_v49, %v4209_v24 }
 0x143   : >> { %v3557_v51 = vpop.f32.mrf.mxu1 }
 0x144   : >> { %v4225_v52 = vpop.f32.mrf.mxu0 }
 0x145   : >> { %v1583_v53 = vpop.f32.mrf.mxu1 }
 0x146   : >> { %v4227_v54 = vpop.f32.mrf.mxu0  ;;  %v1612_v21 = vadd.f32 %v1583_v53, %v4213_v31 }
 0x147   : >> { %v3560_v55 = vpop.f32.mrf.mxu1 }
 0x148   : >> { %v4229_v56 = vpop.f32.mrf.mxu0  ;;  %v1617_v49 = vadd.f32 %v3560_v55, %v4215_v35 }
 0x149   : >> { %v1596_v57 = vpop.f32.mrf.mxu1 }
 0x14a   : >> { %v4231_v58 = vpop.f32.mrf.mxu0  ;;  %v1721_v35 = vadd.f32 %v4227_v54, %v1617_v49 }
 0x14b   : >> { %v4233_v59 = vpop.f32.mrf.mxu1 }
 0x14c   : >> { %v4235_v60 = vpop.f32.mrf.mxu0 }
 0x14d   : >> { %v4237_v61 = vpop.f32.mrf.mxu1 }
 0x14e   : >> { %v3586_v62 = vpop.f32.mrf.mxu0 }
 0x14f   : >> { %v3576_v63 = vpop.f32.mrf.mxu1 }
 0x150   : >> { %v1892_v0 = vpop.f32.mrf.mxu0 }
 0x151   : >> { %v1788_v1 = vpop.f32.mrf.mxu1 }
 0x152   : >> { %v4239_v2 = vpop.f32.mrf.mxu0 }
 0x153   : >> { %v3577_v3 = vpop.f32.mrf.mxu1 }
 0x154   : >> { %v4241_v4 = vpop.f32.mrf.mxu0 }
 0x155   : >> { %v1791_v5 = vpop.f32.mrf.mxu1 }
 0x156   : >> { %v4243_v6 = vpop.f32.mrf.mxu0 }
 0x157   : >> { %v4245_v7 = vpop.f32.mrf.mxu1 }
 0x158   : >> { %v4247_v8 = vpop.f32.mrf.mxu0 }
 0x159   : >> { %v4249_v9 = vpop.f32.mrf.mxu1 }
 0x15a   : >> { %v4251_v10 = vpop.f32.mrf.mxu0 }
 0x15b   : >> { %v4253_v12 = vpop.f32.mrf.mxu1 }
 0x15c   : >> { %v4255_v13 = vpop.f32.mrf.mxu0 }
 0x15d   : >> { %4381 = vst [vmem:[#allocation3_spill] sm:$0xff] %v4255_v13  ;;  %v4257_v14 = vpop.f32.mrf.mxu1 }
 0x15e   : >> { %v4259_v15 = vpop.f32.mrf.mxu0 }
 0x15f   : >> { %v3596_v16 = vpop.f32.mrf.mxu1 }
 0x160   : >> { %v4261_v18 = vpop.f32.mrf.mxu0 }
 0x161   : >> { %v1996_v19 = vpop.f32.mrf.mxu1 }
 0x162   : >> { %v4263_v20 = vpop.f32.mrf.mxu0 }
 0x163   : >> { %v3597_v11 = vpop.f32.mrf.mxu1 }
 0x164   : >> { %v4265_v22 = vpop.f32.mrf.mxu0 }
 0x165   : >> { %v4267_v23 = vpop.f32.mrf.mxu1 }
 0x166   : >> { %v4269_v17 = vpop.f32.mrf.mxu0 }
 0x167   : >> { %4382 = vst [vmem:[#allocation4_spill] sm:$0xff] %v4269_v17  ;;  %v4271_v25 = vpop.f32.mrf.mxu1 }
 0x168   : >> { %v4273_v26 = vpop.f32.mrf.mxu0 }
 0x169   : >> { %4383 = vst [vmem:[#allocation5_spill] sm:$0xff] %v4273_v26  ;;  %v4275_v28 = vpop.f32.mrf.mxu1 }
 0x16a   : >> { %v4277_v29 = vpop.f32.mrf.mxu0 }
 0x16b   : >> { %4384 = vst [vmem:[#allocation6_spill] sm:$0xff] %v4277_v29  ;;  %v4279_v30 = vpop.f32.mrf.mxu1 }
 0x16c   : >> { %4385 = vst [vmem:[#allocation7_spill] sm:$0xff] %v4279_v30  ;;  %v4281_v32 = vpop.f32.mrf.mxu0 }
 0x16d   : >> { %4386 = vst [vmem:[#allocation8_spill] sm:$0xff] %v4281_v32  ;;  %v4283_v33 = vpop.f32.mrf.mxu1  ;;  %v1717_v32 = vadd.f32 %v3566_v45, %v1613_v40 }
 0x16e   : >> { %4387 = vst [vmem:[#allocation9_spill] sm:$0xff] %v4283_v33  ;;  %v4285_v34 = vpop.f32.mrf.mxu0  ;;  %v1614_v33 = vadd.f32 %v3557_v51, %v4211_v27  ;;  %v1615_v27 = vadd.f32 %v1596_v57, %v4217_v39 }
 0x16f   : >> { %v3616_v36 = vpop.f32.mrf.mxu1  ;;  %v1821_v46 = vadd.f32 %v3576_v63, %v1717_v32  ;;  %v1618_v63 = vadd.f32 %v4233_v59, %v4219_v43 }
 0x170   : >> { %v4287_v37 = vpop.f32.mrf.mxu0  ;;  %v1718_v24 = vadd.f32 %v4223_v50, %v1614_v33  ;;  %v1719_v39 = vadd.f32 %v4229_v56, %v1615_v27 }
 0x171   : >> { %4388 = vst [vmem:[#allocation10_spill] sm:$0xff] %v4287_v37  ;;  %v2204_v38 = vpop.f32.mrf.mxu1  ;;  %v1715_v37 = vadd.f32 %v1684_v48, %v1611_v44  ;;  %v1716_v48 = vadd.f32 %v4225_v52, %v1612_v21  ;;  %v1925_v40 = vadd.f32 %v3586_v62, %v1821_v46  ;;  %v1616_v52 = vadd.f32 %v4237_v61, %v4221_v47 }
 0x172   : >> { %v4290_v41 = vpop.f32.mrf.mxu0  ;;  %v1822_v31 = vadd.f32 %v3577_v3, %v1718_v24  ;;  %v1825_v3 = vadd.f32 %v4245_v7, %v1721_v35  ;;  %v1722_v59 = vadd.f32 %v4231_v58, %v1618_v63  ;;  %v1823_v54 = vadd.f32 %v4249_v9, %v1719_v39 }
 0x173   : >> { %4389 = vst [vmem:[#allocation11_spill] sm:$0xff] %v4290_v41  ;;  %v4292_v42 = vpop.f32.mrf.mxu1  ;;  %v1820_v55 = vadd.f32 %v1791_v5, %v1716_v48  ;;  %v1720_v47 = vadd.f32 %v4235_v60, %v1616_v52  ;;  %v4392_v48 = vld [vmem:[#allocation7_spill] sm:$0xff] }
 0x174   : >> { %v4295_v29 = vpop.f32.mrf.mxu0  ;;  %v1926_v62 = vadd.f32 %v4239_v2, %v1822_v31  ;;  %v1826_v61 = vadd.f32 %v4253_v12, %v1722_v59  ;;  %v1929_v7 = vadd.f32 %v4243_v6, %v1825_v3  ;;  %v1927_v21 = vadd.f32 %v4247_v8, %v1823_v54 }
 0x175   : >> { %4390 = vst [vmem:[#allocation12_spill] sm:$0xff] %v4295_v29  ;;  %v4297_v26 = vpop.f32.mrf.mxu1  ;;  %v1819_v29 = vadd.f32 %v1788_v1, %v1715_v37  ;;  %v2029_v1 = vadd.f32 %v3596_v16, %v1925_v40  ;;  %v1924_v5 = vadd.f32 %v4241_v4, %v1820_v55  ;;  %v1824_v4 = vadd.f32 %v4257_v14, %v1720_v47  ;;  %v4391_v14 = vld [vmem:[#allocation3_spill] sm:$0xff]  ;;  %v4396_v55 = vld [vmem:[#allocation9_spill] sm:$0xff] }
 0x176   : >> { %v4300_v17 = vpop.f32.mrf.mxu0  ;;  %v2030_v56 = vadd.f32 %v3597_v11, %v1926_v62  ;;  %v2033_v60 = vadd.f32 %v4271_v25, %v1929_v7  ;;  %v1930_v24 = vadd.f32 %v4251_v10, %v1826_v61  ;;  %v2031_v6 = vadd.f32 %v4275_v28, %v1927_v21  ;;  %v4393_v25 = vld [vmem:[#allocation4_spill] sm:$0xff] }
 0x177   : >> { %v4302_v30 = vpop.f32.mrf.mxu1  ;;  %v1923_v50 = vadd.f32 %v1892_v0, %v1819_v29  ;;  %v2133_v16 = vadd.f32 %v4259_v15, %v2029_v1  ;;  %v2028_v58 = vadd.f32 %v4267_v23, %v1924_v5  ;;  %v1928_v27 = vadd.f32 %v4391_v14, %v1824_v4  ;;  %v4400_v61 = vld [vmem:[#allocation8_spill] sm:$0xff] }
 0x178   : >> { %v4305_v41 = vpop.f32.mrf.mxu0  ;;  %v2134_v11 = vadd.f32 %v4263_v20, %v2030_v56  ;;  %v2034_v20 = vadd.f32 %v4392_v48, %v1930_v24  ;;  %v4394_v31 = vld [vmem:[#allocation10_spill] sm:$0xff] }
 0x179   : >> { %v4307_v13 = vpop.f32.mrf.mxu1  ;;  %v2027_v37 = vadd.f32 %v1996_v19, %v1923_v50  ;;  %v2237_v44 = vadd.f32 %v3616_v36, %v2133_v16  ;;  %v2132_v23 = vadd.f32 %v4265_v22, %v2028_v58  ;;  %v4395_v50 = vld [vmem:[#allocation5_spill] sm:$0xff] }
 0x17a   : >> { %v4311_v45 = vpop.f32.mrf.mxu0  ;;  %v2238_v8 = vadd.f32 %v4292_v42, %v2134_v11  ;;  %v2135_v22 = vadd.f32 %v4395_v50, %v2031_v6  ;;  %v4397_v42 = vld [vmem:[#allocation11_spill] sm:$0xff] }
 0x17b   : >> { %v4314_v51 = vpop.f32.mrf.mxu1  ;;  %v2131_v19 = vadd.f32 %v4261_v18, %v2027_v37  ;;  %v2341_v36 = vadd.f32 %v4285_v34, %v2237_v44  ;;  %v2236_v10 = vadd.f32 %v4297_v26, %v2132_v23  ;;  %v2032_v34 = vadd.f32 %v4396_v55, %v1928_v27  ;;  %v4398_v37 = vld [vmem:[#allocation6_spill] sm:$0xff] }
 0x17c   : >> { %v4317_v53 = vpop.f32.mrf.mxu0  ;;  %v2342_v39 = vadd.f32 %v4397_v42, %v2238_v8  ;;  %v2138_v59 = vadd.f32 %v4398_v37, %v2034_v20  ;;  %v2239_v54 = vadd.f32 %v4307_v13, %v2135_v22  ;;  %v4399_v16 = vld [vmem:[#allocation12_spill] sm:$0xff] }
 0x17d   : >> { %v4321_v32 = vpop.f32.mrf.mxu1  ;;  %v2235_v46 = vadd.f32 %v2204_v38, %v2131_v19  ;;  %v2137_v38 = vadd.f32 %v4393_v25, %v2033_v60  ;;  %v2340_v26 = vadd.f32 %v4399_v16, %v2236_v10  ;;  %v2136_v7 = vadd.f32 %v4400_v61, %v2032_v34  ;;  %v3293_v16 = vld [vmem:[%s4379_s2] ss:$0 sm:$0xff] }
 0x17e   : >> { %v3646_v33 = vpop.f32.mrf.mxu0  ;;  %v2242_v19 = vadd.f32 %v4314_v51, %v2138_v59  ;;  %v2343_v11 = vadd.f32 %v4305_v41, %v2239_v54 }
 0x17f   : >> { %v3636_v57 = vpop.f32.mrf.mxu1  ;;  %v2339_v63 = vadd.f32 %v4394_v31, %v2235_v46  ;;  %v2241_v52 = vadd.f32 %v4302_v30, %v2137_v38  ;;  %v2240_v13 = vadd.f32 %v4321_v32, %v2136_v7 }
 0x180   : >> { %v2516_v43 = vpop.f32.mrf.mxu0  ;;  %v2445_v28 = vadd.f32 %v3636_v57, %v2341_v36  ;;  %v2346_v23 = vadd.f32 %v4311_v45, %v2242_v19 }
 0x181   : >> { %v2412_v0 = vpop.f32.mrf.mxu1  ;;  %v2345_v44 = vadd.f32 %v4300_v17, %v2241_v52  ;;  %v2344_v14 = vadd.f32 %v4317_v53, %v2240_v13 }
 0x182   : >> { %v3647_v29 = vpop.f32.mrf.mxu0  ;;  %v2443_v62 = vadd.f32 %v2412_v0, %v2339_v63  ;;  %v2549_v57 = vadd.f32 %v3646_v33, %v2445_v28 }
 0x183   : >> { %v3637_v2 = vpop.f32.mrf.mxu1 }
 0x184   : >> { %v2519_v9 = vpop.f32.mrf.mxu0  ;;  %v2446_v56 = vadd.f32 %v3637_v2, %v2342_v39  ;;  %v2547_v30 = vadd.f32 %v2516_v43, %v2443_v62 }
 0x185   : >> { %v2415_v15 = vpop.f32.mrf.mxu1 }
 0x186   : >> { %v3650_v12 = vpop.f32.mrf.mxu0  ;;  %v2444_v0 = vadd.f32 %v2415_v15, %v2340_v26  ;;  %v2550_v46 = vadd.f32 %v3647_v29, %v2446_v56 }
 0x187   : >> { %v3640_v18 = vpop.f32.mrf.mxu1 }
 0x188   : >> { %v2532_v49 = vpop.f32.mrf.mxu0  ;;  %v2449_v33 = vadd.f32 %v3640_v18, %v2345_v44  ;;  %v2548_v36 = vadd.f32 %v2519_v9, %v2444_v0 }
 0x189   : >> { %v2428_v40 = vpop.f32.mrf.mxu1 }
 0x18a   : >> { %v3651_v35 = vpop.f32.mrf.mxu0  ;;  %v2447_v8 = vadd.f32 %v2428_v40, %v2343_v11  ;;  %v2553_v27 = vadd.f32 %v3650_v12, %v2449_v33 }
 0x18b   : >> { %v3641_v1 = vpop.f32.mrf.mxu1 }
 0x18c   : >> { %v2535_v3 = vpop.f32.mrf.mxu0  ;;  %v2450_v32 = vadd.f32 %v3641_v1, %v2346_v23  ;;  %v2551_v25 = vadd.f32 %v2532_v49, %v2447_v8 }
 0x18d   : >> { %v2431_v5 = vpop.f32.mrf.mxu1 }
 0x18e   : >> { %v3666_v47 = vpop.f32.mrf.mxu0  ;;  %v2448_v38 = vadd.f32 %v2431_v5, %v2344_v14  ;;  %v2554_v63 = vadd.f32 %v3651_v35, %v2450_v32 }
 0x18f   : >> { %v3656_v58 = vpop.f32.mrf.mxu1 }
 0x190   : >> { %v2653_v21 = vadd.f32 %v3656_v58, %v2549_v57  ;;  %v2724_v4 = vpop.f32.mrf.mxu0  ;;  %v2552_v12 = vadd.f32 %v2535_v3, %v2448_v38 }
 0x191   : >> { %v2620_v60 = vpop.f32.mrf.mxu1 }
 0x192   : >> { %v2757_v2 = vadd.f32 %v3666_v47, %v2653_v21  ;;  %v2651_v24 = vadd.f32 %v2620_v60, %v2547_v30  ;;  %v3667_v6 = vpop.f32.mrf.mxu0 }
 0x193   : >> { %v3657_v51 = vpop.f32.mrf.mxu1 }
 0x194   : >> { %2765 = vst [vmem:[#allocation2 + $0x10] sm:$0xff] %v2757_v2  ;;  %v2755_v17 = vadd.f32 %v2724_v4, %v2651_v24  ;;  %v2654_v43 = vadd.f32 %v3657_v51, %v2550_v46  ;;  %v2727_v15 = vpop.f32.mrf.mxu0 }
 0x195   : >> { %v2623_v41 = vpop.f32.mrf.mxu1 }
 0x196   : >> { %2763 = vst [vmem:[#allocation2] sm:$0xff] %v2755_v17  ;;  %v2758_v29 = vadd.f32 %v3667_v6, %v2654_v43  ;;  %v2652_v18 = vadd.f32 %v2623_v41, %v2548_v36  ;;  %v3670_v48 = vpop.f32.mrf.mxu0 }
 0x197   : >> { %v3660_v20 = vpop.f32.mrf.mxu1 }
 0x198   : >> { %2766 = vst [vmem:[#allocation2 + $0x18] sm:$0xff] %v2758_v29  ;;  %v2756_v45 = vadd.f32 %v2727_v15, %v2652_v18  ;;  %v2657_v9 = vadd.f32 %v3660_v20, %v2553_v27  ;;  %v2740_v40 = vpop.f32.mrf.mxu0 }
 0x199   : >> { %v2636_v31 = vpop.f32.mrf.mxu1 }
 0x19a   : >> { %2764 = vst [vmem:[#allocation2 + $0x8] sm:$0xff] %v2756_v45  ;;  %v2761_v10 = vadd.f32 %v3670_v48, %v2657_v9  ;;  %v2655_v28 = vadd.f32 %v2636_v31, %v2551_v25  ;;  %v3671_v50 = vpop.f32.mrf.mxu0 }
 0x19b   : >> { %v3661_v53 = vpop.f32.mrf.mxu1 }
 0x19c   : >> { %2769 = vst [vmem:[#allocation2 + $0x30] sm:$0xff] %v2761_v10  ;;  %v2759_v22 = vadd.f32 %v2740_v40, %v2655_v28  ;;  %v2658_v55 = vadd.f32 %v3661_v53, %v2554_v63  ;;  %v2743_v42 = vpop.f32.mrf.mxu0 }
 0x19d   : >> { %v2639_v34 = vpop.f32.mrf.mxu1 }
 0x19e   : >> { %2767 = vst [vmem:[#allocation2 + $0x20] sm:$0xff] %v2759_v22  ;;  %v2762_v1 = vadd.f32 %v3671_v50, %v2658_v55  ;;  %v2656_v49 = vadd.f32 %v2639_v34, %v2552_v12 }
 0x19f   : >> { %v2773_v52 = vld [vmem:[#allocation2 + $0x10] ss:$2 sm:$0x3f]  ;;  %v2777_v35 = vld [vmem:[#allocation2 + $0x11] ss:$2 sm:$0x3f] }
 0x1a0   : >> { %2770 = vst [vmem:[#allocation2 + $0x38] sm:$0xff] %v2762_v1  ;;  %v2760_v39 = vadd.f32 %v2743_v42, %v2656_v49  ;;  %v2779_v3 = vmax.f32 %v2773_v52, %v2777_v35 }
 0x1a1   : >> { %v2771_v62 = vld [vmem:[#allocation2] ss:$2 sm:$0xff]  ;;  %v2775_v37 = vld [vmem:[#allocation2 + $0x1] ss:$2 sm:$0xff] }
 0x1a2   : >> { %2768 = vst [vmem:[#allocation2 + $0x28] sm:$0xff] %v2760_v39  ;;  %v2778_v56 = vmax.f32 %v2771_v62, %v2775_v37 }
 0x1a7   : >> { %v2783_v59 = vld [vmem:[#allocation2 + $0x30] ss:$2 sm:$0x3f]  ;;  %v2787_v54 = vld [vmem:[#allocation2 + $0x31] ss:$2 sm:$0x3f] }
 0x1a8   : >> { %v2789_v5 = vmax.f32 %v2783_v59, %v2787_v54 }
 0x1a9   : >> { %v2781_v26 = vld [vmem:[#allocation2 + $0x20] ss:$2 sm:$0xff]  ;;  %v2785_v57 = vld [vmem:[#allocation2 + $0x21] ss:$2 sm:$0xff] }
 0x1aa   : >> { %v2791_v47 = vmax.f32 %v2779_v3, %v2789_v5  ;;  %v2788_v61 = vmax.f32 %v2781_v26, %v2785_v57 }
 0x1ac   : >> { %v2800_v7 = vadd.f32 %v3293_v16, %v2791_v47  ;;  %v2790_v19 = vmax.f32 %v2778_v56, %v2788_v61 }
 0x1ae   : >> { %v2802_v58 = vmax.f32 %v2800_v7, 0.0  ;;  %v2799_v44 = vadd.f32 %v3293_v16, %v2790_v19  ;;  %176 = sbr.rel (!%p174_p4) target bundleno = 16 (0x10), region = 126 }
 0x1b0   : >> { %2808 = vst.msk [vmem:[%s2804_s6 + $0x8] sm:$0x3f] %vm2807_vm2, %v2802_v58  ;;  %v2801_v30 = vmax.f32 %v2799_v44, 0.0 }
 0x1b2   : >> { %2806 = vst.msk [vmem:[%s2804_s6] sm:$0xff] %vm2805_vm3, %v2801_v30 }
 0x1b3 PF: > { %s13_s12 = sadd.s32 1, %s3728_s12  }
 0x1b4   : > { %p10_p5 = scmp.ge.s32.totalorder %s13_s12, 4  }
 0x1b6   :  { %12 = sbr.rel (!%p10_p5) target bundleno = 1 (0x1), region = 137 }

// kernel: mnist_cnn_forward.7
= control target key start
LH: loop header
LB: loop body
LE: loop exit
PB: predicated region body
PF: predicated region fallthrough
CT: control target
= control target key end

     0   :  { %s624_s1 = inlined_call_operand.vmem [shape: bf16[512,128], index: 1, kind: input, shape index: {}]   ;;  %s625_s0 = inlined_call_operand.vmem [shape: bf16[8,512], index: 0, kind: input, shape index: {}]   ;;  %s626_s2 = inlined_call_operand.vmem [shape: f32[1,128], index: 2, kind: input, shape index: {}]   ;;  %s627_s3 = inlined_call_operand.vmem [shape: f32[8,128], index: 3, kind: output, shape index: {}]  }
   0x1   :  { %v460_v0 = vld [vmem:[%s624_s1 + $0x78] sm:$0xff]   ;;  %v464_v4 = vld [vmem:[%s624_s1 + $0x70] sm:$0xff]   ;;  %v468_v8 = vld [vmem:[%s624_s1 + $0x68] sm:$0xff]  }
   0x2   :  { %v461_v1 = vld [vmem:[%s624_s1 + $0xf8] sm:$0xff]   ;;  %416 = vmatprep.subr.bf16.mxu0 %v460_v0  ;;  %v465_v5 = vld [vmem:[%s624_s1 + $0xf0] sm:$0xff]   ;;  %v469_v9 = vld [vmem:[%s624_s1 + $0xe8] sm:$0xff]  }
   0x3   :  { %v462_v2 = vld [vmem:[%s624_s1 + $0x38] sm:$0xff]   ;;  %438 = vmatprep.subr.bf16.mxu1 %v461_v1  ;;  %v466_v6 = vld [vmem:[%s624_s1 + $0x30] sm:$0xff]   ;;  %v470_v10 = vld [vmem:[%s624_s1 + $0x28] sm:$0xff]  }
   0x4   :  { %v463_v3 = vld [vmem:[%s624_s1 + $0xb8] sm:$0xff]   ;;  %417 = vmatpush3.bf16.msra.mxu0 %v462_v2  ;;  %v467_v7 = vld [vmem:[%s624_s1 + $0xb0] sm:$0xff]   ;;  %v471_v11 = vld [vmem:[%s624_s1 + $0xa8] sm:$0xff]  }
   0x5   :  { %439 = vmatpush3.bf16.msra.mxu1 %v463_v3  ;;  %418 = vmatprep.subr.bf16.mxu0 %v464_v4  ;;  %v472_v12 = vld [vmem:[%s624_s1 + $0x60] sm:$0xff]   ;;  %v476_v16 = vld [vmem:[%s624_s1 + $0x58] sm:$0xff]   ;;  %v480_v20 = vld [vmem:[%s624_s1 + $0x50] sm:$0xff]  }
   0x6   :  { %440 = vmatprep.subr.bf16.mxu1 %v465_v5  ;;  %v473_v13 = vld [vmem:[%s624_s1 + $0xe0] sm:$0xff]   ;;  %v477_v17 = vld [vmem:[%s624_s1 + $0xd8] sm:$0xff]   ;;  %v481_v21 = vld [vmem:[%s624_s1 + $0xd0] sm:$0xff]  }
   0x7   :  { %v474_v14 = vld [vmem:[%s624_s1 + $0x20] sm:$0xff]   ;;  %v478_v18 = vld [vmem:[%s624_s1 + $0x18] sm:$0xff]   ;;  %v482_v22 = vld [vmem:[%s624_s1 + $0x10] sm:$0xff]  }
   0x8   :  { %419 = vmatpush3.bf16.msra.mxu0 %v466_v6  ;;  %v475_v15 = vld [vmem:[%s624_s1 + $0xa0] sm:$0xff]   ;;  %v479_v19 = vld [vmem:[%s624_s1 + $0x98] sm:$0xff]   ;;  %v483_v23 = vld [vmem:[%s624_s1 + $0x90] sm:$0xff]  }
   0x9   :  { %441 = vmatpush3.bf16.msra.mxu1 %v467_v7  ;;  %420 = vmatprep.subr.bf16.mxu0 %v468_v8  ;;  %v484_v24 = vld [vmem:[%s624_s1 + $0x48] sm:$0xff]   ;;  %v488_v28 = vld [vmem:[%s624_s1 + $0x40] sm:$0xff]  }
   0xa   :  { %442 = vmatprep.subr.bf16.mxu1 %v469_v9  ;;  %v485_v25 = vld [vmem:[%s624_s1 + $0xc8] sm:$0xff]   ;;  %v489_v29 = vld [vmem:[%s624_s1 + $0xc0] sm:$0xff]  }
   0xb   :  { %v486_v26 = vld [vmem:[%s624_s1 + $0x8] sm:$0xff]   ;;  %v490_v30 = vld [vmem:[%s624_s1] sm:$0xff]  }
   0xc   :  { %421 = vmatpush3.bf16.msra.mxu0 %v470_v10  ;;  %v487_v27 = vld [vmem:[%s624_s1 + $0x88] sm:$0xff]   ;;  %v491_v31 = vld [vmem:[%s624_s1 + $0x80] sm:$0xff]  }
   0xd   :  { %443 = vmatpush3.bf16.msra.mxu1 %v471_v11  ;;  %422 = vmatprep.subr.bf16.mxu0 %v472_v12  ;;  %v15_v32 = vld [vmem:[%s625_s0] sm:$0xff]  ;;  %v16_v33 = vld [vmem:[%s625_s0 + $0x8] sm:$0xff] }
   0xe   :  { %444 = vmatprep.subr.bf16.mxu1 %v473_v13  ;;  %v380_v34 = vcombine.low %v15_v32, %v15_v32  ;;  %v381_v35 = vcombine.high %v15_v32, %v15_v32  ;;  %v382_v36 = vcombine.low %v16_v33, %v16_v33  ;;  %v383_v37 = vcombine.high %v16_v33, %v16_v33  ;;  %v379_v40 = vld [vmem:[%s626_s2] ss:$0 sm:$0xff] }
  0x10   :  { %423 = vmatpush3.bf16.msra.mxu0 %v474_v14  ;;  %326 = vmatprep.mubr.bf16.mxu0 %v381_v35 }
  0x11   :  { %445 = vmatpush3.bf16.msra.mxu1 %v475_v15  ;;  %424 = vmatprep.subr.bf16.mxu0 %v476_v16 }
  0x12   :  { %446 = vmatprep.subr.bf16.mxu1 %v477_v17  ;;  %366 = vmatprep.mubr.bf16.mxu1 %v383_v37 }
  0x14   :  { %425 = vmatpush3.bf16.msra.mxu0 %v478_v18 }
  0x15   :  { %447 = vmatpush3.bf16.msra.mxu1 %v479_v19  ;;  %426 = vmatprep.subr.bf16.mxu0 %v480_v20 }
  0x16   :  { %448 = vmatprep.subr.bf16.mxu1 %v481_v21 }
  0x18   :  { %427 = vmatpush3.bf16.msra.mxu0 %v482_v22 }
  0x19   :  { %449 = vmatpush3.bf16.msra.mxu1 %v483_v23  ;;  %428 = vmatprep.subr.bf16.mxu0 %v484_v24 }
  0x1a   :  { %450 = vmatprep.subr.bf16.mxu1 %v485_v25 }
  0x1c   :  { %429 = vmatpush3.bf16.msra.mxu0 %v486_v26 }
  0x1d   :  { %451 = vmatpush3.bf16.msra.mxu1 %v487_v27  ;;  %430 = vmatprep.subr.bf16.mxu0 %v488_v28 }
  0x1e   :  { %452 = vmatprep.subr.bf16.mxu1 %v489_v29 }
  0x20   :  { %431 = vmatpush3.bf16.msra.mxu0 %v490_v30 }
  0x21   :  { %453 = vmatpush3.bf16.msra.mxu1 %v491_v31 }
  0x23   :  { %327 = vmatmul.mubr.bf16.vlgmr.msra.gmra.mxu0 %v380_v34 }
  0x24   :  { %367 = vmatmul.mubr.bf16.vlgmr.msra.gmra.mxu1 %v382_v36 }
  0xe3   :  { %v432_v38 = vpop.f32.mrf.mxu0 }
  0xe4   :  { %v454_v39 = vpop.f32.mrf.mxu1 }
  0xe5   :  { %v433_v41 = vpop.f32.mrf.mxu0 }
  0xe6   :  { %v455_v42 = vpop.f32.mrf.mxu1  ;;  %v434_v43 = vadd.f32 %v433_v41, %v432_v38 }
  0xe7   :  { %v435_v44 = vpop.f32.mrf.mxu0  ;;  %v456_v47 = vadd.f32 %v455_v42, %v454_v39 }
  0xe8   :  { %v457_v45 = vpop.f32.mrf.mxu1  ;;  %v329_v46 = vadd.f32 %v434_v43, %v379_v40 }
  0xe9   :  { %v436_v48 = vpop.f32.mrf.mxu0 }
  0xea   :  { %v458_v49 = vpop.f32.mrf.mxu1  ;;  %v369_v50 = vadd.f32 %v456_v47, %v329_v46 }
  0xec   :  { %374 = vst [vmem:[%s627_s3] sm:$0xff] %v369_v50 }

// kernel: mnist_cnn_forward.5
= control target key start
LH: loop header
LB: loop body
LE: loop exit
PB: predicated region body
PF: predicated region fallthrough
CT: control target
= control target key end

     0   :  { %s3746_s12 = smov 0   ;;  %s4369_s0 = inlined_call_operand.vmem [shape: f32[2,328,32], index: 0, kind: input, shape index: {}]   ;;  %s4370_s1 = inlined_call_operand.vmem [shape: bf16[25,32,128], index: 1, kind: input, shape index: {}]   ;;  %s4371_s2 = inlined_call_operand.vmem [shape: f32[1,128], index: 2, kind: input, shape index: {}]   ;;  %s4372_s3 = inlined_call_operand.vmem [shape: f32[2,7,7,64], index: 3, kind: output, shape index: {}]  }
   0x1 LB: > { %s2757_s13 = sadd.s32 4294967295, %s3718_s12   ;;  %p2761_p0 = scmp.ge.s32.totalorder %s3718_s12, 1  ;;  %s3718_s12 = sphi %s3746_s12, %s13_s12  }
   0x2   : > { %p137_p1 = scmp.lt.s32.totalorder %s3718_s12, 3 }
   0x4   : > { %p138_p2 = pnand %p2761_p0, %p137_p1 }
   0x5   : > { %p161_p3 = scmp.lt.s32.totalorder (!%p138_p2), %s2757_s13, 1  ;;  %s3764_s22 = smov (!%p138_p2), 0  }
   0x6   : > { %141 = sbr.rel (%p138_p2) target bundleno = 531 (0x213), region = 32 }
   0xb   : > { %s4374_s13 = smov (!%p161_p3, %s2757_s13), 1 }
   0xc   : > { %s3638_s14 = smul.u32 328, %s4374_s13 }
   0xd   : > { %s3639_s15 = smul.u32 56, %s4374_s13 }
   0xe   : > { %s3757_s18 = scalar_lea.vmem %s4369_s0, %s3638_s14 }
   0xf   : > { %s3762_s21 = scalar_lea.vmem %s4372_s3, %s3639_s15 }
  0x10 LB: >> { %v3658_v0 = vld [vmem:[%s4370_s1 + $0x18] sm:$0xff]   ;;  %v3724_v1 = vmov 0.0   ;;  %v3659_v2 = vld [vmem:[%s4370_s1 + $0x10] sm:$0xff]   ;;  %s178_s27 = smul.u32 36, %s3722_s22  ;;  %vm3725_vm0 = vmmov 0   ;;  %vm219_vm1 = vcmask 261120   ;;  %s3722_s22 = sphi %s3764_s22, %s177_s22  }
  0x11   : >> { %3634 = vmatprep.subr.bf16.mxu1 %v3724_v1  ;;  %3234 = vmatprep.subr.bf16.mxu0 %v3724_v1  ;;  %v3660_v7 = vld [vmem:[%s4370_s1 + $0x8] sm:$0xff]   ;;  %v3662_v12 = vld [vmem:[%s4370_s1] sm:$0xff]   ;;  %v3664_v26 = vld [vmem:[%s4370_s1 + $0x38] sm:$0xff]   ;;  %s3106_s11 = sshll.u32 %s3722_s22, 3  ;;  %vm2619_vm2 = vcmask 522240   ;;  %s177_s22 = sadd.s32 1, %s3722_s22  }
  0x12   : >> { %3636 = vmatpush3.bf16.msra.mxu1 %v3658_v0  ;;  %3235 = vmatpush3.bf16.msra.mxu0 %v3658_v0  ;;  %s3782_s28 = scalar_lea.vmem %s3757_s18, %s178_s27  ;;  %v3661_v9 = vld [vmem:[%s4370_s1 + $0x28] sm:$0xff]   ;;  %v3663_v13 = vld [vmem:[%s4370_s1 + $0x20] sm:$0xff]   ;;  %v3666_v30 = vld [vmem:[%s4370_s1 + $0x30] sm:$0xff]   ;;  %s2618_s13 = scalar_lea.vmem %s3762_s21, %s3106_s11 }
  0x13   : >> { %3635 = vmatprep.subr.bf16.mxu1 %v3724_v1  ;;  %3242 = vmatprep.mubr.msk.bf16.mxu1 %vm3725_vm0, %v3724_v1  ;;  %v2766_v3 = vld [vmem:[%s3782_s28 + $0x11] sm:$0xff]  ;;  %v2767_v4 = vld [vmem:[%s3782_s28 + $0x19] sm:$0xff]  ;;  %v2764_v5 = vld [vmem:[%s3782_s28 + $0x1] sm:$0xff]  ;;  %p174_p4 = scmp.ge.s32.totalorder %s177_s22, 7  }
  0x14   : >> { %3236 = vmatprep.subr.bf16.mxu0 %v3724_v1  ;;  %3238 = vmatprep.mubr.msk.bf16.mxu0 %vm3725_vm0, %v3724_v1  ;;  %v200_v6 = vpack.c.bf16 %v2767_v4, %v2766_v3  ;;  %v2765_v8 = vld [vmem:[%s3782_s28 + $0x9] sm:$0xff]  ;;  %v2768_v11 = vld [vmem:[%s3782_s28 + $0x21] sm:$0xf]  ;;  %v2785_v21 = vld [vmem:[%s3782_s28 + $0x12] sm:$0xff] }
  0x15   : >> { %v199_v10 = vpack.c.bf16 %v2765_v8, %v2764_v5  ;;  %v2783_v14 = vld [vmem:[%s3782_s28 + $0x2] sm:$0xff]  ;;  %v2784_v15 = vld [vmem:[%s3782_s28 + $0xa] sm:$0xff]  ;;  %v201_v16 = vpack.c.bf16 %v2768_v11, %v2768_v11  ;;  %v2786_v22 = vld [vmem:[%s3782_s28 + $0x1a] sm:$0xff] }
  0x16   : >> { %3637 = vmatpush3.bf16.msra.mxu1 %v3659_v2  ;;  %3237 = vmatpush3.bf16.msra.mxu0 %v3659_v2  ;;  %v369_v17 = vpack.c.bf16 %v2784_v15, %v2783_v14  ;;  %v3665_v18 = vld [vmem:[%s4370_s1 + $0x48] sm:$0xff]   ;;  %v180_v19 = vld [vmem:[%s3782_s28] sm:$0xff]  ;;  %v3835_v25 = vpack.c.bf16 %v2786_v22, %v2785_v21  ;;  %v182_v27 = vld [vmem:[%s3782_s28 + $0x10] sm:$0xff] }
  0x17   : >> { %3250 = vmatprep.subr.bf16.mxu1 %v3724_v1  ;;  %3266 = vmatprep.subr.bf16.mxu0 %v3724_v1  ;;  %v181_v20 = vld [vmem:[%s3782_s28 + $0x8] sm:$0xff]  ;;  %v3667_v23 = vld [vmem:[%s4370_s1 + $0x40] sm:$0xff]   ;;  %v183_v28 = vld [vmem:[%s3782_s28 + $0x18] sm:$0xff] }
  0x18   : >> { %v185_v24 = vpack.c.bf16 %v181_v20, %v180_v19  ;;  %v2787_v29 = vld [vmem:[%s3782_s28 + $0x22] sm:$0xf]  ;;  %v186_v31 = vpack.c.bf16 %v183_v28, %v182_v27  ;;  %v2812_v35 = vld [vmem:[%s3782_s28 + $0xc] sm:$0xff]  ;;  %v2813_v41 = vld [vmem:[%s3782_s28 + $0x14] sm:$0xff] }
  0x19   : >> { %3243 = vmatmul.mubr.msk.bf16.vlgmr.msra.gmra.mxu1 %vm219_vm1, %v200_v6  ;;  %3239 = vmatmul.mubr.msk.bf16.vlgmr.msra.gmra.mxu0 %vm219_vm1, %v199_v10  ;;  %v371_v32 = vpack.c.bf16 %v2787_v29, %v2787_v29  ;;  %v184_v33 = vld [vmem:[%s3782_s28 + $0x20] sm:$0xf]  ;;  %v2811_v34 = vld [vmem:[%s3782_s28 + $0x4] sm:$0xff]  ;;  %v3668_v46 = vld [vmem:[%s4370_s1 + $0x58] sm:$0xff]  }
  0x1a   : >> { %3251 = vmatpush3.bf16.msra.mxu1 %v3660_v7  ;;  %3267 = vmatpush3.bf16.msra.mxu0 %v3661_v9  ;;  %v187_v36 = vpack.c.bf16 %v184_v33, %v184_v33  ;;  %v563_v37 = vpack.c.bf16 %v2812_v35, %v2811_v34  ;;  %v3669_v38 = vld [vmem:[%s4370_s1 + $0x68] sm:$0xff]   ;;  %v2814_v42 = vld [vmem:[%s3782_s28 + $0x1c] sm:$0xff]  ;;  %v2799_v47 = vld [vmem:[%s3782_s28 + $0x13] sm:$0xff] }
  0x1b   : >> { %3246 = vmatprep.mubr.msk.bf16.mxu1 %vm3725_vm0, %v3724_v1  ;;  %3252 = vmatprep.subr.bf16.mxu1 %v3724_v1  ;;  %v2797_v39 = vld [vmem:[%s3782_s28 + $0x3] sm:$0xff]  ;;  %v2798_v40 = vld [vmem:[%s3782_s28 + $0xb] sm:$0xff]  ;;  %v3882_v45 = vpack.c.bf16 %v2814_v42, %v2813_v41  ;;  %v2800_v48 = vld [vmem:[%s3782_s28 + $0x1b] sm:$0xff] }
  0x1c   : >> { %3268 = vmatprep.subr.bf16.mxu0 %v3724_v1  ;;  %3270 = vmatprep.mubr.msk.bf16.mxu0 %vm3725_vm0, %v3724_v1  ;;  %v3671_v43 = vld [vmem:[%s4370_s1 + $0x60] sm:$0xff]   ;;  %v466_v44 = vpack.c.bf16 %v2798_v40, %v2797_v39  ;;  %v3670_v50 = vld [vmem:[%s4370_s1 + $0x50] sm:$0xff]   ;;  %v467_v51 = vpack.c.bf16 %v2800_v48, %v2799_v47  ;;  %v3673_v54 = vld [vmem:[%s4370_s1 + $0x88] sm:$0xff]  }
  0x1d   : >> { %v2815_v49 = vld [vmem:[%s3782_s28 + $0x24] sm:$0xf]  ;;  %v2842_v57 = vld [vmem:[%s3782_s28 + $0x2b] sm:$0xff]  ;;  %v3672_v60 = vld [vmem:[%s4370_s1 + $0x78] sm:$0xff]  }
  0x1e   : >> { %3253 = vmatpush3.bf16.msra.mxu1 %v3662_v12  ;;  %3269 = vmatpush3.bf16.msra.mxu0 %v3663_v13  ;;  %v565_v52 = vpack.c.bf16 %v2815_v49, %v2815_v49  ;;  %v2801_v53 = vld [vmem:[%s3782_s28 + $0x23] sm:$0xf]  ;;  %v2828_v62 = vld [vmem:[%s3782_s28 + $0x2a] sm:$0xff]  ;;  %v2843_v63 = vld [vmem:[%s3782_s28 + $0x33] sm:$0xf] }
  0x1f   : >> { %3282 = vmatprep.subr.bf16.mxu1 %v3724_v1  ;;  %3298 = vmatprep.subr.bf16.mxu0 %v3724_v1  ;;  %v468_v55 = vpack.c.bf16 %v2801_v53, %v2801_v53  ;;  %v2841_v56 = vld [vmem:[%s3782_s28 + $0x23] sm:$0xff]  ;;  %v3674_v0 = vld [vmem:[%s4370_s1 + $0x70] sm:$0xff]   ;;  %v759_v3 = vpack.c.bf16 %v2843_v63, %v2843_v63  ;;  %v3676_v14 = vld [vmem:[%s4370_s1 + $0x98] sm:$0xff]  }
  0x20   : >> { %v3675_v58 = vld [vmem:[%s4370_s1 + $0x80] sm:$0xff]   ;;  %v758_v59 = vpack.c.bf16 %v2842_v57, %v2841_v56  ;;  %v2829_v4 = vld [vmem:[%s3782_s28 + $0x32] sm:$0xf]  ;;  %v3677_v9 = vld [vmem:[%s4370_s1 + $0xa8] sm:$0xff]  }
  0x21   : >> { %3247 = vmatmul.mubr.msk.bf16.gmra.mxu1 %vm219_vm1, %v201_v16  ;;  %3271 = vmatmul.mubr.msk.bf16.vlgmr.msra.gmra.mxu0 %vm219_vm1, %v369_v17  ;;  %v2827_v61 = vld [vmem:[%s3782_s28 + $0x22] sm:$0xff]  ;;  %v2867_v5 = vld [vmem:[%s3782_s28 + $0x15] sm:$0xff]  ;;  %v662_v7 = vpack.c.bf16 %v2829_v4, %v2829_v4  ;;  %v2870_v11 = vld [vmem:[%s3782_s28 + $0x2d] sm:$0xff] }
  0x22   : >> { %3254 = vmatprep.mubr.msk.bf16.mxu1 %vm3725_vm0, %v3724_v1  ;;  %3299 = vmatpush3.bf16.msra.mxu0 %v3665_v18  ;;  %v661_v2 = vpack.c.bf16 %v2828_v62, %v2827_v61  ;;  %v2868_v6 = vld [vmem:[%s3782_s28 + $0x1d] sm:$0xff]  ;;  %v2869_v10 = vld [vmem:[%s3782_s28 + $0x25] sm:$0xff]  ;;  %v2871_v17 = vld [vmem:[%s3782_s28 + $0x35] sm:$0xf] }
  0x23   : >> { %3274 = vmatprep.mubr.msk.bf16.mxu0 %vm3725_vm0, %v3724_v1  ;;  %3300 = vmatprep.subr.bf16.mxu0 %v3724_v1  ;;  %v951_v8 = vpack.c.bf16 %v2868_v6, %v2867_v5  ;;  %v3679_v12 = vld [vmem:[%s4370_s1 + $0xa0] sm:$0xff]   ;;  %v3968_v13 = vpack.c.bf16 %v2870_v11, %v2869_v10  ;;  %v2856_v16 = vld [vmem:[%s3782_s28 + $0x2c] sm:$0xff]  ;;  %v953_v20 = vpack.c.bf16 %v2871_v17, %v2871_v17  ;;  %v2857_v21 = vld [vmem:[%s3782_s28 + $0x34] sm:$0xf] }
  0x24   : >> { %v2855_v15 = vld [vmem:[%s3782_s28 + $0x24] sm:$0xff]  ;;  %v3678_v18 = vld [vmem:[%s4370_s1 + $0x90] sm:$0xff]   ;;  %v856_v22 = vpack.c.bf16 %v2857_v21, %v2857_v21  ;;  %v2898_v27 = vld [vmem:[%s3782_s28 + $0x3c] sm:$0xff] }
  0x25   : >> { %v855_v19 = vpack.c.bf16 %v2856_v16, %v2855_v15  ;;  %v3683_v28 = vld [vmem:[%s4370_s1 + $0xc0] sm:$0xff]   ;;  %v2884_v33 = vld [vmem:[%s3782_s28 + $0x2e] sm:$0xff]  ;;  %v2925_v41 = vld [vmem:[%s3782_s28 + $0x36] sm:$0xff] }
  0x26   : >> { %3301 = vmatpush3.bf16.msra.mxu0 %v3667_v23  ;;  %v3681_v23 = vld [vmem:[%s4370_s1 + $0xc8] sm:$0xff]   ;;  %v2899_v34 = vld [vmem:[%s3782_s28 + $0x44] sm:$0xf]  ;;  %v3682_v35 = vld [vmem:[%s4370_s1 + $0xb0] sm:$0xff]  }
  0x27   : >> { %3330 = vmatprep.subr.bf16.mxu0 %v3724_v1  ;;  %v3685_v40 = vld [vmem:[%s4370_s1 + $0xe8] sm:$0xff]   ;;  %v2926_v42 = vld [vmem:[%s3782_s28 + $0x3e] sm:$0xff]  ;;  %v3686_v49 = vld [vmem:[%s4370_s1 + $0xd0] sm:$0xff]  }
  0x28   : >> { %v2912_v47 = vld [vmem:[%s3782_s28 + $0x3d] sm:$0xff]  ;;  %v2927_v48 = vld [vmem:[%s3782_s28 + $0x46] sm:$0xf]  ;;  %v3690_v6 = vld [vmem:[%s4370_s1 + $0xf0] sm:$0xff]  }
  0x29   : >> { %3255 = vmatmul.mubr.msk.bf16.vlgmr.msra.gmra.mxu1 %vm219_vm1, %v185_v24  ;;  %3275 = vmatmul.mubr.msk.bf16.gmra.mxu0 %vm219_vm1, %v3835_v25  ;;  %v2881_v24 = vld [vmem:[%s3782_s28 + $0x16] sm:$0xff]  ;;  %v2951_v53 = vld [vmem:[%s3782_s28 + $0x28] sm:$0xff]  ;;  %v2954_v61 = vld [vmem:[%s3782_s28 + $0x40] sm:$0xff] }
  0x2a   : >> { %3283 = vmatpush3.bf16.msra.mxu1 %v3664_v26  ;;  %3258 = vmatprep.mubr.msk.bf16.mxu1 %vm3725_vm0, %v3724_v1  ;;  %v2897_v26 = vld [vmem:[%s3782_s28 + $0x34] sm:$0xff]  ;;  %v3689_v57 = vld [vmem:[%s4370_s1 + $0x108] sm:$0xff]   ;;  %v3691_v62 = vld [vmem:[%s4370_s1 + $0x100] sm:$0xff]  }
  0x2b   : >> { %3278 = vmatprep.mubr.msk.bf16.mxu0 %vm3725_vm0, %v3724_v1  ;;  %3284 = vmatprep.subr.bf16.mxu1 %v3724_v1  ;;  %v2940_v4 = vld [vmem:[%s3782_s28 + $0x3f] sm:$0xff]  ;;  %v2955_v5 = vld [vmem:[%s3782_s28 + $0x48] sm:$0xf] }
  0x2c   : >> { %v3693_v11 = vld [vmem:[%s4370_s1 + $0x128] sm:$0xff]   ;;  %v3692_v16 = vld [vmem:[%s4370_s1 + $0x118] sm:$0xff]  }
  0x2d   : >> { %v2967_v17 = vld [vmem:[%s3782_s28 + $0x46] sm:$0xff] }
  0x2e   : >> { %3285 = vmatpush3.bf16.msra.mxu1 %v3666_v30  ;;  %v1146_v30 = vpack.c.bf16 %v2898_v27, %v2897_v26  ;;  %v3007_v26 = vld [vmem:[%s3782_s28 + $0x39] sm:$0xff]  ;;  %v3008_v27 = vld [vmem:[%s3782_s28 + $0x41] sm:$0xff] }
  0x2f   : >> { %3314 = vmatprep.subr.bf16.mxu1 %v3724_v1 }
  0x31   : >> { %3259 = vmatmul.mubr.msk.bf16.gmra.mxu1 %vm219_vm1, %v186_v31  ;;  %3279 = vmatmul.mubr.msk.bf16.gmra.mxu0 %vm219_vm1, %v371_v32  ;;  %v3680_v31 = vld [vmem:[%s4370_s1 + $0xb8] sm:$0xff]   ;;  %v2883_v32 = vld [vmem:[%s3782_s28 + $0x26] sm:$0xff] }
  0x32   : >> { %3262 = vmatprep.mubr.msk.bf16.mxu1 %vm3725_vm0, %v3724_v1  ;;  %3302 = vmatprep.mubr.msk.bf16.mxu0 %vm3725_vm0, %v3724_v1 }
  0x39   : >> { %3263 = vmatmul.mubr.msk.bf16.gmra.mxu1 %vm219_vm1, %v187_v36  ;;  %3303 = vmatmul.mubr.msk.bf16.vlgmr.msra.gmra.mxu0 %vm219_vm1, %v563_v37  ;;  %v1049_v36 = vpack.c.bf16 %v2884_v33, %v2883_v32  ;;  %v1147_v37 = vpack.c.bf16 %v2899_v34, %v2899_v34  ;;  %v1921_v33 = vpack.c.bf16 %v3008_v27, %v3007_v26  ;;  %v3697_v34 = vld [vmem:[%s4370_s1 + $0x148] sm:$0xff]   ;;  %v3703_v26 = vld [vmem:[%s4370_s1 + $0x160] sm:$0xff]  }
  0x3a   : >> { %3286 = vmatprep.mubr.msk.bf16.mxu1 %vm3725_vm0, %v3724_v1  ;;  %3331 = vmatpush3.bf16.msra.mxu0 %v3669_v38  ;;  %v2885_v38 = vld [vmem:[%s3782_s28 + $0x36] sm:$0xf] }
  0x3b   : >> { %3306 = vmatprep.mubr.msk.bf16.mxu0 %vm3725_vm0, %v3724_v1  ;;  %3332 = vmatprep.subr.bf16.mxu0 %v3724_v1  ;;  %v1050_v39 = vpack.c.bf16 %v2885_v38, %v2885_v38 }
  0x3e   : >> { %3333 = vmatpush3.bf16.msra.mxu0 %v3671_v43  ;;  %v3687_v43 = vld [vmem:[%s4370_s1 + $0xe0] sm:$0xff]  }
  0x3f   : >> { %3362 = vmatprep.subr.bf16.mxu0 %v3724_v1 }
  0x41   : >> { %3287 = vmatmul.mubr.msk.bf16.vlgmr.msra.gmra.mxu1 %vm219_vm1, %v466_v44  ;;  %3307 = vmatmul.mubr.msk.bf16.gmra.mxu0 %vm219_vm1, %v3882_v45  ;;  %v4054_v44 = vpack.c.bf16 %v2926_v42, %v2925_v41  ;;  %v3699_v41 = vld [vmem:[%s4370_s1 + $0x140] sm:$0xff]  }
  0x42   : >> { %3315 = vmatpush3.bf16.msra.mxu1 %v3668_v46  ;;  %3290 = vmatprep.mubr.msk.bf16.mxu1 %vm3725_vm0, %v3724_v1  ;;  %v2911_v46 = vld [vmem:[%s3782_s28 + $0x35] sm:$0xff] }
  0x43   : >> { %3310 = vmatprep.mubr.msk.bf16.mxu0 %vm3725_vm0, %v3724_v1  ;;  %3316 = vmatprep.subr.bf16.mxu1 %v3724_v1 }
  0x46   : >> { %3317 = vmatpush3.bf16.msra.mxu1 %v3670_v50  ;;  %v1243_v50 = vpack.c.bf16 %v2912_v47, %v2911_v46  ;;  %v3696_v47 = vld [vmem:[%s4370_s1 + $0x138] sm:$0xff]  }
  0x47   : >> { %3346 = vmatprep.subr.bf16.mxu1 %v3724_v1 }
  0x49   : >> { %3291 = vmatmul.mubr.msk.bf16.gmra.mxu1 %vm219_vm1, %v467_v51  ;;  %3311 = vmatmul.mubr.msk.bf16.gmra.mxu0 %vm219_vm1, %v565_v52  ;;  %v2913_v52 = vld [vmem:[%s3782_s28 + $0x45] sm:$0xf] }
  0x4a   : >> { %3294 = vmatprep.mubr.msk.bf16.mxu1 %vm3725_vm0, %v3724_v1  ;;  %3334 = vmatprep.mubr.msk.bf16.mxu0 %vm3725_vm0, %v3724_v1 }
  0x51   : >> { %3295 = vmatmul.mubr.msk.bf16.gmra.mxu1 %vm219_vm1, %v468_v55  ;;  %3335 = vmatmul.mubr.msk.bf16.vlgmr.msra.gmra.mxu0 %vm219_vm1, %v467_v51  ;;  %v1341_v51 = vpack.c.bf16 %v2927_v48, %v2927_v48  ;;  %v1244_v55 = vpack.c.bf16 %v2913_v52, %v2913_v52  ;;  %v2995_v52 = vld [vmem:[%s3782_s28 + $0x48] sm:$0xff] }
  0x52   : >> { %3318 = vmatprep.mubr.msk.bf16.mxu1 %vm3725_vm0, %v3724_v1  ;;  %3363 = vmatpush3.bf16.msra.mxu0 %v3673_v54  ;;  %v2952_v54 = vld [vmem:[%s3782_s28 + $0x30] sm:$0xff] }
  0x53   : >> { %3338 = vmatprep.mubr.msk.bf16.mxu0 %vm3725_vm0, %v3724_v1  ;;  %3364 = vmatprep.subr.bf16.mxu0 %v3724_v1  ;;  %v1533_v56 = vpack.c.bf16 %v2952_v54, %v2951_v53  ;;  %v2996_v54 = vld [vmem:[%s3782_s28 + $0x50] sm:$0xff] }
  0x56   : >> { %3365 = vmatpush3.bf16.msra.mxu0 %v3675_v58  ;;  %v2937_v58 = vld [vmem:[%s3782_s28 + $0x27] sm:$0xff] }
  0x57   : >> { %3394 = vmatprep.subr.bf16.mxu0 %v3724_v1 }
  0x59   : >> { %3319 = vmatmul.mubr.msk.bf16.vlgmr.msra.gmra.mxu1 %vm219_vm1, %v3835_v25  ;;  %3339 = vmatmul.mubr.msk.bf16.gmra.mxu0 %vm219_vm1, %v758_v59  ;;  %v2882_v25 = vld [vmem:[%s3782_s28 + $0x1e] sm:$0xff]  ;;  %v2938_v59 = vld [vmem:[%s3782_s28 + $0x2f] sm:$0xff] }
  0x5a   : >> { %3347 = vmatpush3.bf16.msra.mxu1 %v3672_v60  ;;  %3322 = vmatprep.mubr.msk.bf16.mxu1 %vm3725_vm0, %v3724_v1  ;;  %v1048_v29 = vpack.c.bf16 %v2882_v25, %v2881_v24  ;;  %v2953_v60 = vld [vmem:[%s3782_s28 + $0x38] sm:$0xff]  ;;  %v1436_v63 = vpack.c.bf16 %v2938_v59, %v2937_v58 }
  0x5b   : >> { %3342 = vmatprep.mubr.msk.bf16.mxu0 %vm3725_vm0, %v3724_v1  ;;  %3348 = vmatprep.subr.bf16.mxu1 %v3724_v1  ;;  %v2969_v25 = vld [vmem:[%s3782_s28 + $0x56] sm:$0xf] }
  0x5e   : >> { %3349 = vmatpush3.bf16.msra.mxu1 %v3674_v0  ;;  %v4102_v0 = vpack.c.bf16 %v2954_v61, %v2953_v60  ;;  %v1825_v61 = vpack.c.bf16 %v2996_v54, %v2995_v52 }
  0x5f   : >> { %3378 = vmatprep.subr.bf16.mxu1 %v3724_v1 }
  0x61   : >> { %3323 = vmatmul.mubr.msk.bf16.gmra.mxu1 %vm219_vm1, %v661_v2  ;;  %3343 = vmatmul.mubr.msk.bf16.gmra.mxu0 %vm219_vm1, %v759_v3  ;;  %v3688_v2 = vld [vmem:[%s4370_s1 + $0xf8] sm:$0xff]  }
  0x62   : >> { %3326 = vmatprep.mubr.msk.bf16.mxu1 %vm3725_vm0, %v3724_v1  ;;  %3366 = vmatprep.mubr.msk.bf16.mxu0 %vm3725_vm0, %v3724_v1  ;;  %v2939_v3 = vld [vmem:[%s3782_s28 + $0x37] sm:$0xff] }
  0x69   : >> { %3327 = vmatmul.mubr.msk.bf16.gmra.mxu1 %vm219_vm1, %v662_v7  ;;  %3367 = vmatmul.mubr.msk.bf16.vlgmr.msra.gmra.mxu0 %vm219_vm1, %v951_v8  ;;  %v1437_v7 = vpack.c.bf16 %v2940_v4, %v2939_v3  ;;  %v1535_v8 = vpack.c.bf16 %v2955_v5, %v2955_v5 }
  0x6a   : >> { %3350 = vmatprep.mubr.msk.bf16.mxu1 %vm3725_vm0, %v3724_v1  ;;  %3395 = vmatpush3.bf16.msra.mxu0 %v3677_v9  ;;  %v2941_v9 = vld [vmem:[%s3782_s28 + $0x47] sm:$0xf] }
  0x6b   : >> { %3370 = vmatprep.mubr.msk.bf16.mxu0 %vm3725_vm0, %v3724_v1  ;;  %3396 = vmatprep.subr.bf16.mxu0 %v3724_v1  ;;  %v1438_v10 = vpack.c.bf16 %v2941_v9, %v2941_v9 }
  0x6e   : >> { %3397 = vmatpush3.bf16.msra.mxu0 %v3679_v12  ;;  %v2981_v12 = vld [vmem:[%s3782_s28 + $0x47] sm:$0xff] }
  0x6f   : >> { %3426 = vmatprep.subr.bf16.mxu0 %v3724_v1 }
  0x71   : >> { %3351 = vmatmul.mubr.msk.bf16.vlgmr.msra.gmra.mxu1 %vm219_vm1, %v3882_v45  ;;  %3371 = vmatmul.mubr.msk.bf16.gmra.mxu0 %vm219_vm1, %v3968_v13  ;;  %v3684_v45 = vld [vmem:[%s4370_s1 + $0xd8] sm:$0xff]  }
  0x72   : >> { %3379 = vmatpush3.bf16.msra.mxu1 %v3676_v14  ;;  %3354 = vmatprep.mubr.msk.bf16.mxu1 %vm3725_vm0, %v3724_v1  ;;  %v3695_v14 = vld [vmem:[%s4370_s1 + $0x120] sm:$0xff]  }
  0x73   : >> { %3374 = vmatprep.mubr.msk.bf16.mxu0 %vm3725_vm0, %v3724_v1  ;;  %3380 = vmatprep.subr.bf16.mxu1 %v3724_v1 }
  0x76   : >> { %3381 = vmatpush3.bf16.msra.mxu1 %v3678_v18  ;;  %v2968_v18 = vld [vmem:[%s3782_s28 + $0x4e] sm:$0xff] }
  0x77   : >> { %3410 = vmatprep.subr.bf16.mxu1 %v3724_v1  ;;  %v1631_v21 = vpack.c.bf16 %v2968_v18, %v2967_v17 }
  0x79   : >> { %3355 = vmatmul.mubr.msk.bf16.gmra.mxu1 %vm219_vm1, %v855_v19  ;;  %3375 = vmatmul.mubr.msk.bf16.gmra.mxu0 %vm219_vm1, %v953_v20  ;;  %v3694_v20 = vld [vmem:[%s4370_s1 + $0x110] sm:$0xff]  }
  0x7a   : >> { %3358 = vmatprep.mubr.msk.bf16.mxu1 %vm3725_vm0, %v3724_v1  ;;  %3398 = vmatprep.mubr.msk.bf16.mxu0 %vm3725_vm0, %v3724_v1 }
  0x81   : >> { %3359 = vmatmul.mubr.msk.bf16.gmra.mxu1 %vm219_vm1, %v856_v22  ;;  %3399 = vmatmul.mubr.msk.bf16.vlgmr.msra.gmra.mxu0 %vm219_vm1, %v855_v19  ;;  %v2983_v19 = vld [vmem:[%s3782_s28 + $0x57] sm:$0xf] }
  0x82   : >> { %3382 = vmatprep.mubr.msk.bf16.mxu1 %vm3725_vm0, %v3724_v1  ;;  %3427 = vmatpush3.bf16.msra.mxu0 %v3681_v23  ;;  %v1729_v22 = vpack.c.bf16 %v2983_v19, %v2983_v19 }
  0x83   : >> { %3402 = vmatprep.mubr.msk.bf16.mxu0 %vm3725_vm0, %v3724_v1  ;;  %3428 = vmatprep.subr.bf16.mxu0 %v3724_v1 }
  0x86   : >> { %3429 = vmatpush3.bf16.msra.mxu0 %v3683_v28 }
  0x87   : >> { %3458 = vmatprep.subr.bf16.mxu0 %v3724_v1 }
  0x89   : >> { %3383 = vmatmul.mubr.msk.bf16.vlgmr.msra.gmra.mxu1 %vm219_vm1, %v1048_v29  ;;  %3403 = vmatmul.mubr.msk.bf16.gmra.mxu0 %vm219_vm1, %v1146_v30 }
  0x8a   : >> { %3411 = vmatpush3.bf16.msra.mxu1 %v3680_v31  ;;  %3386 = vmatprep.mubr.msk.bf16.mxu1 %vm3725_vm0, %v3724_v1  ;;  %v1632_v31 = vpack.c.bf16 %v2969_v25, %v2969_v25  ;;  %v3038_v25 = vld [vmem:[%s3782_s28 + $0x60] sm:$0xff] }
  0x8b   : >> { %3406 = vmatprep.mubr.msk.bf16.mxu0 %vm3725_vm0, %v3724_v1  ;;  %3412 = vmatprep.subr.bf16.mxu1 %v3724_v1 }
  0x8e   : >> { %3413 = vmatpush3.bf16.msra.mxu1 %v3682_v35 }
  0x8f   : >> { %3442 = vmatprep.subr.bf16.mxu1 %v3724_v1 }
  0x91   : >> { %3387 = vmatmul.mubr.msk.bf16.gmra.mxu1 %vm219_vm1, %v1049_v36  ;;  %3407 = vmatmul.mubr.msk.bf16.gmra.mxu0 %vm219_vm1, %v1147_v37 }
  0x92   : >> { %3390 = vmatprep.mubr.msk.bf16.mxu1 %vm3725_vm0, %v3724_v1  ;;  %3430 = vmatprep.mubr.msk.bf16.mxu0 %vm3725_vm0, %v3724_v1 }
  0x99   : >> { %3391 = vmatmul.mubr.msk.bf16.gmra.mxu1 %vm219_vm1, %v1050_v39  ;;  %3431 = vmatmul.mubr.msk.bf16.vlgmr.msra.gmra.mxu0 %vm219_vm1, %v1049_v36  ;;  %v3009_v39 = vld [vmem:[%s3782_s28 + $0x49] sm:$0xff] }
  0x9a   : >> { %3414 = vmatprep.mubr.msk.bf16.mxu1 %vm3725_vm0, %v3724_v1  ;;  %3459 = vmatpush3.bf16.msra.mxu0 %v3685_v40  ;;  %v3010_v40 = vld [vmem:[%s3782_s28 + $0x51] sm:$0xff] }
  0x9b   : >> { %3434 = vmatprep.mubr.msk.bf16.mxu0 %vm3725_vm0, %v3724_v1  ;;  %3460 = vmatprep.subr.bf16.mxu0 %v3724_v1  ;;  %v4192_v46 = vpack.c.bf16 %v3010_v40, %v3009_v39  ;;  %v3024_v40 = vld [vmem:[%s3782_s28 + $0x52] sm:$0xff] }
  0x9e   : >> { %3461 = vmatpush3.bf16.msra.mxu0 %v3687_v43 }
  0x9f   : >> { %3490 = vmatprep.subr.bf16.mxu0 %v3724_v1 }
  0xa1   : >> { %3415 = vmatmul.mubr.msk.bf16.vlgmr.msra.gmra.mxu1 %vm219_vm1, %v3968_v13  ;;  %3435 = vmatmul.mubr.msk.bf16.gmra.mxu0 %vm219_vm1, %v4054_v44  ;;  %v2982_v13 = vld [vmem:[%s3782_s28 + $0x4f] sm:$0xff] }
  0xa2   : >> { %3443 = vmatpush3.bf16.msra.mxu1 %v3684_v45  ;;  %3418 = vmatprep.mubr.msk.bf16.mxu1 %vm3725_vm0, %v3724_v1  ;;  %v1728_v15 = vpack.c.bf16 %v2982_v13, %v2981_v12 }
  0xa3   : >> { %3438 = vmatprep.mubr.msk.bf16.mxu0 %vm3725_vm0, %v3724_v1  ;;  %3444 = vmatprep.subr.bf16.mxu1 %v3724_v1 }
  0xa6   : >> { %3445 = vmatpush3.bf16.msra.mxu1 %v3686_v49 }
  0xa7   : >> { %3474 = vmatprep.subr.bf16.mxu1 %v3724_v1 }
  0xa9   : >> { %3419 = vmatmul.mubr.msk.bf16.gmra.mxu1 %vm219_vm1, %v1243_v50  ;;  %3439 = vmatmul.mubr.msk.bf16.gmra.mxu0 %vm219_vm1, %v1341_v51 }
  0xaa   : >> { %3422 = vmatprep.mubr.msk.bf16.mxu1 %vm3725_vm0, %v3724_v1  ;;  %3462 = vmatprep.mubr.msk.bf16.mxu0 %vm3725_vm0, %v3724_v1 }
  0xb1   : >> { %3423 = vmatmul.mubr.msk.bf16.gmra.mxu1 %vm219_vm1, %v1244_v55  ;;  %3463 = vmatmul.mubr.msk.bf16.vlgmr.msra.gmra.mxu0 %vm219_vm1, %v1533_v56  ;;  %v3011_v55 = vld [vmem:[%s3782_s28 + $0x59] sm:$0xf]  ;;  %v3698_v56 = vld [vmem:[%s4370_s1 + $0x130] sm:$0xff]  }
  0xb2   : >> { %3446 = vmatprep.mubr.msk.bf16.mxu1 %vm3725_vm0, %v3724_v1  ;;  %3491 = vmatpush3.bf16.msra.mxu0 %v3689_v57 }
  0xb3   : >> { %3466 = vmatprep.mubr.msk.bf16.mxu0 %vm3725_vm0, %v3724_v1  ;;  %3492 = vmatprep.subr.bf16.mxu0 %v3724_v1 }
  0xb6   : >> { %3493 = vmatpush3.bf16.msra.mxu0 %v3691_v62 }
  0xb7   : >> { %3522 = vmatprep.subr.bf16.mxu0 %v3724_v1 }
  0xb9   : >> { %3447 = vmatmul.mubr.msk.bf16.vlgmr.msra.gmra.mxu1 %vm219_vm1, %v1436_v63  ;;  %3467 = vmatmul.mubr.msk.bf16.gmra.mxu0 %vm219_vm1, %v4102_v0  ;;  %v1923_v63 = vpack.c.bf16 %v3011_v55, %v3011_v55 }
  0xba   : >> { %3475 = vmatpush3.bf16.msra.mxu1 %v3688_v2  ;;  %3450 = vmatprep.mubr.msk.bf16.mxu1 %vm3725_vm0, %v3724_v1 }
  0xbb   : >> { %3470 = vmatprep.mubr.msk.bf16.mxu0 %vm3725_vm0, %v3724_v1  ;;  %3476 = vmatprep.subr.bf16.mxu1 %v3724_v1 }
  0xbe   : >> { %3477 = vmatpush3.bf16.msra.mxu1 %v3690_v6 }
  0xbf   : >> { %3506 = vmatprep.subr.bf16.mxu1 %v3724_v1 }
  0xc1   : >> { %3451 = vmatmul.mubr.msk.bf16.gmra.mxu1 %vm219_vm1, %v1437_v7  ;;  %3471 = vmatmul.mubr.msk.bf16.gmra.mxu0 %vm219_vm1, %v1535_v8  ;;  %v2997_v8 = vld [vmem:[%s3782_s28 + $0x58] sm:$0xf] }
  0xc2   : >> { %3454 = vmatprep.mubr.msk.bf16.mxu1 %vm3725_vm0, %v3724_v1  ;;  %3494 = vmatprep.mubr.msk.bf16.mxu0 %vm3725_vm0, %v3724_v1  ;;  %v1826_v13 = vpack.c.bf16 %v2997_v8, %v2997_v8 }
  0xc9   : >> { %3455 = vmatmul.mubr.msk.bf16.gmra.mxu1 %vm219_vm1, %v1438_v10  ;;  %3495 = vmatmul.mubr.msk.bf16.vlgmr.msra.gmra.mxu0 %vm219_vm1, %v1437_v7 }
  0xca   : >> { %3478 = vmatprep.mubr.msk.bf16.mxu1 %vm3725_vm0, %v3724_v1  ;;  %3523 = vmatpush3.bf16.msra.mxu0 %v3693_v11 }
  0xcb   : >> { %3498 = vmatprep.mubr.msk.bf16.mxu0 %vm3725_vm0, %v3724_v1  ;;  %3524 = vmatprep.subr.bf16.mxu0 %v3724_v1 }
  0xce   : >> { %3525 = vmatpush3.bf16.msra.mxu0 %v3695_v14 }
  0xcf   : >> { %3554 = vmatprep.subr.bf16.mxu0 %v3724_v1 }
  0xd1   : >> { %3479 = vmatmul.mubr.msk.bf16.vlgmr.msra.gmra.mxu1 %vm219_vm1, %v4054_v44  ;;  %3499 = vmatmul.mubr.msk.bf16.gmra.mxu0 %vm219_vm1, %v1728_v15 }
  0xd2   : >> { %3507 = vmatpush3.bf16.msra.mxu1 %v3692_v16  ;;  %3482 = vmatprep.mubr.msk.bf16.mxu1 %vm3725_vm0, %v3724_v1  ;;  %v3701_v16 = vld [vmem:[%s4370_s1 + $0x168] sm:$0xff]  }
  0xd3   : >> { %3502 = vmatprep.mubr.msk.bf16.mxu0 %vm3725_vm0, %v3724_v1  ;;  %3508 = vmatprep.subr.bf16.mxu1 %v3724_v1 }
  0xd6   : >> { %3509 = vmatpush3.bf16.msra.mxu1 %v3694_v20 }
  0xd7   : >> { %3538 = vmatprep.subr.bf16.mxu1 %v3724_v1 }
  0xd9   : >> { %v4164_v23 = vpop.f32.mrf.mxu1  ;;  %3483 = vmatmul.mubr.msk.bf16.gmra.mxu1 %vm219_vm1, %v1631_v21  ;;  %v263_v24 = vpop.f32.mrf.mxu0  ;;  %3503 = vmatmul.mubr.msk.bf16.gmra.mxu0 %vm219_vm1, %v1729_v22  ;;  %v3021_v22 = vld [vmem:[%s3782_s28 + $0x3a] sm:$0xff] }
  0xda   : >> { %3486 = vmatprep.mubr.msk.bf16.mxu1 %vm3725_vm0, %v3724_v1  ;;  %3526 = vmatprep.mubr.msk.bf16.mxu0 %vm3725_vm0, %v3724_v1 }
  0xdb   : >> { %v3244_v28 = vpop.f32.mrf.mxu1  ;;  %v3240_v29 = vpop.f32.mrf.mxu0 }
  0xdd   : >> { %v4175_v30 = vpop.f32.mrf.mxu1  ;;  %v266_v32 = vpop.f32.mrf.mxu0 }
  0xdf   : >> { %v3245_v35 = vpop.f32.mrf.mxu1  ;;  %v3241_v36 = vpop.f32.mrf.mxu0 }
  0xe1   : >> { %v279_v37 = vpop.f32.mrf.mxu1  ;;  %3487 = vmatmul.mubr.msk.bf16.gmra.mxu1 %vm219_vm1, %v1632_v31  ;;  %v432_v38 = vpop.f32.mrf.mxu0  ;;  %3527 = vmatmul.mubr.msk.bf16.vlgmr.msra.gmra.mxu0 %vm219_vm1, %v1921_v33  ;;  %v3700_v33 = vld [vmem:[%s4370_s1 + $0x158] sm:$0xff]  }
  0xe2   : >> { %3510 = vmatprep.mubr.msk.bf16.mxu1 %vm3725_vm0, %v3724_v1  ;;  %3555 = vmatpush3.bf16.msra.mxu0 %v3697_v34 }
  0xe3   : >> { %v3248_v42 = vpop.f32.mrf.mxu1  ;;  %v3272_v43 = vpop.f32.mrf.mxu0  ;;  %3530 = vmatprep.mubr.msk.bf16.mxu0 %vm3725_vm0, %v3724_v1  ;;  %3556 = vmatprep.subr.bf16.mxu0 %v3724_v1 }
  0xe4   : >> { %v3702_v42 = vld [vmem:[%s4370_s1 + $0x150] sm:$0xff]  }
  0xe5   : >> { %v282_v44 = vpop.f32.mrf.mxu1  ;;  %v435_v45 = vpop.f32.mrf.mxu0 }
  0xe6   : >> { %3557 = vmatpush3.bf16.msra.mxu0 %v3699_v41  ;;  %v3039_v41 = vld [vmem:[%s3782_s28 + $0x68] sm:$0xf] }
  0xe7   : >> { %v3249_v48 = vpop.f32.mrf.mxu1  ;;  %v3273_v49 = vpop.f32.mrf.mxu0  ;;  %3586 = vmatprep.subr.bf16.mxu0 %v3724_v1 }
  0xe9   : >> { %v340_v50 = vpop.f32.mrf.mxu1  ;;  %3511 = vmatmul.mubr.msk.bf16.vlgmr.msra.gmra.mxu1 %vm219_vm1, %v4102_v0  ;;  %v440_v51 = vpop.f32.mrf.mxu0  ;;  %3531 = vmatmul.mubr.msk.bf16.gmra.mxu0 %vm219_vm1, %v4192_v46 }
  0xea   : >> { %v341_v53 = vadd.f32 %v340_v50, %v263_v24  ;;  %3539 = vmatpush3.bf16.msra.mxu1 %v3696_v47  ;;  %3514 = vmatprep.mubr.msk.bf16.mxu1 %vm3725_vm0, %v3724_v1  ;;  %v3037_v24 = vld [vmem:[%s3782_s28 + $0x58] sm:$0xff]  ;;  %v2117_v50 = vpack.c.bf16 %v3039_v41, %v3039_v41  ;;  %v3091_v41 = vld [vmem:[%s3782_s28 + $0x4c] sm:$0xff] }
  0xeb   : >> { %v3256_v57 = vpop.f32.mrf.mxu1  ;;  %v3276_v58 = vpop.f32.mrf.mxu0  ;;  %3534 = vmatprep.mubr.msk.bf16.mxu0 %vm3725_vm0, %v3724_v1  ;;  %3540 = vmatprep.subr.bf16.mxu1 %v3724_v1 }
  0xec   : >> { %v454_v59 = vadd.f32 %v432_v38, %v341_v53  ;;  %v3023_v38 = vld [vmem:[%s3782_s28 + $0x4a] sm:$0xff]  ;;  %v3025_v58 = vld [vmem:[%s3782_s28 + $0x5a] sm:$0xf] }
  0xed   : >> { %v343_v60 = vpop.f32.mrf.mxu1  ;;  %v443_v62 = vpop.f32.mrf.mxu0  ;;  %v2019_v48 = vpack.c.bf16 %v3024_v40, %v3023_v38  ;;  %v3053_v40 = vld [vmem:[%s3782_s28 + $0x69] sm:$0xf] }
  0xee   : >> { %v344_v0 = vadd.f32 %v343_v60, %v266_v32  ;;  %3541 = vmatpush3.bf16.msra.mxu1 %v3698_v56  ;;  %v2116_v32 = vpack.c.bf16 %v3038_v25, %v3037_v24  ;;  %v3052_v24 = vld [vmem:[%s3782_s28 + $0x61] sm:$0xff]  ;;  %v3067_v25 = vld [vmem:[%s3782_s28 + $0x6a] sm:$0xf] }
  0xef   : >> { %v3257_v2 = vpop.f32.mrf.mxu1  ;;  %v3277_v3 = vpop.f32.mrf.mxu0  ;;  %3570 = vmatprep.subr.bf16.mxu1 %v3724_v1 }
  0xf0   : >> { %v4214_v4 = vadd.f32 %v435_v45, %v344_v0  ;;  %v3705_v3 = vld [vmem:[%s4370_s1 + $0x188] sm:$0xff]  }
  0xf1   : >> { %v348_v5 = vpop.f32.mrf.mxu1  ;;  %3515 = vmatmul.mubr.msk.bf16.gmra.mxu1 %vm219_vm1, %v1825_v61  ;;  %v448_v6 = vpop.f32.mrf.mxu0  ;;  %3535 = vmatmul.mubr.msk.bf16.gmra.mxu0 %vm219_vm1, %v1923_v63  ;;  %v2020_v63 = vpack.c.bf16 %v3025_v58, %v3025_v58  ;;  %v3078_v58 = vld [vmem:[%s3782_s28 + $0x53] sm:$0xff] }
  0xf2   : >> { %v349_v7 = vadd.f32 %v348_v5, %v4164_v23  ;;  %3518 = vmatprep.mubr.msk.bf16.mxu1 %vm3725_vm0, %v3724_v1  ;;  %3558 = vmatprep.mubr.msk.bf16.mxu0 %vm3725_vm0, %v3724_v1  ;;  %v3022_v23 = vld [vmem:[%s3782_s28 + $0x42] sm:$0xff] }
  0xf3   : >> { %v3260_v9 = vpop.f32.mrf.mxu1  ;;  %v3280_v10 = vpop.f32.mrf.mxu0 }
  0xf4   : >> { %v4224_v11 = vadd.f32 %v440_v51, %v349_v7  ;;  %v3065_v9 = vld [vmem:[%s3782_s28 + $0x5a] sm:$0xff]  ;;  %v3066_v10 = vld [vmem:[%s3782_s28 + $0x62] sm:$0xff] }
  0xf5   : >> { %v351_v12 = vpop.f32.mrf.mxu1  ;;  %v451_v14 = vpop.f32.mrf.mxu0 }
  0xf6   : >> { %v352_v15 = vadd.f32 %v351_v12, %v4175_v30  ;;  %v2018_v30 = vpack.c.bf16 %v3022_v23, %v3021_v22  ;;  %v3051_v22 = vld [vmem:[%s3782_s28 + $0x59] sm:$0xff] }
  0xf7   : >> { %v3261_v17 = vpop.f32.mrf.mxu1  ;;  %v3281_v18 = vpop.f32.mrf.mxu0 }
  0xf8   : >> { %v4230_v19 = vadd.f32 %v443_v62, %v352_v15  ;;  %v3704_v17 = vld [vmem:[%s4370_s1 + $0x178] sm:$0xff]  }
  0xf9   : >> { %v356_v20 = vpop.f32.mrf.mxu1  ;;  %3519 = vmatmul.mubr.msk.bf16.gmra.mxu1 %vm219_vm1, %v1826_v13  ;;  %v626_v21 = vpop.f32.mrf.mxu0  ;;  %3559 = vmatmul.mubr.msk.bf16.vlgmr.msra.gmra.mxu0 %vm219_vm1, %v1825_v61 }
  0xfa   : >> { %3542 = vmatprep.mubr.msk.bf16.mxu1 %vm3725_vm0, %v3724_v1  ;;  %3587 = vmatpush3.bf16.msra.mxu0 %v3701_v16  ;;  %v2310_v16 = vpack.c.bf16 %v3066_v10, %v3065_v9  ;;  %v3079_v9 = vld [vmem:[%s3782_s28 + $0x5b] sm:$0xff]  ;;  %v3080_v10 = vld [vmem:[%s3782_s28 + $0x63] sm:$0xff] }
  0xfb   : >> { %v3264_v27 = vpop.f32.mrf.mxu1  ;;  %v3304_v28 = vpop.f32.mrf.mxu0  ;;  %3562 = vmatprep.mubr.msk.bf16.mxu0 %vm3725_vm0, %v3724_v1  ;;  %3588 = vmatprep.subr.bf16.mxu0 %v3724_v1 }
  0xfd   : >> { %v359_v29 = vpop.f32.mrf.mxu1  ;;  %v629_v31 = vpop.f32.mrf.mxu0 }
  0xfe   : >> { %3589 = vmatpush3.bf16.msra.mxu0 %v3703_v26  ;;  %v3706_v26 = vld [vmem:[%s4370_s1 + $0x170] sm:$0xff]  }
  0xff   : >> { %v3265_v34 = vpop.f32.mrf.mxu1  ;;  %v3305_v35 = vpop.f32.mrf.mxu0  ;;  %3618 = vmatprep.subr.bf16.mxu0 %v3724_v1 }
 0x101   : >> { %v529_v36 = vpop.f32.mrf.mxu1  ;;  %3543 = vmatmul.mubr.msk.bf16.vlgmr.msra.gmra.mxu1 %vm219_vm1, %v2018_v30  ;;  %v634_v37 = vpop.f32.mrf.mxu0  ;;  %3563 = vmatmul.mubr.msk.bf16.gmra.mxu0 %vm219_vm1, %v2116_v32  ;;  %v2213_v30 = vpack.c.bf16 %v3052_v24, %v3051_v22  ;;  %v2311_v32 = vpack.c.bf16 %v3067_v25, %v3067_v25 }
 0x102   : >> { %v551_v39 = vadd.f32 %v529_v36, %v454_v59  ;;  %3571 = vmatpush3.bf16.msra.mxu1 %v3700_v33  ;;  %3546 = vmatprep.mubr.msk.bf16.mxu1 %vm3725_vm0, %v3724_v1 }
 0x103   : >> { %v3288_v43 = vpop.f32.mrf.mxu1  ;;  %v3308_v44 = vpop.f32.mrf.mxu0  ;;  %3566 = vmatprep.mubr.msk.bf16.mxu0 %vm3725_vm0, %v3724_v1  ;;  %3572 = vmatprep.subr.bf16.mxu1 %v3724_v1 }
 0x104   : >> { %v648_v45 = vadd.f32 %v626_v21, %v551_v39 }
 0x105   : >> { %v532_v47 = vpop.f32.mrf.mxu1  ;;  %v637_v49 = vpop.f32.mrf.mxu0 }
 0x106   : >> { %v552_v51 = vadd.f32 %v532_v47, %v4214_v4  ;;  %3573 = vmatpush3.bf16.msra.mxu1 %v3702_v42  ;;  %v3092_v42 = vld [vmem:[%s3782_s28 + $0x54] sm:$0xff] }
 0x107   : >> { %v3289_v52 = vpop.f32.mrf.mxu1  ;;  %v3309_v53 = vpop.f32.mrf.mxu0  ;;  %3602 = vmatprep.subr.bf16.mxu1 %v3724_v1 }
 0x108   : >> { %v649_v54 = vadd.f32 %v629_v31, %v552_v51 }
 0x109   : >> { %v537_v55 = vpop.f32.mrf.mxu1  ;;  %3547 = vmatmul.mubr.msk.bf16.gmra.mxu1 %vm219_vm1, %v2019_v48  ;;  %v642_v56 = vpop.f32.mrf.mxu0  ;;  %3567 = vmatmul.mubr.msk.bf16.gmra.mxu0 %vm219_vm1, %v2117_v50  ;;  %v2503_v50 = vpack.c.bf16 %v3092_v42, %v3091_v41 }
 0x10a   : >> { %v553_v57 = vadd.f32 %v537_v55, %v4224_v11  ;;  %3550 = vmatprep.mubr.msk.bf16.mxu1 %vm3725_vm0, %v3724_v1  ;;  %3590 = vmatprep.mubr.msk.bf16.mxu0 %vm3725_vm0, %v3724_v1  ;;  %v3707_v11 = vld [vmem:[%s4370_s1 + $0x180] sm:$0xff]  }
 0x10b   : >> { %v3292_v59 = vpop.f32.mrf.mxu1  ;;  %v3312_v60 = vpop.f32.mrf.mxu0 }
 0x10c   : >> { %v650_v61 = vadd.f32 %v634_v37, %v553_v57  ;;  %v3077_v57 = vld [vmem:[%s3782_s28 + $0x4b] sm:$0xff]  ;;  %v3093_v59 = vld [vmem:[%s3782_s28 + $0x5c] sm:$0xff] }
 0x10d   : >> { %v540_v62 = vpop.f32.mrf.mxu1  ;;  %v645_v0 = vpop.f32.mrf.mxu0  ;;  %v3094_v60 = vld [vmem:[%s3782_s28 + $0x64] sm:$0xff] }
 0x10e   : >> { %v554_v2 = vadd.f32 %v540_v62, %v4230_v19  ;;  %v2406_v0 = vpack.c.bf16 %v3078_v58, %v3077_v57 }
 0x10f   : >> { %v3293_v4 = vpop.f32.mrf.mxu1  ;;  %v3313_v5 = vpop.f32.mrf.mxu0 }
 0x110   : >> { %v4277_v6 = vadd.f32 %v637_v49, %v554_v2 }
 0x111   : >> { %v545_v7 = vpop.f32.mrf.mxu1  ;;  %3551 = vmatmul.mubr.msk.bf16.gmra.mxu1 %vm219_vm1, %v2020_v63  ;;  %v820_v8 = vpop.f32.mrf.mxu0  ;;  %3591 = vmatmul.mubr.msk.bf16.vlgmr.msra.gmra.mxu0 %vm219_vm1, %v2019_v48  ;;  %v2214_v48 = vpack.c.bf16 %v3053_v40, %v3053_v40 }
 0x112   : >> { %3574 = vmatprep.mubr.msk.bf16.mxu1 %vm3725_vm0, %v3724_v1  ;;  %3619 = vmatpush3.bf16.msra.mxu0 %v3705_v3  ;;  %v2504_v3 = vpack.c.bf16 %v3094_v60, %v3093_v59 }
 0x113   : >> { %v3296_v12 = vpop.f32.mrf.mxu1  ;;  %v3336_v13 = vpop.f32.mrf.mxu0  ;;  %3594 = vmatprep.mubr.msk.bf16.mxu0 %vm3725_vm0, %v3724_v1  ;;  %3620 = vmatprep.subr.bf16.mxu0 %v3724_v1 }
 0x115   : >> { %v548_v14 = vpop.f32.mrf.mxu1  ;;  %v823_v15 = vpop.f32.mrf.mxu0 }
 0x116   : >> { %3621 = vmatpush3.bf16.msra.mxu0 %v3707_v11  ;;  %v3095_v11 = vld [vmem:[%s3782_s28 + $0x6c] sm:$0xf] }
 0x117   : >> { %v3297_v18 = vpop.f32.mrf.mxu1  ;;  %v3337_v19 = vpop.f32.mrf.mxu0 }
 0x118   : >> { %v2505_v18 = vpack.c.bf16 %v3095_v11, %v3095_v11 }
 0x119   : >> { %v723_v20 = vpop.f32.mrf.mxu1  ;;  %3575 = vmatmul.mubr.msk.bf16.vlgmr.msra.gmra.mxu1 %vm219_vm1, %v4192_v46  ;;  %v828_v21 = vpop.f32.mrf.mxu0  ;;  %3595 = vmatmul.mubr.msk.bf16.gmra.mxu0 %vm219_vm1, %v2310_v16  ;;  %v2407_v16 = vpack.c.bf16 %v3080_v10, %v3079_v9 }
 0x11a   : >> { %v745_v23 = vadd.f32 %v723_v20, %v648_v45  ;;  %3603 = vmatpush3.bf16.msra.mxu1 %v3704_v17  ;;  %3578 = vmatprep.mubr.msk.bf16.mxu1 %vm3725_vm0, %v3724_v1 }
 0x11b   : >> { %v3320_v27 = vpop.f32.mrf.mxu1  ;;  %v3340_v28 = vpop.f32.mrf.mxu0  ;;  %3598 = vmatprep.mubr.msk.bf16.mxu0 %vm3725_vm0, %v3724_v1  ;;  %3604 = vmatprep.subr.bf16.mxu1 %v3724_v1 }
 0x11c   : >> { %v842_v46 = vadd.f32 %v820_v8, %v745_v23 }
 0x11d   : >> { %v726_v29 = vpop.f32.mrf.mxu1  ;;  %v831_v31 = vpop.f32.mrf.mxu0 }
 0x11e   : >> { %v746_v33 = vadd.f32 %v726_v29, %v649_v54  ;;  %3605 = vmatpush3.bf16.msra.mxu1 %v3706_v26  ;;  %v3081_v26 = vld [vmem:[%s3782_s28 + $0x6b] sm:$0xf] }
 0x11f   : >> { %v3321_v34 = vpop.f32.mrf.mxu1  ;;  %v3341_v35 = vpop.f32.mrf.mxu0 }
 0x120   : >> { %v843_v36 = vadd.f32 %v823_v15, %v746_v33 }
 0x121   : >> { %v731_v37 = vpop.f32.mrf.mxu1  ;;  %3579 = vmatmul.mubr.msk.bf16.gmra.mxu1 %vm219_vm1, %v2213_v30  ;;  %v836_v38 = vpop.f32.mrf.mxu0  ;;  %3599 = vmatmul.mubr.msk.bf16.gmra.mxu0 %vm219_vm1, %v2311_v32  ;;  %v2408_v30 = vpack.c.bf16 %v3081_v26, %v3081_v26 }
 0x122   : >> { %v747_v39 = vadd.f32 %v731_v37, %v650_v61  ;;  %3582 = vmatprep.mubr.msk.bf16.mxu1 %vm3725_vm0, %v3724_v1  ;;  %3622 = vmatprep.mubr.msk.bf16.mxu0 %vm3725_vm0, %v3724_v1 }
 0x123   : >> { %v3324_v43 = vpop.f32.mrf.mxu1  ;;  %v3344_v44 = vpop.f32.mrf.mxu0 }
 0x124   : >> { %v844_v45 = vadd.f32 %v828_v21, %v747_v39 }
 0x125   : >> { %v734_v47 = vpop.f32.mrf.mxu1  ;;  %v839_v49 = vpop.f32.mrf.mxu0 }
 0x126   : >> { %v748_v51 = vadd.f32 %v734_v47, %v4277_v6 }
 0x127   : >> { %v3325_v52 = vpop.f32.mrf.mxu1  ;;  %v3345_v53 = vpop.f32.mrf.mxu0 }
 0x128   : >> { %v845_v54 = vadd.f32 %v831_v31, %v748_v51 }
 0x129   : >> { %v739_v55 = vpop.f32.mrf.mxu1  ;;  %3583 = vmatmul.mubr.msk.bf16.gmra.mxu1 %vm219_vm1, %v2214_v48  ;;  %v1014_v56 = vpop.f32.mrf.mxu0  ;;  %3623 = vmatmul.mubr.msk.bf16.vlgmr.msra.gmra.mxu0 %vm219_vm1, %v2503_v50 }
 0x12a   : >> { %3606 = vmatprep.mubr.msk.bf16.mxu1 %vm3725_vm0, %v3724_v1  ;;  %3626 = vmatprep.mubr.msk.bf16.mxu0 %vm3725_vm0, %v3724_v1 }
 0x12b   : >> { %v3328_v61 = vpop.f32.mrf.mxu1  ;;  %v3368_v62 = vpop.f32.mrf.mxu0 }
 0x12d   : >> { %v742_v63 = vpop.f32.mrf.mxu1  ;;  %v1017_v2 = vpop.f32.mrf.mxu0 }
 0x12f   : >> { %v3329_v4 = vpop.f32.mrf.mxu1  ;;  %v3369_v5 = vpop.f32.mrf.mxu0 }
 0x131   : >> { %v917_v6 = vpop.f32.mrf.mxu1  ;;  %3607 = vmatmul.mubr.msk.bf16.vlgmr.msra.gmra.mxu1 %vm219_vm1, %v2406_v0  ;;  %v1022_v7 = vpop.f32.mrf.mxu0  ;;  %3627 = vmatmul.mubr.msk.bf16.gmra.mxu0 %vm219_vm1, %v2504_v3 }
 0x132   : >> { %v939_v8 = vadd.f32 %v917_v6, %v842_v46  ;;  %3610 = vmatprep.mubr.msk.bf16.mxu1 %vm3725_vm0, %v3724_v1  ;;  %3630 = vmatprep.mubr.msk.bf16.mxu0 %vm3725_vm0, %v3724_v1 }
 0x133   : >> { %v3352_v12 = vpop.f32.mrf.mxu1  ;;  %v3372_v13 = vpop.f32.mrf.mxu0 }
 0x134   : >> { %v1036_v14 = vadd.f32 %v1014_v56, %v939_v8 }
 0x135   : >> { %v920_v15 = vpop.f32.mrf.mxu1  ;;  %v1025_v17 = vpop.f32.mrf.mxu0 }
 0x136   : >> { %v940_v19 = vadd.f32 %v920_v15, %v843_v36 }
 0x137   : >> { %v3353_v20 = vpop.f32.mrf.mxu1  ;;  %v3373_v21 = vpop.f32.mrf.mxu0 }
 0x138   : >> { %v1037_v22 = vadd.f32 %v1017_v2, %v940_v19 }
 0x139   : >> { %v925_v23 = vpop.f32.mrf.mxu1  ;;  %3611 = vmatmul.mubr.msk.bf16.gmra.mxu1 %vm219_vm1, %v2407_v16  ;;  %v1030_v24 = vpop.f32.mrf.mxu0  ;;  %3631 = vmatmul.mubr.msk.bf16.gmra.mxu0 %vm219_vm1, %v2505_v18 }
 0x13a   : >> { %v941_v25 = vadd.f32 %v925_v23, %v844_v45  ;;  %3614 = vmatprep.mubr.msk.bf16.mxu1 %vm3725_vm0, %v3724_v1 }
 0x13b   : >> { %v3356_v27 = vpop.f32.mrf.mxu1  ;;  %v3376_v28 = vpop.f32.mrf.mxu0 }
 0x13c   : >> { %v1038_v46 = vadd.f32 %v1022_v7, %v941_v25 }
 0x13d   : >> { %v928_v29 = vpop.f32.mrf.mxu1  ;;  %v1033_v31 = vpop.f32.mrf.mxu0 }
 0x13e   : >> { %v942_v32 = vadd.f32 %v928_v29, %v845_v54 }
 0x13f   : >> { %v3357_v33 = vpop.f32.mrf.mxu1  ;;  %v3377_v34 = vpop.f32.mrf.mxu0 }
 0x140   : >> { %v1039_v35 = vadd.f32 %v1025_v17, %v942_v32 }
 0x141   : >> { %v933_v36 = vpop.f32.mrf.mxu1  ;;  %3615 = vmatmul.mubr.msk.bf16.gmra.mxu1 %vm219_vm1, %v2408_v30  ;;  %v1208_v37 = vpop.f32.mrf.mxu0 }
 0x143   : >> { %v3360_v38 = vpop.f32.mrf.mxu1  ;;  %v3400_v39 = vpop.f32.mrf.mxu0 }
 0x145   : >> { %v936_v40 = vpop.f32.mrf.mxu1  ;;  %v1211_v41 = vpop.f32.mrf.mxu0 }
 0x147   : >> { %v3361_v1 = vpop.f32.mrf.mxu1  ;;  %v3401_v42 = vpop.f32.mrf.mxu0 }
 0x149   : >> { %v1111_v43 = vpop.f32.mrf.mxu1  ;;  %v1216_v44 = vpop.f32.mrf.mxu0 }
 0x14a   : >> { %v1133_v45 = vadd.f32 %v1111_v43, %v1036_v14 }
 0x14b   : >> { %v3384_v47 = vpop.f32.mrf.mxu1  ;;  %v3404_v48 = vpop.f32.mrf.mxu0 }
 0x14c   : >> { %v1230_v49 = vadd.f32 %v1208_v37, %v1133_v45 }
 0x14d   : >> { %v1114_v50 = vpop.f32.mrf.mxu1  ;;  %v1219_v51 = vpop.f32.mrf.mxu0 }
 0x14e   : >> { %v1134_v52 = vadd.f32 %v1114_v50, %v1037_v22 }
 0x14f   : >> { %v3385_v53 = vpop.f32.mrf.mxu1  ;;  %v3405_v54 = vpop.f32.mrf.mxu0 }
 0x150   : >> { %v1231_v55 = vadd.f32 %v1211_v41, %v1134_v52 }
 0x151   : >> { %v1119_v56 = vpop.f32.mrf.mxu1  ;;  %v1224_v57 = vpop.f32.mrf.mxu0 }
 0x152   : >> { %v1135_v58 = vadd.f32 %v1119_v56, %v1038_v46 }
 0x153   : >> { %v3388_v59 = vpop.f32.mrf.mxu1  ;;  %v3408_v60 = vpop.f32.mrf.mxu0 }
 0x154   : >> { %v1232_v61 = vadd.f32 %v1216_v44, %v1135_v58 }
 0x155   : >> { %v1122_v62 = vpop.f32.mrf.mxu1  ;;  %v1227_v63 = vpop.f32.mrf.mxu0 }
 0x156   : >> { %v1136_v0 = vadd.f32 %v1122_v62, %v1039_v35 }
 0x157   : >> { %v3389_v2 = vpop.f32.mrf.mxu1  ;;  %v3409_v3 = vpop.f32.mrf.mxu0 }
 0x158   : >> { %v1233_v4 = vadd.f32 %v1219_v51, %v1136_v0 }
 0x159   : >> { %v1127_v5 = vpop.f32.mrf.mxu1  ;;  %v1402_v6 = vpop.f32.mrf.mxu0 }
 0x15b   : >> { %v3392_v7 = vpop.f32.mrf.mxu1  ;;  %v3432_v8 = vpop.f32.mrf.mxu0 }
 0x15d   : >> { %v1130_v9 = vpop.f32.mrf.mxu1  ;;  %v1405_v10 = vpop.f32.mrf.mxu0 }
 0x15f   : >> { %v3393_v11 = vpop.f32.mrf.mxu1  ;;  %v3433_v12 = vpop.f32.mrf.mxu0 }
 0x161   : >> { %v1305_v13 = vpop.f32.mrf.mxu1  ;;  %v1410_v14 = vpop.f32.mrf.mxu0 }
 0x162   : >> { %v1327_v15 = vadd.f32 %v1305_v13, %v1230_v49 }
 0x163   : >> { %v3416_v16 = vpop.f32.mrf.mxu1  ;;  %v3436_v17 = vpop.f32.mrf.mxu0 }
 0x164   : >> { %v1424_v18 = vadd.f32 %v1402_v6, %v1327_v15 }
 0x165   : >> { %v1308_v19 = vpop.f32.mrf.mxu1  ;;  %v1413_v20 = vpop.f32.mrf.mxu0 }
 0x166   : >> { %v1328_v21 = vadd.f32 %v1308_v19, %v1231_v55 }
 0x167   : >> { %v3417_v22 = vpop.f32.mrf.mxu1  ;;  %v3437_v23 = vpop.f32.mrf.mxu0 }
 0x168   : >> { %v1425_v24 = vadd.f32 %v1405_v10, %v1328_v21 }
 0x169   : >> { %v1313_v25 = vpop.f32.mrf.mxu1  ;;  %v1418_v26 = vpop.f32.mrf.mxu0 }
 0x16a   : >> { %v1329_v27 = vadd.f32 %v1313_v25, %v1232_v61 }
 0x16b   : >> { %v3420_v28 = vpop.f32.mrf.mxu1  ;;  %v3440_v46 = vpop.f32.mrf.mxu0 }
 0x16c   : >> { %v1426_v29 = vadd.f32 %v1410_v14, %v1329_v27 }
 0x16d   : >> { %v1316_v30 = vpop.f32.mrf.mxu1  ;;  %v1421_v31 = vpop.f32.mrf.mxu0 }
 0x16e   : >> { %v1330_v32 = vadd.f32 %v1316_v30, %v1233_v4 }
 0x16f   : >> { %v3421_v33 = vpop.f32.mrf.mxu1  ;;  %v3441_v34 = vpop.f32.mrf.mxu0 }
 0x170   : >> { %v1427_v35 = vadd.f32 %v1413_v20, %v1330_v32 }
 0x171   : >> { %v1321_v36 = vpop.f32.mrf.mxu1  ;;  %v1596_v37 = vpop.f32.mrf.mxu0 }
 0x173   : >> { %v3424_v38 = vpop.f32.mrf.mxu1  ;;  %v3464_v39 = vpop.f32.mrf.mxu0 }
 0x175   : >> { %v1324_v40 = vpop.f32.mrf.mxu1  ;;  %v1599_v41 = vpop.f32.mrf.mxu0 }
 0x177   : >> { %v3425_v1 = vpop.f32.mrf.mxu1  ;;  %v3465_v42 = vpop.f32.mrf.mxu0 }
 0x179   : >> { %v1499_v43 = vpop.f32.mrf.mxu1  ;;  %v1604_v44 = vpop.f32.mrf.mxu0 }
 0x17a   : >> { %v1521_v45 = vadd.f32 %v1499_v43, %v1424_v18 }
 0x17b   : >> { %v3448_v47 = vpop.f32.mrf.mxu1  ;;  %v3468_v48 = vpop.f32.mrf.mxu0 }
 0x17c   : >> { %v1618_v49 = vadd.f32 %v1596_v37, %v1521_v45 }
 0x17d   : >> { %v1502_v50 = vpop.f32.mrf.mxu1  ;;  %v1607_v51 = vpop.f32.mrf.mxu0 }
 0x17e   : >> { %v1522_v52 = vadd.f32 %v1502_v50, %v1425_v24 }
 0x17f   : >> { %v3449_v53 = vpop.f32.mrf.mxu1  ;;  %v3469_v54 = vpop.f32.mrf.mxu0 }
 0x180   : >> { %v1619_v55 = vadd.f32 %v1599_v41, %v1522_v52 }
 0x181   : >> { %v1507_v56 = vpop.f32.mrf.mxu1  ;;  %v1612_v57 = vpop.f32.mrf.mxu0 }
 0x182   : >> { %v1523_v58 = vadd.f32 %v1507_v56, %v1426_v29 }
 0x183   : >> { %v3452_v59 = vpop.f32.mrf.mxu1  ;;  %v3472_v60 = vpop.f32.mrf.mxu0 }
 0x184   : >> { %v1620_v61 = vadd.f32 %v1604_v44, %v1523_v58 }
 0x185   : >> { %v1510_v62 = vpop.f32.mrf.mxu1  ;;  %v1615_v63 = vpop.f32.mrf.mxu0 }
 0x186   : >> { %v1524_v0 = vadd.f32 %v1510_v62, %v1427_v35 }
 0x187   : >> { %v3453_v2 = vpop.f32.mrf.mxu1  ;;  %v3473_v3 = vpop.f32.mrf.mxu0 }
 0x188   : >> { %v1621_v4 = vadd.f32 %v1607_v51, %v1524_v0 }
 0x189   : >> { %v1515_v5 = vpop.f32.mrf.mxu1  ;;  %v1790_v6 = vpop.f32.mrf.mxu0 }
 0x18b   : >> { %v3456_v7 = vpop.f32.mrf.mxu1  ;;  %v3496_v8 = vpop.f32.mrf.mxu0 }
 0x18d   : >> { %v1518_v9 = vpop.f32.mrf.mxu1  ;;  %v1793_v10 = vpop.f32.mrf.mxu0 }
 0x18f   : >> { %v3457_v11 = vpop.f32.mrf.mxu1  ;;  %v3497_v12 = vpop.f32.mrf.mxu0 }
 0x191   : >> { %v1693_v13 = vpop.f32.mrf.mxu1  ;;  %v1798_v14 = vpop.f32.mrf.mxu0 }
 0x192   : >> { %v1715_v15 = vadd.f32 %v1693_v13, %v1618_v49 }
 0x193   : >> { %v3480_v16 = vpop.f32.mrf.mxu1  ;;  %v3500_v17 = vpop.f32.mrf.mxu0 }
 0x194   : >> { %v1812_v18 = vadd.f32 %v1790_v6, %v1715_v15 }
 0x195   : >> { %v1696_v19 = vpop.f32.mrf.mxu1  ;;  %v1801_v20 = vpop.f32.mrf.mxu0 }
 0x196   : >> { %v1716_v21 = vadd.f32 %v1696_v19, %v1619_v55 }
 0x197   : >> { %v3481_v22 = vpop.f32.mrf.mxu1  ;;  %v3501_v23 = vpop.f32.mrf.mxu0 }
 0x198   : >> { %v1813_v24 = vadd.f32 %v1793_v10, %v1716_v21 }
 0x199   : >> { %v1701_v25 = vpop.f32.mrf.mxu1  ;;  %v1806_v26 = vpop.f32.mrf.mxu0 }
 0x19a   : >> { %v1717_v27 = vadd.f32 %v1701_v25, %v1620_v61 }
 0x19b   : >> { %v3484_v28 = vpop.f32.mrf.mxu1  ;;  %v3504_v46 = vpop.f32.mrf.mxu0 }
 0x19c   : >> { %v1814_v29 = vadd.f32 %v1798_v14, %v1717_v27 }
 0x19d   : >> { %v1704_v30 = vpop.f32.mrf.mxu1  ;;  %v1809_v31 = vpop.f32.mrf.mxu0 }
 0x19e   : >> { %v1718_v32 = vadd.f32 %v1704_v30, %v1621_v4 }
 0x19f   : >> { %v3485_v33 = vpop.f32.mrf.mxu1  ;;  %v3505_v34 = vpop.f32.mrf.mxu0 }
 0x1a0   : >> { %v1815_v35 = vadd.f32 %v1801_v20, %v1718_v32 }
 0x1a1   : >> { %v1709_v36 = vpop.f32.mrf.mxu1  ;;  %v1984_v37 = vpop.f32.mrf.mxu0 }
 0x1a3   : >> { %v3488_v38 = vpop.f32.mrf.mxu1  ;;  %v3528_v39 = vpop.f32.mrf.mxu0 }
 0x1a5   : >> { %v1712_v40 = vpop.f32.mrf.mxu1  ;;  %v1987_v41 = vpop.f32.mrf.mxu0 }
 0x1a7   : >> { %v3489_v1 = vpop.f32.mrf.mxu1  ;;  %v3529_v42 = vpop.f32.mrf.mxu0 }
 0x1a9   : >> { %v1887_v43 = vpop.f32.mrf.mxu1  ;;  %v1992_v44 = vpop.f32.mrf.mxu0 }
 0x1aa   : >> { %v1909_v45 = vadd.f32 %v1887_v43, %v1812_v18 }
 0x1ab   : >> { %v3512_v47 = vpop.f32.mrf.mxu1  ;;  %v3532_v48 = vpop.f32.mrf.mxu0 }
 0x1ac   : >> { %v4343_v49 = vadd.f32 %v1984_v37, %v1909_v45 }
 0x1ad   : >> { %v1890_v50 = vpop.f32.mrf.mxu1  ;;  %v1995_v51 = vpop.f32.mrf.mxu0 }
 0x1ae   : >> { %v1910_v52 = vadd.f32 %v1890_v50, %v1813_v24 }
 0x1af   : >> { %v3513_v53 = vpop.f32.mrf.mxu1  ;;  %v3533_v54 = vpop.f32.mrf.mxu0 }
 0x1b0   : >> { %v4345_v55 = vadd.f32 %v1987_v41, %v1910_v52 }
 0x1b1   : >> { %v1895_v56 = vpop.f32.mrf.mxu1  ;;  %v2000_v57 = vpop.f32.mrf.mxu0 }
 0x1b2   : >> { %v1911_v58 = vadd.f32 %v1895_v56, %v1814_v29 }
 0x1b3   : >> { %v3516_v59 = vpop.f32.mrf.mxu1  ;;  %v3536_v60 = vpop.f32.mrf.mxu0 }
 0x1b4   : >> { %v4347_v61 = vadd.f32 %v1992_v44, %v1911_v58 }
 0x1b5   : >> { %v1898_v62 = vpop.f32.mrf.mxu1  ;;  %v2003_v63 = vpop.f32.mrf.mxu0 }
 0x1b6   : >> { %v1912_v0 = vadd.f32 %v1898_v62, %v1815_v35 }
 0x1b7   : >> { %v3517_v2 = vpop.f32.mrf.mxu1  ;;  %v3537_v3 = vpop.f32.mrf.mxu0 }
 0x1b8   : >> { %v4349_v4 = vadd.f32 %v1995_v51, %v1912_v0 }
 0x1b9   : >> { %v1903_v5 = vpop.f32.mrf.mxu1  ;;  %v2178_v6 = vpop.f32.mrf.mxu0 }
 0x1bb   : >> { %v3520_v7 = vpop.f32.mrf.mxu1  ;;  %v3560_v8 = vpop.f32.mrf.mxu0 }
 0x1bd   : >> { %v1906_v9 = vpop.f32.mrf.mxu1  ;;  %v2181_v10 = vpop.f32.mrf.mxu0 }
 0x1bf   : >> { %v3521_v11 = vpop.f32.mrf.mxu1  ;;  %v3561_v12 = vpop.f32.mrf.mxu0 }
 0x1c1   : >> { %v2081_v13 = vpop.f32.mrf.mxu1  ;;  %v2186_v14 = vpop.f32.mrf.mxu0 }
 0x1c2   : >> { %v2103_v51 = vadd.f32 %v2081_v13, %v4343_v49 }
 0x1c3   : >> { %v3544_v15 = vpop.f32.mrf.mxu1  ;;  %v3564_v16 = vpop.f32.mrf.mxu0 }
 0x1c4   : >> { %v2200_v58 = vadd.f32 %v2178_v6, %v2103_v51 }
 0x1c5   : >> { %v2084_v17 = vpop.f32.mrf.mxu1  ;;  %v4351_v18 = vpop.f32.mrf.mxu0 }
 0x1c6   : >> { %v2104_v57 = vadd.f32 %v2084_v17, %v4345_v55 }
 0x1c7   : >> { %v3545_v19 = vpop.f32.mrf.mxu1  ;;  %v3565_v20 = vpop.f32.mrf.mxu0 }
 0x1c8   : >> { %v2201_v3 = vadd.f32 %v2181_v10, %v2104_v57 }
 0x1c9   : >> { %v2089_v21 = vpop.f32.mrf.mxu1  ;;  %v2194_v22 = vpop.f32.mrf.mxu0 }
 0x1ca   : >> { %v2105_v2 = vadd.f32 %v2089_v21, %v4347_v61 }
 0x1cb   : >> { %v3548_v23 = vpop.f32.mrf.mxu1  ;;  %v3568_v24 = vpop.f32.mrf.mxu0 }
 0x1cc   : >> { %v2202_v13 = vadd.f32 %v2186_v14, %v2105_v2 }
 0x1cd   : >> { %v2092_v25 = vpop.f32.mrf.mxu1  ;;  %v2197_v26 = vpop.f32.mrf.mxu0 }
 0x1ce   : >> { %v2106_v12 = vadd.f32 %v2092_v25, %v4349_v4 }
 0x1cf   : >> { %v3549_v27 = vpop.f32.mrf.mxu1  ;;  %v3569_v28 = vpop.f32.mrf.mxu0 }
 0x1d0   : >> { %v2203_v61 = vadd.f32 %v4351_v18, %v2106_v12 }
 0x1d1   : >> { %v2097_v46 = vpop.f32.mrf.mxu1  ;;  %v2372_v29 = vpop.f32.mrf.mxu0 }
 0x1d3   : >> { %v3552_v30 = vpop.f32.mrf.mxu1  ;;  %v3592_v31 = vpop.f32.mrf.mxu0 }
 0x1d5   : >> { %v2100_v32 = vpop.f32.mrf.mxu1  ;;  %v2375_v33 = vpop.f32.mrf.mxu0 }
 0x1d7   : >> { %v3553_v34 = vpop.f32.mrf.mxu1  ;;  %v3593_v35 = vpop.f32.mrf.mxu0 }
 0x1d9   : >> { %v2275_v36 = vpop.f32.mrf.mxu1  ;;  %v2380_v37 = vpop.f32.mrf.mxu0 }
 0x1da   : >> { %v2297_v62 = vadd.f32 %v2275_v36, %v2200_v58 }
 0x1db   : >> { %v3576_v38 = vpop.f32.mrf.mxu1  ;;  %v3596_v39 = vpop.f32.mrf.mxu0 }
 0x1dc   : >> { %v2394_v9 = vadd.f32 %v2372_v29, %v2297_v62 }
 0x1dd   : >> { %v2278_v40 = vpop.f32.mrf.mxu1  ;;  %v2383_v41 = vpop.f32.mrf.mxu0 }
 0x1de   : >> { %v2298_v8 = vadd.f32 %v2278_v40, %v2201_v3 }
 0x1df   : >> { %v3577_v1 = vpop.f32.mrf.mxu1  ;;  %v3597_v42 = vpop.f32.mrf.mxu0 }
 0x1e0   : >> { %v2395_v19 = vadd.f32 %v2375_v33, %v2298_v8 }
 0x1e1   : >> { %v2283_v43 = vpop.f32.mrf.mxu1  ;;  %v2388_v44 = vpop.f32.mrf.mxu0 }
 0x1e2   : >> { %v2299_v16 = vadd.f32 %v2283_v43, %v2202_v13 }
 0x1e3   : >> { %v3580_v45 = vpop.f32.mrf.mxu1  ;;  %v3600_v47 = vpop.f32.mrf.mxu0 }
 0x1e4   : >> { %v2396_v27 = vadd.f32 %v2380_v37, %v2299_v16  ;;  %v3105_v45 = vld [vmem:[%s4371_s2] ss:$0 sm:$0xff] }
 0x1e5   : >> { %v2286_v48 = vpop.f32.mrf.mxu1  ;;  %v2391_v50 = vpop.f32.mrf.mxu0 }
 0x1e6   : >> { %v2300_v24 = vadd.f32 %v2286_v48, %v2203_v61 }
 0x1e7   : >> { %v3581_v52 = vpop.f32.mrf.mxu1  ;;  %v3601_v53 = vpop.f32.mrf.mxu0 }
 0x1e8   : >> { %v2397_v30 = vadd.f32 %v2383_v41, %v2300_v24 }
 0x1e9   : >> { %v2291_v54 = vpop.f32.mrf.mxu1  ;;  %v2566_v56 = vpop.f32.mrf.mxu0 }
 0x1eb   : >> { %v3584_v59 = vpop.f32.mrf.mxu1  ;;  %v3624_v60 = vpop.f32.mrf.mxu0 }
 0x1ed   : >> { %v2294_v63 = vpop.f32.mrf.mxu1  ;;  %v2569_v0 = vpop.f32.mrf.mxu0 }
 0x1ef   : >> { %v3585_v5 = vpop.f32.mrf.mxu1  ;;  %v3625_v7 = vpop.f32.mrf.mxu0 }
 0x1f1   : >> { %v2469_v49 = vpop.f32.mrf.mxu1  ;;  %v2574_v11 = vpop.f32.mrf.mxu0 }
 0x1f2   : >> { %v2491_v15 = vadd.f32 %v2469_v49, %v2394_v9 }
 0x1f3   : >> { %v3608_v55 = vpop.f32.mrf.mxu1  ;;  %v3628_v6 = vpop.f32.mrf.mxu0 }
 0x1f4   : >> { %v2588_v17 = vadd.f32 %v2566_v56, %v2491_v15 }
 0x1f5   : >> { %v2472_v20 = vpop.f32.mrf.mxu1  ;;  %v2577_v22 = vpop.f32.mrf.mxu0 }
 0x1f6   : >> { %2593 = vst [vmem:[#allocation2] sm:$0xff] %v2588_v17  ;;  %v2492_v10 = vadd.f32 %v2472_v20, %v2395_v19 }
 0x1f7   : >> { %v3609_v21 = vpop.f32.mrf.mxu1  ;;  %v3629_v23 = vpop.f32.mrf.mxu0 }
 0x1f8   : >> { %v2589_v26 = vadd.f32 %v2569_v0, %v2492_v10 }
 0x1f9   : >> { %v2477_v28 = vpop.f32.mrf.mxu1  ;;  %v2582_v4 = vpop.f32.mrf.mxu0 }
 0x1fa   : >> { %2594 = vst [vmem:[#allocation2 + $0x8] sm:$0xff] %v2589_v26  ;;  %v2493_v14 = vadd.f32 %v2477_v28, %v2396_v27 }
 0x1fb   : >> { %v3612_v25 = vpop.f32.mrf.mxu1  ;;  %v3632_v46 = vpop.f32.mrf.mxu0 }
 0x1fc   : >> { %v2590_v29 = vadd.f32 %v2574_v11, %v2493_v14 }
 0x1fd   : >> { %v2480_v31 = vpop.f32.mrf.mxu1  ;;  %v2585_v32 = vpop.f32.mrf.mxu0 }
 0x1fe   : >> { %2595 = vst [vmem:[#allocation2 + $0x10] sm:$0xff] %v2590_v29  ;;  %v2494_v33 = vadd.f32 %v2480_v31, %v2397_v30 }
 0x1ff   : >> { %v3613_v18 = vpop.f32.mrf.mxu1  ;;  %v3633_v34 = vpop.f32.mrf.mxu0 }
 0x200   : >> { %v2591_v35 = vadd.f32 %v2577_v22, %v2494_v33 }
 0x201   : >> { %v2485_v36 = vpop.f32.mrf.mxu1  ;;  %v2598_v39 = vld [vmem:[#allocation2] ss:$2 sm:$0x7f]  ;;  %v2600_v40 = vld [vmem:[#allocation2 + $0x1] ss:$2 sm:$0x7f] }
 0x202   : >> { %2596 = vst [vmem:[#allocation2 + $0x18] sm:$0xff] %v2591_v35  ;;  %v2601_v44 = vmax.f32 %v2598_v39, %v2600_v40 }
 0x203   : >> { %v3616_v37 = vpop.f32.mrf.mxu1 }
 0x205   : >> { %v2488_v38 = vpop.f32.mrf.mxu1 }
 0x207   : >> { %v3617_v1 = vpop.f32.mrf.mxu1 }
 0x209   : >> { %v2603_v42 = vld [vmem:[#allocation2 + $0x12] ss:$2 sm:$0x7f]  ;;  %v2605_v43 = vld [vmem:[#allocation2 + $0x13] ss:$2 sm:$0x7f] }
 0x20a   : >> { %v2606_v41 = vmax.f32 %v2603_v42, %v2605_v43 }
 0x20c   : >> { %v2607_v47 = vmax.f32 %v2601_v44, %v2606_v41 }
 0x20e   : >> { %v2615_v48 = vadd.f32 %v3105_v45, %v2607_v47  ;;  %176 = sbr.rel (!%p174_p4) target bundleno = 16 (0x10), region = 122 }
 0x210   : >> { %v2616_v50 = vmax.f32 %v2615_v48, 0.0 }
 0x212   : >> { %2620 = vst.msk [vmem:[%s2618_s13] sm:$0x7f] %vm2619_vm2, %v2616_v50 }
 0x213 PF: > { %s13_s12 = sadd.s32 1, %s3718_s12  }
 0x214   : > { %p10_p5 = scmp.ge.s32.totalorder %s13_s12, 4  }
 0x216   :  { %12 = sbr.rel (!%p10_p5) target bundleno = 1 (0x1), region = 133 }

// kernel: mnist_cnn_forward.6
= control target key start
LH: loop header
LB: loop body
LE: loop exit
PB: predicated region body
PF: predicated region fallthrough
CT: control target
= control target key end

     0   :  { %vm4841_vm0 = vcmask 523264   ;;  %s10579_s1 = inlined_call_operand.vmem [shape: bf16[3136,512], index: 1, kind: input, shape index: {}]   ;;  %s10580_s0 = inlined_call_operand.vmem [shape: bf16[8,3136], index: 0, kind: input, shape index: {}]   ;;  %s10581_s2 = inlined_call_operand.vmem [shape: f32[1,512], index: 2, kind: input, shape index: {}]   ;;  %s10582_s3 = inlined_call_operand.vmem [shape: f32[8,512], index: 3, kind: output, shape index: {}]  }
   0x1   :  { %v6735_v0 = vld [vmem:[%s10579_s1 + $0xe4] ss:$16 sps:$4 sm:$0xff]   ;;  %v6739_v2 = vld [vmem:[%s10579_s1 + $0xe0] ss:$16 sps:$4 sm:$0xff]   ;;  %v16_v48 = vld [vmem:[%s10580_s0 + $0x8] sm:$0xff] }
   0x2   :  { %v6737_v1 = vld [vmem:[%s10579_s1 + $0x2e4] ss:$16 sps:$4 sm:$0xff]   ;;  %4845 = vmatprep.subr.bf16.mxu0 %v6735_v0  ;;  %v6740_v3 = vld [vmem:[%s10579_s1 + $0x2e0] ss:$16 sps:$4 sm:$0xff]   ;;  %v8111_v51 = vcombine.high %v16_v48, %v16_v48 }
   0x3   :  { %4886 = vmatprep.subr.bf16.mxu1 %v6737_v1  ;;  %v6741_v4 = vld [vmem:[%s10579_s1 + $0xc4] ss:$16 sps:$4 sm:$0xff]   ;;  %4846 = vmatpush1.bf16.msra.mxu0 %v6739_v2  ;;  %v6745_v6 = vld [vmem:[%s10579_s1 + $0xc0] ss:$16 sps:$4 sm:$0xff]  }
   0x4   :  { %4887 = vmatpush1.bf16.msra.mxu1 %v6740_v3  ;;  %v6743_v5 = vld [vmem:[%s10579_s1 + $0x2c4] ss:$16 sps:$4 sm:$0xff]   ;;  %4847 = vmatprep.subr.bf16.mxu0 %v6741_v4  ;;  %v6746_v7 = vld [vmem:[%s10579_s1 + $0x2c0] ss:$16 sps:$4 sm:$0xff]  }
   0x5   :  { %4888 = vmatprep.subr.bf16.mxu1 %v6743_v5  ;;  %v6747_v8 = vld [vmem:[%s10579_s1 + $0xa4] ss:$16 sps:$4 sm:$0xff]   ;;  %v6751_v10 = vld [vmem:[%s10579_s1 + $0xa0] ss:$16 sps:$4 sm:$0xff]   ;;  %4918 = vmatprep.mubr.bf16.mxu1 %v8111_v51 }
   0x6   :  { %v6749_v9 = vld [vmem:[%s10579_s1 + $0x2a4] ss:$16 sps:$4 sm:$0xff]   ;;  %v6752_v11 = vld [vmem:[%s10579_s1 + $0x2a0] ss:$16 sps:$4 sm:$0xff]  }
   0x7   :  { %4848 = vmatpush1.bf16.msra.mxu0 %v6745_v6  ;;  %v6753_v12 = vld [vmem:[%s10579_s1 + $0x84] ss:$16 sps:$4 sm:$0xff]   ;;  %v6757_v14 = vld [vmem:[%s10579_s1 + $0x80] ss:$16 sps:$4 sm:$0xff]  }
   0x8   :  { %4889 = vmatpush1.bf16.msra.mxu1 %v6746_v7  ;;  %4849 = vmatprep.subr.bf16.mxu0 %v6747_v8  ;;  %v6755_v13 = vld [vmem:[%s10579_s1 + $0x284] ss:$16 sps:$4 sm:$0xff]   ;;  %v6758_v15 = vld [vmem:[%s10579_s1 + $0x280] ss:$16 sps:$4 sm:$0xff]   ;;  %v8171_v7 = vcombine.low %v16_v48, %v16_v48 }
   0x9   :  { %4890 = vmatprep.subr.bf16.mxu1 %v6749_v9  ;;  %v6759_v16 = vld [vmem:[%s10579_s1 + $0x64] ss:$16 sps:$4 sm:$0xff]   ;;  %v6763_v18 = vld [vmem:[%s10579_s1 + $0x60] ss:$16 sps:$4 sm:$0xff]  }
   0xa   :  { %v6761_v17 = vld [vmem:[%s10579_s1 + $0x264] ss:$16 sps:$4 sm:$0xff]   ;;  %v6764_v19 = vld [vmem:[%s10579_s1 + $0x260] ss:$16 sps:$4 sm:$0xff]  }
   0xb   :  { %4850 = vmatpush1.bf16.msra.mxu0 %v6751_v10  ;;  %v6765_v20 = vld [vmem:[%s10579_s1 + $0x44] ss:$16 sps:$4 sm:$0xff]   ;;  %v6769_v22 = vld [vmem:[%s10579_s1 + $0x40] ss:$16 sps:$4 sm:$0xff]  }
   0xc   :  { %4891 = vmatpush1.bf16.msra.mxu1 %v6752_v11  ;;  %4851 = vmatprep.subr.bf16.mxu0 %v6753_v12  ;;  %v6767_v21 = vld [vmem:[%s10579_s1 + $0x244] ss:$16 sps:$4 sm:$0xff]   ;;  %v6770_v23 = vld [vmem:[%s10579_s1 + $0x240] ss:$16 sps:$4 sm:$0xff]  }
   0xd   :  { %4892 = vmatprep.subr.bf16.mxu1 %v6755_v13  ;;  %v6771_v24 = vld [vmem:[%s10579_s1 + $0x24] ss:$16 sps:$4 sm:$0xff]   ;;  %v6775_v26 = vld [vmem:[%s10579_s1 + $0x20] ss:$16 sps:$4 sm:$0xff]  }
   0xe   :  { %v6773_v25 = vld [vmem:[%s10579_s1 + $0x224] ss:$16 sps:$4 sm:$0xff]   ;;  %v6776_v27 = vld [vmem:[%s10579_s1 + $0x220] ss:$16 sps:$4 sm:$0xff]  }
   0xf   :  { %4852 = vmatpush1.bf16.msra.mxu0 %v6757_v14  ;;  %v6777_v28 = vld [vmem:[%s10579_s1 + $0x4] ss:$16 sps:$4 sm:$0xff]   ;;  %v6781_v30 = vld [vmem:[%s10579_s1] ss:$16 sps:$4 sm:$0xff]  }
  0x10   :  { %4893 = vmatpush1.bf16.msra.mxu1 %v6758_v15  ;;  %4853 = vmatprep.subr.bf16.mxu0 %v6759_v16  ;;  %v6779_v29 = vld [vmem:[%s10579_s1 + $0x204] ss:$16 sps:$4 sm:$0xff]   ;;  %v6782_v31 = vld [vmem:[%s10579_s1 + $0x200] ss:$16 sps:$4 sm:$0xff]  }
  0x11   :  { %4894 = vmatprep.subr.bf16.mxu1 %v6761_v17  ;;  %v6783_v32 = vld [vmem:[%s10579_s1 + $0x1e4] ss:$16 sps:$4 sm:$0xff]   ;;  %v6787_v34 = vld [vmem:[%s10579_s1 + $0x1e0] ss:$16 sps:$4 sm:$0xff]  }
  0x12   :  { %v6785_v33 = vld [vmem:[%s10579_s1 + $0x3e4] ss:$16 sps:$4 sm:$0xff]   ;;  %v6788_v35 = vld [vmem:[%s10579_s1 + $0x3e0] ss:$16 sps:$4 sm:$0xff]  }
  0x13   :  { %4854 = vmatpush1.bf16.msra.mxu0 %v6763_v18  ;;  %v6789_v36 = vld [vmem:[%s10579_s1 + $0x1c4] ss:$16 sps:$4 sm:$0xff]   ;;  %v6793_v38 = vld [vmem:[%s10579_s1 + $0x1c0] ss:$16 sps:$4 sm:$0xff]  }
  0x14   :  { %4895 = vmatpush1.bf16.msra.mxu1 %v6764_v19  ;;  %4855 = vmatprep.subr.bf16.mxu0 %v6765_v20  ;;  %v6791_v37 = vld [vmem:[%s10579_s1 + $0x3c4] ss:$16 sps:$4 sm:$0xff]   ;;  %v6794_v39 = vld [vmem:[%s10579_s1 + $0x3c0] ss:$16 sps:$4 sm:$0xff]  }
  0x15   :  { %4896 = vmatprep.subr.bf16.mxu1 %v6767_v21  ;;  %v6795_v40 = vld [vmem:[%s10579_s1 + $0x1a4] ss:$16 sps:$4 sm:$0xff]   ;;  %v6799_v42 = vld [vmem:[%s10579_s1 + $0x1a0] ss:$16 sps:$4 sm:$0xff]  }
  0x16   :  { %v6797_v41 = vld [vmem:[%s10579_s1 + $0x3a4] ss:$16 sps:$4 sm:$0xff]   ;;  %v6800_v43 = vld [vmem:[%s10579_s1 + $0x3a0] ss:$16 sps:$4 sm:$0xff]  }
  0x17   :  { %4856 = vmatpush1.bf16.msra.mxu0 %v6769_v22  ;;  %v6801_v44 = vld [vmem:[%s10579_s1 + $0x184] ss:$16 sps:$4 sm:$0xff]   ;;  %v6805_v49 = vld [vmem:[%s10579_s1 + $0x180] ss:$16 sps:$4 sm:$0xff]  }
  0x18   :  { %4897 = vmatpush1.bf16.msra.mxu1 %v6770_v23  ;;  %4857 = vmatprep.subr.bf16.mxu0 %v6771_v24  ;;  %v6803_v45 = vld [vmem:[%s10579_s1 + $0x384] ss:$16 sps:$4 sm:$0xff]   ;;  %v6806_v50 = vld [vmem:[%s10579_s1 + $0x380] ss:$16 sps:$4 sm:$0xff]  }
  0x19   :  { %4898 = vmatprep.subr.bf16.mxu1 %v6773_v25  ;;  %v15_v46 = vld [vmem:[%s10580_s0] sm:$0xff] }
  0x1a   :  { %v8100_v47 = vcombine.high %v15_v46, %v15_v46  ;;  %v6807_v52 = vld [vmem:[%s10579_s1 + $0x164] ss:$16 sps:$4 sm:$0xff]   ;;  %v6811_v54 = vld [vmem:[%s10579_s1 + $0x160] ss:$16 sps:$4 sm:$0xff]   ;;  %v8169_v6 = vcombine.low %v15_v46, %v15_v46 }
  0x1b   :  { %4858 = vmatpush1.bf16.msra.mxu0 %v6775_v26  ;;  %v6809_v53 = vld [vmem:[%s10579_s1 + $0x364] ss:$16 sps:$4 sm:$0xff]   ;;  %v6812_v55 = vld [vmem:[%s10579_s1 + $0x360] ss:$16 sps:$4 sm:$0xff]  }
  0x1c   :  { %4899 = vmatpush1.bf16.msra.mxu1 %v6776_v27  ;;  %4859 = vmatprep.subr.bf16.mxu0 %v6777_v28  ;;  %v6813_v56 = vld [vmem:[%s10579_s1 + $0x144] ss:$16 sps:$4 sm:$0xff]   ;;  %v6817_v58 = vld [vmem:[%s10579_s1 + $0x140] ss:$16 sps:$4 sm:$0xff]  }
  0x1d   :  { %4900 = vmatprep.subr.bf16.mxu1 %v6779_v29  ;;  %4877 = vmatprep.mubr.bf16.mxu0 %v8100_v47  ;;  %v6815_v57 = vld [vmem:[%s10579_s1 + $0x344] ss:$16 sps:$4 sm:$0xff]   ;;  %v6818_v59 = vld [vmem:[%s10579_s1 + $0x340] ss:$16 sps:$4 sm:$0xff]  }
  0x1e   :  { %v6819_v60 = vld [vmem:[%s10579_s1 + $0x124] ss:$16 sps:$4 sm:$0xff]   ;;  %v6823_v62 = vld [vmem:[%s10579_s1 + $0x120] ss:$16 sps:$4 sm:$0xff]  }
  0x1f   :  { %4860 = vmatpush1.bf16.msra.mxu0 %v6781_v30  ;;  %v6821_v61 = vld [vmem:[%s10579_s1 + $0x324] ss:$16 sps:$4 sm:$0xff]   ;;  %v6824_v63 = vld [vmem:[%s10579_s1 + $0x320] ss:$16 sps:$4 sm:$0xff]  }
  0x20   :  { %4901 = vmatpush1.bf16.msra.mxu1 %v6782_v31  ;;  %4861 = vmatprep.subr.bf16.mxu0 %v6783_v32  ;;  %v6825_v0 = vld [vmem:[%s10579_s1 + $0x104] ss:$16 sps:$4 sm:$0xff]   ;;  %v6829_v2 = vld [vmem:[%s10579_s1 + $0x100] ss:$16 sps:$4 sm:$0xff]  }
  0x21   :  { %4902 = vmatprep.subr.bf16.mxu1 %v6785_v33  ;;  %v6827_v1 = vld [vmem:[%s10579_s1 + $0x304] ss:$16 sps:$4 sm:$0xff]   ;;  %v6830_v3 = vld [vmem:[%s10579_s1 + $0x300] ss:$16 sps:$4 sm:$0xff]   ;;  %v8255_v33 = vld [vmem:[%s10580_s0 + $0x18] sm:$0xff] }
  0x22   :  { %v6837_v4 = vld [vmem:[%s10579_s1 + $0x4e4] ss:$16 sps:$4 sm:$0xff]   ;;  %v6835_v8 = vld [vmem:[%s10579_s1 + $0x4e0] ss:$16 sps:$4 sm:$0xff]  }
  0x23   :  { %4862 = vmatpush2.bf16.msra.mxu0 %v6787_v34  ;;  %v6840_v5 = vld [vmem:[%s10579_s1 + $0x6e4] ss:$16 sps:$4 sm:$0xff]   ;;  %v6838_v9 = vld [vmem:[%s10579_s1 + $0x6e0] ss:$16 sps:$4 sm:$0xff]  }
  0x24   :  { %4903 = vmatpush2.bf16.msra.mxu1 %v6788_v35  ;;  %4863 = vmatprep.subr.bf16.mxu0 %v6789_v36  ;;  %v6843_v10 = vld [vmem:[%s10579_s1 + $0x4c4] ss:$16 sps:$4 sm:$0xff]   ;;  %v6841_v12 = vld [vmem:[%s10579_s1 + $0x4c0] ss:$16 sps:$4 sm:$0xff]  }
  0x25   :  { %4904 = vmatprep.subr.bf16.mxu1 %v6791_v37  ;;  %v6846_v11 = vld [vmem:[%s10579_s1 + $0x6c4] ss:$16 sps:$4 sm:$0xff]   ;;  %v6844_v13 = vld [vmem:[%s10579_s1 + $0x6c0] ss:$16 sps:$4 sm:$0xff]   ;;  %v8269_v37 = vcombine.high %v8255_v33, %v8255_v33 }
  0x26   :  { %v6849_v14 = vld [vmem:[%s10579_s1 + $0x4a4] ss:$16 sps:$4 sm:$0xff]   ;;  %v6847_v16 = vld [vmem:[%s10579_s1 + $0x4a0] ss:$16 sps:$4 sm:$0xff]  }
  0x27   :  { %4864 = vmatpush2.bf16.msra.mxu0 %v6793_v38  ;;  %v6852_v15 = vld [vmem:[%s10579_s1 + $0x6a4] ss:$16 sps:$4 sm:$0xff]   ;;  %v6850_v17 = vld [vmem:[%s10579_s1 + $0x6a0] ss:$16 sps:$4 sm:$0xff]  }
  0x28   :  { %4905 = vmatpush2.bf16.msra.mxu1 %v6794_v39  ;;  %4865 = vmatprep.subr.bf16.mxu0 %v6795_v40  ;;  %v6855_v18 = vld [vmem:[%s10579_s1 + $0x484] ss:$16 sps:$4 sm:$0xff]   ;;  %v6853_v20 = vld [vmem:[%s10579_s1 + $0x480] ss:$16 sps:$4 sm:$0xff]  }
  0x29   :  { %4906 = vmatprep.subr.bf16.mxu1 %v6797_v41  ;;  %v6858_v19 = vld [vmem:[%s10579_s1 + $0x684] ss:$16 sps:$4 sm:$0xff]   ;;  %v6856_v21 = vld [vmem:[%s10579_s1 + $0x680] ss:$16 sps:$4 sm:$0xff]  }
  0x2a   :  { %v6861_v22 = vld [vmem:[%s10579_s1 + $0x464] ss:$16 sps:$4 sm:$0xff]   ;;  %v6859_v24 = vld [vmem:[%s10579_s1 + $0x460] ss:$16 sps:$4 sm:$0xff]  }
  0x2b   :  { %4866 = vmatpush2.bf16.msra.mxu0 %v6799_v42  ;;  %v6864_v23 = vld [vmem:[%s10579_s1 + $0x664] ss:$16 sps:$4 sm:$0xff]   ;;  %v6862_v25 = vld [vmem:[%s10579_s1 + $0x660] ss:$16 sps:$4 sm:$0xff]  }
  0x2c   :  { %4907 = vmatpush2.bf16.msra.mxu1 %v6800_v43  ;;  %4867 = vmatprep.subr.bf16.mxu0 %v6801_v44  ;;  %v6867_v26 = vld [vmem:[%s10579_s1 + $0x444] ss:$16 sps:$4 sm:$0xff]   ;;  %v6865_v28 = vld [vmem:[%s10579_s1 + $0x440] ss:$16 sps:$4 sm:$0xff]  }
  0x2d   :  { %4908 = vmatprep.subr.bf16.mxu1 %v6803_v45  ;;  %v6870_v27 = vld [vmem:[%s10579_s1 + $0x644] ss:$16 sps:$4 sm:$0xff]   ;;  %v6868_v29 = vld [vmem:[%s10579_s1 + $0x640] ss:$16 sps:$4 sm:$0xff]  }
  0x2e   :  { %v6873_v30 = vld [vmem:[%s10579_s1 + $0x424] ss:$16 sps:$4 sm:$0xff]   ;;  %v6871_v34 = vld [vmem:[%s10579_s1 + $0x420] ss:$16 sps:$4 sm:$0xff]  }
  0x2f   :  { %4868 = vmatpush2.bf16.msra.mxu0 %v6805_v49  ;;  %v6876_v31 = vld [vmem:[%s10579_s1 + $0x624] ss:$16 sps:$4 sm:$0xff]   ;;  %v6874_v35 = vld [vmem:[%s10579_s1 + $0x620] ss:$16 sps:$4 sm:$0xff]  }
  0x30   :  { %4909 = vmatpush2.bf16.msra.mxu1 %v6806_v50  ;;  %4869 = vmatprep.subr.bf16.mxu0 %v6807_v52  ;;  %v8250_v32 = vld [vmem:[%s10580_s0 + $0x10] sm:$0xff] }
  0x31   :  { %4910 = vmatprep.subr.bf16.mxu1 %v6809_v53  ;;  %v8265_v36 = vcombine.high %v8250_v32, %v8250_v32  ;;  %v6879_v38 = vld [vmem:[%s10579_s1 + $0x404] ss:$16 sps:$4 sm:$0xff]   ;;  %v6877_v40 = vld [vmem:[%s10579_s1 + $0x400] ss:$16 sps:$4 sm:$0xff]  }
  0x32   :  { %v6882_v39 = vld [vmem:[%s10579_s1 + $0x604] ss:$16 sps:$4 sm:$0xff]   ;;  %v6880_v41 = vld [vmem:[%s10579_s1 + $0x600] ss:$16 sps:$4 sm:$0xff]  }
  0x33   :  { %4870 = vmatpush2.bf16.msra.mxu0 %v6811_v54  ;;  %v6885_v42 = vld [vmem:[%s10579_s1 + $0x5e4] ss:$16 sps:$4 sm:$0xff]   ;;  %v6883_v44 = vld [vmem:[%s10579_s1 + $0x5e0] ss:$16 sps:$4 sm:$0xff]  }
  0x34   :  { %4911 = vmatpush2.bf16.msra.mxu1 %v6812_v55  ;;  %4871 = vmatprep.subr.bf16.mxu0 %v6813_v56  ;;  %v6888_v43 = vld [vmem:[%s10579_s1 + $0x7e4] ss:$16 sps:$4 sm:$0xff]   ;;  %v6886_v45 = vld [vmem:[%s10579_s1 + $0x7e0] ss:$16 sps:$4 sm:$0xff]  }
  0x35   :  { %4912 = vmatprep.subr.bf16.mxu1 %v6815_v57  ;;  %v6891_v46 = vld [vmem:[%s10579_s1 + $0x5c4] ss:$16 sps:$4 sm:$0xff]   ;;  %v6889_v49 = vld [vmem:[%s10579_s1 + $0x5c0] ss:$16 sps:$4 sm:$0xff]  }
  0x36   :  { %v6894_v48 = vld [vmem:[%s10579_s1 + $0x7c4] ss:$16 sps:$4 sm:$0xff]   ;;  %v6892_v50 = vld [vmem:[%s10579_s1 + $0x7c0] ss:$16 sps:$4 sm:$0xff]  }
  0x37   :  { %4872 = vmatpush2.bf16.msra.mxu0 %v6817_v58  ;;  %v6897_v52 = vld [vmem:[%s10579_s1 + $0x5a4] ss:$16 sps:$4 sm:$0xff]   ;;  %v6895_v54 = vld [vmem:[%s10579_s1 + $0x5a0] ss:$16 sps:$4 sm:$0xff]  }
  0x38   :  { %4913 = vmatpush2.bf16.msra.mxu1 %v6818_v59  ;;  %4873 = vmatprep.subr.bf16.mxu0 %v6819_v60  ;;  %v6900_v53 = vld [vmem:[%s10579_s1 + $0x7a4] ss:$16 sps:$4 sm:$0xff]   ;;  %v6898_v55 = vld [vmem:[%s10579_s1 + $0x7a0] ss:$16 sps:$4 sm:$0xff]  }
  0x39   :  { %4914 = vmatprep.subr.bf16.mxu1 %v6821_v61  ;;  %v6903_v56 = vld [vmem:[%s10579_s1 + $0x584] ss:$16 sps:$4 sm:$0xff]   ;;  %v6901_v58 = vld [vmem:[%s10579_s1 + $0x580] ss:$16 sps:$4 sm:$0xff]  }
  0x3a   :  { %v6906_v57 = vld [vmem:[%s10579_s1 + $0x784] ss:$16 sps:$4 sm:$0xff]   ;;  %v6904_v59 = vld [vmem:[%s10579_s1 + $0x780] ss:$16 sps:$4 sm:$0xff]  }
  0x3b   :  { %4874 = vmatpush2.bf16.msra.mxu0 %v6823_v62  ;;  %v6909_v60 = vld [vmem:[%s10579_s1 + $0x564] ss:$16 sps:$4 sm:$0xff]   ;;  %v6907_v62 = vld [vmem:[%s10579_s1 + $0x560] ss:$16 sps:$4 sm:$0xff]  }
  0x3c   :  { %4915 = vmatpush2.bf16.msra.mxu1 %v6824_v63  ;;  %4875 = vmatprep.subr.bf16.mxu0 %v6825_v0  ;;  %v6912_v61 = vld [vmem:[%s10579_s1 + $0x764] ss:$16 sps:$4 sm:$0xff]   ;;  %v6910_v63 = vld [vmem:[%s10579_s1 + $0x760] ss:$16 sps:$4 sm:$0xff]  }
  0x3d   :  { %4916 = vmatprep.subr.bf16.mxu1 %v6827_v1  ;;  %v6915_v0 = vld [vmem:[%s10579_s1 + $0x544] ss:$16 sps:$4 sm:$0xff]  }
  0x3e   :  { %v6918_v1 = vld [vmem:[%s10579_s1 + $0x744] ss:$16 sps:$4 sm:$0xff]  }
  0x3f   :  { %4876 = vmatpush2.bf16.msra.mxu0 %v6829_v2  ;;  %v6913_v2 = vld [vmem:[%s10579_s1 + $0x540] ss:$16 sps:$4 sm:$0xff]  }
  0x40   :  { %4917 = vmatpush2.bf16.msra.mxu1 %v6830_v3  ;;  %4927 = vmatprep.subr.bf16.mxu0 %v6837_v4  ;;  %v6916_v3 = vld [vmem:[%s10579_s1 + $0x740] ss:$16 sps:$4 sm:$0xff]   ;;  %v6921_v4 = vld [vmem:[%s10579_s1 + $0x524] ss:$16 sps:$4 sm:$0xff]  }
  0x41   :  { %4968 = vmatprep.subr.bf16.mxu1 %v6840_v5  ;;  %v6924_v5 = vld [vmem:[%s10579_s1 + $0x724] ss:$16 sps:$4 sm:$0xff]  }
  0x42   :  { %4878 = vmatmul.mubr.bf16.vlgmr.msra.gmra.mxu0 %v8169_v6 }
  0x43   :  { %4919 = vmatmul.mubr.bf16.vlgmr.msra.gmra.mxu1 %v8171_v7  ;;  %4928 = vmatpush1.bf16.msra.mxu0 %v6835_v8  ;;  %v6919_v8 = vld [vmem:[%s10579_s1 + $0x520] ss:$16 sps:$4 sm:$0xff]  }
  0x44   :  { %4969 = vmatpush1.bf16.msra.mxu1 %v6838_v9  ;;  %4929 = vmatprep.subr.bf16.mxu0 %v6843_v10  ;;  %v6922_v9 = vld [vmem:[%s10579_s1 + $0x720] ss:$16 sps:$4 sm:$0xff]   ;;  %v6927_v10 = vld [vmem:[%s10579_s1 + $0x504] ss:$16 sps:$4 sm:$0xff]  }
  0x45   :  { %4970 = vmatprep.subr.bf16.mxu1 %v6846_v11  ;;  %4959 = vmatprep.mubr.bf16.mxu0 %v8265_v36  ;;  %v6930_v11 = vld [vmem:[%s10579_s1 + $0x704] ss:$16 sps:$4 sm:$0xff]  }
  0x46   :  { %5000 = vmatprep.mubr.bf16.mxu1 %v8269_v37 }
  0x47   :  { %4930 = vmatpush1.bf16.msra.mxu0 %v6841_v12  ;;  %v6925_v12 = vld [vmem:[%s10579_s1 + $0x500] ss:$16 sps:$4 sm:$0xff]  }
  0x48   :  { %4971 = vmatpush1.bf16.msra.mxu1 %v6844_v13  ;;  %4931 = vmatprep.subr.bf16.mxu0 %v6849_v14  ;;  %v6928_v13 = vld [vmem:[%s10579_s1 + $0x700] ss:$16 sps:$4 sm:$0xff]   ;;  %v6937_v14 = vld [vmem:[%s10579_s1 + $0x8e4] ss:$16 sps:$4 sm:$0xff]  }
  0x49   :  { %4972 = vmatprep.subr.bf16.mxu1 %v6852_v15  ;;  %v6940_v15 = vld [vmem:[%s10579_s1 + $0xae4] ss:$16 sps:$4 sm:$0xff]  }
  0x4b   :  { %4932 = vmatpush1.bf16.msra.mxu0 %v6847_v16  ;;  %v8389_v16 = vcombine.low %v8250_v32, %v8250_v32  ;;  %v6955_v32 = vld [vmem:[%s10579_s1 + $0x884] ss:$16 sps:$4 sm:$0xff]  }
  0x4c   :  { %4973 = vmatpush1.bf16.msra.mxu1 %v6850_v17  ;;  %4933 = vmatprep.subr.bf16.mxu0 %v6855_v18  ;;  %v8393_v17 = vcombine.low %v8255_v33, %v8255_v33  ;;  %v6935_v18 = vld [vmem:[%s10579_s1 + $0x8e0] ss:$16 sps:$4 sm:$0xff]   ;;  %v6958_v33 = vld [vmem:[%s10579_s1 + $0xa84] ss:$16 sps:$4 sm:$0xff]  }
  0x4d   :  { %4974 = vmatprep.subr.bf16.mxu1 %v6858_v19  ;;  %v6938_v19 = vld [vmem:[%s10579_s1 + $0xae0] ss:$16 sps:$4 sm:$0xff]  }
  0x4f   :  { %4934 = vmatpush1.bf16.msra.mxu0 %v6853_v20  ;;  %v6943_v20 = vld [vmem:[%s10579_s1 + $0x8c4] ss:$16 sps:$4 sm:$0xff]  }
  0x50   :  { %4975 = vmatpush1.bf16.msra.mxu1 %v6856_v21  ;;  %4935 = vmatprep.subr.bf16.mxu0 %v6861_v22  ;;  %v6946_v21 = vld [vmem:[%s10579_s1 + $0xac4] ss:$16 sps:$4 sm:$0xff]  }
  0x51   :  { %4976 = vmatprep.subr.bf16.mxu1 %v6864_v23  ;;  %v8410_v22 = vld [vmem:[%s10580_s0 + $0x20] sm:$0xff]  ;;  %v8415_v23 = vld [vmem:[%s10580_s0 + $0x28] sm:$0xff] }
  0x53   :  { %4936 = vmatpush1.bf16.msra.mxu0 %v6859_v24  ;;  %v8419_v24 = vcombine.high %v8410_v22, %v8410_v22 }
  0x54   :  { %4977 = vmatpush1.bf16.msra.mxu1 %v6862_v25  ;;  %4937 = vmatprep.subr.bf16.mxu0 %v6867_v26  ;;  %v8423_v25 = vcombine.high %v8415_v23, %v8415_v23  ;;  %v6941_v26 = vld [vmem:[%s10579_s1 + $0x8c0] ss:$16 sps:$4 sm:$0xff]  }
  0x55   :  { %4978 = vmatprep.subr.bf16.mxu1 %v6870_v27  ;;  %v6944_v27 = vld [vmem:[%s10579_s1 + $0xac0] ss:$16 sps:$4 sm:$0xff]  }
  0x57   :  { %4938 = vmatpush1.bf16.msra.mxu0 %v6865_v28  ;;  %v6949_v28 = vld [vmem:[%s10579_s1 + $0x8a4] ss:$16 sps:$4 sm:$0xff]  }
  0x58   :  { %4979 = vmatpush1.bf16.msra.mxu1 %v6868_v29  ;;  %4939 = vmatprep.subr.bf16.mxu0 %v6873_v30  ;;  %v6952_v29 = vld [vmem:[%s10579_s1 + $0xaa4] ss:$16 sps:$4 sm:$0xff]   ;;  %v6947_v30 = vld [vmem:[%s10579_s1 + $0x8a0] ss:$16 sps:$4 sm:$0xff]  }
  0x59   :  { %4980 = vmatprep.subr.bf16.mxu1 %v6876_v31  ;;  %v6950_v31 = vld [vmem:[%s10579_s1 + $0xaa0] ss:$16 sps:$4 sm:$0xff]  }
  0x5b   :  { %4940 = vmatpush1.bf16.msra.mxu0 %v6871_v34  ;;  %v6953_v34 = vld [vmem:[%s10579_s1 + $0x880] ss:$16 sps:$4 sm:$0xff]  }
  0x5c   :  { %4981 = vmatpush1.bf16.msra.mxu1 %v6874_v35  ;;  %4941 = vmatprep.subr.bf16.mxu0 %v6879_v38  ;;  %v6956_v35 = vld [vmem:[%s10579_s1 + $0xa80] ss:$16 sps:$4 sm:$0xff]   ;;  %v6961_v38 = vld [vmem:[%s10579_s1 + $0x864] ss:$16 sps:$4 sm:$0xff]  }
  0x5d   :  { %4982 = vmatprep.subr.bf16.mxu1 %v6882_v39  ;;  %v6964_v39 = vld [vmem:[%s10579_s1 + $0xa64] ss:$16 sps:$4 sm:$0xff]  }
  0x5f   :  { %4942 = vmatpush1.bf16.msra.mxu0 %v6877_v40  ;;  %v6959_v40 = vld [vmem:[%s10579_s1 + $0x860] ss:$16 sps:$4 sm:$0xff]  }
  0x60   :  { %4983 = vmatpush1.bf16.msra.mxu1 %v6880_v41  ;;  %4943 = vmatprep.subr.bf16.mxu0 %v6885_v42  ;;  %v6962_v41 = vld [vmem:[%s10579_s1 + $0xa60] ss:$16 sps:$4 sm:$0xff]   ;;  %v6967_v42 = vld [vmem:[%s10579_s1 + $0x844] ss:$16 sps:$4 sm:$0xff]  }
  0x61   :  { %4984 = vmatprep.subr.bf16.mxu1 %v6888_v43  ;;  %v6970_v43 = vld [vmem:[%s10579_s1 + $0xa44] ss:$16 sps:$4 sm:$0xff]  }
  0x63   :  { %4944 = vmatpush2.bf16.msra.mxu0 %v6883_v44  ;;  %v6965_v44 = vld [vmem:[%s10579_s1 + $0x840] ss:$16 sps:$4 sm:$0xff]  }
  0x64   :  { %4985 = vmatpush2.bf16.msra.mxu1 %v6886_v45  ;;  %4945 = vmatprep.subr.bf16.mxu0 %v6891_v46  ;;  %v6968_v45 = vld [vmem:[%s10579_s1 + $0xa40] ss:$16 sps:$4 sm:$0xff]   ;;  %v6973_v46 = vld [vmem:[%s10579_s1 + $0x824] ss:$16 sps:$4 sm:$0xff]  }
  0x65   :  { %4986 = vmatprep.subr.bf16.mxu1 %v6894_v48  ;;  %v6976_v48 = vld [vmem:[%s10579_s1 + $0xa24] ss:$16 sps:$4 sm:$0xff]  }
  0x67   :  { %4946 = vmatpush2.bf16.msra.mxu0 %v6889_v49  ;;  %v6971_v49 = vld [vmem:[%s10579_s1 + $0x820] ss:$16 sps:$4 sm:$0xff]  }
  0x68   :  { %4987 = vmatpush2.bf16.msra.mxu1 %v6892_v50  ;;  %4947 = vmatprep.subr.bf16.mxu0 %v6897_v52  ;;  %v6974_v50 = vld [vmem:[%s10579_s1 + $0xa20] ss:$16 sps:$4 sm:$0xff]   ;;  %v6979_v52 = vld [vmem:[%s10579_s1 + $0x804] ss:$16 sps:$4 sm:$0xff]  }
  0x69   :  { %4988 = vmatprep.subr.bf16.mxu1 %v6900_v53  ;;  %v6982_v53 = vld [vmem:[%s10579_s1 + $0xa04] ss:$16 sps:$4 sm:$0xff]  }
  0x6b   :  { %4948 = vmatpush2.bf16.msra.mxu0 %v6895_v54  ;;  %v6977_v54 = vld [vmem:[%s10579_s1 + $0x800] ss:$16 sps:$4 sm:$0xff]  }
  0x6c   :  { %4989 = vmatpush2.bf16.msra.mxu1 %v6898_v55  ;;  %4949 = vmatprep.subr.bf16.mxu0 %v6903_v56  ;;  %v6980_v55 = vld [vmem:[%s10579_s1 + $0xa00] ss:$16 sps:$4 sm:$0xff]   ;;  %v6985_v56 = vld [vmem:[%s10579_s1 + $0x9e4] ss:$16 sps:$4 sm:$0xff]  }
  0x6d   :  { %4990 = vmatprep.subr.bf16.mxu1 %v6906_v57  ;;  %v6988_v57 = vld [vmem:[%s10579_s1 + $0xbe4] ss:$16 sps:$4 sm:$0xff]  }
  0x6f   :  { %4950 = vmatpush2.bf16.msra.mxu0 %v6901_v58  ;;  %v6983_v58 = vld [vmem:[%s10579_s1 + $0x9e0] ss:$16 sps:$4 sm:$0xff]  }
  0x70   :  { %4991 = vmatpush2.bf16.msra.mxu1 %v6904_v59  ;;  %4951 = vmatprep.subr.bf16.mxu0 %v6909_v60  ;;  %v6986_v59 = vld [vmem:[%s10579_s1 + $0xbe0] ss:$16 sps:$4 sm:$0xff]   ;;  %v6991_v60 = vld [vmem:[%s10579_s1 + $0x9c4] ss:$16 sps:$4 sm:$0xff]  }
  0x71   :  { %4992 = vmatprep.subr.bf16.mxu1 %v6912_v61  ;;  %v6994_v61 = vld [vmem:[%s10579_s1 + $0xbc4] ss:$16 sps:$4 sm:$0xff]  }
  0x73   :  { %4952 = vmatpush2.bf16.msra.mxu0 %v6907_v62  ;;  %v6989_v62 = vld [vmem:[%s10579_s1 + $0x9c0] ss:$16 sps:$4 sm:$0xff]  }
  0x74   :  { %4993 = vmatpush2.bf16.msra.mxu1 %v6910_v63  ;;  %4953 = vmatprep.subr.bf16.mxu0 %v6915_v0  ;;  %v6992_v63 = vld [vmem:[%s10579_s1 + $0xbc0] ss:$16 sps:$4 sm:$0xff]   ;;  %v6997_v0 = vld [vmem:[%s10579_s1 + $0x9a4] ss:$16 sps:$4 sm:$0xff]  }
  0x75   :  { %4994 = vmatprep.subr.bf16.mxu1 %v6918_v1  ;;  %v7000_v1 = vld [vmem:[%s10579_s1 + $0xba4] ss:$16 sps:$4 sm:$0xff]  }
  0x77   :  { %4954 = vmatpush2.bf16.msra.mxu0 %v6913_v2  ;;  %v6995_v2 = vld [vmem:[%s10579_s1 + $0x9a0] ss:$16 sps:$4 sm:$0xff]  }
  0x78   :  { %4995 = vmatpush2.bf16.msra.mxu1 %v6916_v3  ;;  %4955 = vmatprep.subr.bf16.mxu0 %v6921_v4  ;;  %v6998_v3 = vld [vmem:[%s10579_s1 + $0xba0] ss:$16 sps:$4 sm:$0xff]   ;;  %v7003_v4 = vld [vmem:[%s10579_s1 + $0x984] ss:$16 sps:$4 sm:$0xff]  }
  0x79   :  { %4996 = vmatprep.subr.bf16.mxu1 %v6924_v5  ;;  %v7006_v5 = vld [vmem:[%s10579_s1 + $0xb84] ss:$16 sps:$4 sm:$0xff]  }
  0x7b   :  { %4956 = vmatpush2.bf16.msra.mxu0 %v6919_v8  ;;  %v7001_v8 = vld [vmem:[%s10579_s1 + $0x980] ss:$16 sps:$4 sm:$0xff]  }
  0x7c   :  { %4997 = vmatpush2.bf16.msra.mxu1 %v6922_v9  ;;  %4957 = vmatprep.subr.bf16.mxu0 %v6927_v10  ;;  %v7004_v9 = vld [vmem:[%s10579_s1 + $0xb80] ss:$16 sps:$4 sm:$0xff]   ;;  %v7009_v10 = vld [vmem:[%s10579_s1 + $0x964] ss:$16 sps:$4 sm:$0xff]  }
  0x7d   :  { %4998 = vmatprep.subr.bf16.mxu1 %v6930_v11  ;;  %v7012_v11 = vld [vmem:[%s10579_s1 + $0xb64] ss:$16 sps:$4 sm:$0xff]  }
  0x7f   :  { %4958 = vmatpush2.bf16.msra.mxu0 %v6925_v12  ;;  %v7007_v12 = vld [vmem:[%s10579_s1 + $0x960] ss:$16 sps:$4 sm:$0xff]  }
  0x80   :  { %4999 = vmatpush2.bf16.msra.mxu1 %v6928_v13  ;;  %5009 = vmatprep.subr.bf16.mxu0 %v6937_v14  ;;  %v7010_v13 = vld [vmem:[%s10579_s1 + $0xb60] ss:$16 sps:$4 sm:$0xff]   ;;  %v7015_v14 = vld [vmem:[%s10579_s1 + $0x944] ss:$16 sps:$4 sm:$0xff]  }
  0x81   :  { %5050 = vmatprep.subr.bf16.mxu1 %v6940_v15  ;;  %v7018_v15 = vld [vmem:[%s10579_s1 + $0xb44] ss:$16 sps:$4 sm:$0xff]  }
  0x82   :  { %4960 = vmatmul.mubr.bf16.vlgmr.msra.gmra.mxu0 %v8389_v16 }
  0x83   :  { %5001 = vmatmul.mubr.bf16.vlgmr.msra.gmra.mxu1 %v8393_v17  ;;  %5010 = vmatpush1.bf16.msra.mxu0 %v6935_v18  ;;  %v7013_v18 = vld [vmem:[%s10579_s1 + $0x940] ss:$16 sps:$4 sm:$0xff]  }
  0x84   :  { %5051 = vmatpush1.bf16.msra.mxu1 %v6938_v19  ;;  %5011 = vmatprep.subr.bf16.mxu0 %v6943_v20  ;;  %v7016_v19 = vld [vmem:[%s10579_s1 + $0xb40] ss:$16 sps:$4 sm:$0xff]   ;;  %v7021_v20 = vld [vmem:[%s10579_s1 + $0x924] ss:$16 sps:$4 sm:$0xff]  }
  0x85   :  { %5052 = vmatprep.subr.bf16.mxu1 %v6946_v21  ;;  %5041 = vmatprep.mubr.bf16.mxu0 %v8419_v24  ;;  %v7024_v21 = vld [vmem:[%s10579_s1 + $0xb24] ss:$16 sps:$4 sm:$0xff]  }
  0x86   :  { %5082 = vmatprep.mubr.bf16.mxu1 %v8423_v25 }
  0x87   :  { %5012 = vmatpush1.bf16.msra.mxu0 %v6941_v26  ;;  %v7019_v26 = vld [vmem:[%s10579_s1 + $0x920] ss:$16 sps:$4 sm:$0xff]  }
  0x88   :  { %5053 = vmatpush1.bf16.msra.mxu1 %v6944_v27  ;;  %5013 = vmatprep.subr.bf16.mxu0 %v6949_v28  ;;  %v7022_v27 = vld [vmem:[%s10579_s1 + $0xb20] ss:$16 sps:$4 sm:$0xff]   ;;  %v7027_v28 = vld [vmem:[%s10579_s1 + $0x904] ss:$16 sps:$4 sm:$0xff]  }
  0x89   :  { %5054 = vmatprep.subr.bf16.mxu1 %v6952_v29  ;;  %v7030_v29 = vld [vmem:[%s10579_s1 + $0xb04] ss:$16 sps:$4 sm:$0xff]  }
  0x8b   :  { %5014 = vmatpush1.bf16.msra.mxu0 %v6947_v30  ;;  %v7025_v30 = vld [vmem:[%s10579_s1 + $0x900] ss:$16 sps:$4 sm:$0xff]  }
  0x8c   :  { %5055 = vmatpush1.bf16.msra.mxu1 %v6950_v31  ;;  %5015 = vmatprep.subr.bf16.mxu0 %v6955_v32  ;;  %v7028_v31 = vld [vmem:[%s10579_s1 + $0xb00] ss:$16 sps:$4 sm:$0xff]   ;;  %v7037_v32 = vld [vmem:[%s10579_s1 + $0xce4] ss:$16 sps:$4 sm:$0xff]  }
  0x8d   :  { %5056 = vmatprep.subr.bf16.mxu1 %v6958_v33  ;;  %v7040_v33 = vld [vmem:[%s10579_s1 + $0xee4] ss:$16 sps:$4 sm:$0xff]  }
  0x8f   :  { %5016 = vmatpush1.bf16.msra.mxu0 %v6953_v34  ;;  %v7035_v34 = vld [vmem:[%s10579_s1 + $0xce0] ss:$16 sps:$4 sm:$0xff]  }
  0x90   :  { %5057 = vmatpush1.bf16.msra.mxu1 %v6956_v35  ;;  %5017 = vmatprep.subr.bf16.mxu0 %v6961_v38  ;;  %v8615_v35 = vld [vmem:[%s10580_s0 + $0x30] sm:$0xff]  ;;  %v8619_v38 = vcombine.low %v8410_v22, %v8410_v22 }
  0x91   :  { %5058 = vmatprep.subr.bf16.mxu1 %v6964_v39  ;;  %v8623_v39 = vcombine.low %v8415_v23, %v8415_v23  ;;  %v7043_v22 = vld [vmem:[%s10579_s1 + $0xcc4] ss:$16 sps:$4 sm:$0xff]  }
  0x92   :  { %v7046_v23 = vld [vmem:[%s10579_s1 + $0xec4] ss:$16 sps:$4 sm:$0xff]  }
  0x93   :  { %5018 = vmatpush1.bf16.msra.mxu0 %v6959_v40  ;;  %v8628_v40 = vld [vmem:[%s10580_s0 + $0x38] sm:$0xff] }
  0x94   :  { %5059 = vmatpush1.bf16.msra.mxu1 %v6962_v41  ;;  %5019 = vmatprep.subr.bf16.mxu0 %v6967_v42  ;;  %v7038_v41 = vld [vmem:[%s10579_s1 + $0xee0] ss:$16 sps:$4 sm:$0xff]   ;;  %v8641_v42 = vcombine.high %v8615_v35, %v8615_v35 }
  0x95   :  { %5060 = vmatprep.subr.bf16.mxu1 %v6970_v43  ;;  %v8645_v43 = vcombine.high %v8628_v40, %v8628_v40 }
  0x97   :  { %5020 = vmatpush1.bf16.msra.mxu0 %v6965_v44  ;;  %v7041_v44 = vld [vmem:[%s10579_s1 + $0xcc0] ss:$16 sps:$4 sm:$0xff]  }
  0x98   :  { %5061 = vmatpush1.bf16.msra.mxu1 %v6968_v45  ;;  %5021 = vmatprep.subr.bf16.mxu0 %v6973_v46  ;;  %v7044_v45 = vld [vmem:[%s10579_s1 + $0xec0] ss:$16 sps:$4 sm:$0xff]   ;;  %v7049_v46 = vld [vmem:[%s10579_s1 + $0xca4] ss:$16 sps:$4 sm:$0xff]  }
  0x99   :  { %5062 = vmatprep.subr.bf16.mxu1 %v6976_v48  ;;  %v7052_v48 = vld [vmem:[%s10579_s1 + $0xea4] ss:$16 sps:$4 sm:$0xff]  }
  0x9b   :  { %5022 = vmatpush1.bf16.msra.mxu0 %v6971_v49  ;;  %v7047_v49 = vld [vmem:[%s10579_s1 + $0xca0] ss:$16 sps:$4 sm:$0xff]  }
  0x9c   :  { %5063 = vmatpush1.bf16.msra.mxu1 %v6974_v50  ;;  %5023 = vmatprep.subr.bf16.mxu0 %v6979_v52  ;;  %v7050_v50 = vld [vmem:[%s10579_s1 + $0xea0] ss:$16 sps:$4 sm:$0xff]   ;;  %v7055_v52 = vld [vmem:[%s10579_s1 + $0xc84] ss:$16 sps:$4 sm:$0xff]  }
  0x9d   :  { %5064 = vmatprep.subr.bf16.mxu1 %v6982_v53  ;;  %v7058_v53 = vld [vmem:[%s10579_s1 + $0xe84] ss:$16 sps:$4 sm:$0xff]  }
  0x9f   :  { %5024 = vmatpush1.bf16.msra.mxu0 %v6977_v54  ;;  %v7053_v54 = vld [vmem:[%s10579_s1 + $0xc80] ss:$16 sps:$4 sm:$0xff]  }
  0xa0   :  { %5065 = vmatpush1.bf16.msra.mxu1 %v6980_v55  ;;  %5025 = vmatprep.subr.bf16.mxu0 %v6985_v56  ;;  %v7056_v55 = vld [vmem:[%s10579_s1 + $0xe80] ss:$16 sps:$4 sm:$0xff]   ;;  %v7061_v56 = vld [vmem:[%s10579_s1 + $0xc64] ss:$16 sps:$4 sm:$0xff]  }
  0xa1   :  { %5066 = vmatprep.subr.bf16.mxu1 %v6988_v57  ;;  %v7064_v57 = vld [vmem:[%s10579_s1 + $0xe64] ss:$16 sps:$4 sm:$0xff]  }
  0xa3   :  { %5026 = vmatpush2.bf16.msra.mxu0 %v6983_v58  ;;  %v7059_v58 = vld [vmem:[%s10579_s1 + $0xc60] ss:$16 sps:$4 sm:$0xff]  }
  0xa4   :  { %5067 = vmatpush2.bf16.msra.mxu1 %v6986_v59  ;;  %5027 = vmatprep.subr.bf16.mxu0 %v6991_v60  ;;  %v7062_v59 = vld [vmem:[%s10579_s1 + $0xe60] ss:$16 sps:$4 sm:$0xff]   ;;  %v7067_v60 = vld [vmem:[%s10579_s1 + $0xc44] ss:$16 sps:$4 sm:$0xff]  }
  0xa5   :  { %5068 = vmatprep.subr.bf16.mxu1 %v6994_v61  ;;  %v7070_v61 = vld [vmem:[%s10579_s1 + $0xe44] ss:$16 sps:$4 sm:$0xff]  }
  0xa7   :  { %5028 = vmatpush2.bf16.msra.mxu0 %v6989_v62  ;;  %v7065_v62 = vld [vmem:[%s10579_s1 + $0xc40] ss:$16 sps:$4 sm:$0xff]  }
  0xa8   :  { %5069 = vmatpush2.bf16.msra.mxu1 %v6992_v63  ;;  %5029 = vmatprep.subr.bf16.mxu0 %v6997_v0  ;;  %v7068_v63 = vld [vmem:[%s10579_s1 + $0xe40] ss:$16 sps:$4 sm:$0xff]   ;;  %v7073_v0 = vld [vmem:[%s10579_s1 + $0xc24] ss:$16 sps:$4 sm:$0xff]  }
  0xa9   :  { %5070 = vmatprep.subr.bf16.mxu1 %v7000_v1  ;;  %v7076_v1 = vld [vmem:[%s10579_s1 + $0xe24] ss:$16 sps:$4 sm:$0xff]  }
  0xab   :  { %5030 = vmatpush2.bf16.msra.mxu0 %v6995_v2  ;;  %v7071_v2 = vld [vmem:[%s10579_s1 + $0xc20] ss:$16 sps:$4 sm:$0xff]  }
  0xac   :  { %5071 = vmatpush2.bf16.msra.mxu1 %v6998_v3  ;;  %5031 = vmatprep.subr.bf16.mxu0 %v7003_v4  ;;  %v7074_v3 = vld [vmem:[%s10579_s1 + $0xe20] ss:$16 sps:$4 sm:$0xff]   ;;  %v7079_v4 = vld [vmem:[%s10579_s1 + $0xc04] ss:$16 sps:$4 sm:$0xff]  }
  0xad   :  { %5072 = vmatprep.subr.bf16.mxu1 %v7006_v5  ;;  %v7082_v5 = vld [vmem:[%s10579_s1 + $0xe04] ss:$16 sps:$4 sm:$0xff]  }
  0xaf   :  { %5032 = vmatpush2.bf16.msra.mxu0 %v7001_v8  ;;  %v7077_v8 = vld [vmem:[%s10579_s1 + $0xc00] ss:$16 sps:$4 sm:$0xff]  }
  0xb0   :  { %5073 = vmatpush2.bf16.msra.mxu1 %v7004_v9  ;;  %5033 = vmatprep.subr.bf16.mxu0 %v7009_v10  ;;  %v7080_v9 = vld [vmem:[%s10579_s1 + $0xe00] ss:$16 sps:$4 sm:$0xff]   ;;  %v7085_v10 = vld [vmem:[%s10579_s1 + $0xde4] ss:$16 sps:$4 sm:$0xff]  }
  0xb1   :  { %5074 = vmatprep.subr.bf16.mxu1 %v7012_v11  ;;  %v7088_v11 = vld [vmem:[%s10579_s1 + $0xfe4] ss:$16 sps:$4 sm:$0xff]  }
  0xb3   :  { %5034 = vmatpush2.bf16.msra.mxu0 %v7007_v12  ;;  %v7083_v12 = vld [vmem:[%s10579_s1 + $0xde0] ss:$16 sps:$4 sm:$0xff]  }
  0xb4   :  { %5075 = vmatpush2.bf16.msra.mxu1 %v7010_v13  ;;  %5035 = vmatprep.subr.bf16.mxu0 %v7015_v14  ;;  %v7086_v13 = vld [vmem:[%s10579_s1 + $0xfe0] ss:$16 sps:$4 sm:$0xff]   ;;  %v7091_v14 = vld [vmem:[%s10579_s1 + $0xdc4] ss:$16 sps:$4 sm:$0xff]  }
  0xb5   :  { %5076 = vmatprep.subr.bf16.mxu1 %v7018_v15  ;;  %v7094_v15 = vld [vmem:[%s10579_s1 + $0xfc4] ss:$16 sps:$4 sm:$0xff]  }
  0xb7   :  { %5036 = vmatpush2.bf16.msra.mxu0 %v7013_v18  ;;  %v7089_v18 = vld [vmem:[%s10579_s1 + $0xdc0] ss:$16 sps:$4 sm:$0xff]  }
  0xb8   :  { %5077 = vmatpush2.bf16.msra.mxu1 %v7016_v19  ;;  %5037 = vmatprep.subr.bf16.mxu0 %v7021_v20  ;;  %v7092_v19 = vld [vmem:[%s10579_s1 + $0xfc0] ss:$16 sps:$4 sm:$0xff]   ;;  %v7097_v20 = vld [vmem:[%s10579_s1 + $0xda4] ss:$16 sps:$4 sm:$0xff]  }
  0xb9   :  { %5078 = vmatprep.subr.bf16.mxu1 %v7024_v21  ;;  %v7100_v21 = vld [vmem:[%s10579_s1 + $0xfa4] ss:$16 sps:$4 sm:$0xff]  }
  0xbb   :  { %5038 = vmatpush2.bf16.msra.mxu0 %v7019_v26  ;;  %v7095_v26 = vld [vmem:[%s10579_s1 + $0xda0] ss:$16 sps:$4 sm:$0xff]  }
  0xbc   :  { %5079 = vmatpush2.bf16.msra.mxu1 %v7022_v27  ;;  %5039 = vmatprep.subr.bf16.mxu0 %v7027_v28  ;;  %v7098_v27 = vld [vmem:[%s10579_s1 + $0xfa0] ss:$16 sps:$4 sm:$0xff]   ;;  %v7103_v28 = vld [vmem:[%s10579_s1 + $0xd84] ss:$16 sps:$4 sm:$0xff]  }
  0xbd   :  { %5080 = vmatprep.subr.bf16.mxu1 %v7030_v29  ;;  %v7106_v29 = vld [vmem:[%s10579_s1 + $0xf84] ss:$16 sps:$4 sm:$0xff]  }
  0xbf   :  { %5040 = vmatpush2.bf16.msra.mxu0 %v7025_v30  ;;  %v7101_v30 = vld [vmem:[%s10579_s1 + $0xd80] ss:$16 sps:$4 sm:$0xff]  }
  0xc0   :  { %5081 = vmatpush2.bf16.msra.mxu1 %v7028_v31  ;;  %5091 = vmatprep.subr.bf16.mxu0 %v7037_v32  ;;  %v7104_v31 = vld [vmem:[%s10579_s1 + $0xf80] ss:$16 sps:$4 sm:$0xff]   ;;  %v7109_v32 = vld [vmem:[%s10579_s1 + $0xd64] ss:$16 sps:$4 sm:$0xff]  }
  0xc1   :  { %5132 = vmatprep.subr.bf16.mxu1 %v7040_v33  ;;  %v7112_v33 = vld [vmem:[%s10579_s1 + $0xf64] ss:$16 sps:$4 sm:$0xff]  }
  0xc2   :  { %5042 = vmatmul.mubr.bf16.vlgmr.msra.gmra.mxu0 %v8619_v38 }
  0xc3   :  { %5083 = vmatmul.mubr.bf16.vlgmr.msra.gmra.mxu1 %v8623_v39  ;;  %5092 = vmatpush1.bf16.msra.mxu0 %v7035_v34  ;;  %v7107_v34 = vld [vmem:[%s10579_s1 + $0xd60] ss:$16 sps:$4 sm:$0xff]  }
  0xc4   :  { %5133 = vmatpush1.bf16.msra.mxu1 %v7038_v41  ;;  %5093 = vmatprep.subr.bf16.mxu0 %v7043_v22  ;;  %v7110_v41 = vld [vmem:[%s10579_s1 + $0xf60] ss:$16 sps:$4 sm:$0xff]   ;;  %v7115_v22 = vld [vmem:[%s10579_s1 + $0xd44] ss:$16 sps:$4 sm:$0xff]  }
  0xc5   :  { %5134 = vmatprep.subr.bf16.mxu1 %v7046_v23  ;;  %5123 = vmatprep.mubr.bf16.mxu0 %v8641_v42  ;;  %v7118_v23 = vld [vmem:[%s10579_s1 + $0xf44] ss:$16 sps:$4 sm:$0xff]  }
  0xc6   :  { %5164 = vmatprep.mubr.bf16.mxu1 %v8645_v43 }
  0xc7   :  { %5094 = vmatpush1.bf16.msra.mxu0 %v7041_v44  ;;  %v7113_v44 = vld [vmem:[%s10579_s1 + $0xd40] ss:$16 sps:$4 sm:$0xff]  }
  0xc8   :  { %5135 = vmatpush1.bf16.msra.mxu1 %v7044_v45  ;;  %5095 = vmatprep.subr.bf16.mxu0 %v7049_v46  ;;  %v7116_v45 = vld [vmem:[%s10579_s1 + $0xf40] ss:$16 sps:$4 sm:$0xff]   ;;  %v7121_v46 = vld [vmem:[%s10579_s1 + $0xd24] ss:$16 sps:$4 sm:$0xff]  }
  0xc9   :  { %5136 = vmatprep.subr.bf16.mxu1 %v7052_v48  ;;  %v814_v48 = vlaneseq }
  0xcb   :  { %5096 = vmatpush1.bf16.msra.mxu0 %v7047_v49  ;;  %v7124_v49 = vld [vmem:[%s10579_s1 + $0xf24] ss:$16 sps:$4 sm:$0xff]  }
  0xcc   :  { %5137 = vmatpush1.bf16.msra.mxu1 %v7050_v50  ;;  %5097 = vmatprep.subr.bf16.mxu0 %v7055_v52  ;;  %v7119_v50 = vld [vmem:[%s10579_s1 + $0xd20] ss:$16 sps:$4 sm:$0xff]  }
  0xcd   :  { %5138 = vmatprep.subr.bf16.mxu1 %v7058_v53  ;;  %v7122_v52 = vld [vmem:[%s10579_s1 + $0xf20] ss:$16 sps:$4 sm:$0xff]   ;;  %v7127_v53 = vld [vmem:[%s10579_s1 + $0xd04] ss:$16 sps:$4 sm:$0xff]  }
  0xcf   :  { %5098 = vmatpush1.bf16.msra.mxu0 %v7053_v54  ;;  %v8816_v54 = vshrl.u32 %v814_v48, 7  ;;  %v7159_v48 = vld [vmem:[%s10579_s1 + $0x1060] ss:$16 sps:$4 sm:$0xff]  }
  0xd0   :  { %5139 = vmatpush1.bf16.msra.mxu1 %v7056_v55  ;;  %5099 = vmatprep.subr.bf16.mxu0 %v7061_v56  ;;  %v7130_v55 = vld [vmem:[%s10579_s1 + $0xf04] ss:$16 sps:$4 sm:$0xff]   ;;  %v7125_v56 = vld [vmem:[%s10579_s1 + $0xd00] ss:$16 sps:$4 sm:$0xff]  }
  0xd1   :  { %5140 = vmatprep.subr.bf16.mxu1 %v7064_v57  ;;  %v7128_v57 = vld [vmem:[%s10579_s1 + $0xf00] ss:$16 sps:$4 sm:$0xff]  }
  0xd3   :  { %5100 = vmatpush1.bf16.msra.mxu0 %v7059_v58  ;;  %v812_v58 = vld [vmem:[%s10581_s2] sm:$0xf] }
  0xd4   :  { %5141 = vmatpush1.bf16.msra.mxu1 %v7062_v59  ;;  %5101 = vmatprep.subr.bf16.mxu0 %v7067_v60  ;;  %v816_v59 = vsub.s32 0, %v8816_v54  ;;  %v7137_v60 = vld [vmem:[%s10579_s1 + $0x10e4] ss:$16 sps:$4 sm:$0xff]  }
  0xd5   :  { %5142 = vmatprep.subr.bf16.mxu1 %v7070_v61  ;;  %v7140_v61 = vld [vmem:[%s10579_s1 + $0x12e4] ss:$16 sps:$4 sm:$0xff]  }
  0xd7   :  { %5102 = vmatpush1.bf16.msra.mxu0 %v7065_v62  ;;  %v7135_v62 = vld [vmem:[%s10579_s1 + $0x10e0] ss:$16 sps:$4 sm:$0xff]  }
  0xd8   :  { %5143 = vmatpush1.bf16.msra.mxu1 %v7068_v63  ;;  %5103 = vmatprep.subr.bf16.mxu0 %v7073_v0  ;;  %v820_v63 = vsub.s32 1, %v8816_v54  ;;  %v8843_v0 = vcombine.low %v8615_v35, %v8615_v35  ;;  %v7138_v35 = vld [vmem:[%s10579_s1 + $0x12e0] ss:$16 sps:$4 sm:$0xff]  }
  0xd9   :  { %5144 = vmatprep.subr.bf16.mxu1 %v7076_v1  ;;  %v8847_v1 = vcombine.low %v8628_v40, %v8628_v40  ;;  %v7143_v40 = vld [vmem:[%s10579_s1 + $0x10c4] ss:$16 sps:$4 sm:$0xff]  }
  0xdb   :  { %5104 = vmatpush1.bf16.msra.mxu0 %v7071_v2  ;;  %v8852_v2 = vld [vmem:[%s10580_s0 + $0x40] sm:$0xff] }
  0xdc   :  { %5145 = vmatpush1.bf16.msra.mxu1 %v7074_v3  ;;  %5105 = vmatprep.subr.bf16.mxu0 %v7079_v4  ;;  %v8857_v3 = vld [vmem:[%s10580_s0 + $0x48] sm:$0xff]  ;;  %v817_v4 = vrot.slane %v812_v58, %v816_v59  ;;  %v7174_v59 = vld [vmem:[%s10579_s1 + $0x1220] ss:$16 sps:$4 sm:$0xff]  }
  0xdd   :  { %5146 = vmatprep.subr.bf16.mxu1 %v7082_v5  ;;  %v7146_v5 = vld [vmem:[%s10579_s1 + $0x12c4] ss:$16 sps:$4 sm:$0xff]  }
  0xdf   :  { %5106 = vmatpush1.bf16.msra.mxu0 %v7077_v8  ;;  %v821_v8 = vrot.slane %v812_v58, %v820_v63  ;;  %v7171_v58 = vld [vmem:[%s10579_s1 + $0x1020] ss:$16 sps:$4 sm:$0xff]  }
  0xe0   :  { %5147 = vmatpush1.bf16.msra.mxu1 %v7080_v9  ;;  %5107 = vmatprep.subr.bf16.mxu0 %v7085_v10  ;;  %v8870_v9 = vcombine.high %v8852_v2, %v8852_v2  ;;  %v8874_v10 = vcombine.high %v8857_v3, %v8857_v3  ;;  %v7180_v63 = vld [vmem:[%s10579_s1 + $0x1200] ss:$16 sps:$4 sm:$0xff]  }
  0xe1   :  { %5148 = vmatprep.subr.bf16.mxu1 %v7088_v11 }
  0xe3   :  { %5108 = vmatpush2.bf16.msra.mxu0 %v7083_v12 }
  0xe4   :  { %5149 = vmatpush2.bf16.msra.mxu1 %v7086_v13  ;;  %5109 = vmatprep.subr.bf16.mxu0 %v7091_v14  ;;  %v7141_v13 = vld [vmem:[%s10579_s1 + $0x10c0] ss:$16 sps:$4 sm:$0xff]  }
  0xe5   :  { %5150 = vmatprep.subr.bf16.mxu1 %v7094_v15  ;;  %v7144_v15 = vld [vmem:[%s10579_s1 + $0x12c0] ss:$16 sps:$4 sm:$0xff]  }
  0xe7   :  { %5110 = vmatpush2.bf16.msra.mxu0 %v7089_v18 }
  0xe8   :  { %5151 = vmatpush2.bf16.msra.mxu1 %v7092_v19  ;;  %5111 = vmatprep.subr.bf16.mxu0 %v7097_v20  ;;  %v7149_v20 = vld [vmem:[%s10579_s1 + $0x10a4] ss:$16 sps:$4 sm:$0xff]  }
  0xe9   :  { %5152 = vmatprep.subr.bf16.mxu1 %v7100_v21  ;;  %v7152_v21 = vld [vmem:[%s10579_s1 + $0x12a4] ss:$16 sps:$4 sm:$0xff]  }
  0xeb   :  { %5112 = vmatpush2.bf16.msra.mxu0 %v7095_v26 }
  0xec   :  { %5153 = vmatpush2.bf16.msra.mxu1 %v7098_v27  ;;  %5113 = vmatprep.subr.bf16.mxu0 %v7103_v28 }
  0xed   :  { %5154 = vmatprep.subr.bf16.mxu1 %v7106_v29 }
  0xef   :  { %5114 = vmatpush2.bf16.msra.mxu0 %v7101_v30  ;;  %v7147_v30 = vld [vmem:[%s10579_s1 + $0x10a0] ss:$16 sps:$4 sm:$0xff]  }
  0xf0   :  { %5155 = vmatpush2.bf16.msra.mxu1 %v7104_v31  ;;  %5115 = vmatprep.subr.bf16.mxu0 %v7109_v32  ;;  %v7150_v32 = vld [vmem:[%s10579_s1 + $0x12a0] ss:$16 sps:$4 sm:$0xff]  }
  0xf1   :  { %5156 = vmatprep.subr.bf16.mxu1 %v7112_v33 }
  0xf3   :  { %5116 = vmatpush2.bf16.msra.mxu0 %v7107_v34 }
  0xf4   :  { %5157 = vmatpush2.bf16.msra.mxu1 %v7110_v41  ;;  %5117 = vmatprep.subr.bf16.mxu0 %v7115_v22  ;;  %v7155_v41 = vld [vmem:[%s10579_s1 + $0x1084] ss:$16 sps:$4 sm:$0xff]  }
  0xf5   :  { %5158 = vmatprep.subr.bf16.mxu1 %v7118_v23  ;;  %v7158_v22 = vld [vmem:[%s10579_s1 + $0x1284] ss:$16 sps:$4 sm:$0xff]   ;;  %v7153_v23 = vld [vmem:[%s10579_s1 + $0x1080] ss:$16 sps:$4 sm:$0xff]  }
  0xf7   :  { %5118 = vmatpush2.bf16.msra.mxu0 %v7113_v44  ;;  %v7156_v44 = vld [vmem:[%s10579_s1 + $0x1280] ss:$16 sps:$4 sm:$0xff]  }
  0xf8   :  { %5159 = vmatpush2.bf16.msra.mxu1 %v7116_v45  ;;  %5119 = vmatprep.subr.bf16.mxu0 %v7121_v46  ;;  %v7161_v45 = vld [vmem:[%s10579_s1 + $0x1064] ss:$16 sps:$4 sm:$0xff]  }
  0xf9   :  { %5160 = vmatprep.subr.bf16.mxu1 %v7124_v49  ;;  %v7164_v46 = vld [vmem:[%s10579_s1 + $0x1264] ss:$16 sps:$4 sm:$0xff]   ;;  %v7162_v49 = vld [vmem:[%s10579_s1 + $0x1260] ss:$16 sps:$4 sm:$0xff]  }
  0xfb   :  { %5120 = vmatpush2.bf16.msra.mxu0 %v7119_v50  ;;  %v7167_v50 = vld [vmem:[%s10579_s1 + $0x1044] ss:$16 sps:$4 sm:$0xff]  }
  0xfc   :  { %5161 = vmatpush2.bf16.msra.mxu1 %v7122_v52  ;;  %5121 = vmatprep.subr.bf16.mxu0 %v7127_v53  ;;  %v7170_v52 = vld [vmem:[%s10579_s1 + $0x1244] ss:$16 sps:$4 sm:$0xff]   ;;  %v7165_v53 = vld [vmem:[%s10579_s1 + $0x1040] ss:$16 sps:$4 sm:$0xff]  }
  0xfd   :  { %5162 = vmatprep.subr.bf16.mxu1 %v7130_v55  ;;  %v7168_v55 = vld [vmem:[%s10579_s1 + $0x1240] ss:$16 sps:$4 sm:$0xff]  }
  0xff   :  { %5122 = vmatpush2.bf16.msra.mxu0 %v7125_v56  ;;  %v7173_v56 = vld [vmem:[%s10579_s1 + $0x1024] ss:$16 sps:$4 sm:$0xff]  }
 0x100   :  { %5163 = vmatpush2.bf16.msra.mxu1 %v7128_v57  ;;  %5173 = vmatprep.subr.bf16.mxu0 %v7137_v60  ;;  %v7176_v57 = vld [vmem:[%s10579_s1 + $0x1224] ss:$16 sps:$4 sm:$0xff]  }
 0x101   :  { %5214 = vmatprep.subr.bf16.mxu1 %v7140_v61  ;;  %v7179_v60 = vld [vmem:[%s10579_s1 + $0x1004] ss:$16 sps:$4 sm:$0xff]  }
 0x102   :  { %v4879_v11 = vpop.f32.mrf.mxu0  ;;  %5124 = vmatmul.mubr.bf16.vlgmr.msra.gmra.mxu0 %v8843_v0  ;;  %v7182_v61 = vld [vmem:[%s10579_s1 + $0x1204] ss:$16 sps:$4 sm:$0xff]  }
 0x103   :  { %v4920_v12 = vpop.f32.mrf.mxu1  ;;  %5165 = vmatmul.mubr.bf16.vlgmr.msra.gmra.mxu1 %v8847_v1  ;;  %v4880_v14 = vadd.f32 %v4879_v11, %v817_v4  ;;  %5174 = vmatpush1.bf16.msra.mxu0 %v7135_v62  ;;  %v7177_v62 = vld [vmem:[%s10579_s1 + $0x1000] ss:$16 sps:$4 sm:$0xff]   ;;  %v7185_v4 = vld [vmem:[%s10579_s1 + $0x11e4] ss:$16 sps:$4 sm:$0xff]  }
 0x104   :  { %5215 = vmatpush1.bf16.msra.mxu1 %v7138_v35  ;;  %v4881_v18 = vpop.f32.mrf.mxu0  ;;  %5175 = vmatprep.subr.bf16.mxu0 %v7143_v40  ;;  %v7188_v35 = vld [vmem:[%s10579_s1 + $0x13e4] ss:$16 sps:$4 sm:$0xff]   ;;  %v7183_v40 = vld [vmem:[%s10579_s1 + $0x11e0] ss:$16 sps:$4 sm:$0xff]  }
 0x105   :  { %v4922_v19 = vpop.f32.mrf.mxu1  ;;  %5216 = vmatprep.subr.bf16.mxu1 %v7146_v5  ;;  %v8890_v26 = vadd.f32 %v4920_v12, %v4880_v14  ;;  %v4882_v27 = vadd.f32 %v4881_v18, %v821_v8  ;;  %5205 = vmatprep.mubr.bf16.mxu0 %v8870_v9  ;;  %v7186_v5 = vld [vmem:[%s10579_s1 + $0x13e0] ss:$16 sps:$4 sm:$0xff]   ;;  %v7191_v8 = vld [vmem:[%s10579_s1 + $0x11c4] ss:$16 sps:$4 sm:$0xff]  }
 0x106   :  { %5246 = vmatprep.mubr.bf16.mxu1 %v8874_v10  ;;  %v4883_v28 = vpop.f32.mrf.mxu0  ;;  %v7194_v11 = vld [vmem:[%s10579_s1 + $0x13c4] ss:$16 sps:$4 sm:$0xff]   ;;  %v7189_v12 = vld [vmem:[%s10579_s1 + $0x11c0] ss:$16 sps:$4 sm:$0xff]  }
 0x107   :  { %v4924_v29 = vpop.f32.mrf.mxu1  ;;  %v8897_v31 = vadd.f32 %v4922_v19, %v4882_v27  ;;  %5176 = vmatpush1.bf16.msra.mxu0 %v7141_v13  ;;  %v7192_v13 = vld [vmem:[%s10579_s1 + $0x13c0] ss:$16 sps:$4 sm:$0xff]   ;;  %v7197_v14 = vld [vmem:[%s10579_s1 + $0x11a4] ss:$16 sps:$4 sm:$0xff]  }
 0x108   :  { %5217 = vmatpush1.bf16.msra.mxu1 %v7144_v15  ;;  %v4884_v33 = vpop.f32.mrf.mxu0  ;;  %5177 = vmatprep.subr.bf16.mxu0 %v7149_v20  ;;  %v7200_v15 = vld [vmem:[%s10579_s1 + $0x13a4] ss:$16 sps:$4 sm:$0xff]   ;;  %v7195_v18 = vld [vmem:[%s10579_s1 + $0x11a0] ss:$16 sps:$4 sm:$0xff]  }
 0x109   :  { %v4925_v34 = vpop.f32.mrf.mxu1  ;;  %5218 = vmatprep.subr.bf16.mxu1 %v7152_v21  ;;  %v7198_v19 = vld [vmem:[%s10579_s1 + $0x13a0] ss:$16 sps:$4 sm:$0xff]   ;;  %v7203_v20 = vld [vmem:[%s10579_s1 + $0x1184] ss:$16 sps:$4 sm:$0xff]  }
 0x10a   :  { %v7206_v21 = vld [vmem:[%s10579_s1 + $0x1384] ss:$16 sps:$4 sm:$0xff]   ;;  %v7201_v27 = vld [vmem:[%s10579_s1 + $0x1180] ss:$16 sps:$4 sm:$0xff]  }
 0x10b   :  { %5178 = vmatpush1.bf16.msra.mxu0 %v7147_v30  ;;  %v7204_v28 = vld [vmem:[%s10579_s1 + $0x1380] ss:$16 sps:$4 sm:$0xff]   ;;  %v7209_v29 = vld [vmem:[%s10579_s1 + $0x1164] ss:$16 sps:$4 sm:$0xff]  }
 0x10c   :  { %5219 = vmatpush1.bf16.msra.mxu1 %v7150_v32  ;;  %5179 = vmatprep.subr.bf16.mxu0 %v7155_v41  ;;  %v7212_v30 = vld [vmem:[%s10579_s1 + $0x1364] ss:$16 sps:$4 sm:$0xff]   ;;  %v7207_v32 = vld [vmem:[%s10579_s1 + $0x1160] ss:$16 sps:$4 sm:$0xff]  }
 0x10d   :  { %5220 = vmatprep.subr.bf16.mxu1 %v7158_v22  ;;  %v7210_v33 = vld [vmem:[%s10579_s1 + $0x1360] ss:$16 sps:$4 sm:$0xff]   ;;  %v7215_v34 = vld [vmem:[%s10579_s1 + $0x1144] ss:$16 sps:$4 sm:$0xff]  }
 0x10e   :  { %v7218_v41 = vld [vmem:[%s10579_s1 + $0x1344] ss:$16 sps:$4 sm:$0xff]   ;;  %v7213_v22 = vld [vmem:[%s10579_s1 + $0x1140] ss:$16 sps:$4 sm:$0xff]  }
 0x10f   :  { %5180 = vmatpush1.bf16.msra.mxu0 %v7153_v23  ;;  %v7216_v23 = vld [vmem:[%s10579_s1 + $0x1340] ss:$16 sps:$4 sm:$0xff]  }
 0x110   :  { %5221 = vmatpush1.bf16.msra.mxu1 %v7156_v44  ;;  %5181 = vmatprep.subr.bf16.mxu0 %v7161_v45  ;;  %v7221_v44 = vld [vmem:[%s10579_s1 + $0x1124] ss:$16 sps:$4 sm:$0xff]  }
 0x111   :  { %5222 = vmatprep.subr.bf16.mxu1 %v7164_v46  ;;  %v7224_v45 = vld [vmem:[%s10579_s1 + $0x1324] ss:$16 sps:$4 sm:$0xff]   ;;  %v7219_v46 = vld [vmem:[%s10579_s1 + $0x1120] ss:$16 sps:$4 sm:$0xff]  }
 0x113   :  { %5182 = vmatpush1.bf16.msra.mxu0 %v7159_v48  ;;  %v7222_v48 = vld [vmem:[%s10579_s1 + $0x1320] ss:$16 sps:$4 sm:$0xff]  }
 0x114   :  { %5223 = vmatpush1.bf16.msra.mxu1 %v7162_v49  ;;  %5183 = vmatprep.subr.bf16.mxu0 %v7167_v50  ;;  %v7227_v49 = vld [vmem:[%s10579_s1 + $0x1104] ss:$16 sps:$4 sm:$0xff]  }
 0x115   :  { %5224 = vmatprep.subr.bf16.mxu1 %v7170_v52  ;;  %v7230_v50 = vld [vmem:[%s10579_s1 + $0x1304] ss:$16 sps:$4 sm:$0xff]   ;;  %v7225_v52 = vld [vmem:[%s10579_s1 + $0x1100] ss:$16 sps:$4 sm:$0xff]  }
 0x117   :  { %5184 = vmatpush1.bf16.msra.mxu0 %v7165_v53  ;;  %v7228_v53 = vld [vmem:[%s10579_s1 + $0x1300] ss:$16 sps:$4 sm:$0xff]  }
 0x118   :  { %5225 = vmatpush1.bf16.msra.mxu1 %v7168_v55  ;;  %5185 = vmatprep.subr.bf16.mxu0 %v7173_v56  ;;  %v7237_v55 = vld [vmem:[%s10579_s1 + $0x14e4] ss:$16 sps:$4 sm:$0xff]  }
 0x119   :  { %5226 = vmatprep.subr.bf16.mxu1 %v7176_v57  ;;  %v7240_v56 = vld [vmem:[%s10579_s1 + $0x16e4] ss:$16 sps:$4 sm:$0xff]  }
 0x11a   :  { %v9067_v57 = vld [vmem:[%s10580_s0 + $0x50] sm:$0xff] }
 0x11b   :  { %5186 = vmatpush1.bf16.msra.mxu0 %v7171_v58  ;;  %v9072_v58 = vld [vmem:[%s10580_s0 + $0x58] sm:$0xff] }
 0x11c   :  { %5227 = vmatpush1.bf16.msra.mxu1 %v7174_v59  ;;  %5187 = vmatprep.subr.bf16.mxu0 %v7179_v60  ;;  %v7235_v59 = vld [vmem:[%s10579_s1 + $0x14e0] ss:$16 sps:$4 sm:$0xff]  }
 0x11d   :  { %5228 = vmatprep.subr.bf16.mxu1 %v7182_v61  ;;  %v7238_v60 = vld [vmem:[%s10579_s1 + $0x16e0] ss:$16 sps:$4 sm:$0xff]   ;;  %v9082_v61 = vcombine.low %v8852_v2, %v8852_v2 }
 0x11e   :  { %v7241_v2 = vld [vmem:[%s10579_s1 + $0x14c0] ss:$16 sps:$4 sm:$0xff]  }
 0x11f   :  { %5188 = vmatpush1.bf16.msra.mxu0 %v7177_v62  ;;  %v9086_v62 = vcombine.low %v8857_v3, %v8857_v3  ;;  %v7244_v3 = vld [vmem:[%s10579_s1 + $0x16c0] ss:$16 sps:$4 sm:$0xff]  }
 0x120   :  { %5229 = vmatpush1.bf16.msra.mxu1 %v7180_v63  ;;  %5189 = vmatprep.subr.bf16.mxu0 %v7185_v4  ;;  %v7243_v63 = vld [vmem:[%s10579_s1 + $0x14c4] ss:$16 sps:$4 sm:$0xff]  }
 0x121   :  { %5230 = vmatprep.subr.bf16.mxu1 %v7188_v35  ;;  %v7246_v4 = vld [vmem:[%s10579_s1 + $0x16c4] ss:$16 sps:$4 sm:$0xff]   ;;  %v9102_v35 = vcombine.high %v9067_v57, %v9067_v57 }
 0x123   :  { %5190 = vmatpush2.bf16.msra.mxu0 %v7183_v40  ;;  %v9106_v40 = vcombine.high %v9072_v58, %v9072_v58 }
 0x124   :  { %5231 = vmatpush2.bf16.msra.mxu1 %v7186_v5  ;;  %5191 = vmatprep.subr.bf16.mxu0 %v7191_v8 }
 0x125   :  { %5232 = vmatprep.subr.bf16.mxu1 %v7194_v11 }
 0x127   :  { %5192 = vmatpush2.bf16.msra.mxu0 %v7189_v12 }
 0x128   :  { %5233 = vmatpush2.bf16.msra.mxu1 %v7192_v13  ;;  %5193 = vmatprep.subr.bf16.mxu0 %v7197_v14  ;;  %v7249_v14 = vld [vmem:[%s10579_s1 + $0x14a4] ss:$16 sps:$4 sm:$0xff]  }
 0x129   :  { %5234 = vmatprep.subr.bf16.mxu1 %v7200_v15  ;;  %v7252_v15 = vld [vmem:[%s10579_s1 + $0x16a4] ss:$16 sps:$4 sm:$0xff]  }
 0x12b   :  { %5194 = vmatpush2.bf16.msra.mxu0 %v7195_v18 }
 0x12c   :  { %5235 = vmatpush2.bf16.msra.mxu1 %v7198_v19  ;;  %5195 = vmatprep.subr.bf16.mxu0 %v7203_v20  ;;  %v7250_v20 = vld [vmem:[%s10579_s1 + $0x16a0] ss:$16 sps:$4 sm:$0xff]  }
 0x12d   :  { %5236 = vmatprep.subr.bf16.mxu1 %v7206_v21 }
 0x12f   :  { %5196 = vmatpush2.bf16.msra.mxu0 %v7201_v27 }
 0x130   :  { %5237 = vmatpush2.bf16.msra.mxu1 %v7204_v28  ;;  %5197 = vmatprep.subr.bf16.mxu0 %v7209_v29 }
 0x131   :  { %5238 = vmatprep.subr.bf16.mxu1 %v7212_v30  ;;  %v7255_v30 = vld [vmem:[%s10579_s1 + $0x1484] ss:$16 sps:$4 sm:$0xff]  }
 0x133   :  { %5198 = vmatpush2.bf16.msra.mxu0 %v7207_v32  ;;  %v7258_v32 = vld [vmem:[%s10579_s1 + $0x1684] ss:$16 sps:$4 sm:$0xff]  }
 0x134   :  { %5239 = vmatpush2.bf16.msra.mxu1 %v7210_v33  ;;  %5199 = vmatprep.subr.bf16.mxu0 %v7215_v34  ;;  %v7253_v33 = vld [vmem:[%s10579_s1 + $0x1480] ss:$16 sps:$4 sm:$0xff]  }
 0x135   :  { %5240 = vmatprep.subr.bf16.mxu1 %v7218_v41  ;;  %v7256_v34 = vld [vmem:[%s10579_s1 + $0x1680] ss:$16 sps:$4 sm:$0xff]   ;;  %v7261_v41 = vld [vmem:[%s10579_s1 + $0x1464] ss:$16 sps:$4 sm:$0xff]  }
 0x137   :  { %5200 = vmatpush2.bf16.msra.mxu0 %v7213_v22  ;;  %v7264_v22 = vld [vmem:[%s10579_s1 + $0x1664] ss:$16 sps:$4 sm:$0xff]  }
 0x138   :  { %5241 = vmatpush2.bf16.msra.mxu1 %v7216_v23  ;;  %5201 = vmatprep.subr.bf16.mxu0 %v7221_v44  ;;  %v7259_v23 = vld [vmem:[%s10579_s1 + $0x1460] ss:$16 sps:$4 sm:$0xff]  }
 0x139   :  { %5242 = vmatprep.subr.bf16.mxu1 %v7224_v45  ;;  %v7262_v44 = vld [vmem:[%s10579_s1 + $0x1660] ss:$16 sps:$4 sm:$0xff]   ;;  %v7267_v45 = vld [vmem:[%s10579_s1 + $0x1444] ss:$16 sps:$4 sm:$0xff]  }
 0x13b   :  { %5202 = vmatpush2.bf16.msra.mxu0 %v7219_v46  ;;  %v7270_v46 = vld [vmem:[%s10579_s1 + $0x1644] ss:$16 sps:$4 sm:$0xff]  }
 0x13c   :  { %5243 = vmatpush2.bf16.msra.mxu1 %v7222_v48  ;;  %5203 = vmatprep.subr.bf16.mxu0 %v7227_v49  ;;  %v7265_v48 = vld [vmem:[%s10579_s1 + $0x1440] ss:$16 sps:$4 sm:$0xff]  }
 0x13d   :  { %5244 = vmatprep.subr.bf16.mxu1 %v7230_v50  ;;  %v7268_v49 = vld [vmem:[%s10579_s1 + $0x1640] ss:$16 sps:$4 sm:$0xff]   ;;  %v7273_v50 = vld [vmem:[%s10579_s1 + $0x1424] ss:$16 sps:$4 sm:$0xff]  }
 0x13f   :  { %5204 = vmatpush2.bf16.msra.mxu0 %v7225_v52  ;;  %v7276_v52 = vld [vmem:[%s10579_s1 + $0x1624] ss:$16 sps:$4 sm:$0xff]  }
 0x140   :  { %5245 = vmatpush2.bf16.msra.mxu1 %v7228_v53  ;;  %5255 = vmatprep.subr.bf16.mxu0 %v7237_v55  ;;  %v7271_v53 = vld [vmem:[%s10579_s1 + $0x1420] ss:$16 sps:$4 sm:$0xff]  }
 0x141   :  { %5296 = vmatprep.subr.bf16.mxu1 %v7240_v56  ;;  %v7274_v55 = vld [vmem:[%s10579_s1 + $0x1620] ss:$16 sps:$4 sm:$0xff]   ;;  %v7279_v56 = vld [vmem:[%s10579_s1 + $0x1404] ss:$16 sps:$4 sm:$0xff]  }
 0x142   :  { %v4961_v5 = vpop.f32.mrf.mxu0  ;;  %5206 = vmatmul.mubr.bf16.vlgmr.msra.gmra.mxu0 %v9082_v61 }
 0x143   :  { %v5002_v8 = vpop.f32.mrf.mxu1  ;;  %5247 = vmatmul.mubr.bf16.vlgmr.msra.gmra.mxu1 %v9086_v62  ;;  %v4962_v11 = vadd.f32 %v4961_v5, %v8890_v26  ;;  %5256 = vmatpush1.bf16.msra.mxu0 %v7235_v59  ;;  %v7247_v26 = vld [vmem:[%s10579_s1 + $0x14a0] ss:$16 sps:$4 sm:$0xff]   ;;  %v7282_v59 = vld [vmem:[%s10579_s1 + $0x1604] ss:$16 sps:$4 sm:$0xff]  }
 0x144   :  { %5297 = vmatpush1.bf16.msra.mxu1 %v7238_v60  ;;  %v4963_v12 = vpop.f32.mrf.mxu0  ;;  %5257 = vmatprep.subr.bf16.mxu0 %v7243_v63  ;;  %v7277_v60 = vld [vmem:[%s10579_s1 + $0x1400] ss:$16 sps:$4 sm:$0xff]  }
 0x145   :  { %v5004_v13 = vpop.f32.mrf.mxu1  ;;  %5298 = vmatprep.subr.bf16.mxu1 %v7246_v4  ;;  %v9117_v18 = vadd.f32 %v5002_v8, %v4962_v11  ;;  %v4964_v19 = vadd.f32 %v4963_v12, %v8897_v31  ;;  %5287 = vmatprep.mubr.bf16.mxu0 %v9102_v35  ;;  %v7280_v63 = vld [vmem:[%s10579_s1 + $0x1600] ss:$16 sps:$4 sm:$0xff]   ;;  %v7285_v4 = vld [vmem:[%s10579_s1 + $0x15e4] ss:$16 sps:$4 sm:$0xff]  }
 0x146   :  { %5328 = vmatprep.mubr.bf16.mxu1 %v9106_v40  ;;  %v4965_v21 = vpop.f32.mrf.mxu0  ;;  %v7286_v5 = vld [vmem:[%s10579_s1 + $0x17e0] ss:$16 sps:$4 sm:$0xff]   ;;  %v7291_v8 = vld [vmem:[%s10579_s1 + $0x15c4] ss:$16 sps:$4 sm:$0xff]  }
 0x147   :  { %v5006_v27 = vpop.f32.mrf.mxu1  ;;  %v9128_v28 = vadd.f32 %v5004_v13, %v4964_v19  ;;  %5258 = vmatpush1.bf16.msra.mxu0 %v7241_v2  ;;  %v7288_v2 = vld [vmem:[%s10579_s1 + $0x17e4] ss:$16 sps:$4 sm:$0xff]   ;;  %v7289_v12 = vld [vmem:[%s10579_s1 + $0x15c0] ss:$16 sps:$4 sm:$0xff]  }
 0x148   :  { %5299 = vmatpush1.bf16.msra.mxu1 %v7244_v3  ;;  %v4966_v29 = vpop.f32.mrf.mxu0  ;;  %5259 = vmatprep.subr.bf16.mxu0 %v7249_v14  ;;  %v7283_v3 = vld [vmem:[%s10579_s1 + $0x15e0] ss:$16 sps:$4 sm:$0xff]   ;;  %v7294_v11 = vld [vmem:[%s10579_s1 + $0x17c4] ss:$16 sps:$4 sm:$0xff]  }
 0x149   :  { %v5007_v31 = vpop.f32.mrf.mxu1  ;;  %5300 = vmatprep.subr.bf16.mxu1 %v7252_v15  ;;  %v7292_v13 = vld [vmem:[%s10579_s1 + $0x17c0] ss:$16 sps:$4 sm:$0xff]   ;;  %v7297_v14 = vld [vmem:[%s10579_s1 + $0x15a4] ss:$16 sps:$4 sm:$0xff]  }
 0x14a   :  { %v7300_v15 = vld [vmem:[%s10579_s1 + $0x17a4] ss:$16 sps:$4 sm:$0xff]   ;;  %v7295_v19 = vld [vmem:[%s10579_s1 + $0x15a0] ss:$16 sps:$4 sm:$0xff]  }
 0x14b   :  { %5260 = vmatpush1.bf16.msra.mxu0 %v7247_v26  ;;  %v7298_v26 = vld [vmem:[%s10579_s1 + $0x17a0] ss:$16 sps:$4 sm:$0xff]   ;;  %v7306_v21 = vld [vmem:[%s10579_s1 + $0x1784] ss:$16 sps:$4 sm:$0xff]  }
 0x14c   :  { %5301 = vmatpush1.bf16.msra.mxu1 %v7250_v20  ;;  %5261 = vmatprep.subr.bf16.mxu0 %v7255_v30  ;;  %v7303_v20 = vld [vmem:[%s10579_s1 + $0x1584] ss:$16 sps:$4 sm:$0xff]   ;;  %v7301_v27 = vld [vmem:[%s10579_s1 + $0x1580] ss:$16 sps:$4 sm:$0xff]  }
 0x14d   :  { %5302 = vmatprep.subr.bf16.mxu1 %v7258_v32  ;;  %v7304_v29 = vld [vmem:[%s10579_s1 + $0x1780] ss:$16 sps:$4 sm:$0xff]   ;;  %v7309_v31 = vld [vmem:[%s10579_s1 + $0x1564] ss:$16 sps:$4 sm:$0xff]  }
 0x14e   :  { %v7312_v30 = vld [vmem:[%s10579_s1 + $0x1764] ss:$16 sps:$4 sm:$0xff]   ;;  %v7307_v32 = vld [vmem:[%s10579_s1 + $0x1560] ss:$16 sps:$4 sm:$0xff]  }
 0x14f   :  { %5262 = vmatpush1.bf16.msra.mxu0 %v7253_v33  ;;  %v7310_v33 = vld [vmem:[%s10579_s1 + $0x1760] ss:$16 sps:$4 sm:$0xff]  }
 0x150   :  { %5303 = vmatpush1.bf16.msra.mxu1 %v7256_v34  ;;  %5263 = vmatprep.subr.bf16.mxu0 %v7261_v41  ;;  %v7315_v34 = vld [vmem:[%s10579_s1 + $0x1544] ss:$16 sps:$4 sm:$0xff]  }
 0x151   :  { %5304 = vmatprep.subr.bf16.mxu1 %v7264_v22  ;;  %v7318_v41 = vld [vmem:[%s10579_s1 + $0x1744] ss:$16 sps:$4 sm:$0xff]   ;;  %v7313_v22 = vld [vmem:[%s10579_s1 + $0x1540] ss:$16 sps:$4 sm:$0xff]  }
 0x153   :  { %5264 = vmatpush1.bf16.msra.mxu0 %v7259_v23  ;;  %v7316_v23 = vld [vmem:[%s10579_s1 + $0x1740] ss:$16 sps:$4 sm:$0xff]  }
 0x154   :  { %5305 = vmatpush1.bf16.msra.mxu1 %v7262_v44  ;;  %5265 = vmatprep.subr.bf16.mxu0 %v7267_v45  ;;  %v7321_v44 = vld [vmem:[%s10579_s1 + $0x1524] ss:$16 sps:$4 sm:$0xff]  }
 0x155   :  { %5306 = vmatprep.subr.bf16.mxu1 %v7270_v46  ;;  %v7324_v45 = vld [vmem:[%s10579_s1 + $0x1724] ss:$16 sps:$4 sm:$0xff]   ;;  %v7319_v46 = vld [vmem:[%s10579_s1 + $0x1520] ss:$16 sps:$4 sm:$0xff]  }
 0x157   :  { %5266 = vmatpush1.bf16.msra.mxu0 %v7265_v48  ;;  %v7322_v48 = vld [vmem:[%s10579_s1 + $0x1720] ss:$16 sps:$4 sm:$0xff]  }
 0x158   :  { %5307 = vmatpush1.bf16.msra.mxu1 %v7268_v49  ;;  %5267 = vmatprep.subr.bf16.mxu0 %v7273_v50  ;;  %v7327_v49 = vld [vmem:[%s10579_s1 + $0x1504] ss:$16 sps:$4 sm:$0xff]  }
 0x159   :  { %5308 = vmatprep.subr.bf16.mxu1 %v7276_v52  ;;  %v7330_v50 = vld [vmem:[%s10579_s1 + $0x1704] ss:$16 sps:$4 sm:$0xff]   ;;  %v7325_v52 = vld [vmem:[%s10579_s1 + $0x1500] ss:$16 sps:$4 sm:$0xff]  }
 0x15b   :  { %5268 = vmatpush1.bf16.msra.mxu0 %v7271_v53  ;;  %v7328_v53 = vld [vmem:[%s10579_s1 + $0x1700] ss:$16 sps:$4 sm:$0xff]  }
 0x15c   :  { %5309 = vmatpush1.bf16.msra.mxu1 %v7274_v55  ;;  %5269 = vmatprep.subr.bf16.mxu0 %v7279_v56  ;;  %v7337_v55 = vld [vmem:[%s10579_s1 + $0x1864] ss:$16 sps:$4 sm:$0xff]   ;;  %v7340_v56 = vld [vmem:[%s10579_s1 + $0xec] ss:$16 sps:$4 sm:$0xff]  }
 0x15d   :  { %5310 = vmatprep.subr.bf16.mxu1 %v7282_v59  ;;  %v7335_v59 = vld [vmem:[%s10579_s1 + $0x1860] ss:$16 sps:$4 sm:$0xff]  }
 0x15f   :  { %5270 = vmatpush1.bf16.msra.mxu0 %v7277_v60  ;;  %v7338_v60 = vld [vmem:[%s10579_s1 + $0xe8] ss:$16 sps:$4 sm:$0xff]  }
 0x160   :  { %5311 = vmatpush1.bf16.msra.mxu1 %v7280_v63  ;;  %5271 = vmatprep.subr.bf16.mxu0 %v7285_v4  ;;  %v9300_v63 = vcombine.low %v9067_v57, %v9067_v57  ;;  %v9304_v4 = vcombine.low %v9072_v58, %v9072_v58  ;;  %v7341_v57 = vld [vmem:[%s10579_s1 + $0x1840] ss:$16 sps:$4 sm:$0xff]   ;;  %v7344_v58 = vld [vmem:[%s10579_s1 + $0xc8] ss:$16 sps:$4 sm:$0xff]  }
 0x161   :  { %5312 = vmatprep.subr.bf16.mxu1 %v7288_v2  ;;  %v7343_v2 = vld [vmem:[%s10579_s1 + $0x1844] ss:$16 sps:$4 sm:$0xff]  }
 0x163   :  { %5272 = vmatpush2.bf16.msra.mxu0 %v7283_v3  ;;  %v7346_v3 = vld [vmem:[%s10579_s1 + $0xcc] ss:$16 sps:$4 sm:$0xff]  }
 0x164   :  { %5313 = vmatpush2.bf16.msra.mxu1 %v7286_v5  ;;  %5273 = vmatprep.subr.bf16.mxu0 %v7291_v8 }
 0x165   :  { %5314 = vmatprep.subr.bf16.mxu1 %v7294_v11 }
 0x167   :  { %5274 = vmatpush2.bf16.msra.mxu0 %v7289_v12 }
 0x168   :  { %5315 = vmatpush2.bf16.msra.mxu1 %v7292_v13  ;;  %5275 = vmatprep.subr.bf16.mxu0 %v7297_v14  ;;  %v7349_v14 = vld [vmem:[%s10579_s1 + $0x1824] ss:$16 sps:$4 sm:$0xff]  }
 0x169   :  { %5316 = vmatprep.subr.bf16.mxu1 %v7300_v15  ;;  %v7352_v15 = vld [vmem:[%s10579_s1 + $0xac] ss:$16 sps:$4 sm:$0xff]  }
 0x16b   :  { %5276 = vmatpush2.bf16.msra.mxu0 %v7295_v19 }
 0x16c   :  { %5317 = vmatpush2.bf16.msra.mxu1 %v7298_v26  ;;  %5277 = vmatprep.subr.bf16.mxu0 %v7303_v20  ;;  %v7350_v20 = vld [vmem:[%s10579_s1 + $0xa8] ss:$16 sps:$4 sm:$0xff]  }
 0x16d   :  { %5318 = vmatprep.subr.bf16.mxu1 %v7306_v21  ;;  %v7938_v21 = vmov 0  }
 0x16f   :  { %5278 = vmatpush2.bf16.msra.mxu0 %v7301_v27 }
 0x170   :  { %5319 = vmatpush2.bf16.msra.mxu1 %v7304_v29  ;;  %5279 = vmatprep.subr.bf16.mxu0 %v7309_v31 }
 0x171   :  { %5320 = vmatprep.subr.bf16.mxu1 %v7312_v30 }
 0x173   :  { %5280 = vmatpush2.bf16.msra.mxu0 %v7307_v32  ;;  %v7355_v32 = vld [vmem:[%s10579_s1 + $0x1804] ss:$16 sps:$4 sm:$0xff]  }
 0x174   :  { %5321 = vmatpush2.bf16.msra.mxu1 %v7310_v33  ;;  %5281 = vmatprep.subr.bf16.mxu0 %v7315_v34  ;;  %v7358_v33 = vld [vmem:[%s10579_s1 + $0x8c] ss:$16 sps:$4 sm:$0xff]   ;;  %v7356_v34 = vld [vmem:[%s10579_s1 + $0x88] ss:$16 sps:$4 sm:$0xff]  }
 0x175   :  { %5322 = vmatprep.subr.bf16.mxu1 %v7318_v41  ;;  %v7359_v41 = vld [vmem:[%s10580_s0 + $0x60] ss:$0 sps:$4 sm:$0xff]  }
 0x177   :  { %5282 = vmatpush2.bf16.msra.mxu0 %v7313_v22  ;;  %v7362_v22 = vld [vmem:[%s10579_s1 + $0x6c] ss:$16 sps:$4 sm:$0xff]  }
 0x178   :  { %5323 = vmatpush2.bf16.msra.mxu1 %v7316_v23  ;;  %5283 = vmatprep.subr.bf16.mxu0 %v7321_v44  ;;  %v7365_v23 = vld [vmem:[%s10579_s1 + $0x2ec] ss:$16 sps:$4 sm:$0xff]   ;;  %v7360_v44 = vld [vmem:[%s10579_s1 + $0x68] ss:$16 sps:$4 sm:$0xff]  }
 0x179   :  { %5324 = vmatprep.subr.bf16.mxu1 %v7324_v45  ;;  %v7363_v45 = vld [vmem:[%s10579_s1 + $0x2e8] ss:$16 sps:$4 sm:$0xff]  }
 0x17b   :  { %5284 = vmatpush2.bf16.msra.mxu0 %v7319_v46  ;;  %v7368_v46 = vld [vmem:[%s10579_s1 + $0x4c] ss:$16 sps:$4 sm:$0xff]  }
 0x17c   :  { %5325 = vmatpush2.bf16.msra.mxu1 %v7322_v48  ;;  %5285 = vmatprep.subr.bf16.mxu0 %v7327_v49  ;;  %v7371_v48 = vld [vmem:[%s10579_s1 + $0x2cc] ss:$16 sps:$4 sm:$0xff]   ;;  %v7366_v49 = vld [vmem:[%s10579_s1 + $0x48] ss:$16 sps:$4 sm:$0xff]  }
 0x17d   :  { %5326 = vmatprep.subr.bf16.mxu1 %v7330_v50  ;;  %v7369_v50 = vld [vmem:[%s10579_s1 + $0x2c8] ss:$16 sps:$4 sm:$0xff]  }
 0x17f   :  { %5286 = vmatpush2.bf16.msra.mxu0 %v7325_v52  ;;  %v7374_v52 = vld [vmem:[%s10579_s1 + $0x2c] ss:$16 sps:$4 sm:$0xff]  }
 0x180   :  { %5327 = vmatpush2.bf16.msra.mxu1 %v7328_v53  ;;  %5345 = vmatprep.subr.bf16.mxu0 %v7337_v55  ;;  %v7377_v53 = vld [vmem:[%s10579_s1 + $0x2ac] ss:$16 sps:$4 sm:$0xff]   ;;  %v7372_v55 = vld [vmem:[%s10579_s1 + $0x28] ss:$16 sps:$4 sm:$0xff]  }
 0x181   :  { %5378 = vmatprep.subr.bf16.mxu1 %v7340_v56  ;;  %v7375_v56 = vld [vmem:[%s10579_s1 + $0x2a8] ss:$16 sps:$4 sm:$0xff]  }
 0x182   :  { %v5043_v5 = vpop.f32.mrf.mxu0  ;;  %5288 = vmatmul.mubr.bf16.vlgmr.msra.gmra.mxu0 %v9300_v63 }
 0x183   :  { %v5084_v8 = vpop.f32.mrf.mxu1  ;;  %5329 = vmatmul.mubr.bf16.vlgmr.msra.gmra.mxu1 %v9304_v4  ;;  %v5044_v11 = vadd.f32 %v5043_v5, %v9117_v18  ;;  %5346 = vmatpush1.bf16.msra.mxu0 %v7335_v59  ;;  %v7347_v18 = vld [vmem:[%s10579_s1 + $0x1820] ss:$16 sps:$4 sm:$0xff]   ;;  %v7380_v59 = vld [vmem:[%s10579_s1 + $0xc] ss:$16 sps:$4 sm:$0xff]   ;;  %v7387_v5 = vld [vmem:[%s10579_s1 + $0x268] ss:$16 sps:$4 sm:$0xff]  }
 0x184   :  { %5379 = vmatpush1.bf16.msra.mxu1 %v7338_v60  ;;  %v5045_v12 = vpop.f32.mrf.mxu0  ;;  %5347 = vmatprep.subr.bf16.mxu0 %v7343_v2  ;;  %v7378_v60 = vld [vmem:[%s10579_s1 + $0x8] ss:$16 sps:$4 sm:$0xff]  }
 0x185   :  { %v5086_v13 = vpop.f32.mrf.mxu1  ;;  %5380 = vmatprep.subr.bf16.mxu1 %v7346_v3  ;;  %v9327_v19 = vadd.f32 %v5084_v8, %v5044_v11  ;;  %v5046_v26 = vadd.f32 %v5045_v12, %v9128_v28  ;;  %5369 = vmatprep.mubr.bf16.mxu0 %v7938_v21  ;;  %v7381_v2 = vld [vmem:[%s10579_s1 + $0x288] ss:$16 sps:$4 sm:$0xff]   ;;  %v7386_v3 = vld [vmem:[%s10579_s1 + $0x1ec] ss:$16 sps:$4 sm:$0xff]  }
 0x186   :  { %5410 = vmatprep.mubr.bf16.mxu1 %v8100_v47  ;;  %v5047_v27 = vpop.f32.mrf.mxu0  ;;  %v7353_v47 = vld [vmem:[%s10579_s1 + $0x1800] ss:$16 sps:$4 sm:$0xff]   ;;  %v7392_v8 = vld [vmem:[%s10579_s1 + $0x1cc] ss:$16 sps:$4 sm:$0xff]   ;;  %v7390_v12 = vld [vmem:[%s10579_s1 + $0x1c8] ss:$16 sps:$4 sm:$0xff]  }
 0x187   :  { %v5088_v29 = vpop.f32.mrf.mxu1  ;;  %v9338_v31 = vadd.f32 %v5086_v13, %v5046_v26  ;;  %5348 = vmatpush1.bf16.msra.mxu0 %v7341_v57  ;;  %v7389_v57 = vld [vmem:[%s10579_s1 + $0x26c] ss:$16 sps:$4 sm:$0xff]   ;;  %v7393_v13 = vld [vmem:[%s10579_s1 + $0x248] ss:$16 sps:$4 sm:$0xff]  }
 0x188   :  { %5381 = vmatpush1.bf16.msra.mxu1 %v7344_v58  ;;  %v5048_v28 = vpop.f32.mrf.mxu0  ;;  %5349 = vmatprep.subr.bf16.mxu0 %v7349_v14  ;;  %v7384_v58 = vld [vmem:[%s10579_s1 + $0x1e8] ss:$16 sps:$4 sm:$0xff]   ;;  %v7395_v11 = vld [vmem:[%s10579_s1 + $0x24c] ss:$16 sps:$4 sm:$0xff]  }
 0x189   :  { %v5089_v30 = vpop.f32.mrf.mxu1  ;;  %5382 = vmatprep.subr.bf16.mxu1 %v7352_v15  ;;  %v7398_v14 = vld [vmem:[%s10579_s1 + $0x1ac] ss:$16 sps:$4 sm:$0xff]   ;;  %v7396_v26 = vld [vmem:[%s10579_s1 + $0x1a8] ss:$16 sps:$4 sm:$0xff]  }
 0x18a   :  { %v7401_v15 = vld [vmem:[%s10579_s1 + $0x22c] ss:$16 sps:$4 sm:$0xff]   ;;  %v7402_v29 = vld [vmem:[%s10579_s1 + $0x188] ss:$16 sps:$4 sm:$0xff]  }
 0x18b   :  { %5350 = vmatpush1.bf16.msra.mxu0 %v7347_v18  ;;  %v7399_v18 = vld [vmem:[%s10579_s1 + $0x228] ss:$16 sps:$4 sm:$0xff]   ;;  %v7407_v27 = vld [vmem:[%s10579_s1 + $0x20c] ss:$16 sps:$4 sm:$0xff]  }
 0x18c   :  { %5383 = vmatpush1.bf16.msra.mxu1 %v7350_v20  ;;  %5351 = vmatprep.subr.bf16.mxu0 %v7355_v32  ;;  %v7404_v20 = vld [vmem:[%s10579_s1 + $0x18c] ss:$16 sps:$4 sm:$0xff]   ;;  %v7405_v28 = vld [vmem:[%s10579_s1 + $0x208] ss:$16 sps:$4 sm:$0xff]  }
 0x18d   :  { %5384 = vmatprep.subr.bf16.mxu1 %v7358_v33  ;;  %v7410_v30 = vld [vmem:[%s10579_s1 + $0x16c] ss:$16 sps:$4 sm:$0xff]   ;;  %v7408_v33 = vld [vmem:[%s10579_s1 + $0x168] ss:$16 sps:$4 sm:$0xff]  }
 0x18e   :  { %v7413_v32 = vld [vmem:[%s10579_s1 + $0x3ec] ss:$16 sps:$4 sm:$0xff]  }
 0x18f   :  { %5352 = vmatpush1.bf16.msra.mxu0 %v7353_v47  ;;  %v7411_v47 = vld [vmem:[%s10579_s1 + $0x3e8] ss:$16 sps:$4 sm:$0xff]  }
 0x190   :  { %5385 = vmatpush1.bf16.msra.mxu1 %v7356_v34  ;;  %5419 = vmatprep.subr.bf16.mxu0 %v7365_v23  ;;  %v7416_v34 = vld [vmem:[%s10579_s1 + $0x14c] ss:$16 sps:$4 sm:$0xff]   ;;  %v7417_v23 = vld [vmem:[%s10579_s1 + $0x3c8] ss:$16 sps:$4 sm:$0xff]  }
 0x191   :  { %5386 = vmatprep.subr.bf16.mxu1 %v7362_v22  ;;  %v7414_v22 = vld [vmem:[%s10579_s1 + $0x148] ss:$16 sps:$4 sm:$0xff]  }
 0x192   :  { %6732 = vmatmul.mubr.msk.bf16.vlgmr.msra.gmra.mxu0 %vm4841_vm0, %v7359_v41  ;;  %v7419_v41 = vld [vmem:[%s10579_s1 + $0x3cc] ss:$16 sps:$4 sm:$0xff]  }
 0x193   :  { %5420 = vmatpush1.bf16.msra.mxu0 %v7363_v45  ;;  %5451 = vmatprep.mubr.bf16.mxu0 %v8111_v51  ;;  %v7383_v51 = vld [vmem:[%s10579_s1 + $0x28c] ss:$16 sps:$4 sm:$0xff]  }
 0x194   :  { %5387 = vmatpush1.bf16.msra.mxu1 %v7360_v44  ;;  %5421 = vmatprep.subr.bf16.mxu0 %v7371_v48  ;;  %v7422_v44 = vld [vmem:[%s10579_s1 + $0x12c] ss:$16 sps:$4 sm:$0xff]   ;;  %v7423_v48 = vld [vmem:[%s10579_s1 + $0x3a8] ss:$16 sps:$4 sm:$0xff]  }
 0x195   :  { %5388 = vmatprep.subr.bf16.mxu1 %v7368_v46  ;;  %v7425_v45 = vld [vmem:[%s10579_s1 + $0x3ac] ss:$16 sps:$4 sm:$0xff]   ;;  %v7420_v46 = vld [vmem:[%s10579_s1 + $0x128] ss:$16 sps:$4 sm:$0xff]  }
 0x197   :  { %5422 = vmatpush1.bf16.msra.mxu0 %v7369_v50  ;;  %v7431_v50 = vld [vmem:[%s10579_s1 + $0x38c] ss:$16 sps:$4 sm:$0xff]  }
 0x198   :  { %5389 = vmatpush1.bf16.msra.mxu1 %v7366_v49  ;;  %5423 = vmatprep.subr.bf16.mxu0 %v7377_v53  ;;  %v7428_v49 = vld [vmem:[%s10579_s1 + $0x10c] ss:$16 sps:$4 sm:$0xff]   ;;  %v7429_v53 = vld [vmem:[%s10579_s1 + $0x388] ss:$16 sps:$4 sm:$0xff]  }
 0x199   :  { %5390 = vmatprep.subr.bf16.mxu1 %v7374_v52  ;;  %v7426_v52 = vld [vmem:[%s10579_s1 + $0x108] ss:$16 sps:$4 sm:$0xff]  }
 0x19b   :  { %5424 = vmatpush1.bf16.msra.mxu0 %v7375_v56  ;;  %v7437_v56 = vld [vmem:[%s10579_s1 + $0x4ec] ss:$16 sps:$4 sm:$0xff]  }
 0x19c   :  { %5391 = vmatpush1.bf16.msra.mxu1 %v7372_v55  ;;  %5425 = vmatprep.subr.bf16.mxu0 %v7383_v51  ;;  %v7434_v55 = vld [vmem:[%s10579_s1 + $0x36c] ss:$16 sps:$4 sm:$0xff]   ;;  %v7435_v51 = vld [vmem:[%s10579_s1 + $0x4e8] ss:$16 sps:$4 sm:$0xff]  }
 0x19d   :  { %5392 = vmatprep.subr.bf16.mxu1 %v7380_v59  ;;  %v7432_v59 = vld [vmem:[%s10579_s1 + $0x368] ss:$16 sps:$4 sm:$0xff]  }
 0x19f   :  { %5426 = vmatpush1.bf16.msra.mxu0 %v7381_v2  ;;  %v7443_v2 = vld [vmem:[%s10579_s1 + $0x4cc] ss:$16 sps:$4 sm:$0xff]  }
 0x1a0   :  { %5393 = vmatpush1.bf16.msra.mxu1 %v7378_v60  ;;  %5427 = vmatprep.subr.bf16.mxu0 %v7389_v57  ;;  %v7440_v60 = vld [vmem:[%s10579_s1 + $0x34c] ss:$16 sps:$4 sm:$0xff]   ;;  %v7441_v57 = vld [vmem:[%s10579_s1 + $0x4c8] ss:$16 sps:$4 sm:$0xff]  }
 0x1a1   :  { %5394 = vmatprep.subr.bf16.mxu1 %v7386_v3  ;;  %v7438_v3 = vld [vmem:[%s10579_s1 + $0x348] ss:$16 sps:$4 sm:$0xff]  }
 0x1a3   :  { %5428 = vmatpush1.bf16.msra.mxu0 %v7387_v5 }
 0x1a4   :  { %5395 = vmatpush2.bf16.msra.mxu1 %v7384_v58  ;;  %5429 = vmatprep.subr.bf16.mxu0 %v7395_v11 }
 0x1a5   :  { %5396 = vmatprep.subr.bf16.mxu1 %v7392_v8 }
 0x1a7   :  { %5430 = vmatpush1.bf16.msra.mxu0 %v7393_v13  ;;  %v7446_v13 = vld [vmem:[%s10579_s1 + $0x32c] ss:$16 sps:$4 sm:$0xff]  }
 0x1a8   :  { %5397 = vmatpush2.bf16.msra.mxu1 %v7390_v12  ;;  %5431 = vmatprep.subr.bf16.mxu0 %v7401_v15 }
 0x1a9   :  { %5398 = vmatprep.subr.bf16.mxu1 %v7398_v14  ;;  %v7449_v14 = vld [vmem:[%s10579_s1 + $0x4ac] ss:$16 sps:$4 sm:$0xff]  }
 0x1ab   :  { %5432 = vmatpush1.bf16.msra.mxu0 %v7399_v18 }
 0x1ac   :  { %5399 = vmatpush2.bf16.msra.mxu1 %v7396_v26  ;;  %5433 = vmatprep.subr.bf16.mxu0 %v7407_v27  ;;  %v7447_v26 = vld [vmem:[%s10579_s1 + $0x4a8] ss:$16 sps:$4 sm:$0xff]  }
 0x1ad   :  { %5400 = vmatprep.subr.bf16.mxu1 %v7404_v20 }
 0x1af   :  { %5434 = vmatpush1.bf16.msra.mxu0 %v7405_v28 }
 0x1b0   :  { %5401 = vmatpush2.bf16.msra.mxu1 %v7402_v29  ;;  %5435 = vmatprep.subr.bf16.mxu0 %v7413_v32  ;;  %v7453_v32 = vld [vmem:[%s10579_s1 + $0x488] ss:$16 sps:$4 sm:$0xff]  }
 0x1b1   :  { %5402 = vmatprep.subr.bf16.mxu1 %v7410_v30  ;;  %v7455_v30 = vld [vmem:[%s10579_s1 + $0x48c] ss:$16 sps:$4 sm:$0xff]  }
 0x1b3   :  { %5436 = vmatpush2.bf16.msra.mxu0 %v7411_v47  ;;  %v7461_v47 = vld [vmem:[%s10579_s1 + $0x6ec] ss:$16 sps:$4 sm:$0xff]  }
 0x1b4   :  { %5403 = vmatpush2.bf16.msra.mxu1 %v7408_v33  ;;  %5437 = vmatprep.subr.bf16.mxu0 %v7419_v41  ;;  %v7458_v33 = vld [vmem:[%s10579_s1 + $0x46c] ss:$16 sps:$4 sm:$0xff]   ;;  %v7459_v41 = vld [vmem:[%s10579_s1 + $0x6e8] ss:$16 sps:$4 sm:$0xff]  }
 0x1b5   :  { %5404 = vmatprep.subr.bf16.mxu1 %v7416_v34  ;;  %v7456_v34 = vld [vmem:[%s10579_s1 + $0x468] ss:$16 sps:$4 sm:$0xff]  }
 0x1b7   :  { %5438 = vmatpush2.bf16.msra.mxu0 %v7417_v23  ;;  %v7467_v23 = vld [vmem:[%s10579_s1 + $0x6cc] ss:$16 sps:$4 sm:$0xff]  }
 0x1b8   :  { %5405 = vmatpush2.bf16.msra.mxu1 %v7414_v22  ;;  %5439 = vmatprep.subr.bf16.mxu0 %v7425_v45  ;;  %v7464_v22 = vld [vmem:[%s10579_s1 + $0x44c] ss:$16 sps:$4 sm:$0xff]   ;;  %v7465_v45 = vld [vmem:[%s10579_s1 + $0x6c8] ss:$16 sps:$4 sm:$0xff]  }
 0x1b9   :  { %5406 = vmatprep.subr.bf16.mxu1 %v7422_v44  ;;  %v7462_v44 = vld [vmem:[%s10579_s1 + $0x448] ss:$16 sps:$4 sm:$0xff]  }
 0x1bb   :  { %5440 = vmatpush2.bf16.msra.mxu0 %v7423_v48  ;;  %v7468_v48 = vld [vmem:[%s10579_s1 + $0x428] ss:$16 sps:$4 sm:$0xff]  }
 0x1bc   :  { %5407 = vmatpush2.bf16.msra.mxu1 %v7420_v46  ;;  %5441 = vmatprep.subr.bf16.mxu0 %v7431_v50  ;;  %v7470_v46 = vld [vmem:[%s10579_s1 + $0x42c] ss:$16 sps:$4 sm:$0xff]  }
 0x1bd   :  { %5408 = vmatprep.subr.bf16.mxu1 %v7428_v49  ;;  %v7471_v49 = vld [vmem:[%s10579_s1 + $0x6a8] ss:$16 sps:$4 sm:$0xff]   ;;  %v7476_v50 = vld [vmem:[%s10579_s1 + $0x40c] ss:$16 sps:$4 sm:$0xff]  }
 0x1bf   :  { %5442 = vmatpush2.bf16.msra.mxu0 %v7429_v53  ;;  %v7477_v53 = vld [vmem:[%s10579_s1 + $0x688] ss:$16 sps:$4 sm:$0xff]  }
 0x1c0   :  { %5409 = vmatpush2.bf16.msra.mxu1 %v7426_v52  ;;  %5443 = vmatprep.subr.bf16.mxu0 %v7434_v55  ;;  %v7474_v52 = vld [vmem:[%s10579_s1 + $0x408] ss:$16 sps:$4 sm:$0xff]   ;;  %v7482_v55 = vld [vmem:[%s10579_s1 + $0x5ec] ss:$16 sps:$4 sm:$0xff]  }
 0x1c1   :  { %5460 = vmatprep.subr.bf16.mxu1 %v7437_v56  ;;  %v7485_v56 = vld [vmem:[%s10579_s1 + $0x66c] ss:$16 sps:$4 sm:$0xff]  }
 0x1c2   :  { %v5125_v58 = vpop.f32.mrf.mxu0 }
 0x1c3   :  { %v5166_v5 = vpop.f32.mrf.mxu1  ;;  %5411 = vmatmul.mubr.bf16.vlgmr.msra.gmra.mxu1 %v8169_v6  ;;  %v5126_v8 = vadd.f32 %v5125_v58, %v9327_v19  ;;  %5444 = vmatpush2.bf16.msra.mxu0 %v7432_v59  ;;  %v7444_v19 = vld [vmem:[%s10579_s1 + $0x328] ss:$16 sps:$4 sm:$0xff]   ;;  %v7494_v58 = vld [vmem:[%s10579_s1 + $0x5ac] ss:$16 sps:$4 sm:$0xff]  }
 0x1c4   :  { %5461 = vmatpush1.bf16.msra.mxu1 %v7435_v51  ;;  %v5127_v11 = vpop.f32.mrf.mxu0  ;;  %5445 = vmatprep.subr.bf16.mxu0 %v7440_v60  ;;  %v7480_v59 = vld [vmem:[%s10579_s1 + $0x5e8] ss:$16 sps:$4 sm:$0xff]   ;;  %v7488_v60 = vld [vmem:[%s10579_s1 + $0x5cc] ss:$16 sps:$4 sm:$0xff]  }
 0x1c5   :  { %v5168_v12 = vpop.f32.mrf.mxu1  ;;  %5462 = vmatprep.subr.bf16.mxu1 %v7443_v2  ;;  %v9533_v15 = vadd.f32 %v5166_v5, %v5126_v8  ;;  %v5128_v6 = vadd.f32 %v5127_v11, %v9338_v31  ;;  %5492 = vmatprep.mubr.bf16.mxu1 %v8265_v36  ;;  %v7452_v31 = vld [vmem:[%s10579_s1 + $0x30c] ss:$16 sps:$4 sm:$0xff]   ;;  %v7450_v36 = vld [vmem:[%s10579_s1 + $0x308] ss:$16 sps:$4 sm:$0xff]  }
 0x1c6   :  { %v5129_v18 = vpop.f32.mrf.mxu0  ;;  %v7483_v51 = vld [vmem:[%s10579_s1 + $0x668] ss:$16 sps:$4 sm:$0xff]   ;;  %v7491_v2 = vld [vmem:[%s10579_s1 + $0x64c] ss:$16 sps:$4 sm:$0xff]  }
 0x1c7   :  { %v5170_v20 = vpop.f32.mrf.mxu1  ;;  %v9543_v27 = vadd.f32 %v5168_v12, %v5128_v6  ;;  %5446 = vmatpush2.bf16.msra.mxu0 %v7438_v3  ;;  %v7486_v3 = vld [vmem:[%s10579_s1 + $0x5c8] ss:$16 sps:$4 sm:$0xff]   ;;  %v7497_v5 = vld [vmem:[%s10579_s1 + $0x62c] ss:$16 sps:$4 sm:$0xff]  }
 0x1c8   :  { %5463 = vmatpush1.bf16.msra.mxu1 %v7441_v57  ;;  %v5130_v29 = vpop.f32.mrf.mxu0  ;;  %5447 = vmatprep.subr.bf16.mxu0 %v7446_v13  ;;  %v7489_v57 = vld [vmem:[%s10579_s1 + $0x648] ss:$16 sps:$4 sm:$0xff]   ;;  %v7500_v12 = vld [vmem:[%s10579_s1 + $0x58c] ss:$16 sps:$4 sm:$0xff]  }
 0x1c9   :  { %v5171_v28 = vpop.f32.mrf.mxu1  ;;  %5464 = vmatprep.subr.bf16.mxu1 %v7449_v14  ;;  %v7492_v8 = vld [vmem:[%s10579_s1 + $0x5a8] ss:$16 sps:$4 sm:$0xff]   ;;  %v7503_v13 = vld [vmem:[%s10579_s1 + $0x60c] ss:$16 sps:$4 sm:$0xff]  }
 0x1ca   :  { %v7495_v11 = vld [vmem:[%s10579_s1 + $0x628] ss:$16 sps:$4 sm:$0xff]   ;;  %v7512_v29 = vld [vmem:[%s10579_s1 + $0x54c] ss:$16 sps:$4 sm:$0xff]  }
 0x1cb   :  { %5448 = vmatpush2.bf16.msra.mxu0 %v7444_v19  ;;  %v7498_v14 = vld [vmem:[%s10579_s1 + $0x588] ss:$16 sps:$4 sm:$0xff]   ;;  %v7506_v19 = vld [vmem:[%s10579_s1 + $0x56c] ss:$16 sps:$4 sm:$0xff]  }
 0x1cc   :  { %5465 = vmatpush1.bf16.msra.mxu1 %v7447_v26  ;;  %5449 = vmatprep.subr.bf16.mxu0 %v7452_v31  ;;  %v7501_v6 = vld [vmem:[%s10579_s1 + $0x608] ss:$16 sps:$4 sm:$0xff]   ;;  %v7509_v26 = vld [vmem:[%s10579_s1 + $0x7ec] ss:$16 sps:$4 sm:$0xff]  }
 0x1cd   :  { %5466 = vmatprep.subr.bf16.mxu1 %v7455_v30  ;;  %v7504_v18 = vld [vmem:[%s10579_s1 + $0x568] ss:$16 sps:$4 sm:$0xff]   ;;  %v7515_v28 = vld [vmem:[%s10579_s1 + $0x7cc] ss:$16 sps:$4 sm:$0xff]  }
 0x1ce   :  { %v7507_v20 = vld [vmem:[%s10579_s1 + $0x7e8] ss:$16 sps:$4 sm:$0xff]  }
 0x1cf   :  { %5450 = vmatpush2.bf16.msra.mxu0 %v7450_v36  ;;  %v7510_v31 = vld [vmem:[%s10579_s1 + $0x548] ss:$16 sps:$4 sm:$0xff]   ;;  %v7518_v36 = vld [vmem:[%s10579_s1 + $0x52c] ss:$16 sps:$4 sm:$0xff]  }
 0x1d0   :  { %5467 = vmatpush1.bf16.msra.mxu1 %v7453_v32  ;;  %5501 = vmatprep.subr.bf16.mxu0 %v7461_v47  ;;  %v7513_v30 = vld [vmem:[%s10579_s1 + $0x7c8] ss:$16 sps:$4 sm:$0xff]   ;;  %v7521_v32 = vld [vmem:[%s10579_s1 + $0x7ac] ss:$16 sps:$4 sm:$0xff]  }
 0x1d1   :  { %5468 = vmatprep.subr.bf16.mxu1 %v7458_v33  ;;  %v7516_v33 = vld [vmem:[%s10579_s1 + $0x528] ss:$16 sps:$4 sm:$0xff]  }
 0x1d2   :  { %5452 = vmatmul.mubr.bf16.vlgmr.msra.gmra.mxu0 %v8171_v7  ;;  %v7473_v7 = vld [vmem:[%s10579_s1 + $0x6ac] ss:$16 sps:$4 sm:$0xff]   ;;  %v7519_v47 = vld [vmem:[%s10579_s1 + $0x7a8] ss:$16 sps:$4 sm:$0xff]  }
 0x1d3   :  { %5502 = vmatpush1.bf16.msra.mxu0 %v7459_v41  ;;  %5533 = vmatprep.mubr.bf16.mxu0 %v8269_v37  ;;  %v7479_v37 = vld [vmem:[%s10579_s1 + $0x68c] ss:$16 sps:$4 sm:$0xff]  }
 0x1d4   :  { %5469 = vmatpush1.bf16.msra.mxu1 %v7456_v34  ;;  %5503 = vmatprep.subr.bf16.mxu0 %v7467_v23  ;;  %v7524_v34 = vld [vmem:[%s10579_s1 + $0x50c] ss:$16 sps:$4 sm:$0xff]   ;;  %v7525_v23 = vld [vmem:[%s10579_s1 + $0x788] ss:$16 sps:$4 sm:$0xff]  }
 0x1d5   :  { %5470 = vmatprep.subr.bf16.mxu1 %v7464_v22  ;;  %v7527_v41 = vld [vmem:[%s10579_s1 + $0x78c] ss:$16 sps:$4 sm:$0xff]   ;;  %v7522_v22 = vld [vmem:[%s10579_s1 + $0x508] ss:$16 sps:$4 sm:$0xff]  }
 0x1d7   :  { %5504 = vmatpush1.bf16.msra.mxu0 %v7465_v45  ;;  %v7533_v45 = vld [vmem:[%s10579_s1 + $0x8ec] ss:$16 sps:$4 sm:$0xff]  }
 0x1d8   :  { %5471 = vmatpush1.bf16.msra.mxu1 %v7462_v44  ;;  %5505 = vmatprep.subr.bf16.mxu0 %v7473_v7  ;;  %v7530_v44 = vld [vmem:[%s10579_s1 + $0x76c] ss:$16 sps:$4 sm:$0xff]   ;;  %v7531_v7 = vld [vmem:[%s10579_s1 + $0x8e8] ss:$16 sps:$4 sm:$0xff]  }
 0x1d9   :  { %5472 = vmatprep.subr.bf16.mxu1 %v7470_v46  ;;  %v7528_v46 = vld [vmem:[%s10579_s1 + $0x768] ss:$16 sps:$4 sm:$0xff]  }
 0x1db   :  { %5506 = vmatpush1.bf16.msra.mxu0 %v7471_v49  ;;  %v7539_v49 = vld [vmem:[%s10579_s1 + $0x8cc] ss:$16 sps:$4 sm:$0xff]  }
 0x1dc   :  { %5473 = vmatpush1.bf16.msra.mxu1 %v7468_v48  ;;  %5507 = vmatprep.subr.bf16.mxu0 %v7479_v37  ;;  %v7536_v48 = vld [vmem:[%s10579_s1 + $0x74c] ss:$16 sps:$4 sm:$0xff]  }
 0x1dd   :  { %5474 = vmatprep.subr.bf16.mxu1 %v7476_v50 }
 0x1df   :  { %5508 = vmatpush1.bf16.msra.mxu0 %v7477_v53  ;;  %v7534_v53 = vld [vmem:[%s10579_s1 + $0x748] ss:$16 sps:$4 sm:$0xff]  }
 0x1e0   :  { %5475 = vmatpush1.bf16.msra.mxu1 %v7474_v52  ;;  %5509 = vmatprep.subr.bf16.mxu0 %v7485_v56 }
 0x1e1   :  { %5476 = vmatprep.subr.bf16.mxu1 %v7482_v55  ;;  %v7537_v55 = vld [vmem:[%s10579_s1 + $0x8c8] ss:$16 sps:$4 sm:$0xff]  }
 0x1e3   :  { %5510 = vmatpush1.bf16.msra.mxu0 %v7483_v51 }
 0x1e4   :  { %5477 = vmatpush2.bf16.msra.mxu1 %v7480_v59  ;;  %5511 = vmatprep.subr.bf16.mxu0 %v7491_v2 }
 0x1e5   :  { %5478 = vmatprep.subr.bf16.mxu1 %v7488_v60 }
 0x1e7   :  { %5512 = vmatpush1.bf16.msra.mxu0 %v7489_v57 }
 0x1e8   :  { %5479 = vmatpush2.bf16.msra.mxu1 %v7486_v3  ;;  %5513 = vmatprep.subr.bf16.mxu0 %v7497_v5  ;;  %v7543_v5 = vld [vmem:[%s10579_s1 + $0x8a8] ss:$16 sps:$4 sm:$0xff]  }
 0x1e9   :  { %5480 = vmatprep.subr.bf16.mxu1 %v7494_v58  ;;  %v7540_v58 = vld [vmem:[%s10579_s1 + $0x728] ss:$16 sps:$4 sm:$0xff]  }
 0x1eb   :  { %5514 = vmatpush1.bf16.msra.mxu0 %v7495_v11 }
 0x1ec   :  { %5481 = vmatpush2.bf16.msra.mxu1 %v7492_v8  ;;  %5515 = vmatprep.subr.bf16.mxu0 %v7503_v13  ;;  %v7549_v13 = vld [vmem:[%s10579_s1 + $0x888] ss:$16 sps:$4 sm:$0xff]  }
 0x1ed   :  { %5482 = vmatprep.subr.bf16.mxu1 %v7500_v12  ;;  %v7546_v12 = vld [vmem:[%s10579_s1 + $0x708] ss:$16 sps:$4 sm:$0xff]  }
 0x1ef   :  { %5516 = vmatpush1.bf16.msra.mxu0 %v7501_v6  ;;  %v7557_v6 = vld [vmem:[%s10579_s1 + $0xaec] ss:$16 sps:$4 sm:$0xff]  }
 0x1f0   :  { %5483 = vmatpush2.bf16.msra.mxu1 %v7498_v14  ;;  %5517 = vmatprep.subr.bf16.mxu0 %v7509_v26  ;;  %v7554_v14 = vld [vmem:[%s10579_s1 + $0x86c] ss:$16 sps:$4 sm:$0xff]   ;;  %v7555_v26 = vld [vmem:[%s10579_s1 + $0xae8] ss:$16 sps:$4 sm:$0xff]  }
 0x1f1   :  { %5484 = vmatprep.subr.bf16.mxu1 %v7506_v19  ;;  %v7552_v19 = vld [vmem:[%s10579_s1 + $0x868] ss:$16 sps:$4 sm:$0xff]  }
 0x1f3   :  { %5518 = vmatpush2.bf16.msra.mxu0 %v7507_v20  ;;  %v7563_v20 = vld [vmem:[%s10579_s1 + $0xacc] ss:$16 sps:$4 sm:$0xff]  }
 0x1f4   :  { %5485 = vmatpush2.bf16.msra.mxu1 %v7504_v18  ;;  %5519 = vmatprep.subr.bf16.mxu0 %v7515_v28  ;;  %v7560_v18 = vld [vmem:[%s10579_s1 + $0x84c] ss:$16 sps:$4 sm:$0xff]   ;;  %v7561_v28 = vld [vmem:[%s10579_s1 + $0xac8] ss:$16 sps:$4 sm:$0xff]  }
 0x1f5   :  { %5486 = vmatprep.subr.bf16.mxu1 %v7512_v29  ;;  %v7558_v29 = vld [vmem:[%s10579_s1 + $0x848] ss:$16 sps:$4 sm:$0xff]  }
 0x1f7   :  { %5520 = vmatpush2.bf16.msra.mxu0 %v7513_v30  ;;  %v7564_v30 = vld [vmem:[%s10579_s1 + $0x828] ss:$16 sps:$4 sm:$0xff]  }
 0x1f8   :  { %5487 = vmatpush2.bf16.msra.mxu1 %v7510_v31  ;;  %5521 = vmatprep.subr.bf16.mxu0 %v7521_v32  ;;  %v7566_v31 = vld [vmem:[%s10579_s1 + $0x82c] ss:$16 sps:$4 sm:$0xff]  }
 0x1f9   :  { %5488 = vmatprep.subr.bf16.mxu1 %v7518_v36  ;;  %v7567_v36 = vld [vmem:[%s10579_s1 + $0xaa8] ss:$16 sps:$4 sm:$0xff]   ;;  %v7572_v32 = vld [vmem:[%s10579_s1 + $0x80c] ss:$16 sps:$4 sm:$0xff]  }
 0x1fb   :  { %5522 = vmatpush2.bf16.msra.mxu0 %v7519_v47  ;;  %v7573_v47 = vld [vmem:[%s10579_s1 + $0xa88] ss:$16 sps:$4 sm:$0xff]  }
 0x1fc   :  { %5489 = vmatpush2.bf16.msra.mxu1 %v7516_v33  ;;  %5523 = vmatprep.subr.bf16.mxu0 %v7527_v41  ;;  %v7570_v33 = vld [vmem:[%s10579_s1 + $0x808] ss:$16 sps:$4 sm:$0xff]   ;;  %v7581_v41 = vld [vmem:[%s10579_s1 + $0xa6c] ss:$16 sps:$4 sm:$0xff]  }
 0x1fd   :  { %5490 = vmatprep.subr.bf16.mxu1 %v7524_v34  ;;  %v7578_v34 = vld [vmem:[%s10579_s1 + $0x9ec] ss:$16 sps:$4 sm:$0xff]  }
 0x1ff   :  { %5524 = vmatpush2.bf16.msra.mxu0 %v7525_v23  ;;  %v7579_v23 = vld [vmem:[%s10579_s1 + $0xa68] ss:$16 sps:$4 sm:$0xff]  }
 0x200   :  { %5491 = vmatpush2.bf16.msra.mxu1 %v7522_v22  ;;  %5525 = vmatprep.subr.bf16.mxu0 %v7530_v44  ;;  %v7576_v22 = vld [vmem:[%s10579_s1 + $0x9e8] ss:$16 sps:$4 sm:$0xff]   ;;  %v7584_v44 = vld [vmem:[%s10579_s1 + $0x9cc] ss:$16 sps:$4 sm:$0xff]  }
 0x201   :  { %5542 = vmatprep.subr.bf16.mxu1 %v7533_v45  ;;  %v7587_v45 = vld [vmem:[%s10579_s1 + $0xa4c] ss:$16 sps:$4 sm:$0xff]  }
 0x202   :  { %v5207_v50 = vpop.f32.mrf.mxu0 }
 0x203   :  { %v5248_v37 = vpop.f32.mrf.mxu1  ;;  %5493 = vmatmul.mubr.bf16.vlgmr.msra.gmra.mxu1 %v8389_v16  ;;  %v5208_v52 = vadd.f32 %v5207_v50, %v9533_v15  ;;  %5526 = vmatpush2.bf16.msra.mxu0 %v7528_v46  ;;  %v7542_v16 = vld [vmem:[%s10579_s1 + $0x72c] ss:$16 sps:$4 sm:$0xff]   ;;  %v7582_v46 = vld [vmem:[%s10579_s1 + $0x9c8] ss:$16 sps:$4 sm:$0xff]  }
 0x204   :  { %5543 = vmatpush1.bf16.msra.mxu1 %v7531_v7  ;;  %v5209_v56 = vpop.f32.mrf.mxu0  ;;  %5527 = vmatprep.subr.bf16.mxu0 %v7536_v48  ;;  %v7545_v15 = vld [vmem:[%s10579_s1 + $0x8ac] ss:$16 sps:$4 sm:$0xff]   ;;  %v7585_v7 = vld [vmem:[%s10579_s1 + $0xa48] ss:$16 sps:$4 sm:$0xff]  }
 0x205   :  { %v5250_v59 = vpop.f32.mrf.mxu1  ;;  %5544 = vmatprep.subr.bf16.mxu1 %v7539_v49  ;;  %v9735_v51 = vadd.f32 %v5248_v37, %v5208_v52  ;;  %v5210_v60 = vadd.f32 %v5209_v56, %v9543_v27  ;;  %5574 = vmatprep.mubr.bf16.mxu1 %v8419_v24  ;;  %v7548_v24 = vld [vmem:[%s10579_s1 + $0x70c] ss:$16 sps:$4 sm:$0xff]   ;;  %v7588_v50 = vld [vmem:[%s10579_s1 + $0x9a8] ss:$16 sps:$4 sm:$0xff]  }
 0x206   :  { %v5211_v2 = vpop.f32.mrf.mxu0  ;;  %v7551_v27 = vld [vmem:[%s10579_s1 + $0x88c] ss:$16 sps:$4 sm:$0xff]   ;;  %v7591_v37 = vld [vmem:[%s10579_s1 + $0xa28] ss:$16 sps:$4 sm:$0xff]  }
 0x207   :  { %v5252_v3 = vpop.f32.mrf.mxu1  ;;  %v9739_v57 = vadd.f32 %v5250_v59, %v5210_v60  ;;  %5528 = vmatpush2.bf16.msra.mxu0 %v7534_v53  ;;  %v7590_v48 = vld [vmem:[%s10579_s1 + $0x9ac] ss:$16 sps:$4 sm:$0xff]   ;;  %v7597_v56 = vld [vmem:[%s10579_s1 + $0xa08] ss:$16 sps:$4 sm:$0xff]  }
 0x208   :  { %5545 = vmatpush1.bf16.msra.mxu1 %v7537_v55  ;;  %v5212_v8 = vpop.f32.mrf.mxu0  ;;  %5529 = vmatprep.subr.bf16.mxu0 %v7542_v16  ;;  %v7593_v49 = vld [vmem:[%s10579_s1 + $0xa2c] ss:$16 sps:$4 sm:$0xff]   ;;  %v7594_v55 = vld [vmem:[%s10579_s1 + $0x988] ss:$16 sps:$4 sm:$0xff]  }
 0x209   :  { %v5253_v11 = vpop.f32.mrf.mxu1  ;;  %5546 = vmatprep.subr.bf16.mxu1 %v7545_v15  ;;  %v7596_v52 = vld [vmem:[%s10579_s1 + $0x98c] ss:$16 sps:$4 sm:$0xff]   ;;  %v7600_v15 = vld [vmem:[%s10579_s1 + $0x968] ss:$16 sps:$4 sm:$0xff]  }
 0x20a   :  { %v7599_v53 = vld [vmem:[%s10579_s1 + $0xa0c] ss:$16 sps:$4 sm:$0xff]   ;;  %v7603_v60 = vld [vmem:[%s10579_s1 + $0xbe8] ss:$16 sps:$4 sm:$0xff]  }
 0x20b   :  { %5530 = vmatpush2.bf16.msra.mxu0 %v7540_v58  ;;  %v7602_v59 = vld [vmem:[%s10579_s1 + $0x96c] ss:$16 sps:$4 sm:$0xff]   ;;  %v7606_v58 = vld [vmem:[%s10579_s1 + $0x948] ss:$16 sps:$4 sm:$0xff]  }
 0x20c   :  { %5547 = vmatpush1.bf16.msra.mxu1 %v7543_v5  ;;  %5531 = vmatprep.subr.bf16.mxu0 %v7548_v24  ;;  %v7605_v16 = vld [vmem:[%s10579_s1 + $0xbec] ss:$16 sps:$4 sm:$0xff]   ;;  %v7609_v5 = vld [vmem:[%s10579_s1 + $0xbc8] ss:$16 sps:$4 sm:$0xff]  }
 0x20d   :  { %5548 = vmatprep.subr.bf16.mxu1 %v7551_v27  ;;  %v7608_v2 = vld [vmem:[%s10579_s1 + $0x94c] ss:$16 sps:$4 sm:$0xff]   ;;  %v7612_v24 = vld [vmem:[%s10579_s1 + $0x928] ss:$16 sps:$4 sm:$0xff]  }
 0x20e   :  { %v7611_v3 = vld [vmem:[%s10579_s1 + $0xbcc] ss:$16 sps:$4 sm:$0xff]   ;;  %v7615_v27 = vld [vmem:[%s10579_s1 + $0xba8] ss:$16 sps:$4 sm:$0xff]  }
 0x20f   :  { %5532 = vmatpush2.bf16.msra.mxu0 %v7546_v12  ;;  %v7614_v8 = vld [vmem:[%s10579_s1 + $0x92c] ss:$16 sps:$4 sm:$0xff]  }
 0x210   :  { %5549 = vmatpush1.bf16.msra.mxu1 %v7549_v13  ;;  %5583 = vmatprep.subr.bf16.mxu0 %v7557_v6  ;;  %v7617_v11 = vld [vmem:[%s10579_s1 + $0xbac] ss:$16 sps:$4 sm:$0xff]   ;;  %v7621_v6 = vld [vmem:[%s10579_s1 + $0xb88] ss:$16 sps:$4 sm:$0xff]  }
 0x211   :  { %5550 = vmatprep.subr.bf16.mxu1 %v7554_v14  ;;  %v7620_v12 = vld [vmem:[%s10579_s1 + $0x90c] ss:$16 sps:$4 sm:$0xff]   ;;  %v7618_v14 = vld [vmem:[%s10579_s1 + $0x908] ss:$16 sps:$4 sm:$0xff]  }
 0x212   :  { %5534 = vmatmul.mubr.bf16.vlgmr.msra.gmra.mxu0 %v8393_v17  ;;  %v7569_v17 = vld [vmem:[%s10579_s1 + $0xaac] ss:$16 sps:$4 sm:$0xff]  }
 0x213   :  { %5584 = vmatpush1.bf16.msra.mxu0 %v7555_v26  ;;  %5615 = vmatprep.mubr.bf16.mxu0 %v8423_v25  ;;  %v7575_v25 = vld [vmem:[%s10579_s1 + $0xa8c] ss:$16 sps:$4 sm:$0xff]  }
 0x214   :  { %5551 = vmatpush1.bf16.msra.mxu1 %v7552_v19  ;;  %5585 = vmatprep.subr.bf16.mxu0 %v7563_v20  ;;  %v7623_v13 = vld [vmem:[%s10579_s1 + $0xb8c] ss:$16 sps:$4 sm:$0xff]   ;;  %v7627_v20 = vld [vmem:[%s10579_s1 + $0xce8] ss:$16 sps:$4 sm:$0xff]  }
 0x215   :  { %5552 = vmatprep.subr.bf16.mxu1 %v7560_v18  ;;  %v7626_v19 = vld [vmem:[%s10579_s1 + $0xb6c] ss:$16 sps:$4 sm:$0xff]   ;;  %v7624_v18 = vld [vmem:[%s10579_s1 + $0xb68] ss:$16 sps:$4 sm:$0xff]  }
 0x216   :  { %v7629_v26 = vld [vmem:[%s10579_s1 + $0xcec] ss:$16 sps:$4 sm:$0xff]  }
 0x217   :  { %5586 = vmatpush1.bf16.msra.mxu0 %v7561_v28  ;;  %v7635_v28 = vld [vmem:[%s10579_s1 + $0xccc] ss:$16 sps:$4 sm:$0xff]  }
 0x218   :  { %5553 = vmatpush1.bf16.msra.mxu1 %v7558_v29  ;;  %5587 = vmatprep.subr.bf16.mxu0 %v7569_v17  ;;  %v7632_v29 = vld [vmem:[%s10579_s1 + $0xb4c] ss:$16 sps:$4 sm:$0xff]  }
 0x219   :  { %5554 = vmatprep.subr.bf16.mxu1 %v7566_v31 }
 0x21b   :  { %5588 = vmatpush1.bf16.msra.mxu0 %v7567_v36  ;;  %v7633_v36 = vld [vmem:[%s10579_s1 + $0xcc8] ss:$16 sps:$4 sm:$0xff]  }
 0x21c   :  { %5555 = vmatpush1.bf16.msra.mxu1 %v7564_v30  ;;  %5589 = vmatprep.subr.bf16.mxu0 %v7575_v25  ;;  %v7630_v30 = vld [vmem:[%s10579_s1 + $0xb48] ss:$16 sps:$4 sm:$0xff]  }
 0x21d   :  { %5556 = vmatprep.subr.bf16.mxu1 %v7572_v32 }
 0x21f   :  { %5590 = vmatpush1.bf16.msra.mxu0 %v7573_v47 }
 0x220   :  { %5557 = vmatpush1.bf16.msra.mxu1 %v7570_v33  ;;  %5591 = vmatprep.subr.bf16.mxu0 %v7581_v41  ;;  %v7638_v33 = vld [vmem:[%s10579_s1 + $0xb2c] ss:$16 sps:$4 sm:$0xff]   ;;  %v7636_v41 = vld [vmem:[%s10579_s1 + $0xb28] ss:$16 sps:$4 sm:$0xff]  }
 0x221   :  { %5558 = vmatprep.subr.bf16.mxu1 %v7578_v34 }
 0x223   :  { %5592 = vmatpush1.bf16.msra.mxu0 %v7579_v23 }
 0x224   :  { %5559 = vmatpush2.bf16.msra.mxu1 %v7576_v22  ;;  %5593 = vmatprep.subr.bf16.mxu0 %v7587_v45  ;;  %v7639_v22 = vld [vmem:[%s10579_s1 + $0xca8] ss:$16 sps:$4 sm:$0xff]   ;;  %v7647_v45 = vld [vmem:[%s10579_s1 + $0xc8c] ss:$16 sps:$4 sm:$0xff]  }
 0x225   :  { %5560 = vmatprep.subr.bf16.mxu1 %v7584_v44 }
 0x227   :  { %5594 = vmatpush1.bf16.msra.mxu0 %v7585_v7  ;;  %v7645_v7 = vld [vmem:[%s10579_s1 + $0xc88] ss:$16 sps:$4 sm:$0xff]  }
 0x228   :  { %5561 = vmatpush2.bf16.msra.mxu1 %v7582_v46  ;;  %5595 = vmatprep.subr.bf16.mxu0 %v7593_v49  ;;  %v7642_v46 = vld [vmem:[%s10579_s1 + $0xb08] ss:$16 sps:$4 sm:$0xff]   ;;  %v7653_v49 = vld [vmem:[%s10579_s1 + $0xeec] ss:$16 sps:$4 sm:$0xff]  }
 0x229   :  { %5562 = vmatprep.subr.bf16.mxu1 %v7590_v48  ;;  %v7650_v48 = vld [vmem:[%s10579_s1 + $0xc6c] ss:$16 sps:$4 sm:$0xff]  }
 0x22b   :  { %5596 = vmatpush1.bf16.msra.mxu0 %v7591_v37 }
 0x22c   :  { %5563 = vmatpush2.bf16.msra.mxu1 %v7588_v50  ;;  %5597 = vmatprep.subr.bf16.mxu0 %v7599_v53  ;;  %v7651_v53 = vld [vmem:[%s10579_s1 + $0xee8] ss:$16 sps:$4 sm:$0xff]  }
 0x22d   :  { %5564 = vmatprep.subr.bf16.mxu1 %v7596_v52  ;;  %v7648_v52 = vld [vmem:[%s10579_s1 + $0xc68] ss:$16 sps:$4 sm:$0xff]  }
 0x22f   :  { %5598 = vmatpush1.bf16.msra.mxu0 %v7597_v56 }
 0x230   :  { %5565 = vmatpush2.bf16.msra.mxu1 %v7594_v55  ;;  %5599 = vmatprep.subr.bf16.mxu0 %v7605_v16  ;;  %v7656_v55 = vld [vmem:[%s10579_s1 + $0xc4c] ss:$16 sps:$4 sm:$0xff]  }
 0x231   :  { %5566 = vmatprep.subr.bf16.mxu1 %v7602_v59 }
 0x233   :  { %5600 = vmatpush2.bf16.msra.mxu0 %v7603_v60  ;;  %v7657_v60 = vld [vmem:[%s10579_s1 + $0xec8] ss:$16 sps:$4 sm:$0xff]  }
 0x234   :  { %5567 = vmatpush2.bf16.msra.mxu1 %v7600_v15  ;;  %5601 = vmatprep.subr.bf16.mxu0 %v7611_v3  ;;  %v7654_v15 = vld [vmem:[%s10579_s1 + $0xc48] ss:$16 sps:$4 sm:$0xff]   ;;  %v7662_v3 = vld [vmem:[%s10579_s1 + $0xc2c] ss:$16 sps:$4 sm:$0xff]  }
 0x235   :  { %5568 = vmatprep.subr.bf16.mxu1 %v7608_v2 }
 0x237   :  { %5602 = vmatpush2.bf16.msra.mxu0 %v7609_v5 }
 0x238   :  { %5569 = vmatpush2.bf16.msra.mxu1 %v7606_v58  ;;  %5603 = vmatprep.subr.bf16.mxu0 %v7617_v11 }
 0x239   :  { %5570 = vmatprep.subr.bf16.mxu1 %v7614_v8 }
 0x23b   :  { %5604 = vmatpush2.bf16.msra.mxu0 %v7615_v27  ;;  %v7663_v27 = vld [vmem:[%s10579_s1 + $0xea8] ss:$16 sps:$4 sm:$0xff]  }
 0x23c   :  { %5571 = vmatpush2.bf16.msra.mxu1 %v7612_v24  ;;  %5605 = vmatprep.subr.bf16.mxu0 %v7623_v13  ;;  %v7660_v24 = vld [vmem:[%s10579_s1 + $0xc28] ss:$16 sps:$4 sm:$0xff]   ;;  %v7671_v13 = vld [vmem:[%s10579_s1 + $0xe8c] ss:$16 sps:$4 sm:$0xff]  }
 0x23d   :  { %5572 = vmatprep.subr.bf16.mxu1 %v7620_v12 }
 0x23f   :  { %5606 = vmatpush2.bf16.msra.mxu0 %v7621_v6  ;;  %v7669_v6 = vld [vmem:[%s10579_s1 + $0xe88] ss:$16 sps:$4 sm:$0xff]  }
 0x240   :  { %5573 = vmatpush2.bf16.msra.mxu1 %v7618_v14  ;;  %5607 = vmatprep.subr.bf16.mxu0 %v7626_v19  ;;  %v7666_v14 = vld [vmem:[%s10579_s1 + $0xc08] ss:$16 sps:$4 sm:$0xff]   ;;  %v7674_v19 = vld [vmem:[%s10579_s1 + $0xdec] ss:$16 sps:$4 sm:$0xff]  }
 0x241   :  { %5624 = vmatprep.subr.bf16.mxu1 %v7629_v26  ;;  %v7677_v26 = vld [vmem:[%s10579_s1 + $0xe6c] ss:$16 sps:$4 sm:$0xff]  }
 0x242   :  { %v5289_v31 = vpop.f32.mrf.mxu0 }
 0x243   :  { %v5330_v17 = vpop.f32.mrf.mxu1  ;;  %5575 = vmatmul.mubr.bf16.vlgmr.msra.gmra.mxu1 %v8619_v38  ;;  %5608 = vmatpush2.bf16.msra.mxu0 %v7624_v18  ;;  %v7641_v38 = vld [vmem:[%s10579_s1 + $0xcac] ss:$16 sps:$4 sm:$0xff]   ;;  %v5290_v50 = vadd.f32 %v5289_v31, %v9735_v51  ;;  %v7672_v18 = vld [vmem:[%s10579_s1 + $0xde8] ss:$16 sps:$4 sm:$0xff]  }
 0x244   :  { %5625 = vmatpush1.bf16.msra.mxu1 %v7627_v20  ;;  %v5291_v32 = vpop.f32.mrf.mxu0  ;;  %5609 = vmatprep.subr.bf16.mxu0 %v7632_v29  ;;  %v7659_v51 = vld [vmem:[%s10579_s1 + $0xecc] ss:$16 sps:$4 sm:$0xff]   ;;  %v7675_v20 = vld [vmem:[%s10579_s1 + $0xe68] ss:$16 sps:$4 sm:$0xff]  }
 0x245   :  { %v5332_v25 = vpop.f32.mrf.mxu1  ;;  %5626 = vmatprep.subr.bf16.mxu1 %v7635_v28  ;;  %5656 = vmatprep.mubr.bf16.mxu1 %v8641_v42  ;;  %v7644_v42 = vld [vmem:[%s10579_s1 + $0xb0c] ss:$16 sps:$4 sm:$0xff]   ;;  %v5292_v37 = vadd.f32 %v5291_v32, %v9739_v57  ;;  %v5331_v57 = vadd.f32 %v5330_v17, %v5290_v50  ;;  %v7678_v31 = vld [vmem:[%s10579_s1 + $0xdc8] ss:$16 sps:$4 sm:$0xff]  }
 0x246   :  { %v5293_v47 = vpop.f32.mrf.mxu0  ;;  %v7680_v29 = vld [vmem:[%s10579_s1 + $0xdcc] ss:$16 sps:$4 sm:$0xff]   ;;  %v7681_v17 = vld [vmem:[%s10579_s1 + $0xe48] ss:$16 sps:$4 sm:$0xff]  }
 0x247   :  { %v5334_v34 = vpop.f32.mrf.mxu1  ;;  %5610 = vmatpush2.bf16.msra.mxu0 %v7630_v30  ;;  %v5333_v59 = vadd.f32 %v5332_v25, %v5292_v37  ;;  %v7683_v28 = vld [vmem:[%s10579_s1 + $0xe4c] ss:$16 sps:$4 sm:$0xff]   ;;  %v7684_v32 = vld [vmem:[%s10579_s1 + $0xda8] ss:$16 sps:$4 sm:$0xff]  }
 0x248   :  { %5627 = vmatpush1.bf16.msra.mxu1 %v7633_v36  ;;  %v5294_v23 = vpop.f32.mrf.mxu0  ;;  %5611 = vmatprep.subr.bf16.mxu0 %v7638_v33  ;;  %v7686_v30 = vld [vmem:[%s10579_s1 + $0xdac] ss:$16 sps:$4 sm:$0xff]   ;;  %v7687_v25 = vld [vmem:[%s10579_s1 + $0xe28] ss:$16 sps:$4 sm:$0xff]  }
 0x249   :  { %v5335_v44 = vpop.f32.mrf.mxu1  ;;  %5628 = vmatprep.subr.bf16.mxu1 %v7641_v38  ;;  %v7689_v36 = vld [vmem:[%s10579_s1 + $0xe2c] ss:$16 sps:$4 sm:$0xff]   ;;  %v7690_v47 = vld [vmem:[%s10579_s1 + $0xd88] ss:$16 sps:$4 sm:$0xff]  }
 0x24a   :  { %v7692_v33 = vld [vmem:[%s10579_s1 + $0xd8c] ss:$16 sps:$4 sm:$0xff]   ;;  %v7693_v34 = vld [vmem:[%s10579_s1 + $0xe08] ss:$16 sps:$4 sm:$0xff]  }
 0x24b   :  { %5612 = vmatpush2.bf16.msra.mxu0 %v7636_v41  ;;  %v7695_v38 = vld [vmem:[%s10579_s1 + $0xe0c] ss:$16 sps:$4 sm:$0xff]   ;;  %v7696_v23 = vld [vmem:[%s10579_s1 + $0xd68] ss:$16 sps:$4 sm:$0xff]  }
 0x24c   :  { %5629 = vmatpush1.bf16.msra.mxu1 %v7639_v22  ;;  %5613 = vmatprep.subr.bf16.mxu0 %v7644_v42  ;;  %v7698_v41 = vld [vmem:[%s10579_s1 + $0xd6c] ss:$16 sps:$4 sm:$0xff]   ;;  %v7699_v44 = vld [vmem:[%s10579_s1 + $0xfe8] ss:$16 sps:$4 sm:$0xff]  }
 0x24d   :  { %5630 = vmatprep.subr.bf16.mxu1 %v7647_v45  ;;  %v7701_v22 = vld [vmem:[%s10579_s1 + $0xfec] ss:$16 sps:$4 sm:$0xff]   ;;  %v7708_v50 = vld [vmem:[%s10579_s1 + $0xd28] ss:$16 sps:$4 sm:$0xff]  }
 0x24e   :  { %v7704_v42 = vld [vmem:[%s10579_s1 + $0xd4c] ss:$16 sps:$4 sm:$0xff]   ;;  %v7711_v37 = vld [vmem:[%s10579_s1 + $0xfa8] ss:$16 sps:$4 sm:$0xff]  }
 0x24f   :  { %5614 = vmatpush2.bf16.msra.mxu0 %v7642_v46  ;;  %v7707_v45 = vld [vmem:[%s10579_s1 + $0xfcc] ss:$16 sps:$4 sm:$0xff]   ;;  %v7702_v46 = vld [vmem:[%s10579_s1 + $0xd48] ss:$16 sps:$4 sm:$0xff]  }
 0x250   :  { %5631 = vmatpush1.bf16.msra.mxu1 %v7645_v7  ;;  %5665 = vmatprep.subr.bf16.mxu0 %v7653_v49  ;;  %v7705_v7 = vld [vmem:[%s10579_s1 + $0xfc8] ss:$16 sps:$4 sm:$0xff]   ;;  %v7713_v49 = vld [vmem:[%s10579_s1 + $0xfac] ss:$16 sps:$4 sm:$0xff]  }
 0x251   :  { %5632 = vmatprep.subr.bf16.mxu1 %v7650_v48  ;;  %v7710_v48 = vld [vmem:[%s10579_s1 + $0xd2c] ss:$16 sps:$4 sm:$0xff]  }
 0x252   :  { %v5371_v56 = vpop.f32.mrf.mxu0  ;;  %5616 = vmatmul.mubr.bf16.vlgmr.msra.gmra.mxu0 %v8623_v39  ;;  %v7665_v39 = vld [vmem:[%s10579_s1 + $0xeac] ss:$16 sps:$4 sm:$0xff]  }
 0x253   :  { %v5372_v16 = vadd.f32 %v5371_v56, %v5331_v57  ;;  %5666 = vmatpush1.bf16.msra.mxu0 %v7651_v53  ;;  %5697 = vmatprep.mubr.bf16.mxu0 %v8645_v43  ;;  %v7668_v43 = vld [vmem:[%s10579_s1 + $0xc0c] ss:$16 sps:$4 sm:$0xff]  }
 0x254   :  { %5633 = vmatpush1.bf16.msra.mxu1 %v7648_v52  ;;  %v5373_v2 = vpop.f32.mrf.mxu0  ;;  %5667 = vmatprep.subr.bf16.mxu0 %v7659_v51  ;;  %v7716_v52 = vld [vmem:[%s10579_s1 + $0xd0c] ss:$16 sps:$4 sm:$0xff]   ;;  %v7717_v51 = vld [vmem:[%s10579_s1 + $0xf88] ss:$16 sps:$4 sm:$0xff]  }
 0x255   :  { %5634 = vmatprep.subr.bf16.mxu1 %v7656_v55  ;;  %v5911_v58 = vmax.f32 %v5372_v16, 0.0  ;;  %v5374_v5 = vadd.f32 %v5373_v2, %v5333_v59  ;;  %v7719_v53 = vld [vmem:[%s10579_s1 + $0xf8c] ss:$16 sps:$4 sm:$0xff]   ;;  %v7714_v55 = vld [vmem:[%s10579_s1 + $0xd08] ss:$16 sps:$4 sm:$0xff]  }
 0x256   :  { %v5375_v8 = vpop.f32.mrf.mxu0  ;;  %v7722_v57 = vld [vmem:[%s10579_s1 + $0xf6c] ss:$16 sps:$4 sm:$0xff]   ;;  %v7720_v59 = vld [vmem:[%s10579_s1 + $0xf68] ss:$16 sps:$4 sm:$0xff]  }
 0x257   :  { %5915 = vst [vmem:[%s10582_s3] sm:$0xff] %v5911_v58  ;;  %v5912_v11 = vmax.f32 %v5374_v5, 0.0  ;;  %5668 = vmatpush1.bf16.msra.mxu0 %v7657_v60  ;;  %v7725_v56 = vld [vmem:[%s10579_s1 + $0x10ec] ss:$16 sps:$4 sm:$0xff]   ;;  %v7723_v16 = vld [vmem:[%s10579_s1 + $0x10e8] ss:$16 sps:$4 sm:$0xff]  }
 0x258   :  { %5635 = vmatpush1.bf16.msra.mxu1 %v7654_v15  ;;  %v5376_v12 = vpop.f32.mrf.mxu0  ;;  %5669 = vmatprep.subr.bf16.mxu0 %v7665_v39  ;;  %v7728_v15 = vld [vmem:[%s10579_s1 + $0xf4c] ss:$16 sps:$4 sm:$0xff]   ;;  %v7729_v39 = vld [vmem:[%s10579_s1 + $0x10c8] ss:$16 sps:$4 sm:$0xff]  }
 0x259   :  { %5636 = vmatprep.subr.bf16.mxu1 %v7662_v3  ;;  %5916 = vst [vmem:[%s10582_s3 + $0x8] sm:$0xff] %v5912_v11  ;;  %v7731_v60 = vld [vmem:[%s10579_s1 + $0x10cc] ss:$16 sps:$4 sm:$0xff]   ;;  %v7726_v3 = vld [vmem:[%s10579_s1 + $0xf48] ss:$16 sps:$4 sm:$0xff]  }
 0x25a   :  { %v7734_v5 = vld [vmem:[%s10579_s1 + $0xf2c] ss:$16 sps:$4 sm:$0xff]   ;;  %v7732_v11 = vld [vmem:[%s10579_s1 + $0xf28] ss:$16 sps:$4 sm:$0xff]  }
 0x25b   :  { %5670 = vmatpush1.bf16.msra.mxu0 %v7663_v27  ;;  %v7740_v12 = vld [vmem:[%s10579_s1 + $0xf0c] ss:$16 sps:$4 sm:$0xff]  }
 0x25c   :  { %5637 = vmatpush1.bf16.msra.mxu1 %v7660_v24  ;;  %5671 = vmatprep.subr.bf16.mxu0 %v7671_v13  ;;  %v7735_v24 = vld [vmem:[%s10579_s1 + $0x10a8] ss:$16 sps:$4 sm:$0xff]   ;;  %v828_v13 = vsub.s32 3, %v8816_v54 }
 0x25d   :  { %5638 = vmatprep.subr.bf16.mxu1 %v7668_v43  ;;  %v824_v43 = vsub.s32 2, %v8816_v54  ;;  %v7749_v54 = vld [vmem:[%s10579_s1 + $0x12ec] ss:$16 sps:$4 sm:$0xff]  }
 0x25f   :  { %5672 = vmatpush1.bf16.msra.mxu0 %v7669_v6  ;;  %v7741_v6 = vld [vmem:[%s10579_s1 + $0x1088] ss:$16 sps:$4 sm:$0xff]  }
 0x260   :  { %5639 = vmatpush1.bf16.msra.mxu1 %v7666_v14  ;;  %5673 = vmatprep.subr.bf16.mxu0 %v7677_v26  ;;  %v7738_v14 = vld [vmem:[%s10579_s1 + $0xf08] ss:$16 sps:$4 sm:$0xff]   ;;  %v7936_v26 = vld [vmem:[%s10581_s2] sm:$0xf] }
 0x261   :  { %5640 = vmatprep.subr.bf16.mxu1 %v7674_v19  ;;  %v7746_v19 = vld [vmem:[%s10579_s1 + $0x106c] ss:$16 sps:$4 sm:$0xff]  }
 0x263   :  { %5674 = vmatpush1.bf16.msra.mxu0 %v7675_v20  ;;  %v829_v20 = vrot.slane %v7936_v26, %v828_v13  ;;  %v7807_v13 = vld [vmem:[%s10579_s1 + $0x13a8] ss:$16 sps:$4 sm:$0xff]  }
 0x264   :  { %5641 = vmatpush2.bf16.msra.mxu1 %v7672_v18  ;;  %5675 = vmatprep.subr.bf16.mxu0 %v7683_v28  ;;  %v825_v18 = vrot.slane %v7936_v26, %v824_v43  ;;  %v7747_v28 = vld [vmem:[%s10579_s1 + $0x12e8] ss:$16 sps:$4 sm:$0xff]   ;;  %v7818_v26 = vld [vmem:[%s10579_s1 + $0x136c] ss:$16 sps:$4 sm:$0xff]  }
 0x265   :  { %5642 = vmatprep.subr.bf16.mxu1 %v7680_v29  ;;  %v7744_v29 = vld [vmem:[%s10579_s1 + $0x1068] ss:$16 sps:$4 sm:$0xff]  }
 0x266   :  { %v7804_v43 = vld [vmem:[%s10579_s1 + $0x1128] ss:$16 sps:$4 sm:$0xff]  }
 0x267   :  { %5676 = vmatpush1.bf16.msra.mxu0 %v7681_v17  ;;  %v7755_v17 = vld [vmem:[%s10579_s1 + $0x12cc] ss:$16 sps:$4 sm:$0xff]  }
 0x268   :  { %5643 = vmatpush2.bf16.msra.mxu1 %v7678_v31  ;;  %5677 = vmatprep.subr.bf16.mxu0 %v7689_v36  ;;  %v7752_v31 = vld [vmem:[%s10579_s1 + $0x104c] ss:$16 sps:$4 sm:$0xff]  }
 0x269   :  { %5644 = vmatprep.subr.bf16.mxu1 %v7686_v30 }
 0x26b   :  { %5678 = vmatpush1.bf16.msra.mxu0 %v7687_v25 }
 0x26c   :  { %5645 = vmatpush2.bf16.msra.mxu1 %v7684_v32  ;;  %5679 = vmatprep.subr.bf16.mxu0 %v7695_v38  ;;  %v7753_v38 = vld [vmem:[%s10579_s1 + $0x12c8] ss:$16 sps:$4 sm:$0xff]  }
 0x26d   :  { %5646 = vmatprep.subr.bf16.mxu1 %v7692_v33  ;;  %v7750_v33 = vld [vmem:[%s10579_s1 + $0x1048] ss:$16 sps:$4 sm:$0xff]  }
 0x26f   :  { %5680 = vmatpush1.bf16.msra.mxu0 %v7693_v34  ;;  %v7761_v34 = vld [vmem:[%s10579_s1 + $0x12ac] ss:$16 sps:$4 sm:$0xff]  }
 0x270   :  { %5647 = vmatpush2.bf16.msra.mxu1 %v7690_v47  ;;  %5681 = vmatprep.subr.bf16.mxu0 %v7701_v22 }
 0x271   :  { %5648 = vmatprep.subr.bf16.mxu1 %v7698_v41 }
 0x273   :  { %5682 = vmatpush2.bf16.msra.mxu0 %v7699_v44  ;;  %v7759_v44 = vld [vmem:[%s10579_s1 + $0x12a8] ss:$16 sps:$4 sm:$0xff]  }
 0x274   :  { %5649 = vmatpush2.bf16.msra.mxu1 %v7696_v23  ;;  %5683 = vmatprep.subr.bf16.mxu0 %v7707_v45  ;;  %v7756_v23 = vld [vmem:[%s10579_s1 + $0x1028] ss:$16 sps:$4 sm:$0xff]   ;;  %v7764_v45 = vld [vmem:[%s10579_s1 + $0x100c] ss:$16 sps:$4 sm:$0xff]  }
 0x275   :  { %5650 = vmatprep.subr.bf16.mxu1 %v7704_v42 }
 0x277   :  { %5684 = vmatpush2.bf16.msra.mxu0 %v7705_v7  ;;  %v7765_v7 = vld [vmem:[%s10579_s1 + $0x1288] ss:$16 sps:$4 sm:$0xff]  }
 0x278   :  { %5651 = vmatpush2.bf16.msra.mxu1 %v7702_v46  ;;  %5685 = vmatprep.subr.bf16.mxu0 %v7713_v49  ;;  %v7762_v46 = vld [vmem:[%s10579_s1 + $0x1008] ss:$16 sps:$4 sm:$0xff]   ;;  %v7773_v49 = vld [vmem:[%s10579_s1 + $0x126c] ss:$16 sps:$4 sm:$0xff]  }
 0x279   :  { %5652 = vmatprep.subr.bf16.mxu1 %v7710_v48  ;;  %v7770_v48 = vld [vmem:[%s10579_s1 + $0x11ec] ss:$16 sps:$4 sm:$0xff]  }
 0x27b   :  { %5686 = vmatpush2.bf16.msra.mxu0 %v7711_v37  ;;  %v7771_v37 = vld [vmem:[%s10579_s1 + $0x1268] ss:$16 sps:$4 sm:$0xff]  }
 0x27c   :  { %5653 = vmatpush2.bf16.msra.mxu1 %v7708_v50  ;;  %5687 = vmatprep.subr.bf16.mxu0 %v7719_v53  ;;  %v7768_v50 = vld [vmem:[%s10579_s1 + $0x11e8] ss:$16 sps:$4 sm:$0xff]   ;;  %v7779_v53 = vld [vmem:[%s10579_s1 + $0x124c] ss:$16 sps:$4 sm:$0xff]  }
 0x27d   :  { %5654 = vmatprep.subr.bf16.mxu1 %v7716_v52  ;;  %v7776_v52 = vld [vmem:[%s10579_s1 + $0x11cc] ss:$16 sps:$4 sm:$0xff]  }
 0x27f   :  { %5688 = vmatpush2.bf16.msra.mxu0 %v7717_v51  ;;  %v7777_v51 = vld [vmem:[%s10579_s1 + $0x1248] ss:$16 sps:$4 sm:$0xff]  }
 0x280   :  { %5655 = vmatpush2.bf16.msra.mxu1 %v7714_v55  ;;  %5689 = vmatprep.subr.bf16.mxu0 %v7722_v57  ;;  %v7774_v55 = vld [vmem:[%s10579_s1 + $0x11c8] ss:$16 sps:$4 sm:$0xff]   ;;  %v7782_v57 = vld [vmem:[%s10579_s1 + $0x11ac] ss:$16 sps:$4 sm:$0xff]  }
 0x281   :  { %5706 = vmatprep.subr.bf16.mxu1 %v7725_v56  ;;  %v7785_v56 = vld [vmem:[%s10579_s1 + $0x122c] ss:$16 sps:$4 sm:$0xff]  }
 0x283   :  { %v5412_v2 = vpop.f32.mrf.mxu1  ;;  %5657 = vmatmul.mubr.bf16.vlgmr.msra.gmra.mxu1 %v8843_v0  ;;  %5690 = vmatpush2.bf16.msra.mxu0 %v7720_v59  ;;  %v7737_v0 = vld [vmem:[%s10579_s1 + $0x10ac] ss:$16 sps:$4 sm:$0xff]   ;;  %v7780_v59 = vld [vmem:[%s10579_s1 + $0x11a8] ss:$16 sps:$4 sm:$0xff]  }
 0x284   :  { %5707 = vmatpush1.bf16.msra.mxu1 %v7723_v16  ;;  %5691 = vmatprep.subr.bf16.mxu0 %v7728_v15  ;;  %v5413_v30 = vadd.f32 %v5412_v2, %v825_v18  ;;  %v7783_v16 = vld [vmem:[%s10579_s1 + $0x1228] ss:$16 sps:$4 sm:$0xff]   ;;  %v7788_v15 = vld [vmem:[%s10579_s1 + $0x118c] ss:$16 sps:$4 sm:$0xff]  }
 0x285   :  { %v5414_v58 = vpop.f32.mrf.mxu1  ;;  %5708 = vmatprep.subr.bf16.mxu1 %v7731_v60  ;;  %5738 = vmatprep.mubr.bf16.mxu1 %v8870_v9  ;;  %v7743_v9 = vld [vmem:[%s10579_s1 + $0x108c] ss:$16 sps:$4 sm:$0xff]   ;;  %v7786_v2 = vld [vmem:[%s10579_s1 + $0x1188] ss:$16 sps:$4 sm:$0xff]  }
 0x286   :  { %v5415_v32 = vadd.f32 %v5414_v58, %v829_v20  ;;  %v7791_v60 = vld [vmem:[%s10579_s1 + $0x120c] ss:$16 sps:$4 sm:$0xff]   ;;  %v7816_v20 = vld [vmem:[%s10579_s1 + $0x1368] ss:$16 sps:$4 sm:$0xff]  }
 0x287   :  { %v5416_v8 = vpop.f32.mrf.mxu1  ;;  %5692 = vmatpush2.bf16.msra.mxu0 %v7726_v3  ;;  %v7789_v3 = vld [vmem:[%s10579_s1 + $0x1208] ss:$16 sps:$4 sm:$0xff]   ;;  %v7797_v58 = vld [vmem:[%s10579_s1 + $0x13ec] ss:$16 sps:$4 sm:$0xff]  }
 0x288   :  { %5709 = vmatpush1.bf16.msra.mxu1 %v7729_v39  ;;  %5693 = vmatprep.subr.bf16.mxu0 %v7734_v5  ;;  %v7794_v39 = vld [vmem:[%s10579_s1 + $0x116c] ss:$16 sps:$4 sm:$0xff]   ;;  %v7792_v5 = vld [vmem:[%s10579_s1 + $0x1168] ss:$16 sps:$4 sm:$0xff]  }
 0x289   :  { %v5417_v27 = vpop.f32.mrf.mxu1  ;;  %5710 = vmatprep.subr.bf16.mxu1 %v7737_v0  ;;  %v7795_v0 = vld [vmem:[%s10579_s1 + $0x13e8] ss:$16 sps:$4 sm:$0xff]   ;;  %v7800_v8 = vld [vmem:[%s10579_s1 + $0x114c] ss:$16 sps:$4 sm:$0xff]  }
 0x28a   :  { %v7801_v27 = vld [vmem:[%s10579_s1 + $0x13c8] ss:$16 sps:$4 sm:$0xff]   ;;  %v7821_v18 = vld [vmem:[%s10579_s1 + $0x14ec] ss:$16 sps:$4 sm:$0xff]  }
 0x28b   :  { %5694 = vmatpush2.bf16.msra.mxu0 %v7732_v11  ;;  %v7803_v11 = vld [vmem:[%s10579_s1 + $0x13cc] ss:$16 sps:$4 sm:$0xff]  }
 0x28c   :  { %5711 = vmatpush1.bf16.msra.mxu1 %v7735_v24  ;;  %5695 = vmatprep.subr.bf16.mxu0 %v7740_v12  ;;  %v7798_v24 = vld [vmem:[%s10579_s1 + $0x1148] ss:$16 sps:$4 sm:$0xff]   ;;  %v7806_v12 = vld [vmem:[%s10579_s1 + $0x112c] ss:$16 sps:$4 sm:$0xff]  }
 0x28d   :  { %5712 = vmatprep.subr.bf16.mxu1 %v7743_v9  ;;  %v7809_v9 = vld [vmem:[%s10579_s1 + $0x13ac] ss:$16 sps:$4 sm:$0xff]  }
 0x28f   :  { %5696 = vmatpush2.bf16.msra.mxu0 %v7738_v14  ;;  %v7812_v14 = vld [vmem:[%s10579_s1 + $0x110c] ss:$16 sps:$4 sm:$0xff]  }
 0x290   :  { %5713 = vmatpush1.bf16.msra.mxu1 %v7741_v6  ;;  %5747 = vmatprep.subr.bf16.mxu0 %v7749_v54  ;;  %v7815_v6 = vld [vmem:[%s10579_s1 + $0x138c] ss:$16 sps:$4 sm:$0xff]   ;;  %v7813_v54 = vld [vmem:[%s10579_s1 + $0x1388] ss:$16 sps:$4 sm:$0xff]  }
 0x291   :  { %5714 = vmatprep.subr.bf16.mxu1 %v7746_v19  ;;  %v7810_v19 = vld [vmem:[%s10579_s1 + $0x1108] ss:$16 sps:$4 sm:$0xff]  }
 0x292   :  { %v5453_v36 = vpop.f32.mrf.mxu0  ;;  %5698 = vmatmul.mubr.bf16.vlgmr.msra.gmra.mxu0 %v8847_v1  ;;  %v7758_v1 = vld [vmem:[%s10579_s1 + $0x102c] ss:$16 sps:$4 sm:$0xff]  }
 0x293   :  { %v10183_v25 = vadd.f32 %v5453_v36, %v5413_v30  ;;  %5748 = vmatpush1.bf16.msra.mxu0 %v7747_v28  ;;  %5779 = vmatprep.mubr.bf16.mxu0 %v8874_v10  ;;  %v7767_v10 = vld [vmem:[%s10579_s1 + $0x128c] ss:$16 sps:$4 sm:$0xff]   ;;  %v7822_v36 = vld [vmem:[%s10579_s1 + $0x1348] ss:$16 sps:$4 sm:$0xff]  }
 0x294   :  { %5715 = vmatpush1.bf16.msra.mxu1 %v7744_v29  ;;  %v5455_v47 = vpop.f32.mrf.mxu0  ;;  %5749 = vmatprep.subr.bf16.mxu0 %v7755_v17  ;;  %v7819_v29 = vld [vmem:[%s10579_s1 + $0x14e8] ss:$16 sps:$4 sm:$0xff]   ;;  %v7824_v28 = vld [vmem:[%s10579_s1 + $0x134c] ss:$16 sps:$4 sm:$0xff]  }
 0x295   :  { %5716 = vmatprep.subr.bf16.mxu1 %v7752_v31  ;;  %v10197_v41 = vadd.f32 %v5455_v47, %v5415_v32  ;;  %v7827_v31 = vld [vmem:[%s10579_s1 + $0x14cc] ss:$16 sps:$4 sm:$0xff]   ;;  %v7825_v32 = vld [vmem:[%s10579_s1 + $0x14c8] ss:$16 sps:$4 sm:$0xff]  }
 0x296   :  { %v5457_v22 = vpop.f32.mrf.mxu0 }
 0x297   :  { %5750 = vmatpush1.bf16.msra.mxu0 %v7753_v38  ;;  %v7830_v38 = vld [vmem:[%s10579_s1 + $0x132c] ss:$16 sps:$4 sm:$0xff]  }
 0x298   :  { %5717 = vmatpush1.bf16.msra.mxu1 %v7750_v33  ;;  %v5458_v42 = vpop.f32.mrf.mxu0  ;;  %5751 = vmatprep.subr.bf16.mxu0 %v7761_v34  ;;  %v7831_v34 = vld [vmem:[%s10579_s1 + $0x14a8] ss:$16 sps:$4 sm:$0xff]  }
 0x299   :  { %5718 = vmatprep.subr.bf16.mxu1 %v7758_v1  ;;  %v7828_v1 = vld [vmem:[%s10579_s1 + $0x1328] ss:$16 sps:$4 sm:$0xff]   ;;  %v7842_v42 = vld [vmem:[%s10579_s1 + $0x146c] ss:$16 sps:$4 sm:$0xff]  }
 0x29b   :  { %5752 = vmatpush1.bf16.msra.mxu0 %v7759_v44  ;;  %v7837_v44 = vld [vmem:[%s10579_s1 + $0x1488] ss:$16 sps:$4 sm:$0xff]  }
 0x29c   :  { %5719 = vmatpush1.bf16.msra.mxu1 %v7756_v23  ;;  %5753 = vmatprep.subr.bf16.mxu0 %v7767_v10  ;;  %v7834_v23 = vld [vmem:[%s10579_s1 + $0x1308] ss:$16 sps:$4 sm:$0xff]  }
 0x29d   :  { %5720 = vmatprep.subr.bf16.mxu1 %v7764_v45  ;;  %v7845_v45 = vld [vmem:[%s10579_s1 + $0x16ec] ss:$16 sps:$4 sm:$0xff]   ;;  %v7840_v10 = vld [vmem:[%s10579_s1 + $0x1468] ss:$16 sps:$4 sm:$0xff]  }
 0x29f   :  { %5754 = vmatpush1.bf16.msra.mxu0 %v7765_v7  ;;  %v7848_v7 = vld [vmem:[%s10579_s1 + $0x144c] ss:$16 sps:$4 sm:$0xff]  }
 0x2a0   :  { %5721 = vmatpush1.bf16.msra.mxu1 %v7762_v46  ;;  %5755 = vmatprep.subr.bf16.mxu0 %v7773_v49  ;;  %v7843_v46 = vld [vmem:[%s10579_s1 + $0x16e8] ss:$16 sps:$4 sm:$0xff]  }
 0x2a1   :  { %5722 = vmatprep.subr.bf16.mxu1 %v7770_v48  ;;  %v7851_v48 = vld [vmem:[%s10579_s1 + $0x16cc] ss:$16 sps:$4 sm:$0xff]  }
 0x2a3   :  { %5756 = vmatpush1.bf16.msra.mxu0 %v7771_v37  ;;  %v7846_v37 = vld [vmem:[%s10579_s1 + $0x1448] ss:$16 sps:$4 sm:$0xff]  }
 0x2a4   :  { %5723 = vmatpush2.bf16.msra.mxu1 %v7768_v50  ;;  %5757 = vmatprep.subr.bf16.mxu0 %v7779_v53 }
 0x2a5   :  { %5724 = vmatprep.subr.bf16.mxu1 %v7776_v52  ;;  %v7849_v52 = vld [vmem:[%s10579_s1 + $0x16c8] ss:$16 sps:$4 sm:$0xff]  }
 0x2a7   :  { %5758 = vmatpush1.bf16.msra.mxu0 %v7777_v51 }
 0x2a8   :  { %5725 = vmatpush2.bf16.msra.mxu1 %v7774_v55  ;;  %5759 = vmatprep.subr.bf16.mxu0 %v7785_v56  ;;  %v7854_v55 = vld [vmem:[%s10579_s1 + $0x142c] ss:$16 sps:$4 sm:$0xff]   ;;  %v7852_v56 = vld [vmem:[%s10579_s1 + $0x1428] ss:$16 sps:$4 sm:$0xff]  }
 0x2a9   :  { %5726 = vmatprep.subr.bf16.mxu1 %v7782_v57 }
 0x2ab   :  { %5760 = vmatpush1.bf16.msra.mxu0 %v7783_v16 }
 0x2ac   :  { %5727 = vmatpush2.bf16.msra.mxu1 %v7780_v59  ;;  %5761 = vmatprep.subr.bf16.mxu0 %v7791_v60  ;;  %v7855_v59 = vld [vmem:[%s10579_s1 + $0x16a8] ss:$16 sps:$4 sm:$0xff]  }
 0x2ad   :  { %5728 = vmatprep.subr.bf16.mxu1 %v7788_v15  ;;  %v7860_v15 = vld [vmem:[%s10579_s1 + $0x140c] ss:$16 sps:$4 sm:$0xff]   ;;  %v7858_v60 = vld [vmem:[%s10579_s1 + $0x1408] ss:$16 sps:$4 sm:$0xff]  }
 0x2af   :  { %5762 = vmatpush1.bf16.msra.mxu0 %v7789_v3  ;;  %v7866_v3 = vld [vmem:[%s10579_s1 + $0x15ec] ss:$16 sps:$4 sm:$0xff]  }
 0x2b0   :  { %5729 = vmatpush2.bf16.msra.mxu1 %v7786_v2  ;;  %5763 = vmatprep.subr.bf16.mxu0 %v7797_v58  ;;  %v7861_v2 = vld [vmem:[%s10579_s1 + $0x1688] ss:$16 sps:$4 sm:$0xff]  }
 0x2b1   :  { %5730 = vmatprep.subr.bf16.mxu1 %v7794_v39  ;;  %v7869_v39 = vld [vmem:[%s10579_s1 + $0x166c] ss:$16 sps:$4 sm:$0xff]   ;;  %v7864_v58 = vld [vmem:[%s10579_s1 + $0x15e8] ss:$16 sps:$4 sm:$0xff]  }
 0x2b3   :  { %5764 = vmatpush2.bf16.msra.mxu0 %v7795_v0  ;;  %v7872_v0 = vld [vmem:[%s10579_s1 + $0x15cc] ss:$16 sps:$4 sm:$0xff]  }
 0x2b4   :  { %5731 = vmatpush2.bf16.msra.mxu1 %v7792_v5  ;;  %5765 = vmatprep.subr.bf16.mxu0 %v7803_v11  ;;  %v7867_v5 = vld [vmem:[%s10579_s1 + $0x1668] ss:$16 sps:$4 sm:$0xff]  }
 0x2b5   :  { %5732 = vmatprep.subr.bf16.mxu1 %v7800_v8  ;;  %v7875_v8 = vld [vmem:[%s10579_s1 + $0x164c] ss:$16 sps:$4 sm:$0xff]   ;;  %v7870_v11 = vld [vmem:[%s10579_s1 + $0x15c8] ss:$16 sps:$4 sm:$0xff]  }
 0x2b7   :  { %5766 = vmatpush2.bf16.msra.mxu0 %v7801_v27  ;;  %v7878_v27 = vld [vmem:[%s10579_s1 + $0x15ac] ss:$16 sps:$4 sm:$0xff]  }
 0x2b8   :  { %5733 = vmatpush2.bf16.msra.mxu1 %v7798_v24  ;;  %5767 = vmatprep.subr.bf16.mxu0 %v7809_v9  ;;  %v7873_v24 = vld [vmem:[%s10579_s1 + $0x1648] ss:$16 sps:$4 sm:$0xff]  }
 0x2b9   :  { %5734 = vmatprep.subr.bf16.mxu1 %v7806_v12  ;;  %v7881_v12 = vld [vmem:[%s10579_s1 + $0x162c] ss:$16 sps:$4 sm:$0xff]   ;;  %v7876_v9 = vld [vmem:[%s10579_s1 + $0x15a8] ss:$16 sps:$4 sm:$0xff]  }
 0x2bb   :  { %5768 = vmatpush2.bf16.msra.mxu0 %v7807_v13  ;;  %v7884_v13 = vld [vmem:[%s10579_s1 + $0x158c] ss:$16 sps:$4 sm:$0xff]  }
 0x2bc   :  { %5735 = vmatpush2.bf16.msra.mxu1 %v7804_v43  ;;  %5769 = vmatprep.subr.bf16.mxu0 %v7815_v6  ;;  %v7879_v43 = vld [vmem:[%s10579_s1 + $0x1628] ss:$16 sps:$4 sm:$0xff]  }
 0x2bd   :  { %5736 = vmatprep.subr.bf16.mxu1 %v7812_v14  ;;  %v7887_v14 = vld [vmem:[%s10579_s1 + $0x160c] ss:$16 sps:$4 sm:$0xff]   ;;  %v7882_v6 = vld [vmem:[%s10579_s1 + $0x1588] ss:$16 sps:$4 sm:$0xff]  }
 0x2bf   :  { %5770 = vmatpush2.bf16.msra.mxu0 %v7813_v54  ;;  %v7890_v54 = vld [vmem:[%s10579_s1 + $0x156c] ss:$16 sps:$4 sm:$0xff]  }
 0x2c0   :  { %5737 = vmatpush2.bf16.msra.mxu1 %v7810_v19  ;;  %5771 = vmatprep.subr.bf16.mxu0 %v7818_v26  ;;  %v7885_v19 = vld [vmem:[%s10579_s1 + $0x1608] ss:$16 sps:$4 sm:$0xff]   ;;  %v7893_v26 = vld [vmem:[%s10579_s1 + $0x17ec] ss:$16 sps:$4 sm:$0xff]  }
 0x2c1   :  { %5788 = vmatprep.subr.bf16.mxu1 %v7821_v18  ;;  %v7888_v18 = vld [vmem:[%s10579_s1 + $0x1568] ss:$16 sps:$4 sm:$0xff]  }
 0x2c3   :  { %v5494_v17 = vpop.f32.mrf.mxu1  ;;  %5739 = vmatmul.mubr.bf16.vlgmr.msra.gmra.mxu1 %v9082_v61  ;;  %5772 = vmatpush2.bf16.msra.mxu0 %v7816_v20  ;;  %v7833_v61 = vld [vmem:[%s10579_s1 + $0x14ac] ss:$16 sps:$4 sm:$0xff]   ;;  %v7891_v20 = vld [vmem:[%s10579_s1 + $0x17e8] ss:$16 sps:$4 sm:$0xff]  }
 0x2c4   :  { %v5495_v30 = vadd.f32 %v5494_v17, %v10183_v25  ;;  %5789 = vmatpush1.bf16.msra.mxu1 %v7819_v29  ;;  %5773 = vmatprep.subr.bf16.mxu0 %v7824_v28  ;;  %v7896_v29 = vld [vmem:[%s10579_s1 + $0x154c] ss:$16 sps:$4 sm:$0xff]   ;;  %v7897_v17 = vld [vmem:[%s10579_s1 + $0x17c8] ss:$16 sps:$4 sm:$0xff]  }
 0x2c5   :  { %v5496_v33 = vpop.f32.mrf.mxu1  ;;  %5790 = vmatprep.subr.bf16.mxu1 %v7827_v31  ;;  %5820 = vmatprep.mubr.bf16.mxu1 %v9102_v35  ;;  %v7839_v35 = vld [vmem:[%s10579_s1 + $0x148c] ss:$16 sps:$4 sm:$0xff]   ;;  %v7894_v31 = vld [vmem:[%s10579_s1 + $0x1548] ss:$16 sps:$4 sm:$0xff]  }
 0x2c6   :  { %v5497_v25 = vadd.f32 %v5496_v33, %v10197_v41  ;;  %v7836_v41 = vld [vmem:[%s10579_s1 + $0x130c] ss:$16 sps:$4 sm:$0xff]   ;;  %v7903_v33 = vld [vmem:[%s10579_s1 + $0x17a8] ss:$16 sps:$4 sm:$0xff]  }
 0x2c7   :  { %v5498_v47 = vpop.f32.mrf.mxu1  ;;  %5774 = vmatpush2.bf16.msra.mxu0 %v7822_v36  ;;  %v7899_v28 = vld [vmem:[%s10579_s1 + $0x17cc] ss:$16 sps:$4 sm:$0xff]  }
 0x2c8   :  { %5791 = vmatpush1.bf16.msra.mxu1 %v7825_v32  ;;  %5775 = vmatprep.subr.bf16.mxu0 %v7830_v38  ;;  %v7905_v36 = vld [vmem:[%s10579_s1 + $0x17ac] ss:$16 sps:$4 sm:$0xff]   ;;  %v7900_v32 = vld [vmem:[%s10579_s1 + $0x1528] ss:$16 sps:$4 sm:$0xff]  }
 0x2c9   :  { %v5499_v22 = vpop.f32.mrf.mxu1  ;;  %5792 = vmatprep.subr.bf16.mxu1 %v7833_v61  ;;  %v7908_v38 = vld [vmem:[%s10579_s1 + $0x150c] ss:$16 sps:$4 sm:$0xff]   ;;  %v7909_v47 = vld [vmem:[%s10579_s1 + $0x1788] ss:$16 sps:$4 sm:$0xff]  }
 0x2ca   :  { %v7911_v61 = vld [vmem:[%s10579_s1 + $0x178c] ss:$16 sps:$4 sm:$0xff]   ;;  %v7912_v22 = vld [vmem:[%s10579_s1 + $0x1768] ss:$16 sps:$4 sm:$0xff]  }
 0x2cb   :  { %5776 = vmatpush2.bf16.msra.mxu0 %v7828_v1  ;;  %v7914_v1 = vld [vmem:[%s10579_s1 + $0x176c] ss:$16 sps:$4 sm:$0xff]  }
 0x2cc   :  { %5793 = vmatpush1.bf16.msra.mxu1 %v7831_v34  ;;  %5777 = vmatprep.subr.bf16.mxu0 %v7836_v41  ;;  %v7917_v34 = vld [vmem:[%s10579_s1 + $0x186c] ss:$16 sps:$4 sm:$0xff]   ;;  %v7915_v41 = vld [vmem:[%s10579_s1 + $0x1868] ss:$16 sps:$4 sm:$0xff]  }
 0x2cd   :  { %5794 = vmatprep.subr.bf16.mxu1 %v7839_v35  ;;  %v7920_v35 = vld [vmem:[%s10579_s1 + $0x174c] ss:$16 sps:$4 sm:$0xff]  }
 0x2cf   :  { %5778 = vmatpush2.bf16.msra.mxu0 %v7834_v23  ;;  %v7923_v23 = vld [vmem:[%s10579_s1 + $0x184c] ss:$16 sps:$4 sm:$0xff]  }
 0x2d0   :  { %5795 = vmatpush1.bf16.msra.mxu1 %v7837_v44  ;;  %5829 = vmatprep.subr.bf16.mxu0 %v7845_v45  ;;  %v7918_v45 = vld [vmem:[%s10579_s1 + $0x1748] ss:$16 sps:$4 sm:$0xff]  }
 0x2d1   :  { %5796 = vmatprep.subr.bf16.mxu1 %v7842_v42 }
 0x2d2   :  { %v5535_v49 = vpop.f32.mrf.mxu0  ;;  %5780 = vmatmul.mubr.bf16.vlgmr.msra.gmra.mxu0 %v9086_v62  ;;  %v7857_v62 = vld [vmem:[%s10579_s1 + $0x16ac] ss:$16 sps:$4 sm:$0xff]  }
 0x2d3   :  { %v10385_v50 = vadd.f32 %v5535_v49, %v5495_v30  ;;  %5830 = vmatpush1.bf16.msra.mxu0 %v7843_v46  ;;  %5861 = vmatprep.mubr.bf16.mxu0 %v9106_v40  ;;  %v7863_v40 = vld [vmem:[%s10579_s1 + $0x168c] ss:$16 sps:$4 sm:$0xff]  }
 0x2d4   :  { %5797 = vmatpush1.bf16.msra.mxu1 %v7840_v10  ;;  %v5537_v53 = vpop.f32.mrf.mxu0  ;;  %5831 = vmatprep.subr.bf16.mxu0 %v7851_v48  ;;  %v7902_v30 = vld [vmem:[%s10579_s1 + $0x152c] ss:$16 sps:$4 sm:$0xff]   ;;  %v7921_v10 = vld [vmem:[%s10579_s1 + $0x1848] ss:$16 sps:$4 sm:$0xff]  }
 0x2d5   :  { %5798 = vmatprep.subr.bf16.mxu1 %v7848_v7  ;;  %v10399_v51 = vadd.f32 %v5537_v53, %v5497_v25  ;;  %v7906_v25 = vld [vmem:[%s10579_s1 + $0x1508] ss:$16 sps:$4 sm:$0xff]   ;;  %v7926_v7 = vld [vmem:[%s10579_s1 + $0x172c] ss:$16 sps:$4 sm:$0xff]  }
 0x2d6   :  { %v5539_v57 = vpop.f32.mrf.mxu0  ;;  %v7932_v53 = vld [vmem:[%s10579_s1 + $0x170c] ss:$16 sps:$4 sm:$0xff]  }
 0x2d7   :  { %5832 = vmatpush1.bf16.msra.mxu0 %v7849_v52  ;;  %v7937_v57 = vld [vmem:[%s10580_s0 + $0x60] ss:$0 sps:$4 sm:$0xff]  }
 0x2d8   :  { %5799 = vmatpush1.bf16.msra.mxu1 %v7846_v37  ;;  %v5540_v16 = vpop.f32.mrf.mxu0  ;;  %5833 = vmatprep.subr.bf16.mxu0 %v7857_v62  ;;  %v7927_v37 = vld [vmem:[%s10579_s1 + $0x1828] ss:$16 sps:$4 sm:$0xff]  }
 0x2d9   :  { %5800 = vmatprep.subr.bf16.mxu1 %v7854_v55  ;;  %v7930_v55 = vld [vmem:[%s10579_s1 + $0x1708] ss:$16 sps:$4 sm:$0xff]  }
 0x2da   :  { %v7933_v62 = vld [vmem:[%s10579_s1 + $0x1808] ss:$16 sps:$4 sm:$0xff]  }
 0x2db   :  { %5834 = vmatpush1.bf16.msra.mxu0 %v7855_v59 }
 0x2dc   :  { %5801 = vmatpush1.bf16.msra.mxu1 %v7852_v56  ;;  %5835 = vmatprep.subr.bf16.mxu0 %v7863_v40 }
 0x2dd   :  { %5802 = vmatprep.subr.bf16.mxu1 %v7860_v15 }
 0x2df   :  { %5836 = vmatpush1.bf16.msra.mxu0 %v7861_v2 }
 0x2e0   :  { %5803 = vmatpush1.bf16.msra.mxu1 %v7858_v60  ;;  %5837 = vmatprep.subr.bf16.mxu0 %v7869_v39 }
 0x2e1   :  { %5804 = vmatprep.subr.bf16.mxu1 %v7866_v3 }
 0x2e3   :  { %5838 = vmatpush1.bf16.msra.mxu0 %v7867_v5 }
 0x2e4   :  { %5805 = vmatpush2.bf16.msra.mxu1 %v7864_v58  ;;  %5839 = vmatprep.subr.bf16.mxu0 %v7875_v8 }
 0x2e5   :  { %5806 = vmatprep.subr.bf16.mxu1 %v7872_v0 }
 0x2e7   :  { %5840 = vmatpush1.bf16.msra.mxu0 %v7873_v24 }
 0x2e8   :  { %5807 = vmatpush2.bf16.msra.mxu1 %v7870_v11  ;;  %5841 = vmatprep.subr.bf16.mxu0 %v7881_v12 }
 0x2e9   :  { %5808 = vmatprep.subr.bf16.mxu1 %v7878_v27 }
 0x2eb   :  { %5842 = vmatpush1.bf16.msra.mxu0 %v7879_v43 }
 0x2ec   :  { %5809 = vmatpush2.bf16.msra.mxu1 %v7876_v9  ;;  %5843 = vmatprep.subr.bf16.mxu0 %v7887_v14 }
 0x2ed   :  { %5810 = vmatprep.subr.bf16.mxu1 %v7884_v13 }
 0x2ef   :  { %5844 = vmatpush1.bf16.msra.mxu0 %v7885_v19 }
 0x2f0   :  { %5811 = vmatpush2.bf16.msra.mxu1 %v7882_v6  ;;  %5845 = vmatprep.subr.bf16.mxu0 %v7893_v26 }
 0x2f1   :  { %5812 = vmatprep.subr.bf16.mxu1 %v7890_v54 }
 0x2f3   :  { %5846 = vmatpush2.bf16.msra.mxu0 %v7891_v20 }
 0x2f4   :  { %5813 = vmatpush2.bf16.msra.mxu1 %v7888_v18  ;;  %5847 = vmatprep.subr.bf16.mxu0 %v7899_v28 }
 0x2f5   :  { %5814 = vmatprep.subr.bf16.mxu1 %v7896_v29 }
 0x2f7   :  { %5848 = vmatpush2.bf16.msra.mxu0 %v7897_v17 }
 0x2f8   :  { %5815 = vmatpush2.bf16.msra.mxu1 %v7894_v31  ;;  %5849 = vmatprep.subr.bf16.mxu0 %v7905_v36 }
 0x2f9   :  { %5816 = vmatprep.subr.bf16.mxu1 %v7902_v30 }
 0x2fb   :  { %5850 = vmatpush2.bf16.msra.mxu0 %v7903_v33 }
 0x2fc   :  { %5817 = vmatpush2.bf16.msra.mxu1 %v7900_v32  ;;  %5851 = vmatprep.subr.bf16.mxu0 %v7911_v61 }
 0x2fd   :  { %5818 = vmatprep.subr.bf16.mxu1 %v7908_v38 }
 0x2ff   :  { %5852 = vmatpush2.bf16.msra.mxu0 %v7909_v47 }
 0x300   :  { %5819 = vmatpush2.bf16.msra.mxu1 %v7906_v25  ;;  %5853 = vmatprep.subr.bf16.mxu0 %v7914_v1 }
 0x301   :  { %5878 = vmatprep.subr.bf16.mxu1 %v7917_v34 }
 0x303   :  { %v5576_v44 = vpop.f32.mrf.mxu1  ;;  %5821 = vmatmul.mubr.bf16.vlgmr.msra.gmra.mxu1 %v9300_v63  ;;  %5854 = vmatpush2.bf16.msra.mxu0 %v7912_v22  ;;  %v7929_v63 = vld [vmem:[%s10579_s1 + $0x182c] ss:$16 sps:$4 sm:$0xff]  }
 0x304   :  { %v5577_v42 = vadd.f32 %v5576_v44, %v10385_v50  ;;  %5879 = vmatpush1.bf16.msra.mxu1 %v7915_v41  ;;  %5855 = vmatprep.subr.bf16.mxu0 %v7920_v35  ;;  %v7924_v50 = vld [vmem:[%s10579_s1 + $0x1728] ss:$16 sps:$4 sm:$0xff]  }
 0x305   :  { %v5578_v46 = vpop.f32.mrf.mxu1  ;;  %5880 = vmatprep.subr.bf16.mxu1 %v7923_v23  ;;  %5902 = vmatprep.mubr.bf16.mxu1 %v7938_v21  ;;  %v7935_v21 = vld [vmem:[%s10579_s1 + $0x180c] ss:$16 sps:$4 sm:$0xff]  }
 0x306   :  { %v5579_v48 = vadd.f32 %v5578_v46, %v10399_v51 }
 0x307   :  { %v5580_v49 = vpop.f32.mrf.mxu1  ;;  %5856 = vmatpush2.bf16.msra.mxu0 %v7918_v45 }
 0x308   :  { %5881 = vmatpush1.bf16.msra.mxu1 %v7921_v10  ;;  %5857 = vmatprep.subr.bf16.mxu0 %v7926_v7 }
 0x309   :  { %v5581_v52 = vpop.f32.mrf.mxu1  ;;  %5882 = vmatprep.subr.bf16.mxu1 %v7929_v63 }
 0x30b   :  { %5858 = vmatpush2.bf16.msra.mxu0 %v7924_v50 }
 0x30c   :  { %5883 = vmatpush1.bf16.msra.mxu1 %v7927_v37  ;;  %5859 = vmatprep.subr.bf16.mxu0 %v7932_v53 }
 0x30d   :  { %5884 = vmatprep.subr.bf16.mxu1 %v7935_v21 }
 0x30f   :  { %5860 = vmatpush2.bf16.msra.mxu0 %v7930_v55 }
 0x310   :  { %5885 = vmatpush1.bf16.msra.mxu1 %v7933_v62 }
 0x312   :  { %v5617_v51 = vpop.f32.mrf.mxu0  ;;  %5862 = vmatmul.mubr.bf16.vlgmr.msra.gmra.mxu0 %v9304_v4 }
 0x313   :  { %6733 = vmatmul.mubr.msk.bf16.vlgmr.msra.gmra.mxu1 %vm4841_vm0, %v7937_v57  ;;  %v5618_v56 = vadd.f32 %v5617_v51, %v5577_v42 }
 0x314   :  { %v5619_v59 = vpop.f32.mrf.mxu0 }
 0x315   :  { %v5620_v16 = vadd.f32 %v5619_v59, %v5579_v48 }
 0x316   :  { %v5621_v15 = vpop.f32.mrf.mxu0 }
 0x318   :  { %v5622_v40 = vpop.f32.mrf.mxu0 }
 0x343   :  { %v5658_v60 = vpop.f32.mrf.mxu1 }
 0x344   :  { %v5659_v2 = vadd.f32 %v5658_v60, %v5618_v56 }
 0x345   :  { %v5660_v3 = vpop.f32.mrf.mxu1 }
 0x346   :  { %v5661_v39 = vadd.f32 %v5660_v3, %v5620_v16 }
 0x347   :  { %v5662_v58 = vpop.f32.mrf.mxu1 }
 0x349   :  { %v5663_v5 = vpop.f32.mrf.mxu1 }
 0x352   :  { %v5699_v0 = vpop.f32.mrf.mxu0 }
 0x353   :  { %v5700_v8 = vadd.f32 %v5699_v0, %v5659_v2 }
 0x354   :  { %v5701_v4 = vpop.f32.mrf.mxu0 }
 0x355   :  { %v5702_v11 = vadd.f32 %v5701_v4, %v5661_v39 }
 0x356   :  { %v5703_v24 = vpop.f32.mrf.mxu0 }
 0x358   :  { %v5704_v27 = vpop.f32.mrf.mxu0 }
 0x383   :  { %v5740_v12 = vpop.f32.mrf.mxu1 }
 0x384   :  { %v5741_v9 = vadd.f32 %v5740_v12, %v5700_v8 }
 0x385   :  { %v5742_v43 = vpop.f32.mrf.mxu1 }
 0x386   :  { %v5743_v13 = vadd.f32 %v5742_v43, %v5702_v11 }
 0x387   :  { %v5744_v14 = vpop.f32.mrf.mxu1 }
 0x389   :  { %v5745_v6 = vpop.f32.mrf.mxu1 }
 0x392   :  { %v5781_v19 = vpop.f32.mrf.mxu0 }
 0x393   :  { %v5782_v17 = vadd.f32 %v5781_v19, %v5741_v9 }
 0x394   :  { %v5783_v54 = vpop.f32.mrf.mxu0 }
 0x395   :  { %v5784_v30 = vadd.f32 %v5783_v54, %v5743_v13 }
 0x396   :  { %v5785_v26 = vpop.f32.mrf.mxu0 }
 0x398   :  { %v5786_v18 = vpop.f32.mrf.mxu0 }
 0x3c3   :  { %v5822_v20 = vpop.f32.mrf.mxu1 }
 0x3c4   :  { %v5823_v36 = vadd.f32 %v5822_v20, %v5782_v17 }
 0x3c5   :  { %v5824_v29 = vpop.f32.mrf.mxu1 }
 0x3c6   :  { %v5825_v38 = vadd.f32 %v5824_v29, %v5784_v30 }
 0x3c7   :  { %v5826_v28 = vpop.f32.mrf.mxu1 }
 0x3c9   :  { %v5827_v31 = vpop.f32.mrf.mxu1 }
 0x3d2   :  { %v5863_v32 = vpop.f32.mrf.mxu0 }
 0x3d3   :  { %v5904_v33 = vpop.f32.mrf.mxu1  ;;  %v5864_v61 = vadd.f32 %v5863_v32, %v5823_v36 }
 0x3d4   :  { %v5865_v25 = vpop.f32.mrf.mxu0 }
 0x3d5   :  { %v5906_v47 = vpop.f32.mrf.mxu1  ;;  %v5905_v1 = vadd.f32 %v5904_v33, %v5864_v61  ;;  %v5866_v34 = vadd.f32 %v5865_v25, %v5825_v38 }
 0x3d6   :  { %v5867_v22 = vpop.f32.mrf.mxu0 }
 0x3d7   :  { %v5908_v41 = vpop.f32.mrf.mxu1  ;;  %v5913_v35 = vmax.f32 %v5905_v1, 0.0  ;;  %v5907_v23 = vadd.f32 %v5906_v47, %v5866_v34 }
 0x3d8   :  { %v5868_v44 = vpop.f32.mrf.mxu0 }
 0x3d9   :  { %v5909_v42 = vpop.f32.mrf.mxu1  ;;  %5917 = vst [vmem:[%s10582_s3 + $0x10] sm:$0xff] %v5913_v35  ;;  %v5914_v45 = vmax.f32 %v5907_v23, 0.0 }
 0x3db   :  { %5918 = vst [vmem:[%s10582_s3 + $0x18] sm:$0xff] %v5914_v45 }

</bundles_post_ra>
